<compile_context>
chip_gen: v6e
topology: v6e:2x2x1
jax: 0.10.0
libtpu: 0.0.40
codegen_flags: <defaults>
</compile_context>

<pallas_src>
import functools

import jax
import jax.numpy as jnp
from jax import lax
from jax.experimental import pallas as pl
from jax.experimental.pallas import tpu as pltpu


def _round_up(x, m):
    return (x + m - 1) // m * m


def _stage1_kernel(x_ref, w_ref, b_ref, o_ref, xk_ref, acc_ref, *,
                   NB, H, W, Cin, Cout, H1, W1, H2, W2, Rows):
    """Fused ReLU -> maxpool(3,2) -> conv5x5(pad=2)+bias+ReLU -> maxpool(3,2)."""
    KC = 5 * Cin
    NBH1 = NB * H1
    M = W1 * NBH1

    # Width-halo bands of the im2col scratch (ow_pad in {0,1} and {W1+2, W1+3}).
    # Zeroed EVERY step (not gated on program_id -> safe under megacore sharding).
    xk_ref[0:2 * NBH1, :] = jnp.zeros((2 * NBH1, KC), xk_ref.dtype)
    tail0 = (W1 + 2) * NBH1
    xk_ref[tail0:, :] = jnp.zeros((Rows - tail0, KC), xk_ref.dtype)

    zpad2 = jnp.zeros((2, Cin), xk_ref.dtype)          # vertical conv halo (hoisted)

    # ---------------- pool1 (ReLU folded after max; max is monotone) + slab build
    for b in range(NB):
        xv = x_ref[b]                                              # (H, W, Cin) f32
        ha = jnp.max(xv[:2 * H1].reshape(H1, 2, W, Cin), axis=1)
        hb = jnp.max(xv[1:2 * H1 + 1].reshape(H1, 2, W, Cin), axis=1)
        xh = jnp.maximum(ha, hb)                                   # (H1, W, Cin)
        for ow in range(W1):
            col = jnp.max(xh[:, 2 * ow:2 * ow + 3, :], axis=1)     # (H1, Cin)
            col = jnp.maximum(col, 0.0).astype(xk_ref.dtype)       # ReLU + bf16 cast
            colp = jnp.concatenate([zpad2, col, zpad2], axis=0)    # (H1+4, Cin)
            # kh folded into lanes: blk[oh, kh*Cin + c] = colp[oh + kh, c]
            blk = jnp.concatenate([colp[kh:kh + H1] for kh in range(5)], axis=1)
            r0 = ((ow + 2) * NB + b) * H1
            xk_ref[r0:r0 + H1, :] = blk                            # one (H1, 5*Cin) store

    # ---------------- conv 5x5: five (M, 5*Cin) @ (5*Cin, Cout) MXU matmuls ------
    for kw in range(5):
        off = kw * NBH1
        d = jnp.dot(xk_ref[off:off + M, :], w_ref[kw],
                    preferred_element_type=jnp.float32)
        if kw == 0:
            acc_ref[...] = d
        else:
            acc_ref[...] += d

    # ---------------- bias + ReLU + pool2 (bias-add and ReLU commute with max) ---
    bias_row = b_ref[...]                                          # (1, Cout)
    out_rows = [[None] * (H2 * W2) for _ in range(NB)]
    for j in range(W2):
        w0 = 2 * j * NBH1
        cw = jnp.maximum(jnp.maximum(acc_ref[w0:w0 + NBH1],
                                     acc_ref[w0 + NBH1:w0 + 2 * NBH1]),
                         acc_ref[w0 + 2 * NBH1:w0 + 3 * NBH1])     # (NB*H1, Cout)
        cw = jnp.maximum(cw + bias_row, 0.0)                       # bias + ReLU fused
        for b in range(NB):
            for i in range(H2):
                s0 = b * H1 + 2 * i
                out_rows[b][i * W2 + j] = jnp.max(cw[s0:s0 + 3, :], axis=0,
                                                  keepdims=True)
    for b in range(NB):                                            # lane-dense stores
        o_ref[b] = jnp.concatenate(out_rows[b], axis=0).astype(o_ref.dtype)


def stage1_forward(x_nchw, w_oihw, bias, *, nb=4):
    """Stage1 forward, NCHW in / NCHW out (matches the PyTorch module)."""
    x = jnp.transpose(x_nchw, (0, 2, 3, 1)).astype(jnp.float32)    # NCHW -> NHWC
    N, H, W, Cin = x.shape
    Cout = w_oihw.shape[0]

    H1, W1 = (H - 3) // 2 + 1, (W - 3) // 2 + 1     # pool1 output spatial
    H2, W2 = (H1 - 3) // 2 + 1, (W1 - 3) // 2 + 1   # pool2 output spatial

    NB = min(nb, N)                                  # images per grid step
    Np = _round_up(N, NB)
    if Np != N:                                      # pad batch to a multiple of NB
        x = jnp.concatenate([x, jnp.zeros((Np - N, H, W, Cin), x.dtype)], axis=0)

    KC = 5 * Cin
    NBH1 = NB * H1
    M = W1 * NBH1                                    # matmul rows = valid conv pixels
    Rows = _round_up((W1 + 4) * NBH1, 16)            # im2col scratch rows (bf16 tile)

    # OIHW -> (kw, kh*Cin, Cout); bf16 operands for the MXU (f32 accumulation).
    wk = jnp.transpose(w_oihw, (3, 2, 1, 0)).reshape(5, KC, Cout).astype(jnp.bfloat16)
    b2 = bias.reshape(1, Cout).astype(jnp.float32)

    kernel = functools.partial(_stage1_kernel, NB=NB, H=H, W=W, Cin=Cin, Cout=Cout,
                               H1=H1, W1=W1, H2=H2, W2=W2, Rows=Rows)

    out = pl.pallas_call(
        kernel,
        out_shape=jax.ShapeDtypeStruct((Np, H2 * W2, Cout), jnp.float32),
        grid=(Np // NB,),
        in_specs=[
            pl.BlockSpec((NB, H, W, Cin), lambda g: (g, 0, 0, 0)),
            pl.BlockSpec((5, KC, Cout), lambda g: (0, 0, 0)),      # weights resident
            pl.BlockSpec((1, Cout), lambda g: (0, 0)),
        ],
        out_specs=pl.BlockSpec((NB, H2 * W2, Cout), lambda g: (g, 0, 0)),
        scratch_shapes=[pltpu.VMEM((Rows, KC), jnp.bfloat16),      # kh-im2col slab
                        pltpu.VMEM((M, Cout), jnp.float32)],       # conv accumulator
        compiler_params=pltpu.CompilerParams(dimension_semantics=("parallel",)),
    )(x, wk, b2)

    out = out[:N].reshape(N, H2, W2, Cout)
    return jnp.transpose(out, (0, 3, 1, 2))                        # NHWC -> NCHW


# Pure-JAX reference for correctness checking.
def stage1_reference(x_nchw, w_oihw, bias):
    x = jnp.transpose(x_nchw, (0, 2, 3, 1))
    x = jnp.maximum(x, 0.0)
    x = lax.reduce_window(x, -jnp.inf, lax.max, (1, 3, 3, 1), (1, 2, 2, 1), "VALID")
    w = jnp.transpose(w_oihw, (2, 3, 1, 0))
    x = lax.conv_general_dilated(x, w, (1, 1), [(2, 2), (2, 2)],
                                 dimension_numbers=("NHWC", "HWIO", "NHWC")) + bias
    x = jnp.maximum(x, 0.0)
    x = lax.reduce_window(x, -jnp.inf, lax.max, (1, 3, 3, 1), (1, 2, 2, 1), "VALID")
    return jnp.transpose(x, (0, 3, 1, 2))


if __name__ == "__main__":
    key = jax.random.PRNGKey(0)
    k1, k2, k3 = jax.random.split(key, 3)

    # Channels fixed by the module (64 -> 192); spatial kept small.
    # Input (N, 64, 13, 13) -> pool1 (6,6) -> conv (6,6) -> pool2 (2,2).
    # N=8 with NB=4 -> grid of 2 steps (both v7x TensorCores busy).
    N, C, H, W = 8, 64, 13, 13
    x_nchw = jax.random.normal(k1, (N, C, H, W), jnp.float32)
    conv_w = jax.random.normal(k2, (192, 64, 5, 5), jnp.float32) * 0.05  # OIHW
    conv_b = jax.random.normal(k3, (192,), jnp.float32) * 0.05

    fwd = jax.jit(stage1_forward)
    out = jax.block_until_ready(fwd(x_nchw, conv_w, conv_b))

    ref = stage1_reference(x_nchw, conv_w, conv_b)
    assert out.shape == (N, 192, 2, 2), out.shape
    # bf16 MXU operands (f32 accumulation) => relaxed tolerance vs. f32 reference.
    assert jnp.allclose(out, ref, atol=5e-2, rtol=3e-2), "mismatch vs. JAX reference"

    print("KERNEL_OK")
</pallas_src>

<mosaic_0001>
module attributes {stable_mosaic.version = 11 : i64} {
  func.func @_stage1_kernel(%arg0: i32, %arg1: memref<4x13x13x64xf32, #tpu.memory_space<vmem>>, %arg2: memref<5x320x192xbf16, #tpu.memory_space<vmem>>, %arg3: memref<1x192xf32, #tpu.memory_space<vmem>>, %arg4: memref<4x4x192xf32, #tpu.memory_space<vmem>>, %arg5: memref<240x320xbf16, #tpu.memory_space<vmem>>, %arg6: memref<144x192xf32, #tpu.memory_space<vmem>>) attributes {dimension_semantics = [#tpu.dimension_semantics<parallel>], iteration_bounds = array<i64: 2>, scalar_prefetch = 0 : i64, scratch_operands = 2 : i64, tpu.core_type = #tpu.core_type<tc>, window_params = [{transform_indices = @transform_0, window_bounds = array<i64: 4, 13, 13, 64>}, {pipeline_mode = #tpu.pipeline_mode<synchronous>, transform_indices = @transform_1, window_bounds = array<i64: 5, 320, 192>}, {pipeline_mode = #tpu.pipeline_mode<synchronous>, transform_indices = @transform_2, window_bounds = array<i64: 1, 192>}, {transform_indices = @transform_3, window_bounds = array<i64: 4, 4, 192>}]} {
    %cst = arith.constant 0.000000e+00 : bf16
    %0 = vector.broadcast %cst : bf16 to vector<48x320xbf16>
    %c0 = arith.constant 0 : index
    %c0_0 = arith.constant 0 : index
    %1 = vector.load %arg5[%c0, %c0_0] : memref<240x320xbf16, #tpu.memory_space<vmem>>, vector<48x320xbf16>
    tpu.vector_store %arg5[%c0, %c0_0], %0 {strides = array<i32>} : memref<240x320xbf16, #tpu.memory_space<vmem>>, vector<48x320xbf16>,
    %cst_1 = arith.constant 0.000000e+00 : bf16
    %2 = vector.broadcast %cst_1 : bf16 to vector<48x320xbf16>
    %c192 = arith.constant 192 : index
    %c0_2 = arith.constant 0 : index
    %3 = vector.load %arg5[%c192, %c0_2] : memref<240x320xbf16, #tpu.memory_space<vmem>>, vector<48x320xbf16>
    tpu.vector_store %arg5[%c192, %c0_2], %2 {strides = array<i32>} : memref<240x320xbf16, #tpu.memory_space<vmem>>, vector<48x320xbf16>,
    %cst_3 = arith.constant 0.000000e+00 : bf16
    %4 = vector.broadcast %cst_3 : bf16 to vector<2x64xbf16>
    %c0_4 = arith.constant 0 : index
    %c0_5 = arith.constant 0 : index
    %c0_6 = arith.constant 0 : index
    %c0_7 = arith.constant 0 : index
    %5 = vector.load %arg1[%c0_4, %c0_5, %c0_6, %c0_7] : memref<4x13x13x64xf32, #tpu.memory_space<vmem>>, vector<1x13x13x64xf32>
    %6 = vector.shape_cast %5 : vector<1x13x13x64xf32> to vector<13x13x64xf32>
    %7 = vector.extract_strided_slice %6 {offsets = [0, 0, 0], sizes = [12, 13, 64], strides = [1, 1, 1]} : vector<13x13x64xf32> to vector<12x13x64xf32>
    %8 = vector.shape_cast %7 : vector<12x13x64xf32> to vector<6x2x13x64xf32>
    %cst_8 = arith.constant dense<0xFF800000> : vector<6x13x64xf32>
    %9 = vector.multi_reduction <maximumf>, %8, %cst_8 [1] : vector<6x2x13x64xf32> to vector<6x13x64xf32>
    %10 = vector.extract_strided_slice %6 {offsets = [1, 0, 0], sizes = [12, 13, 64], strides = [1, 1, 1]} : vector<13x13x64xf32> to vector<12x13x64xf32>
    %11 = vector.shape_cast %10 : vector<12x13x64xf32> to vector<6x2x13x64xf32>
    %cst_9 = arith.constant dense<0xFF800000> : vector<6x13x64xf32>
    %12 = vector.multi_reduction <maximumf>, %11, %cst_9 [1] : vector<6x2x13x64xf32> to vector<6x13x64xf32>
    %13 = arith.maximumf %9, %12 : vector<6x13x64xf32>
    %14 = vector.extract_strided_slice %13 {offsets = [0, 0, 0], sizes = [6, 3, 64], strides = [1, 1, 1]} : vector<6x13x64xf32> to vector<6x3x64xf32>
    %cst_10 = arith.constant dense<0xFF800000> : vector<6x64xf32>
    %15 = vector.multi_reduction <maximumf>, %14, %cst_10 [1] : vector<6x3x64xf32> to vector<6x64xf32>
    %cst_11 = arith.constant 0.000000e+00 : f32
    %16 = vector.broadcast %cst_11 : f32 to vector<6x64xf32>
    %17 = arith.maximumf %15, %16 : vector<6x64xf32>
    %18 = arith.truncf %17 : vector<6x64xf32> to vector<6x64xbf16>
    %19 = tpu.concatenate %4, %18, %4 in 0 : vector<2x64xbf16>, vector<6x64xbf16>, vector<2x64xbf16> -> vector<10x64xbf16>
    %20 = vector.extract_strided_slice %19 {offsets = [0, 0], sizes = [6, 64], strides = [1, 1]} : vector<10x64xbf16> to vector<6x64xbf16>
    %21 = vector.extract_strided_slice %19 {offsets = [1, 0], sizes = [6, 64], strides = [1, 1]} : vector<10x64xbf16> to vector<6x64xbf16>
    %22 = vector.extract_strided_slice %19 {offsets = [2, 0], sizes = [6, 64], strides = [1, 1]} : vector<10x64xbf16> to vector<6x64xbf16>
    %23 = vector.extract_strided_slice %19 {offsets = [3, 0], sizes = [6, 64], strides = [1, 1]} : vector<10x64xbf16> to vector<6x64xbf16>
    %24 = vector.extract_strided_slice %19 {offsets = [4, 0], sizes = [6, 64], strides = [1, 1]} : vector<10x64xbf16> to vector<6x64xbf16>
    %25 = tpu.concatenate %20, %21, %22, %23, %24 in 1 : vector<6x64xbf16>, vector<6x64xbf16>, vector<6x64xbf16>, vector<6x64xbf16>, vector<6x64xbf16> -> vector<6x320xbf16>
    %c48 = arith.constant 48 : index
    %c0_12 = arith.constant 0 : index
    %26 = vector.load %arg5[%c48, %c0_12] : memref<240x320xbf16, #tpu.memory_space<vmem>>, vector<6x320xbf16>
    tpu.vector_store %arg5[%c48, %c0_12], %25 {strides = array<i32>} : memref<240x320xbf16, #tpu.memory_space<vmem>>, vector<6x320xbf16>,
    %27 = vector.extract_strided_slice %13 {offsets = [0, 2, 0], sizes = [6, 3, 64], strides = [1, 1, 1]} : vector<6x13x64xf32> to vector<6x3x64xf32>
    %cst_13 = arith.constant dense<0xFF800000> : vector<6x64xf32>
    %28 = vector.multi_reduction <maximumf>, %27, %cst_13 [1] : vector<6x3x64xf32> to vector<6x64xf32>
    %cst_14 = arith.constant 0.000000e+00 : f32
    %29 = vector.broadcast %cst_14 : f32 to vector<6x64xf32>
    %30 = arith.maximumf %28, %29 : vector<6x64xf32>
    %31 = arith.truncf %30 : vector<6x64xf32> to vector<6x64xbf16>
    %32 = tpu.concatenate %4, %31, %4 in 0 : vector<2x64xbf16>, vector<6x64xbf16>, vector<2x64xbf16> -> vector<10x64xbf16>
    %33 = vector.extract_strided_slice %32 {offsets = [0, 0], sizes = [6, 64], strides = [1, 1]} : vector<10x64xbf16> to vector<6x64xbf16>
    %34 = vector.extract_strided_slice %32 {offsets = [1, 0], sizes = [6, 64], strides = [1, 1]} : vector<10x64xbf16> to vector<6x64xbf16>
    %35 = vector.extract_strided_slice %32 {offsets = [2, 0], sizes = [6, 64], strides = [1, 1]} : vector<10x64xbf16> to vector<6x64xbf16>
    %36 = vector.extract_strided_slice %32 {offsets = [3, 0], sizes = [6, 64], strides = [1, 1]} : vector<10x64xbf16> to vector<6x64xbf16>
    %37 = vector.extract_strided_slice %32 {offsets = [4, 0], sizes = [6, 64], strides = [1, 1]} : vector<10x64xbf16> to vector<6x64xbf16>
    %38 = tpu.concatenate %33, %34, %35, %36, %37 in 1 : vector<6x64xbf16>, vector<6x64xbf16>, vector<6x64xbf16>, vector<6x64xbf16>, vector<6x64xbf16> -> vector<6x320xbf16>
    %c72 = arith.constant 72 : index
    %c0_15 = arith.constant 0 : index
    %39 = vector.load %arg5[%c72, %c0_15] : memref<240x320xbf16, #tpu.memory_space<vmem>>, vector<6x320xbf16>
    tpu.vector_store %arg5[%c72, %c0_15], %38 {strides = array<i32>} : memref<240x320xbf16, #tpu.memory_space<vmem>>, vector<6x320xbf16>,
    %40 = vector.extract_strided_slice %13 {offsets = [0, 4, 0], sizes = [6, 3, 64], strides = [1, 1, 1]} : vector<6x13x64xf32> to vector<6x3x64xf32>
    %cst_16 = arith.constant dense<0xFF800000> : vector<6x64xf32>
    %41 = vector.multi_reduction <maximumf>, %40, %cst_16 [1] : vector<6x3x64xf32> to vector<6x64xf32>
    %cst_17 = arith.constant 0.000000e+00 : f32
    %42 = vector.broadcast %cst_17 : f32 to vector<6x64xf32>
    %43 = arith.maximumf %41, %42 : vector<6x64xf32>
    %44 = arith.truncf %43 : vector<6x64xf32> to vector<6x64xbf16>
    %45 = tpu.concatenate %4, %44, %4 in 0 : vector<2x64xbf16>, vector<6x64xbf16>, vector<2x64xbf16> -> vector<10x64xbf16>
    %46 = vector.extract_strided_slice %45 {offsets = [0, 0], sizes = [6, 64], strides = [1, 1]} : vector<10x64xbf16> to vector<6x64xbf16>
    %47 = vector.extract_strided_slice %45 {offsets = [1, 0], sizes = [6, 64], strides = [1, 1]} : vector<10x64xbf16> to vector<6x64xbf16>
    %48 = vector.extract_strided_slice %45 {offsets = [2, 0], sizes = [6, 64], strides = [1, 1]} : vector<10x64xbf16> to vector<6x64xbf16>
    %49 = vector.extract_strided_slice %45 {offsets = [3, 0], sizes = [6, 64], strides = [1, 1]} : vector<10x64xbf16> to vector<6x64xbf16>
    %50 = vector.extract_strided_slice %45 {offsets = [4, 0], sizes = [6, 64], strides = [1, 1]} : vector<10x64xbf16> to vector<6x64xbf16>
    %51 = tpu.concatenate %46, %47, %48, %49, %50 in 1 : vector<6x64xbf16>, vector<6x64xbf16>, vector<6x64xbf16>, vector<6x64xbf16>, vector<6x64xbf16> -> vector<6x320xbf16>
    %c96 = arith.constant 96 : index
    %c0_18 = arith.constant 0 : index
    %52 = vector.load %arg5[%c96, %c0_18] : memref<240x320xbf16, #tpu.memory_space<vmem>>, vector<6x320xbf16>
    tpu.vector_store %arg5[%c96, %c0_18], %51 {strides = array<i32>} : memref<240x320xbf16, #tpu.memory_space<vmem>>, vector<6x320xbf16>,
    %53 = vector.extract_strided_slice %13 {offsets = [0, 6, 0], sizes = [6, 3, 64], strides = [1, 1, 1]} : vector<6x13x64xf32> to vector<6x3x64xf32>
    %cst_19 = arith.constant dense<0xFF800000> : vector<6x64xf32>
    %54 = vector.multi_reduction <maximumf>, %53, %cst_19 [1] : vector<6x3x64xf32> to vector<6x64xf32>
    %cst_20 = arith.constant 0.000000e+00 : f32
    %55 = vector.broadcast %cst_20 : f32 to vector<6x64xf32>
    %56 = arith.maximumf %54, %55 : vector<6x64xf32>
    %57 = arith.truncf %56 : vector<6x64xf32> to vector<6x64xbf16>
    %58 = tpu.concatenate %4, %57, %4 in 0 : vector<2x64xbf16>, vector<6x64xbf16>, vector<2x64xbf16> -> vector<10x64xbf16>
    %59 = vector.extract_strided_slice %58 {offsets = [0, 0], sizes = [6, 64], strides = [1, 1]} : vector<10x64xbf16> to vector<6x64xbf16>
    %60 = vector.extract_strided_slice %58 {offsets = [1, 0], sizes = [6, 64], strides = [1, 1]} : vector<10x64xbf16> to vector<6x64xbf16>
    %61 = vector.extract_strided_slice %58 {offsets = [2, 0], sizes = [6, 64], strides = [1, 1]} : vector<10x64xbf16> to vector<6x64xbf16>
    %62 = vector.extract_strided_slice %58 {offsets = [3, 0], sizes = [6, 64], strides = [1, 1]} : vector<10x64xbf16> to vector<6x64xbf16>
    %63 = vector.extract_strided_slice %58 {offsets = [4, 0], sizes = [6, 64], strides = [1, 1]} : vector<10x64xbf16> to vector<6x64xbf16>
    %64 = tpu.concatenate %59, %60, %61, %62, %63 in 1 : vector<6x64xbf16>, vector<6x64xbf16>, vector<6x64xbf16>, vector<6x64xbf16>, vector<6x64xbf16> -> vector<6x320xbf16>
    %c120 = arith.constant 120 : index
    %c0_21 = arith.constant 0 : index
    %65 = vector.load %arg5[%c120, %c0_21] : memref<240x320xbf16, #tpu.memory_space<vmem>>, vector<6x320xbf16>
    tpu.vector_store %arg5[%c120, %c0_21], %64 {strides = array<i32>} : memref<240x320xbf16, #tpu.memory_space<vmem>>, vector<6x320xbf16>,
    %66 = vector.extract_strided_slice %13 {offsets = [0, 8, 0], sizes = [6, 3, 64], strides = [1, 1, 1]} : vector<6x13x64xf32> to vector<6x3x64xf32>
    %cst_22 = arith.constant dense<0xFF800000> : vector<6x64xf32>
    %67 = vector.multi_reduction <maximumf>, %66, %cst_22 [1] : vector<6x3x64xf32> to vector<6x64xf32>
    %cst_23 = arith.constant 0.000000e+00 : f32
    %68 = vector.broadcast %cst_23 : f32 to vector<6x64xf32>
    %69 = arith.maximumf %67, %68 : vector<6x64xf32>
    %70 = arith.truncf %69 : vector<6x64xf32> to vector<6x64xbf16>
    %71 = tpu.concatenate %4, %70, %4 in 0 : vector<2x64xbf16>, vector<6x64xbf16>, vector<2x64xbf16> -> vector<10x64xbf16>
    %72 = vector.extract_strided_slice %71 {offsets = [0, 0], sizes = [6, 64], strides = [1, 1]} : vector<10x64xbf16> to vector<6x64xbf16>
    %73 = vector.extract_strided_slice %71 {offsets = [1, 0], sizes = [6, 64], strides = [1, 1]} : vector<10x64xbf16> to vector<6x64xbf16>
    %74 = vector.extract_strided_slice %71 {offsets = [2, 0], sizes = [6, 64], strides = [1, 1]} : vector<10x64xbf16> to vector<6x64xbf16>
    %75 = vector.extract_strided_slice %71 {offsets = [3, 0], sizes = [6, 64], strides = [1, 1]} : vector<10x64xbf16> to vector<6x64xbf16>
    %76 = vector.extract_strided_slice %71 {offsets = [4, 0], sizes = [6, 64], strides = [1, 1]} : vector<10x64xbf16> to vector<6x64xbf16>
    %77 = tpu.concatenate %72, %73, %74, %75, %76 in 1 : vector<6x64xbf16>, vector<6x64xbf16>, vector<6x64xbf16>, vector<6x64xbf16>, vector<6x64xbf16> -> vector<6x320xbf16>
    %c144 = arith.constant 144 : index
    %c0_24 = arith.constant 0 : index
    %78 = vector.load %arg5[%c144, %c0_24] : memref<240x320xbf16, #tpu.memory_space<vmem>>, vector<6x320xbf16>
    tpu.vector_store %arg5[%c144, %c0_24], %77 {strides = array<i32>} : memref<240x320xbf16, #tpu.memory_space<vmem>>, vector<6x320xbf16>,
    %79 = vector.extract_strided_slice %13 {offsets = [0, 10, 0], sizes = [6, 3, 64], strides = [1, 1, 1]} : vector<6x13x64xf32> to vector<6x3x64xf32>
    %cst_25 = arith.constant dense<0xFF800000> : vector<6x64xf32>
    %80 = vector.multi_reduction <maximumf>, %79, %cst_25 [1] : vector<6x3x64xf32> to vector<6x64xf32>
    %cst_26 = arith.constant 0.000000e+00 : f32
    %81 = vector.broadcast %cst_26 : f32 to vector<6x64xf32>
    %82 = arith.maximumf %80, %81 : vector<6x64xf32>
    %83 = arith.truncf %82 : vector<6x64xf32> to vector<6x64xbf16>
    %84 = tpu.concatenate %4, %83, %4 in 0 : vector<2x64xbf16>, vector<6x64xbf16>, vector<2x64xbf16> -> vector<10x64xbf16>
    %85 = vector.extract_strided_slice %84 {offsets = [0, 0], sizes = [6, 64], strides = [1, 1]} : vector<10x64xbf16> to vector<6x64xbf16>
    %86 = vector.extract_strided_slice %84 {offsets = [1, 0], sizes = [6, 64], strides = [1, 1]} : vector<10x64xbf16> to vector<6x64xbf16>
    %87 = vector.extract_strided_slice %84 {offsets = [2, 0], sizes = [6, 64], strides = [1, 1]} : vector<10x64xbf16> to vector<6x64xbf16>
    %88 = vector.extract_strided_slice %84 {offsets = [3, 0], sizes = [6, 64], strides = [1, 1]} : vector<10x64xbf16> to vector<6x64xbf16>
    %89 = vector.extract_strided_slice %84 {offsets = [4, 0], sizes = [6, 64], strides = [1, 1]} : vector<10x64xbf16> to vector<6x64xbf16>
    %90 = tpu.concatenate %85, %86, %87, %88, %89 in 1 : vector<6x64xbf16>, vector<6x64xbf16>, vector<6x64xbf16>, vector<6x64xbf16>, vector<6x64xbf16> -> vector<6x320xbf16>
    %c168 = arith.constant 168 : index
    %c0_27 = arith.constant 0 : index
    %91 = vector.load %arg5[%c168, %c0_27] : memref<240x320xbf16, #tpu.memory_space<vmem>>, vector<6x320xbf16>
    tpu.vector_store %arg5[%c168, %c0_27], %90 {strides = array<i32>} : memref<240x320xbf16, #tpu.memory_space<vmem>>, vector<6x320xbf16>,
    %c1 = arith.constant 1 : index
    %c0_28 = arith.constant 0 : index
    %c0_29 = arith.constant 0 : index
    %c0_30 = arith.constant 0 : index
    %92 = vector.load %arg1[%c1, %c0_28, %c0_29, %c0_30] : memref<4x13x13x64xf32, #tpu.memory_space<vmem>>, vector<1x13x13x64xf32>
    %93 = vector.shape_cast %92 : vector<1x13x13x64xf32> to vector<13x13x64xf32>
    %94 = vector.extract_strided_slice %93 {offsets = [0, 0, 0], sizes = [12, 13, 64], strides = [1, 1, 1]} : vector<13x13x64xf32> to vector<12x13x64xf32>
    %95 = vector.shape_cast %94 : vector<12x13x64xf32> to vector<6x2x13x64xf32>
    %cst_31 = arith.constant dense<0xFF800000> : vector<6x13x64xf32>
    %96 = vector.multi_reduction <maximumf>, %95, %cst_31 [1] : vector<6x2x13x64xf32> to vector<6x13x64xf32>
    %97 = vector.extract_strided_slice %93 {offsets = [1, 0, 0], sizes = [12, 13, 64], strides = [1, 1, 1]} : vector<13x13x64xf32> to vector<12x13x64xf32>
    %98 = vector.shape_cast %97 : vector<12x13x64xf32> to vector<6x2x13x64xf32>
    %cst_32 = arith.constant dense<0xFF800000> : vector<6x13x64xf32>
    %99 = vector.multi_reduction <maximumf>, %98, %cst_32 [1] : vector<6x2x13x64xf32> to vector<6x13x64xf32>
    %100 = arith.maximumf %96, %99 : vector<6x13x64xf32>
    %101 = vector.extract_strided_slice %100 {offsets = [0, 0, 0], sizes = [6, 3, 64], strides = [1, 1, 1]} : vector<6x13x64xf32> to vector<6x3x64xf32>
    %cst_33 = arith.constant dense<0xFF800000> : vector<6x64xf32>
    %102 = vector.multi_reduction <maximumf>, %101, %cst_33 [1] : vector<6x3x64xf32> to vector<6x64xf32>
    %cst_34 = arith.constant 0.000000e+00 : f32
    %103 = vector.broadcast %cst_34 : f32 to vector<6x64xf32>
    %104 = arith.maximumf %102, %103 : vector<6x64xf32>
    %105 = arith.truncf %104 : vector<6x64xf32> to vector<6x64xbf16>
    %106 = tpu.concatenate %4, %105, %4 in 0 : vector<2x64xbf16>, vector<6x64xbf16>, vector<2x64xbf16> -> vector<10x64xbf16>
    %107 = vector.extract_strided_slice %106 {offsets = [0, 0], sizes = [6, 64], strides = [1, 1]} : vector<10x64xbf16> to vector<6x64xbf16>
    %108 = vector.extract_strided_slice %106 {offsets = [1, 0], sizes = [6, 64], strides = [1, 1]} : vector<10x64xbf16> to vector<6x64xbf16>
    %109 = vector.extract_strided_slice %106 {offsets = [2, 0], sizes = [6, 64], strides = [1, 1]} : vector<10x64xbf16> to vector<6x64xbf16>
    %110 = vector.extract_strided_slice %106 {offsets = [3, 0], sizes = [6, 64], strides = [1, 1]} : vector<10x64xbf16> to vector<6x64xbf16>
    %111 = vector.extract_strided_slice %106 {offsets = [4, 0], sizes = [6, 64], strides = [1, 1]} : vector<10x64xbf16> to vector<6x64xbf16>
    %112 = tpu.concatenate %107, %108, %109, %110, %111 in 1 : vector<6x64xbf16>, vector<6x64xbf16>, vector<6x64xbf16>, vector<6x64xbf16>, vector<6x64xbf16> -> vector<6x320xbf16>
    %c54 = arith.constant 54 : index
    %c0_35 = arith.constant 0 : index
    %113 = vector.load %arg5[%c54, %c0_35] : memref<240x320xbf16, #tpu.memory_space<vmem>>, vector<6x320xbf16>
    tpu.vector_store %arg5[%c54, %c0_35], %112 {strides = array<i32>} : memref<240x320xbf16, #tpu.memory_space<vmem>>, vector<6x320xbf16>,
    %114 = vector.extract_strided_slice %100 {offsets = [0, 2, 0], sizes = [6, 3, 64], strides = [1, 1, 1]} : vector<6x13x64xf32> to vector<6x3x64xf32>
    %cst_36 = arith.constant dense<0xFF800000> : vector<6x64xf32>
    %115 = vector.multi_reduction <maximumf>, %114, %cst_36 [1] : vector<6x3x64xf32> to vector<6x64xf32>
    %cst_37 = arith.constant 0.000000e+00 : f32
    %116 = vector.broadcast %cst_37 : f32 to vector<6x64xf32>
    %117 = arith.maximumf %115, %116 : vector<6x64xf32>
    %118 = arith.truncf %117 : vector<6x64xf32> to vector<6x64xbf16>
    %119 = tpu.concatenate %4, %118, %4 in 0 : vector<2x64xbf16>, vector<6x64xbf16>, vector<2x64xbf16> -> vector<10x64xbf16>
    %120 = vector.extract_strided_slice %119 {offsets = [0, 0], sizes = [6, 64], strides = [1, 1]} : vector<10x64xbf16> to vector<6x64xbf16>
    %121 = vector.extract_strided_slice %119 {offsets = [1, 0], sizes = [6, 64], strides = [1, 1]} : vector<10x64xbf16> to vector<6x64xbf16>
    %122 = vector.extract_strided_slice %119 {offsets = [2, 0], sizes = [6, 64], strides = [1, 1]} : vector<10x64xbf16> to vector<6x64xbf16>
    %123 = vector.extract_strided_slice %119 {offsets = [3, 0], sizes = [6, 64], strides = [1, 1]} : vector<10x64xbf16> to vector<6x64xbf16>
    %124 = vector.extract_strided_slice %119 {offsets = [4, 0], sizes = [6, 64], strides = [1, 1]} : vector<10x64xbf16> to vector<6x64xbf16>
    %125 = tpu.concatenate %120, %121, %122, %123, %124 in 1 : vector<6x64xbf16>, vector<6x64xbf16>, vector<6x64xbf16>, vector<6x64xbf16>, vector<6x64xbf16> -> vector<6x320xbf16>
    %c78 = arith.constant 78 : index
    %c0_38 = arith.constant 0 : index
    %126 = vector.load %arg5[%c78, %c0_38] : memref<240x320xbf16, #tpu.memory_space<vmem>>, vector<6x320xbf16>
    tpu.vector_store %arg5[%c78, %c0_38], %125 {strides = array<i32>} : memref<240x320xbf16, #tpu.memory_space<vmem>>, vector<6x320xbf16>,
    %127 = vector.extract_strided_slice %100 {offsets = [0, 4, 0], sizes = [6, 3, 64], strides = [1, 1, 1]} : vector<6x13x64xf32> to vector<6x3x64xf32>
    %cst_39 = arith.constant dense<0xFF800000> : vector<6x64xf32>
    %128 = vector.multi_reduction <maximumf>, %127, %cst_39 [1] : vector<6x3x64xf32> to vector<6x64xf32>
    %cst_40 = arith.constant 0.000000e+00 : f32
    %129 = vector.broadcast %cst_40 : f32 to vector<6x64xf32>
    %130 = arith.maximumf %128, %129 : vector<6x64xf32>
    %131 = arith.truncf %130 : vector<6x64xf32> to vector<6x64xbf16>
    %132 = tpu.concatenate %4, %131, %4 in 0 : vector<2x64xbf16>, vector<6x64xbf16>, vector<2x64xbf16> -> vector<10x64xbf16>
    %133 = vector.extract_strided_slice %132 {offsets = [0, 0], sizes = [6, 64], strides = [1, 1]} : vector<10x64xbf16> to vector<6x64xbf16>
    %134 = vector.extract_strided_slice %132 {offsets = [1, 0], sizes = [6, 64], strides = [1, 1]} : vector<10x64xbf16> to vector<6x64xbf16>
    %135 = vector.extract_strided_slice %132 {offsets = [2, 0], sizes = [6, 64], strides = [1, 1]} : vector<10x64xbf16> to vector<6x64xbf16>
    %136 = vector.extract_strided_slice %132 {offsets = [3, 0], sizes = [6, 64], strides = [1, 1]} : vector<10x64xbf16> to vector<6x64xbf16>
    %137 = vector.extract_strided_slice %132 {offsets = [4, 0], sizes = [6, 64], strides = [1, 1]} : vector<10x64xbf16> to vector<6x64xbf16>
    %138 = tpu.concatenate %133, %134, %135, %136, %137 in 1 : vector<6x64xbf16>, vector<6x64xbf16>, vector<6x64xbf16>, vector<6x64xbf16>, vector<6x64xbf16> -> vector<6x320xbf16>
    %c102 = arith.constant 102 : index
    %c0_41 = arith.constant 0 : index
    %139 = vector.load %arg5[%c102, %c0_41] : memref<240x320xbf16, #tpu.memory_space<vmem>>, vector<6x320xbf16>
    tpu.vector_store %arg5[%c102, %c0_41], %138 {strides = array<i32>} : memref<240x320xbf16, #tpu.memory_space<vmem>>, vector<6x320xbf16>,
    %140 = vector.extract_strided_slice %100 {offsets = [0, 6, 0], sizes = [6, 3, 64], strides = [1, 1, 1]} : vector<6x13x64xf32> to vector<6x3x64xf32>
    %cst_42 = arith.constant dense<0xFF800000> : vector<6x64xf32>
    %141 = vector.multi_reduction <maximumf>, %140, %cst_42 [1] : vector<6x3x64xf32> to vector<6x64xf32>
    %cst_43 = arith.constant 0.000000e+00 : f32
    %142 = vector.broadcast %cst_43 : f32 to vector<6x64xf32>
    %143 = arith.maximumf %141, %142 : vector<6x64xf32>
    %144 = arith.truncf %143 : vector<6x64xf32> to vector<6x64xbf16>
    %145 = tpu.concatenate %4, %144, %4 in 0 : vector<2x64xbf16>, vector<6x64xbf16>, vector<2x64xbf16> -> vector<10x64xbf16>
    %146 = vector.extract_strided_slice %145 {offsets = [0, 0], sizes = [6, 64], strides = [1, 1]} : vector<10x64xbf16> to vector<6x64xbf16>
    %147 = vector.extract_strided_slice %145 {offsets = [1, 0], sizes = [6, 64], strides = [1, 1]} : vector<10x64xbf16> to vector<6x64xbf16>
    %148 = vector.extract_strided_slice %145 {offsets = [2, 0], sizes = [6, 64], strides = [1, 1]} : vector<10x64xbf16> to vector<6x64xbf16>
    %149 = vector.extract_strided_slice %145 {offsets = [3, 0], sizes = [6, 64], strides = [1, 1]} : vector<10x64xbf16> to vector<6x64xbf16>
    %150 = vector.extract_strided_slice %145 {offsets = [4, 0], sizes = [6, 64], strides = [1, 1]} : vector<10x64xbf16> to vector<6x64xbf16>
    %151 = tpu.concatenate %146, %147, %148, %149, %150 in 1 : vector<6x64xbf16>, vector<6x64xbf16>, vector<6x64xbf16>, vector<6x64xbf16>, vector<6x64xbf16> -> vector<6x320xbf16>
    %c126 = arith.constant 126 : index
    %c0_44 = arith.constant 0 : index
    %152 = vector.load %arg5[%c126, %c0_44] : memref<240x320xbf16, #tpu.memory_space<vmem>>, vector<6x320xbf16>
    tpu.vector_store %arg5[%c126, %c0_44], %151 {strides = array<i32>} : memref<240x320xbf16, #tpu.memory_space<vmem>>, vector<6x320xbf16>,
    %153 = vector.extract_strided_slice %100 {offsets = [0, 8, 0], sizes = [6, 3, 64], strides = [1, 1, 1]} : vector<6x13x64xf32> to vector<6x3x64xf32>
    %cst_45 = arith.constant dense<0xFF800000> : vector<6x64xf32>
    %154 = vector.multi_reduction <maximumf>, %153, %cst_45 [1] : vector<6x3x64xf32> to vector<6x64xf32>
    %cst_46 = arith.constant 0.000000e+00 : f32
    %155 = vector.broadcast %cst_46 : f32 to vector<6x64xf32>
    %156 = arith.maximumf %154, %155 : vector<6x64xf32>
    %157 = arith.truncf %156 : vector<6x64xf32> to vector<6x64xbf16>
    %158 = tpu.concatenate %4, %157, %4 in 0 : vector<2x64xbf16>, vector<6x64xbf16>, vector<2x64xbf16> -> vector<10x64xbf16>
    %159 = vector.extract_strided_slice %158 {offsets = [0, 0], sizes = [6, 64], strides = [1, 1]} : vector<10x64xbf16> to vector<6x64xbf16>
    %160 = vector.extract_strided_slice %158 {offsets = [1, 0], sizes = [6, 64], strides = [1, 1]} : vector<10x64xbf16> to vector<6x64xbf16>
    %161 = vector.extract_strided_slice %158 {offsets = [2, 0], sizes = [6, 64], strides = [1, 1]} : vector<10x64xbf16> to vector<6x64xbf16>
    %162 = vector.extract_strided_slice %158 {offsets = [3, 0], sizes = [6, 64], strides = [1, 1]} : vector<10x64xbf16> to vector<6x64xbf16>
    %163 = vector.extract_strided_slice %158 {offsets = [4, 0], sizes = [6, 64], strides = [1, 1]} : vector<10x64xbf16> to vector<6x64xbf16>
    %164 = tpu.concatenate %159, %160, %161, %162, %163 in 1 : vector<6x64xbf16>, vector<6x64xbf16>, vector<6x64xbf16>, vector<6x64xbf16>, vector<6x64xbf16> -> vector<6x320xbf16>
    %c150 = arith.constant 150 : index
    %c0_47 = arith.constant 0 : index
    %165 = vector.load %arg5[%c150, %c0_47] : memref<240x320xbf16, #tpu.memory_space<vmem>>, vector<6x320xbf16>
    tpu.vector_store %arg5[%c150, %c0_47], %164 {strides = array<i32>} : memref<240x320xbf16, #tpu.memory_space<vmem>>, vector<6x320xbf16>,
    %166 = vector.extract_strided_slice %100 {offsets = [0, 10, 0], sizes = [6, 3, 64], strides = [1, 1, 1]} : vector<6x13x64xf32> to vector<6x3x64xf32>
    %cst_48 = arith.constant dense<0xFF800000> : vector<6x64xf32>
    %167 = vector.multi_reduction <maximumf>, %166, %cst_48 [1] : vector<6x3x64xf32> to vector<6x64xf32>
    %cst_49 = arith.constant 0.000000e+00 : f32
    %168 = vector.broadcast %cst_49 : f32 to vector<6x64xf32>
    %169 = arith.maximumf %167, %168 : vector<6x64xf32>
    %170 = arith.truncf %169 : vector<6x64xf32> to vector<6x64xbf16>
    %171 = tpu.concatenate %4, %170, %4 in 0 : vector<2x64xbf16>, vector<6x64xbf16>, vector<2x64xbf16> -> vector<10x64xbf16>
    %172 = vector.extract_strided_slice %171 {offsets = [0, 0], sizes = [6, 64], strides = [1, 1]} : vector<10x64xbf16> to vector<6x64xbf16>
    %173 = vector.extract_strided_slice %171 {offsets = [1, 0], sizes = [6, 64], strides = [1, 1]} : vector<10x64xbf16> to vector<6x64xbf16>
    %174 = vector.extract_strided_slice %171 {offsets = [2, 0], sizes = [6, 64], strides = [1, 1]} : vector<10x64xbf16> to vector<6x64xbf16>
    %175 = vector.extract_strided_slice %171 {offsets = [3, 0], sizes = [6, 64], strides = [1, 1]} : vector<10x64xbf16> to vector<6x64xbf16>
    %176 = vector.extract_strided_slice %171 {offsets = [4, 0], sizes = [6, 64], strides = [1, 1]} : vector<10x64xbf16> to vector<6x64xbf16>
    %177 = tpu.concatenate %172, %173, %174, %175, %176 in 1 : vector<6x64xbf16>, vector<6x64xbf16>, vector<6x64xbf16>, vector<6x64xbf16>, vector<6x64xbf16> -> vector<6x320xbf16>
    %c174 = arith.constant 174 : index
    %c0_50 = arith.constant 0 : index
    %178 = vector.load %arg5[%c174, %c0_50] : memref<240x320xbf16, #tpu.memory_space<vmem>>, vector<6x320xbf16>
    tpu.vector_store %arg5[%c174, %c0_50], %177 {strides = array<i32>} : memref<240x320xbf16, #tpu.memory_space<vmem>>, vector<6x320xbf16>,
    %c2 = arith.constant 2 : index
    %c0_51 = arith.constant 0 : index
    %c0_52 = arith.constant 0 : index
    %c0_53 = arith.constant 0 : index
    %179 = vector.load %arg1[%c2, %c0_51, %c0_52, %c0_53] : memref<4x13x13x64xf32, #tpu.memory_space<vmem>>, vector<1x13x13x64xf32>
    %180 = vector.shape_cast %179 : vector<1x13x13x64xf32> to vector<13x13x64xf32>
    %181 = vector.extract_strided_slice %180 {offsets = [0, 0, 0], sizes = [12, 13, 64], strides = [1, 1, 1]} : vector<13x13x64xf32> to vector<12x13x64xf32>
    %182 = vector.shape_cast %181 : vector<12x13x64xf32> to vector<6x2x13x64xf32>
    %cst_54 = arith.constant dense<0xFF800000> : vector<6x13x64xf32>
    %183 = vector.multi_reduction <maximumf>, %182, %cst_54 [1] : vector<6x2x13x64xf32> to vector<6x13x64xf32>
    %184 = vector.extract_strided_slice %180 {offsets = [1, 0, 0], sizes = [12, 13, 64], strides = [1, 1, 1]} : vector<13x13x64xf32> to vector<12x13x64xf32>
    %185 = vector.shape_cast %184 : vector<12x13x64xf32> to vector<6x2x13x64xf32>
    %cst_55 = arith.constant dense<0xFF800000> : vector<6x13x64xf32>
    %186 = vector.multi_reduction <maximumf>, %185, %cst_55 [1] : vector<6x2x13x64xf32> to vector<6x13x64xf32>
    %187 = arith.maximumf %183, %186 : vector<6x13x64xf32>
    %188 = vector.extract_strided_slice %187 {offsets = [0, 0, 0], sizes = [6, 3, 64], strides = [1, 1, 1]} : vector<6x13x64xf32> to vector<6x3x64xf32>
    %cst_56 = arith.constant dense<0xFF800000> : vector<6x64xf32>
    %189 = vector.multi_reduction <maximumf>, %188, %cst_56 [1] : vector<6x3x64xf32> to vector<6x64xf32>
    %cst_57 = arith.constant 0.000000e+00 : f32
    %190 = vector.broadcast %cst_57 : f32 to vector<6x64xf32>
    %191 = arith.maximumf %189, %190 : vector<6x64xf32>
    %192 = arith.truncf %191 : vector<6x64xf32> to vector<6x64xbf16>
    %193 = tpu.concatenate %4, %192, %4 in 0 : vector<2x64xbf16>, vector<6x64xbf16>, vector<2x64xbf16> -> vector<10x64xbf16>
    %194 = vector.extract_strided_slice %193 {offsets = [0, 0], sizes = [6, 64], strides = [1, 1]} : vector<10x64xbf16> to vector<6x64xbf16>
    %195 = vector.extract_strided_slice %193 {offsets = [1, 0], sizes = [6, 64], strides = [1, 1]} : vector<10x64xbf16> to vector<6x64xbf16>
    %196 = vector.extract_strided_slice %193 {offsets = [2, 0], sizes = [6, 64], strides = [1, 1]} : vector<10x64xbf16> to vector<6x64xbf16>
    %197 = vector.extract_strided_slice %193 {offsets = [3, 0], sizes = [6, 64], strides = [1, 1]} : vector<10x64xbf16> to vector<6x64xbf16>
    %198 = vector.extract_strided_slice %193 {offsets = [4, 0], sizes = [6, 64], strides = [1, 1]} : vector<10x64xbf16> to vector<6x64xbf16>
    %199 = tpu.concatenate %194, %195, %196, %197, %198 in 1 : vector<6x64xbf16>, vector<6x64xbf16>, vector<6x64xbf16>, vector<6x64xbf16>, vector<6x64xbf16> -> vector<6x320xbf16>
    %c60 = arith.constant 60 : index
    %c0_58 = arith.constant 0 : index
    %200 = vector.load %arg5[%c60, %c0_58] : memref<240x320xbf16, #tpu.memory_space<vmem>>, vector<6x320xbf16>
    tpu.vector_store %arg5[%c60, %c0_58], %199 {strides = array<i32>} : memref<240x320xbf16, #tpu.memory_space<vmem>>, vector<6x320xbf16>,
    %201 = vector.extract_strided_slice %187 {offsets = [0, 2, 0], sizes = [6, 3, 64], strides = [1, 1, 1]} : vector<6x13x64xf32> to vector<6x3x64xf32>
    %cst_59 = arith.constant dense<0xFF800000> : vector<6x64xf32>
    %202 = vector.multi_reduction <maximumf>, %201, %cst_59 [1] : vector<6x3x64xf32> to vector<6x64xf32>
    %cst_60 = arith.constant 0.000000e+00 : f32
    %203 = vector.broadcast %cst_60 : f32 to vector<6x64xf32>
    %204 = arith.maximumf %202, %203 : vector<6x64xf32>
    %205 = arith.truncf %204 : vector<6x64xf32> to vector<6x64xbf16>
    %206 = tpu.concatenate %4, %205, %4 in 0 : vector<2x64xbf16>, vector<6x64xbf16>, vector<2x64xbf16> -> vector<10x64xbf16>
    %207 = vector.extract_strided_slice %206 {offsets = [0, 0], sizes = [6, 64], strides = [1, 1]} : vector<10x64xbf16> to vector<6x64xbf16>
    %208 = vector.extract_strided_slice %206 {offsets = [1, 0], sizes = [6, 64], strides = [1, 1]} : vector<10x64xbf16> to vector<6x64xbf16>
    %209 = vector.extract_strided_slice %206 {offsets = [2, 0], sizes = [6, 64], strides = [1, 1]} : vector<10x64xbf16> to vector<6x64xbf16>
    %210 = vector.extract_strided_slice %206 {offsets = [3, 0], sizes = [6, 64], strides = [1, 1]} : vector<10x64xbf16> to vector<6x64xbf16>
    %211 = vector.extract_strided_slice %206 {offsets = [4, 0], sizes = [6, 64], strides = [1, 1]} : vector<10x64xbf16> to vector<6x64xbf16>
    %212 = tpu.concatenate %207, %208, %209, %210, %211 in 1 : vector<6x64xbf16>, vector<6x64xbf16>, vector<6x64xbf16>, vector<6x64xbf16>, vector<6x64xbf16> -> vector<6x320xbf16>
    %c84 = arith.constant 84 : index
    %c0_61 = arith.constant 0 : index
    %213 = vector.load %arg5[%c84, %c0_61] : memref<240x320xbf16, #tpu.memory_space<vmem>>, vector<6x320xbf16>
    tpu.vector_store %arg5[%c84, %c0_61], %212 {strides = array<i32>} : memref<240x320xbf16, #tpu.memory_space<vmem>>, vector<6x320xbf16>,
    %214 = vector.extract_strided_slice %187 {offsets = [0, 4, 0], sizes = [6, 3, 64], strides = [1, 1, 1]} : vector<6x13x64xf32> to vector<6x3x64xf32>
    %cst_62 = arith.constant dense<0xFF800000> : vector<6x64xf32>
    %215 = vector.multi_reduction <maximumf>, %214, %cst_62 [1] : vector<6x3x64xf32> to vector<6x64xf32>
    %cst_63 = arith.constant 0.000000e+00 : f32
    %216 = vector.broadcast %cst_63 : f32 to vector<6x64xf32>
    %217 = arith.maximumf %215, %216 : vector<6x64xf32>
    %218 = arith.truncf %217 : vector<6x64xf32> to vector<6x64xbf16>
    %219 = tpu.concatenate %4, %218, %4 in 0 : vector<2x64xbf16>, vector<6x64xbf16>, vector<2x64xbf16> -> vector<10x64xbf16>
    %220 = vector.extract_strided_slice %219 {offsets = [0, 0], sizes = [6, 64], strides = [1, 1]} : vector<10x64xbf16> to vector<6x64xbf16>
    %221 = vector.extract_strided_slice %219 {offsets = [1, 0], sizes = [6, 64], strides = [1, 1]} : vector<10x64xbf16> to vector<6x64xbf16>
    %222 = vector.extract_strided_slice %219 {offsets = [2, 0], sizes = [6, 64], strides = [1, 1]} : vector<10x64xbf16> to vector<6x64xbf16>
    %223 = vector.extract_strided_slice %219 {offsets = [3, 0], sizes = [6, 64], strides = [1, 1]} : vector<10x64xbf16> to vector<6x64xbf16>
    %224 = vector.extract_strided_slice %219 {offsets = [4, 0], sizes = [6, 64], strides = [1, 1]} : vector<10x64xbf16> to vector<6x64xbf16>
    %225 = tpu.concatenate %220, %221, %222, %223, %224 in 1 : vector<6x64xbf16>, vector<6x64xbf16>, vector<6x64xbf16>, vector<6x64xbf16>, vector<6x64xbf16> -> vector<6x320xbf16>
    %c108 = arith.constant 108 : index
    %c0_64 = arith.constant 0 : index
    %226 = vector.load %arg5[%c108, %c0_64] : memref<240x320xbf16, #tpu.memory_space<vmem>>, vector<6x320xbf16>
    tpu.vector_store %arg5[%c108, %c0_64], %225 {strides = array<i32>} : memref<240x320xbf16, #tpu.memory_space<vmem>>, vector<6x320xbf16>,
    %227 = vector.extract_strided_slice %187 {offsets = [0, 6, 0], sizes = [6, 3, 64], strides = [1, 1, 1]} : vector<6x13x64xf32> to vector<6x3x64xf32>
    %cst_65 = arith.constant dense<0xFF800000> : vector<6x64xf32>
    %228 = vector.multi_reduction <maximumf>, %227, %cst_65 [1] : vector<6x3x64xf32> to vector<6x64xf32>
    %cst_66 = arith.constant 0.000000e+00 : f32
    %229 = vector.broadcast %cst_66 : f32 to vector<6x64xf32>
    %230 = arith.maximumf %228, %229 : vector<6x64xf32>
    %231 = arith.truncf %230 : vector<6x64xf32> to vector<6x64xbf16>
    %232 = tpu.concatenate %4, %231, %4 in 0 : vector<2x64xbf16>, vector<6x64xbf16>, vector<2x64xbf16> -> vector<10x64xbf16>
    %233 = vector.extract_strided_slice %232 {offsets = [0, 0], sizes = [6, 64], strides = [1, 1]} : vector<10x64xbf16> to vector<6x64xbf16>
    %234 = vector.extract_strided_slice %232 {offsets = [1, 0], sizes = [6, 64], strides = [1, 1]} : vector<10x64xbf16> to vector<6x64xbf16>
    %235 = vector.extract_strided_slice %232 {offsets = [2, 0], sizes = [6, 64], strides = [1, 1]} : vector<10x64xbf16> to vector<6x64xbf16>
    %236 = vector.extract_strided_slice %232 {offsets = [3, 0], sizes = [6, 64], strides = [1, 1]} : vector<10x64xbf16> to vector<6x64xbf16>
    %237 = vector.extract_strided_slice %232 {offsets = [4, 0], sizes = [6, 64], strides = [1, 1]} : vector<10x64xbf16> to vector<6x64xbf16>
    %238 = tpu.concatenate %233, %234, %235, %236, %237 in 1 : vector<6x64xbf16>, vector<6x64xbf16>, vector<6x64xbf16>, vector<6x64xbf16>, vector<6x64xbf16> -> vector<6x320xbf16>
    %c132 = arith.constant 132 : index
    %c0_67 = arith.constant 0 : index
    %239 = vector.load %arg5[%c132, %c0_67] : memref<240x320xbf16, #tpu.memory_space<vmem>>, vector<6x320xbf16>
    tpu.vector_store %arg5[%c132, %c0_67], %238 {strides = array<i32>} : memref<240x320xbf16, #tpu.memory_space<vmem>>, vector<6x320xbf16>,
    %240 = vector.extract_strided_slice %187 {offsets = [0, 8, 0], sizes = [6, 3, 64], strides = [1, 1, 1]} : vector<6x13x64xf32> to vector<6x3x64xf32>
    %cst_68 = arith.constant dense<0xFF800000> : vector<6x64xf32>
    %241 = vector.multi_reduction <maximumf>, %240, %cst_68 [1] : vector<6x3x64xf32> to vector<6x64xf32>
    %cst_69 = arith.constant 0.000000e+00 : f32
    %242 = vector.broadcast %cst_69 : f32 to vector<6x64xf32>
    %243 = arith.maximumf %241, %242 : vector<6x64xf32>
    %244 = arith.truncf %243 : vector<6x64xf32> to vector<6x64xbf16>
    %245 = tpu.concatenate %4, %244, %4 in 0 : vector<2x64xbf16>, vector<6x64xbf16>, vector<2x64xbf16> -> vector<10x64xbf16>
    %246 = vector.extract_strided_slice %245 {offsets = [0, 0], sizes = [6, 64], strides = [1, 1]} : vector<10x64xbf16> to vector<6x64xbf16>
    %247 = vector.extract_strided_slice %245 {offsets = [1, 0], sizes = [6, 64], strides = [1, 1]} : vector<10x64xbf16> to vector<6x64xbf16>
    %248 = vector.extract_strided_slice %245 {offsets = [2, 0], sizes = [6, 64], strides = [1, 1]} : vector<10x64xbf16> to vector<6x64xbf16>
    %249 = vector.extract_strided_slice %245 {offsets = [3, 0], sizes = [6, 64], strides = [1, 1]} : vector<10x64xbf16> to vector<6x64xbf16>
    %250 = vector.extract_strided_slice %245 {offsets = [4, 0], sizes = [6, 64], strides = [1, 1]} : vector<10x64xbf16> to vector<6x64xbf16>
    %251 = tpu.concatenate %246, %247, %248, %249, %250 in 1 : vector<6x64xbf16>, vector<6x64xbf16>, vector<6x64xbf16>, vector<6x64xbf16>, vector<6x64xbf16> -> vector<6x320xbf16>
    %c156 = arith.constant 156 : index
    %c0_70 = arith.constant 0 : index
    %252 = vector.load %arg5[%c156, %c0_70] : memref<240x320xbf16, #tpu.memory_space<vmem>>, vector<6x320xbf16>
    tpu.vector_store %arg5[%c156, %c0_70], %251 {strides = array<i32>} : memref<240x320xbf16, #tpu.memory_space<vmem>>, vector<6x320xbf16>,
    %253 = vector.extract_strided_slice %187 {offsets = [0, 10, 0], sizes = [6, 3, 64], strides = [1, 1, 1]} : vector<6x13x64xf32> to vector<6x3x64xf32>
    %cst_71 = arith.constant dense<0xFF800000> : vector<6x64xf32>
    %254 = vector.multi_reduction <maximumf>, %253, %cst_71 [1] : vector<6x3x64xf32> to vector<6x64xf32>
    %cst_72 = arith.constant 0.000000e+00 : f32
    %255 = vector.broadcast %cst_72 : f32 to vector<6x64xf32>
    %256 = arith.maximumf %254, %255 : vector<6x64xf32>
    %257 = arith.truncf %256 : vector<6x64xf32> to vector<6x64xbf16>
    %258 = tpu.concatenate %4, %257, %4 in 0 : vector<2x64xbf16>, vector<6x64xbf16>, vector<2x64xbf16> -> vector<10x64xbf16>
    %259 = vector.extract_strided_slice %258 {offsets = [0, 0], sizes = [6, 64], strides = [1, 1]} : vector<10x64xbf16> to vector<6x64xbf16>
    %260 = vector.extract_strided_slice %258 {offsets = [1, 0], sizes = [6, 64], strides = [1, 1]} : vector<10x64xbf16> to vector<6x64xbf16>
    %261 = vector.extract_strided_slice %258 {offsets = [2, 0], sizes = [6, 64], strides = [1, 1]} : vector<10x64xbf16> to vector<6x64xbf16>
    %262 = vector.extract_strided_slice %258 {offsets = [3, 0], sizes = [6, 64], strides = [1, 1]} : vector<10x64xbf16> to vector<6x64xbf16>
    %263 = vector.extract_strided_slice %258 {offsets = [4, 0], sizes = [6, 64], strides = [1, 1]} : vector<10x64xbf16> to vector<6x64xbf16>
    %264 = tpu.concatenate %259, %260, %261, %262, %263 in 1 : vector<6x64xbf16>, vector<6x64xbf16>, vector<6x64xbf16>, vector<6x64xbf16>, vector<6x64xbf16> -> vector<6x320xbf16>
    %c180 = arith.constant 180 : index
    %c0_73 = arith.constant 0 : index
    %265 = vector.load %arg5[%c180, %c0_73] : memref<240x320xbf16, #tpu.memory_space<vmem>>, vector<6x320xbf16>
    tpu.vector_store %arg5[%c180, %c0_73], %264 {strides = array<i32>} : memref<240x320xbf16, #tpu.memory_space<vmem>>, vector<6x320xbf16>,
    %c3 = arith.constant 3 : index
    %c0_74 = arith.constant 0 : index
    %c0_75 = arith.constant 0 : index
    %c0_76 = arith.constant 0 : index
    %266 = vector.load %arg1[%c3, %c0_74, %c0_75, %c0_76] : memref<4x13x13x64xf32, #tpu.memory_space<vmem>>, vector<1x13x13x64xf32>
    %267 = vector.shape_cast %266 : vector<1x13x13x64xf32> to vector<13x13x64xf32>
    %268 = vector.extract_strided_slice %267 {offsets = [0, 0, 0], sizes = [12, 13, 64], strides = [1, 1, 1]} : vector<13x13x64xf32> to vector<12x13x64xf32>
    %269 = vector.shape_cast %268 : vector<12x13x64xf32> to vector<6x2x13x64xf32>
    %cst_77 = arith.constant dense<0xFF800000> : vector<6x13x64xf32>
    %270 = vector.multi_reduction <maximumf>, %269, %cst_77 [1] : vector<6x2x13x64xf32> to vector<6x13x64xf32>
    %271 = vector.extract_strided_slice %267 {offsets = [1, 0, 0], sizes = [12, 13, 64], strides = [1, 1, 1]} : vector<13x13x64xf32> to vector<12x13x64xf32>
    %272 = vector.shape_cast %271 : vector<12x13x64xf32> to vector<6x2x13x64xf32>
    %cst_78 = arith.constant dense<0xFF800000> : vector<6x13x64xf32>
    %273 = vector.multi_reduction <maximumf>, %272, %cst_78 [1] : vector<6x2x13x64xf32> to vector<6x13x64xf32>
    %274 = arith.maximumf %270, %273 : vector<6x13x64xf32>
    %275 = vector.extract_strided_slice %274 {offsets = [0, 0, 0], sizes = [6, 3, 64], strides = [1, 1, 1]} : vector<6x13x64xf32> to vector<6x3x64xf32>
    %cst_79 = arith.constant dense<0xFF800000> : vector<6x64xf32>
    %276 = vector.multi_reduction <maximumf>, %275, %cst_79 [1] : vector<6x3x64xf32> to vector<6x64xf32>
    %cst_80 = arith.constant 0.000000e+00 : f32
    %277 = vector.broadcast %cst_80 : f32 to vector<6x64xf32>
    %278 = arith.maximumf %276, %277 : vector<6x64xf32>
    %279 = arith.truncf %278 : vector<6x64xf32> to vector<6x64xbf16>
    %280 = tpu.concatenate %4, %279, %4 in 0 : vector<2x64xbf16>, vector<6x64xbf16>, vector<2x64xbf16> -> vector<10x64xbf16>
    %281 = vector.extract_strided_slice %280 {offsets = [0, 0], sizes = [6, 64], strides = [1, 1]} : vector<10x64xbf16> to vector<6x64xbf16>
    %282 = vector.extract_strided_slice %280 {offsets = [1, 0], sizes = [6, 64], strides = [1, 1]} : vector<10x64xbf16> to vector<6x64xbf16>
    %283 = vector.extract_strided_slice %280 {offsets = [2, 0], sizes = [6, 64], strides = [1, 1]} : vector<10x64xbf16> to vector<6x64xbf16>
    %284 = vector.extract_strided_slice %280 {offsets = [3, 0], sizes = [6, 64], strides = [1, 1]} : vector<10x64xbf16> to vector<6x64xbf16>
    %285 = vector.extract_strided_slice %280 {offsets = [4, 0], sizes = [6, 64], strides = [1, 1]} : vector<10x64xbf16> to vector<6x64xbf16>
    %286 = tpu.concatenate %281, %282, %283, %284, %285 in 1 : vector<6x64xbf16>, vector<6x64xbf16>, vector<6x64xbf16>, vector<6x64xbf16>, vector<6x64xbf16> -> vector<6x320xbf16>
    %c66 = arith.constant 66 : index
    %c0_81 = arith.constant 0 : index
    %287 = vector.load %arg5[%c66, %c0_81] : memref<240x320xbf16, #tpu.memory_space<vmem>>, vector<6x320xbf16>
    tpu.vector_store %arg5[%c66, %c0_81], %286 {strides = array<i32>} : memref<240x320xbf16, #tpu.memory_space<vmem>>, vector<6x320xbf16>,
    %288 = vector.extract_strided_slice %274 {offsets = [0, 2, 0], sizes = [6, 3, 64], strides = [1, 1, 1]} : vector<6x13x64xf32> to vector<6x3x64xf32>
    %cst_82 = arith.constant dense<0xFF800000> : vector<6x64xf32>
    %289 = vector.multi_reduction <maximumf>, %288, %cst_82 [1] : vector<6x3x64xf32> to vector<6x64xf32>
    %cst_83 = arith.constant 0.000000e+00 : f32
    %290 = vector.broadcast %cst_83 : f32 to vector<6x64xf32>
    %291 = arith.maximumf %289, %290 : vector<6x64xf32>
    %292 = arith.truncf %291 : vector<6x64xf32> to vector<6x64xbf16>
    %293 = tpu.concatenate %4, %292, %4 in 0 : vector<2x64xbf16>, vector<6x64xbf16>, vector<2x64xbf16> -> vector<10x64xbf16>
    %294 = vector.extract_strided_slice %293 {offsets = [0, 0], sizes = [6, 64], strides = [1, 1]} : vector<10x64xbf16> to vector<6x64xbf16>
    %295 = vector.extract_strided_slice %293 {offsets = [1, 0], sizes = [6, 64], strides = [1, 1]} : vector<10x64xbf16> to vector<6x64xbf16>
    %296 = vector.extract_strided_slice %293 {offsets = [2, 0], sizes = [6, 64], strides = [1, 1]} : vector<10x64xbf16> to vector<6x64xbf16>
    %297 = vector.extract_strided_slice %293 {offsets = [3, 0], sizes = [6, 64], strides = [1, 1]} : vector<10x64xbf16> to vector<6x64xbf16>
    %298 = vector.extract_strided_slice %293 {offsets = [4, 0], sizes = [6, 64], strides = [1, 1]} : vector<10x64xbf16> to vector<6x64xbf16>
    %299 = tpu.concatenate %294, %295, %296, %297, %298 in 1 : vector<6x64xbf16>, vector<6x64xbf16>, vector<6x64xbf16>, vector<6x64xbf16>, vector<6x64xbf16> -> vector<6x320xbf16>
    %c90 = arith.constant 90 : index
    %c0_84 = arith.constant 0 : index
    %300 = vector.load %arg5[%c90, %c0_84] : memref<240x320xbf16, #tpu.memory_space<vmem>>, vector<6x320xbf16>
    tpu.vector_store %arg5[%c90, %c0_84], %299 {strides = array<i32>} : memref<240x320xbf16, #tpu.memory_space<vmem>>, vector<6x320xbf16>,
    %301 = vector.extract_strided_slice %274 {offsets = [0, 4, 0], sizes = [6, 3, 64], strides = [1, 1, 1]} : vector<6x13x64xf32> to vector<6x3x64xf32>
    %cst_85 = arith.constant dense<0xFF800000> : vector<6x64xf32>
    %302 = vector.multi_reduction <maximumf>, %301, %cst_85 [1] : vector<6x3x64xf32> to vector<6x64xf32>
    %cst_86 = arith.constant 0.000000e+00 : f32
    %303 = vector.broadcast %cst_86 : f32 to vector<6x64xf32>
    %304 = arith.maximumf %302, %303 : vector<6x64xf32>
    %305 = arith.truncf %304 : vector<6x64xf32> to vector<6x64xbf16>
    %306 = tpu.concatenate %4, %305, %4 in 0 : vector<2x64xbf16>, vector<6x64xbf16>, vector<2x64xbf16> -> vector<10x64xbf16>
    %307 = vector.extract_strided_slice %306 {offsets = [0, 0], sizes = [6, 64], strides = [1, 1]} : vector<10x64xbf16> to vector<6x64xbf16>
    %308 = vector.extract_strided_slice %306 {offsets = [1, 0], sizes = [6, 64], strides = [1, 1]} : vector<10x64xbf16> to vector<6x64xbf16>
    %309 = vector.extract_strided_slice %306 {offsets = [2, 0], sizes = [6, 64], strides = [1, 1]} : vector<10x64xbf16> to vector<6x64xbf16>
    %310 = vector.extract_strided_slice %306 {offsets = [3, 0], sizes = [6, 64], strides = [1, 1]} : vector<10x64xbf16> to vector<6x64xbf16>
    %311 = vector.extract_strided_slice %306 {offsets = [4, 0], sizes = [6, 64], strides = [1, 1]} : vector<10x64xbf16> to vector<6x64xbf16>
    %312 = tpu.concatenate %307, %308, %309, %310, %311 in 1 : vector<6x64xbf16>, vector<6x64xbf16>, vector<6x64xbf16>, vector<6x64xbf16>, vector<6x64xbf16> -> vector<6x320xbf16>
    %c114 = arith.constant 114 : index
    %c0_87 = arith.constant 0 : index
    %313 = vector.load %arg5[%c114, %c0_87] : memref<240x320xbf16, #tpu.memory_space<vmem>>, vector<6x320xbf16>
    tpu.vector_store %arg5[%c114, %c0_87], %312 {strides = array<i32>} : memref<240x320xbf16, #tpu.memory_space<vmem>>, vector<6x320xbf16>,
    %314 = vector.extract_strided_slice %274 {offsets = [0, 6, 0], sizes = [6, 3, 64], strides = [1, 1, 1]} : vector<6x13x64xf32> to vector<6x3x64xf32>
    %cst_88 = arith.constant dense<0xFF800000> : vector<6x64xf32>
    %315 = vector.multi_reduction <maximumf>, %314, %cst_88 [1] : vector<6x3x64xf32> to vector<6x64xf32>
    %cst_89 = arith.constant 0.000000e+00 : f32
    %316 = vector.broadcast %cst_89 : f32 to vector<6x64xf32>
    %317 = arith.maximumf %315, %316 : vector<6x64xf32>
    %318 = arith.truncf %317 : vector<6x64xf32> to vector<6x64xbf16>
    %319 = tpu.concatenate %4, %318, %4 in 0 : vector<2x64xbf16>, vector<6x64xbf16>, vector<2x64xbf16> -> vector<10x64xbf16>
    %320 = vector.extract_strided_slice %319 {offsets = [0, 0], sizes = [6, 64], strides = [1, 1]} : vector<10x64xbf16> to vector<6x64xbf16>
    %321 = vector.extract_strided_slice %319 {offsets = [1, 0], sizes = [6, 64], strides = [1, 1]} : vector<10x64xbf16> to vector<6x64xbf16>
    %322 = vector.extract_strided_slice %319 {offsets = [2, 0], sizes = [6, 64], strides = [1, 1]} : vector<10x64xbf16> to vector<6x64xbf16>
    %323 = vector.extract_strided_slice %319 {offsets = [3, 0], sizes = [6, 64], strides = [1, 1]} : vector<10x64xbf16> to vector<6x64xbf16>
    %324 = vector.extract_strided_slice %319 {offsets = [4, 0], sizes = [6, 64], strides = [1, 1]} : vector<10x64xbf16> to vector<6x64xbf16>
    %325 = tpu.concatenate %320, %321, %322, %323, %324 in 1 : vector<6x64xbf16>, vector<6x64xbf16>, vector<6x64xbf16>, vector<6x64xbf16>, vector<6x64xbf16> -> vector<6x320xbf16>
    %c138 = arith.constant 138 : index
    %c0_90 = arith.constant 0 : index
    %326 = vector.load %arg5[%c138, %c0_90] : memref<240x320xbf16, #tpu.memory_space<vmem>>, vector<6x320xbf16>
    tpu.vector_store %arg5[%c138, %c0_90], %325 {strides = array<i32>} : memref<240x320xbf16, #tpu.memory_space<vmem>>, vector<6x320xbf16>,
    %327 = vector.extract_strided_slice %274 {offsets = [0, 8, 0], sizes = [6, 3, 64], strides = [1, 1, 1]} : vector<6x13x64xf32> to vector<6x3x64xf32>
    %cst_91 = arith.constant dense<0xFF800000> : vector<6x64xf32>
    %328 = vector.multi_reduction <maximumf>, %327, %cst_91 [1] : vector<6x3x64xf32> to vector<6x64xf32>
    %cst_92 = arith.constant 0.000000e+00 : f32
    %329 = vector.broadcast %cst_92 : f32 to vector<6x64xf32>
    %330 = arith.maximumf %328, %329 : vector<6x64xf32>
    %331 = arith.truncf %330 : vector<6x64xf32> to vector<6x64xbf16>
    %332 = tpu.concatenate %4, %331, %4 in 0 : vector<2x64xbf16>, vector<6x64xbf16>, vector<2x64xbf16> -> vector<10x64xbf16>
    %333 = vector.extract_strided_slice %332 {offsets = [0, 0], sizes = [6, 64], strides = [1, 1]} : vector<10x64xbf16> to vector<6x64xbf16>
    %334 = vector.extract_strided_slice %332 {offsets = [1, 0], sizes = [6, 64], strides = [1, 1]} : vector<10x64xbf16> to vector<6x64xbf16>
    %335 = vector.extract_strided_slice %332 {offsets = [2, 0], sizes = [6, 64], strides = [1, 1]} : vector<10x64xbf16> to vector<6x64xbf16>
    %336 = vector.extract_strided_slice %332 {offsets = [3, 0], sizes = [6, 64], strides = [1, 1]} : vector<10x64xbf16> to vector<6x64xbf16>
    %337 = vector.extract_strided_slice %332 {offsets = [4, 0], sizes = [6, 64], strides = [1, 1]} : vector<10x64xbf16> to vector<6x64xbf16>
    %338 = tpu.concatenate %333, %334, %335, %336, %337 in 1 : vector<6x64xbf16>, vector<6x64xbf16>, vector<6x64xbf16>, vector<6x64xbf16>, vector<6x64xbf16> -> vector<6x320xbf16>
    %c162 = arith.constant 162 : index
    %c0_93 = arith.constant 0 : index
    %339 = vector.load %arg5[%c162, %c0_93] : memref<240x320xbf16, #tpu.memory_space<vmem>>, vector<6x320xbf16>
    tpu.vector_store %arg5[%c162, %c0_93], %338 {strides = array<i32>} : memref<240x320xbf16, #tpu.memory_space<vmem>>, vector<6x320xbf16>,
    %340 = vector.extract_strided_slice %274 {offsets = [0, 10, 0], sizes = [6, 3, 64], strides = [1, 1, 1]} : vector<6x13x64xf32> to vector<6x3x64xf32>
    %cst_94 = arith.constant dense<0xFF800000> : vector<6x64xf32>
    %341 = vector.multi_reduction <maximumf>, %340, %cst_94 [1] : vector<6x3x64xf32> to vector<6x64xf32>
    %cst_95 = arith.constant 0.000000e+00 : f32
    %342 = vector.broadcast %cst_95 : f32 to vector<6x64xf32>
    %343 = arith.maximumf %341, %342 : vector<6x64xf32>
    %344 = arith.truncf %343 : vector<6x64xf32> to vector<6x64xbf16>
    %345 = tpu.concatenate %4, %344, %4 in 0 : vector<2x64xbf16>, vector<6x64xbf16>, vector<2x64xbf16> -> vector<10x64xbf16>
    %346 = vector.extract_strided_slice %345 {offsets = [0, 0], sizes = [6, 64], strides = [1, 1]} : vector<10x64xbf16> to vector<6x64xbf16>
    %347 = vector.extract_strided_slice %345 {offsets = [1, 0], sizes = [6, 64], strides = [1, 1]} : vector<10x64xbf16> to vector<6x64xbf16>
    %348 = vector.extract_strided_slice %345 {offsets = [2, 0], sizes = [6, 64], strides = [1, 1]} : vector<10x64xbf16> to vector<6x64xbf16>
    %349 = vector.extract_strided_slice %345 {offsets = [3, 0], sizes = [6, 64], strides = [1, 1]} : vector<10x64xbf16> to vector<6x64xbf16>
    %350 = vector.extract_strided_slice %345 {offsets = [4, 0], sizes = [6, 64], strides = [1, 1]} : vector<10x64xbf16> to vector<6x64xbf16>
    %351 = tpu.concatenate %346, %347, %348, %349, %350 in 1 : vector<6x64xbf16>, vector<6x64xbf16>, vector<6x64xbf16>, vector<6x64xbf16>, vector<6x64xbf16> -> vector<6x320xbf16>
    %c186 = arith.constant 186 : index
    %c0_96 = arith.constant 0 : index
    %352 = vector.load %arg5[%c186, %c0_96] : memref<240x320xbf16, #tpu.memory_space<vmem>>, vector<6x320xbf16>
    tpu.vector_store %arg5[%c186, %c0_96], %351 {strides = array<i32>} : memref<240x320xbf16, #tpu.memory_space<vmem>>, vector<6x320xbf16>,
    %c0_97 = arith.constant 0 : index
    %c0_98 = arith.constant 0 : index
    %353 = vector.load %arg5[%c0_97, %c0_98] : memref<240x320xbf16, #tpu.memory_space<vmem>>, vector<144x320xbf16>
    %c0_99 = arith.constant 0 : index
    %c0_100 = arith.constant 0 : index
    %c0_101 = arith.constant 0 : index
    %354 = vector.load %arg2[%c0_99, %c0_100, %c0_101] : memref<5x320x192xbf16, #tpu.memory_space<vmem>>, vector<1x320x192xbf16>
    %355 = vector.shape_cast %354 : vector<1x320x192xbf16> to vector<320x192xbf16>
    %cst_102 = arith.constant dense<0.000000e+00> : vector<144x192xf32>
    %356 = tpu.matmul %353, %355, %cst_102 {dimension_numbers = #tpu.dot_dimension_numbers<[1], [0], [0], [1], [0, 0, 1, 1], [], []>} : vector<144x320xbf16>, vector<320x192xbf16>, vector<144x192xf32> -> vector<144x192xf32>
    %c0_103 = arith.constant 0 : index
    %c0_104 = arith.constant 0 : index
    %357 = vector.load %arg6[%c0_103, %c0_104] : memref<144x192xf32, #tpu.memory_space<vmem>>, vector<144x192xf32>
    tpu.vector_store %arg6[%c0_103, %c0_104], %356 {strides = array<i32>} : memref<144x192xf32, #tpu.memory_space<vmem>>, vector<144x192xf32>,
    %c24 = arith.constant 24 : index
    %c0_105 = arith.constant 0 : index
    %358 = vector.load %arg5[%c24, %c0_105] : memref<240x320xbf16, #tpu.memory_space<vmem>>, vector<144x320xbf16>
    %c1_106 = arith.constant 1 : index
    %c0_107 = arith.constant 0 : index
    %c0_108 = arith.constant 0 : index
    %359 = vector.load %arg2[%c1_106, %c0_107, %c0_108] : memref<5x320x192xbf16, #tpu.memory_space<vmem>>, vector<1x320x192xbf16>
    %360 = vector.shape_cast %359 : vector<1x320x192xbf16> to vector<320x192xbf16>
    %cst_109 = arith.constant dense<0.000000e+00> : vector<144x192xf32>
    %361 = tpu.matmul %358, %360, %cst_109 {dimension_numbers = #tpu.dot_dimension_numbers<[1], [0], [0], [1], [0, 0, 1, 1], [], []>} : vector<144x320xbf16>, vector<320x192xbf16>, vector<144x192xf32> -> vector<144x192xf32>
    %c0_110 = arith.constant 0 : index
    %c0_111 = arith.constant 0 : index
    %362 = vector.load %arg6[%c0_110, %c0_111] : memref<144x192xf32, #tpu.memory_space<vmem>>, vector<144x192xf32>
    %363 = arith.addf %362, %361 : vector<144x192xf32>
    %c0_112 = arith.constant 0 : index
    %c0_113 = arith.constant 0 : index
    %364 = vector.load %arg6[%c0_112, %c0_113] : memref<144x192xf32, #tpu.memory_space<vmem>>, vector<144x192xf32>
    tpu.vector_store %arg6[%c0_112, %c0_113], %363 {strides = array<i32>} : memref<144x192xf32, #tpu.memory_space<vmem>>, vector<144x192xf32>,
    %c48_114 = arith.constant 48 : index
    %c0_115 = arith.constant 0 : index
    %365 = vector.load %arg5[%c48_114, %c0_115] : memref<240x320xbf16, #tpu.memory_space<vmem>>, vector<144x320xbf16>
    %c2_116 = arith.constant 2 : index
    %c0_117 = arith.constant 0 : index
    %c0_118 = arith.constant 0 : index
    %366 = vector.load %arg2[%c2_116, %c0_117, %c0_118] : memref<5x320x192xbf16, #tpu.memory_space<vmem>>, vector<1x320x192xbf16>
    %367 = vector.shape_cast %366 : vector<1x320x192xbf16> to vector<320x192xbf16>
    %cst_119 = arith.constant dense<0.000000e+00> : vector<144x192xf32>
    %368 = tpu.matmul %365, %367, %cst_119 {dimension_numbers = #tpu.dot_dimension_numbers<[1], [0], [0], [1], [0, 0, 1, 1], [], []>} : vector<144x320xbf16>, vector<320x192xbf16>, vector<144x192xf32> -> vector<144x192xf32>
    %c0_120 = arith.constant 0 : index
    %c0_121 = arith.constant 0 : index
    %369 = vector.load %arg6[%c0_120, %c0_121] : memref<144x192xf32, #tpu.memory_space<vmem>>, vector<144x192xf32>
    %370 = arith.addf %369, %368 : vector<144x192xf32>
    %c0_122 = arith.constant 0 : index
    %c0_123 = arith.constant 0 : index
    %371 = vector.load %arg6[%c0_122, %c0_123] : memref<144x192xf32, #tpu.memory_space<vmem>>, vector<144x192xf32>
    tpu.vector_store %arg6[%c0_122, %c0_123], %370 {strides = array<i32>} : memref<144x192xf32, #tpu.memory_space<vmem>>, vector<144x192xf32>,
    %c72_124 = arith.constant 72 : index
    %c0_125 = arith.constant 0 : index
    %372 = vector.load %arg5[%c72_124, %c0_125] : memref<240x320xbf16, #tpu.memory_space<vmem>>, vector<144x320xbf16>
    %c3_126 = arith.constant 3 : index
    %c0_127 = arith.constant 0 : index
    %c0_128 = arith.constant 0 : index
    %373 = vector.load %arg2[%c3_126, %c0_127, %c0_128] : memref<5x320x192xbf16, #tpu.memory_space<vmem>>, vector<1x320x192xbf16>
    %374 = vector.shape_cast %373 : vector<1x320x192xbf16> to vector<320x192xbf16>
    %cst_129 = arith.constant dense<0.000000e+00> : vector<144x192xf32>
    %375 = tpu.matmul %372, %374, %cst_129 {dimension_numbers = #tpu.dot_dimension_numbers<[1], [0], [0], [1], [0, 0, 1, 1], [], []>} : vector<144x320xbf16>, vector<320x192xbf16>, vector<144x192xf32> -> vector<144x192xf32>
    %c0_130 = arith.constant 0 : index
    %c0_131 = arith.constant 0 : index
    %376 = vector.load %arg6[%c0_130, %c0_131] : memref<144x192xf32, #tpu.memory_space<vmem>>, vector<144x192xf32>
    %377 = arith.addf %376, %375 : vector<144x192xf32>
    %c0_132 = arith.constant 0 : index
    %c0_133 = arith.constant 0 : index
    %378 = vector.load %arg6[%c0_132, %c0_133] : memref<144x192xf32, #tpu.memory_space<vmem>>, vector<144x192xf32>
    tpu.vector_store %arg6[%c0_132, %c0_133], %377 {strides = array<i32>} : memref<144x192xf32, #tpu.memory_space<vmem>>, vector<144x192xf32>,
    %c96_134 = arith.constant 96 : index
    %c0_135 = arith.constant 0 : index
    %379 = vector.load %arg5[%c96_134, %c0_135] : memref<240x320xbf16, #tpu.memory_space<vmem>>, vector<144x320xbf16>
    %c4 = arith.constant 4 : index
    %c0_136 = arith.constant 0 : index
    %c0_137 = arith.constant 0 : index
    %380 = vector.load %arg2[%c4, %c0_136, %c0_137] : memref<5x320x192xbf16, #tpu.memory_space<vmem>>, vector<1x320x192xbf16>
    %381 = vector.shape_cast %380 : vector<1x320x192xbf16> to vector<320x192xbf16>
    %cst_138 = arith.constant dense<0.000000e+00> : vector<144x192xf32>
    %382 = tpu.matmul %379, %381, %cst_138 {dimension_numbers = #tpu.dot_dimension_numbers<[1], [0], [0], [1], [0, 0, 1, 1], [], []>} : vector<144x320xbf16>, vector<320x192xbf16>, vector<144x192xf32> -> vector<144x192xf32>
    %c0_139 = arith.constant 0 : index
    %c0_140 = arith.constant 0 : index
    %383 = vector.load %arg6[%c0_139, %c0_140] : memref<144x192xf32, #tpu.memory_space<vmem>>, vector<144x192xf32>
    %384 = arith.addf %383, %382 : vector<144x192xf32>
    %c0_141 = arith.constant 0 : index
    %c0_142 = arith.constant 0 : index
    %385 = vector.load %arg6[%c0_141, %c0_142] : memref<144x192xf32, #tpu.memory_space<vmem>>, vector<144x192xf32>
    tpu.vector_store %arg6[%c0_141, %c0_142], %384 {strides = array<i32>} : memref<144x192xf32, #tpu.memory_space<vmem>>, vector<144x192xf32>,
    %c0_143 = arith.constant 0 : index
    %c0_144 = arith.constant 0 : index
    %386 = vector.load %arg3[%c0_143, %c0_144] : memref<1x192xf32, #tpu.memory_space<vmem>>, vector<1x192xf32>
    %c0_145 = arith.constant 0 : index
    %c0_146 = arith.constant 0 : index
    %387 = vector.load %arg6[%c0_145, %c0_146] : memref<144x192xf32, #tpu.memory_space<vmem>>, vector<24x192xf32>
    %c24_147 = arith.constant 24 : index
    %c0_148 = arith.constant 0 : index
    %388 = vector.load %arg6[%c24_147, %c0_148] : memref<144x192xf32, #tpu.memory_space<vmem>>, vector<24x192xf32>
    %389 = arith.maximumf %387, %388 : vector<24x192xf32>
    %c48_149 = arith.constant 48 : index
    %c0_150 = arith.constant 0 : index
    %390 = vector.load %arg6[%c48_149, %c0_150] : memref<144x192xf32, #tpu.memory_space<vmem>>, vector<24x192xf32>
    %391 = arith.maximumf %389, %390 : vector<24x192xf32>
    %392 = vector.broadcast %386 : vector<1x192xf32> to vector<24x192xf32>
    %393 = arith.addf %391, %392 : vector<24x192xf32>
    %cst_151 = arith.constant 0.000000e+00 : f32
    %394 = vector.broadcast %cst_151 : f32 to vector<24x192xf32>
    %395 = arith.maximumf %393, %394 : vector<24x192xf32>
    %396 = vector.extract_strided_slice %395 {offsets = [0, 0], sizes = [3, 192], strides = [1, 1]} : vector<24x192xf32> to vector<3x192xf32>
    %cst_152 = arith.constant dense<0xFF800000> : vector<192xf32>
    %397 = vector.multi_reduction <maximumf>, %396, %cst_152 [0] : vector<3x192xf32> to vector<192xf32>
    %398 = vector.shape_cast %397 : vector<192xf32> to vector<1x192xf32>
    %399 = vector.extract_strided_slice %395 {offsets = [2, 0], sizes = [3, 192], strides = [1, 1]} : vector<24x192xf32> to vector<3x192xf32>
    %cst_153 = arith.constant dense<0xFF800000> : vector<192xf32>
    %400 = vector.multi_reduction <maximumf>, %399, %cst_153 [0] : vector<3x192xf32> to vector<192xf32>
    %401 = vector.shape_cast %400 : vector<192xf32> to vector<1x192xf32>
    %402 = vector.extract_strided_slice %395 {offsets = [6, 0], sizes = [3, 192], strides = [1, 1]} : vector<24x192xf32> to vector<3x192xf32>
    %cst_154 = arith.constant dense<0xFF800000> : vector<192xf32>
    %403 = vector.multi_reduction <maximumf>, %402, %cst_154 [0] : vector<3x192xf32> to vector<192xf32>
    %404 = vector.shape_cast %403 : vector<192xf32> to vector<1x192xf32>
    %405 = vector.extract_strided_slice %395 {offsets = [8, 0], sizes = [3, 192], strides = [1, 1]} : vector<24x192xf32> to vector<3x192xf32>
    %cst_155 = arith.constant dense<0xFF800000> : vector<192xf32>
    %406 = vector.multi_reduction <maximumf>, %405, %cst_155 [0] : vector<3x192xf32> to vector<192xf32>
    %407 = vector.shape_cast %406 : vector<192xf32> to vector<1x192xf32>
    %408 = vector.extract_strided_slice %395 {offsets = [12, 0], sizes = [3, 192], strides = [1, 1]} : vector<24x192xf32> to vector<3x192xf32>
    %cst_156 = arith.constant dense<0xFF800000> : vector<192xf32>
    %409 = vector.multi_reduction <maximumf>, %408, %cst_156 [0] : vector<3x192xf32> to vector<192xf32>
    %410 = vector.shape_cast %409 : vector<192xf32> to vector<1x192xf32>
    %411 = vector.extract_strided_slice %395 {offsets = [14, 0], sizes = [3, 192], strides = [1, 1]} : vector<24x192xf32> to vector<3x192xf32>
    %cst_157 = arith.constant dense<0xFF800000> : vector<192xf32>
    %412 = vector.multi_reduction <maximumf>, %411, %cst_157 [0] : vector<3x192xf32> to vector<192xf32>
    %413 = vector.shape_cast %412 : vector<192xf32> to vector<1x192xf32>
    %414 = vector.extract_strided_slice %395 {offsets = [18, 0], sizes = [3, 192], strides = [1, 1]} : vector<24x192xf32> to vector<3x192xf32>
    %cst_158 = arith.constant dense<0xFF800000> : vector<192xf32>
    %415 = vector.multi_reduction <maximumf>, %414, %cst_158 [0] : vector<3x192xf32> to vector<192xf32>
    %416 = vector.shape_cast %415 : vector<192xf32> to vector<1x192xf32>
    %417 = vector.extract_strided_slice %395 {offsets = [20, 0], sizes = [3, 192], strides = [1, 1]} : vector<24x192xf32> to vector<3x192xf32>
    %cst_159 = arith.constant dense<0xFF800000> : vector<192xf32>
    %418 = vector.multi_reduction <maximumf>, %417, %cst_159 [0] : vector<3x192xf32> to vector<192xf32>
    %419 = vector.shape_cast %418 : vector<192xf32> to vector<1x192xf32>
    %c48_160 = arith.constant 48 : index
    %c0_161 = arith.constant 0 : index
    %420 = vector.load %arg6[%c48_160, %c0_161] : memref<144x192xf32, #tpu.memory_space<vmem>>, vector<24x192xf32>
    %c72_162 = arith.constant 72 : index
    %c0_163 = arith.constant 0 : index
    %421 = vector.load %arg6[%c72_162, %c0_163] : memref<144x192xf32, #tpu.memory_space<vmem>>, vector<24x192xf32>
    %422 = arith.maximumf %420, %421 : vector<24x192xf32>
    %c96_164 = arith.constant 96 : index
    %c0_165 = arith.constant 0 : index
    %423 = vector.load %arg6[%c96_164, %c0_165] : memref<144x192xf32, #tpu.memory_space<vmem>>, vector<24x192xf32>
    %424 = arith.maximumf %422, %423 : vector<24x192xf32>
    %425 = vector.broadcast %386 : vector<1x192xf32> to vector<24x192xf32>
    %426 = arith.addf %424, %425 : vector<24x192xf32>
    %cst_166 = arith.constant 0.000000e+00 : f32
    %427 = vector.broadcast %cst_166 : f32 to vector<24x192xf32>
    %428 = arith.maximumf %426, %427 : vector<24x192xf32>
    %429 = vector.extract_strided_slice %428 {offsets = [0, 0], sizes = [3, 192], strides = [1, 1]} : vector<24x192xf32> to vector<3x192xf32>
    %cst_167 = arith.constant dense<0xFF800000> : vector<192xf32>
    %430 = vector.multi_reduction <maximumf>, %429, %cst_167 [0] : vector<3x192xf32> to vector<192xf32>
    %431 = vector.shape_cast %430 : vector<192xf32> to vector<1x192xf32>
    %432 = vector.extract_strided_slice %428 {offsets = [2, 0], sizes = [3, 192], strides = [1, 1]} : vector<24x192xf32> to vector<3x192xf32>
    %cst_168 = arith.constant dense<0xFF800000> : vector<192xf32>
    %433 = vector.multi_reduction <maximumf>, %432, %cst_168 [0] : vector<3x192xf32> to vector<192xf32>
    %434 = vector.shape_cast %433 : vector<192xf32> to vector<1x192xf32>
    %435 = vector.extract_strided_slice %428 {offsets = [6, 0], sizes = [3, 192], strides = [1, 1]} : vector<24x192xf32> to vector<3x192xf32>
    %cst_169 = arith.constant dense<0xFF800000> : vector<192xf32>
    %436 = vector.multi_reduction <maximumf>, %435, %cst_169 [0] : vector<3x192xf32> to vector<192xf32>
    %437 = vector.shape_cast %436 : vector<192xf32> to vector<1x192xf32>
    %438 = vector.extract_strided_slice %428 {offsets = [8, 0], sizes = [3, 192], strides = [1, 1]} : vector<24x192xf32> to vector<3x192xf32>
    %cst_170 = arith.constant dense<0xFF800000> : vector<192xf32>
    %439 = vector.multi_reduction <maximumf>, %438, %cst_170 [0] : vector<3x192xf32> to vector<192xf32>
    %440 = vector.shape_cast %439 : vector<192xf32> to vector<1x192xf32>
    %441 = vector.extract_strided_slice %428 {offsets = [12, 0], sizes = [3, 192], strides = [1, 1]} : vector<24x192xf32> to vector<3x192xf32>
    %cst_171 = arith.constant dense<0xFF800000> : vector<192xf32>
    %442 = vector.multi_reduction <maximumf>, %441, %cst_171 [0] : vector<3x192xf32> to vector<192xf32>
    %443 = vector.shape_cast %442 : vector<192xf32> to vector<1x192xf32>
    %444 = vector.extract_strided_slice %428 {offsets = [14, 0], sizes = [3, 192], strides = [1, 1]} : vector<24x192xf32> to vector<3x192xf32>
    %cst_172 = arith.constant dense<0xFF800000> : vector<192xf32>
    %445 = vector.multi_reduction <maximumf>, %444, %cst_172 [0] : vector<3x192xf32> to vector<192xf32>
    %446 = vector.shape_cast %445 : vector<192xf32> to vector<1x192xf32>
    %447 = vector.extract_strided_slice %428 {offsets = [18, 0], sizes = [3, 192], strides = [1, 1]} : vector<24x192xf32> to vector<3x192xf32>
    %cst_173 = arith.constant dense<0xFF800000> : vector<192xf32>
    %448 = vector.multi_reduction <maximumf>, %447, %cst_173 [0] : vector<3x192xf32> to vector<192xf32>
    %449 = vector.shape_cast %448 : vector<192xf32> to vector<1x192xf32>
    %450 = vector.extract_strided_slice %428 {offsets = [20, 0], sizes = [3, 192], strides = [1, 1]} : vector<24x192xf32> to vector<3x192xf32>
    %cst_174 = arith.constant dense<0xFF800000> : vector<192xf32>
    %451 = vector.multi_reduction <maximumf>, %450, %cst_174 [0] : vector<3x192xf32> to vector<192xf32>
    %452 = vector.shape_cast %451 : vector<192xf32> to vector<1x192xf32>
    %453 = tpu.concatenate %398, %431, %401, %434 in 0 : vector<1x192xf32>, vector<1x192xf32>, vector<1x192xf32>, vector<1x192xf32> -> vector<4x192xf32>
    %c0_175 = arith.constant 0 : index
    %c0_176 = arith.constant 0 : index
    %c0_177 = arith.constant 0 : index
    %454 = vector.load %arg4[%c0_175, %c0_176, %c0_177] : memref<4x4x192xf32, #tpu.memory_space<vmem>>, vector<1x4x192xf32>
    %455 = vector.shape_cast %454 : vector<1x4x192xf32> to vector<4x192xf32>
    %456 = vector.shape_cast %453 : vector<4x192xf32> to vector<1x4x192xf32>
    tpu.vector_store %arg4[%c0_175, %c0_176, %c0_177], %456 {strides = array<i32>} : memref<4x4x192xf32, #tpu.memory_space<vmem>>, vector<1x4x192xf32>,
    %457 = tpu.concatenate %404, %437, %407, %440 in 0 : vector<1x192xf32>, vector<1x192xf32>, vector<1x192xf32>, vector<1x192xf32> -> vector<4x192xf32>
    %c1_178 = arith.constant 1 : index
    %c0_179 = arith.constant 0 : index
    %c0_180 = arith.constant 0 : index
    %458 = vector.load %arg4[%c1_178, %c0_179, %c0_180] : memref<4x4x192xf32, #tpu.memory_space<vmem>>, vector<1x4x192xf32>
    %459 = vector.shape_cast %458 : vector<1x4x192xf32> to vector<4x192xf32>
    %460 = vector.shape_cast %457 : vector<4x192xf32> to vector<1x4x192xf32>
    tpu.vector_store %arg4[%c1_178, %c0_179, %c0_180], %460 {strides = array<i32>} : memref<4x4x192xf32, #tpu.memory_space<vmem>>, vector<1x4x192xf32>,
    %461 = tpu.concatenate %410, %443, %413, %446 in 0 : vector<1x192xf32>, vector<1x192xf32>, vector<1x192xf32>, vector<1x192xf32> -> vector<4x192xf32>
    %c2_181 = arith.constant 2 : index
    %c0_182 = arith.constant 0 : index
    %c0_183 = arith.constant 0 : index
    %462 = vector.load %arg4[%c2_181, %c0_182, %c0_183] : memref<4x4x192xf32, #tpu.memory_space<vmem>>, vector<1x4x192xf32>
    %463 = vector.shape_cast %462 : vector<1x4x192xf32> to vector<4x192xf32>
    %464 = vector.shape_cast %461 : vector<4x192xf32> to vector<1x4x192xf32>
    tpu.vector_store %arg4[%c2_181, %c0_182, %c0_183], %464 {strides = array<i32>} : memref<4x4x192xf32, #tpu.memory_space<vmem>>, vector<1x4x192xf32>,
    %465 = tpu.concatenate %416, %449, %419, %452 in 0 : vector<1x192xf32>, vector<1x192xf32>, vector<1x192xf32>, vector<1x192xf32> -> vector<4x192xf32>
    %c3_184 = arith.constant 3 : index
    %c0_185 = arith.constant 0 : index
    %c0_186 = arith.constant 0 : index
    %466 = vector.load %arg4[%c3_184, %c0_185, %c0_186] : memref<4x4x192xf32, #tpu.memory_space<vmem>>, vector<1x4x192xf32>
    %467 = vector.shape_cast %466 : vector<1x4x192xf32> to vector<4x192xf32>
    %468 = vector.shape_cast %465 : vector<4x192xf32> to vector<1x4x192xf32>
    tpu.vector_store %arg4[%c3_184, %c0_185, %c0_186], %468 {strides = array<i32>} : memref<4x4x192xf32, #tpu.memory_space<vmem>>, vector<1x4x192xf32>,
    return
  }
  func.func @transform_0(%arg0: i32) -> (i32, i32, i32, i32) {
    %c0_i32 = arith.constant 0 : i32
    %c0_i32_0 = arith.constant 0 : i32
    %c0_i32_1 = arith.constant 0 : i32
    %c0_i32_2 = arith.constant 0 : i32
    return %arg0, %c0_i32, %c0_i32_0, %c0_i32_1 : i32, i32, i32, i32
  }
  func.func @transform_1(%arg0: i32) -> (i32, i32, i32) {
    %c0_i32 = arith.constant 0 : i32
    %c0_i32_0 = arith.constant 0 : i32
    %c0_i32_1 = arith.constant 0 : i32
    %c0_i32_2 = arith.constant 0 : i32
    return %c0_i32, %c0_i32_0, %c0_i32_1 : i32, i32, i32
  }
  func.func @transform_2(%arg0: i32) -> (i32, i32) {
    %c0_i32 = arith.constant 0 : i32
    %c0_i32_0 = arith.constant 0 : i32
    %c0_i32_1 = arith.constant 0 : i32
    return %c0_i32, %c0_i32_0 : i32, i32
  }
  func.func @transform_3(%arg0: i32) -> (i32, i32, i32) {
    %c0_i32 = arith.constant 0 : i32
    %c0_i32_0 = arith.constant 0 : i32
    %c0_i32_1 = arith.constant 0 : i32
    return %arg0, %c0_i32, %c0_i32_0 : i32, i32, i32
  }
}

</mosaic_0001>

<bundles_post_ra>
// kernel: stage1_forward.1
= control target key start
LH: loop header
LB: loop body
LE: loop exit
PB: predicated region body
PF: predicated region fallthrough
CT: control target
= control target key end

     0   :  { %s8755_s12 = smov 0   ;;  %s12039_s0 = inlined_call_operand.vmem [shape: f32[8,13,13,64], index: 0, kind: input, shape index: {}]   ;;  %s12040_s1 = inlined_call_operand.vmem [shape: bf16[5,320,192], index: 1, kind: input, shape index: {}]   ;;  %s12041_s2 = inlined_call_operand.vmem [shape: f32[1,192], index: 2, kind: input, shape index: {}]   ;;  %s12042_s3 = inlined_call_operand.vmem [shape: f32[8,4,192], index: 3, kind: output, shape index: {}]  }
   0x1 LB: > { %s7637_s13 = sadd.s32 4294967295, %s8731_s12   ;;  %p7641_p0 = scmp.ge.s32.totalorder %s8731_s12, 1  ;;  %s8731_s12 = sphi %s8755_s12, %s13_s12  }
   0x2   : > { %p139_p1 = scmp.lt.s32.totalorder %s8731_s12, 3 }
   0x4   : > { %p140_p2 = pnand %p7641_p0, %p139_p1 }
   0x6   : > { %143 = sbr.rel (%p140_p2) target bundleno = 1158 (0x486), region = 32 }
   0xb   : > { %s7642_s14 = sshll.u32 %s7637_s13, 2  ;;  %vm231_vm0 = vcmask 523264   ;;  %vm295_vm1 = vcmask 518144   ;;  %vm362_vm2 = vcmask 1043459   ;;  %vm364_vm3 = vcmask 1044484   ;;  %s8733_s23 = smov 64  }
   0xc   : > { %p166_p3 = scmp.lt.s32.totalorder %s7642_s14, 7  ;;  %vm366_vm4 = vcmask 1045509   ;;  %vm368_vm5 = vcmask 1046534   ;;  %vm370_vm6 = vcmask 1047559   ;;  %vm373_vm7 = vcmask 1040384  }
   0xd   : > { %vm377_vm8 = vcmask 1043456   ;;  %vm1956_vm9 = vcmask 519170   ;;  %vm629_vm10 = vcmask 516096   ;;  %vm12049_vm11 = vcmask 520194  }
   0xe   : > { %s12186_s14 = smov (!%p166_p3, %s7642_s14), 7  ;;  %vm1163_vm12 = vcmask 519171   ;;  %vm12063_vm13 = vcmask 517120   ;;  %vm2744_vm14 = vcmask 519169   ;;  %vm12050_vm15 = vcmask 522244  }
   0xf   : > { %s8327_s15 = smul.u32 208, %s12186_s14  ;;  %s8318_s7 = sshll.u32 %s12186_s14, 3 }
  0x10   : > { %s11966_s8 = scalar_lea.vmem %s12042_s3, %s8318_s7 }
  0x11   : > { %s8769_s18 = scalar_lea.vmem %s12039_s0, %s8327_s15 }
  0x12   : > { %v7697_v0 = vld [vmem:[%s8769_s18 + $0x1a0] sm:$0xff]  ;;  %v7699_v1 = vld [vmem:[%s8769_s18 + $0x1b0] sm:$0xff] }
  0x13   : > { %v7701_v2 = vld [vmem:[%s8769_s18 + $0x1c0] sm:$0xff]  ;;  %v7703_v3 = vld [vmem:[%s8769_s18 + $0x1d0] sm:$0xff]  ;;  %v1782_v6 = vsel %vm231_vm0, %v7697_v0, -inf  ;;  %v1783_v7 = vsel %vm231_vm0, %v7699_v1, -inf }
  0x14   : > { %v7705_v4 = vld [vmem:[%s8769_s18 + $0x1e0] sm:$0xff]  ;;  %v7707_v5 = vld [vmem:[%s8769_s18 + $0x1f0] sm:$0xff]  ;;  %v1788_v8 = vsel %vm231_vm0, %v7701_v2, -inf  ;;  %v1784_v12 = vmax.f32 %v1782_v6, %v1783_v7  ;;  %v1789_v13 = vsel %vm231_vm0, %v7703_v3, -inf }
  0x15   : > { %v7709_v9 = vld [vmem:[%s8769_s18 + $0x200] sm:$0xff]  ;;  %v7711_v10 = vld [vmem:[%s8769_s18 + $0x210] sm:$0xff]  ;;  %v1794_v14 = vsel %vm231_vm0, %v7705_v4, -inf  ;;  %v1795_v15 = vsel %vm231_vm0, %v7707_v5, -inf  ;;  %v1790_v19 = vmax.f32 %v1788_v8, %v1789_v13  ;;  %v1818_v31 = vmax.f32 %v1783_v7, %v1788_v8 }
  0x16   : > { %v7713_v11 = vld [vmem:[%s8769_s18 + $0x220] sm:$0xff]  ;;  %v7715_v16 = vld [vmem:[%s8769_s18 + $0x230] sm:$0xff]  ;;  %v1796_v20 = vmax.f32 %v1794_v14, %v1795_v15  ;;  %v1800_v21 = vsel %vm231_vm0, %v7709_v9, -inf  ;;  %v1801_v22 = vsel %vm231_vm0, %v7711_v10, -inf  ;;  %v1820_v32 = vmax.f32 %v1789_v13, %v1794_v14 }
  0x17   : > { %v7717_v17 = vld [vmem:[%s8769_s18 + $0x240] sm:$0xff]  ;;  %v7719_v18 = vld [vmem:[%s8769_s18 + $0x250] sm:$0xff]  ;;  %v1802_v24 = vmax.f32 %v1800_v21, %v1801_v22  ;;  %v1806_v25 = vsel %vm231_vm0, %v7713_v11, -inf  ;;  %v1807_v26 = vsel %vm231_vm0, %v7715_v16, -inf  ;;  %v1822_v34 = vmax.f32 %v1795_v15, %v1800_v21 }
  0x18   : > { %v7721_v23 = vld [vmem:[%s8769_s18 + $0x260] sm:$0xff]  ;;  %v1812_v27 = vsel %vm231_vm0, %v7717_v17, -inf  ;;  %v7659_v28 = vld [vmem:[%s8769_s18 + $0xd0] sm:$0xff]  ;;  %v1808_v29 = vmax.f32 %v1806_v25, %v1807_v26  ;;  %v1813_v30 = vsel %vm231_vm0, %v7719_v18, -inf  ;;  %v1824_v35 = vmax.f32 %v1801_v22, %v1806_v25 }
  0x19   : > { %v1814_v33 = vmax.f32 %v1812_v27, %v1813_v30  ;;  %v1826_v36 = vmax.f32 %v1807_v26, %v1812_v27  ;;  %v7661_v37 = vld [vmem:[%s8769_s18 + $0xe0] sm:$0xff]  ;;  %v7663_v38 = vld [vmem:[%s8769_s18 + $0xf0] sm:$0xff]  ;;  %v1828_v39 = vsel %vm231_vm0, %v7721_v23, -inf  ;;  %v8800_v40 = vmax.f32 %v1784_v12, %v1818_v31 }
  0x1a   : > { %v8802_v41 = vmax.f32 %v1790_v19, %v1820_v32  ;;  %v8805_v42 = vsel %vm231_vm0, %v7659_v28, -inf  ;;  %v1829_v43 = vmax.f32 %v1813_v30, %v1828_v39  ;;  %v8807_v44 = vmax.f32 %v1796_v20, %v1822_v34  ;;  %v7665_v55 = vld [vmem:[%s8769_s18 + $0x100] sm:$0xff]  ;;  %v7667_v56 = vld [vmem:[%s8769_s18 + $0x110] sm:$0xff] }
  0x1b   : > { %v8809_v45 = vmax.f32 %v1802_v24, %v1824_v35  ;;  %v8811_v46 = vmax.f32 %v1808_v29, %v1826_v36  ;;  %v1844_v47 = vsel %vm295_vm1, %v8800_v40, -inf  ;;  %v8818_v49 = vsel %vm231_vm0, %v7661_v37, -inf  ;;  %v7669_v1 = vld [vmem:[%s8769_s18 + $0x120] sm:$0xff]  ;;  %v7671_v10 = vld [vmem:[%s8769_s18 + $0x130] sm:$0xff] }
  0x1c   : > { %v1851_v48 = vsel %vm295_vm1, %v8802_v41, -inf  ;;  %v8821_v50 = vsel %vm231_vm0, %v7663_v38, -inf  ;;  %v8823_v51 = vmax.f32 %v1814_v33, %v1829_v43  ;;  %v1845_v52 = vrot.slane %v1844_v47, 4  ;;  %v7673_v19 = vld [vmem:[%s8769_s18 + $0x140] sm:$0xff]  ;;  %v7675_v20 = vld [vmem:[%s8769_s18 + $0x150] sm:$0xff] }
  0x1d   : > { %v1852_v53 = vrot.slane %v1851_v48, 4  ;;  %v1858_v54 = vsel %vm295_vm1, %v8807_v44, -inf  ;;  %v1865_v58 = vsel %vm295_vm1, %v8809_v45, -inf  ;;  %v1872_v59 = vsel %vm295_vm1, %v8811_v46, -inf  ;;  %v7677_v23 = vld [vmem:[%s8769_s18 + $0x160] sm:$0xff]  ;;  %v7679_v30 = vld [vmem:[%s8769_s18 + $0x170] sm:$0xff] }
  0x1e   : > { %v1859_v57 = vrot.slane %v1858_v54, 4  ;;  %v991_v60 = vmax.f32 %v8805_v42, %v8818_v49  ;;  %v1846_v61 = vmax.f32 %v1844_v47, %v1845_v52  ;;  %v1866_v63 = vrot.slane %v1865_v58, 4  ;;  %v7681_v39 = vld [vmem:[%s8769_s18 + $0x180] sm:$0xff] }
  0x1f   : > { %v1853_v62 = vmax.f32 %v1851_v48, %v1852_v53  ;;  %v1873_v0 = vrot.slane %v1872_v59, 4  ;;  %v1879_v3 = vsel %vm295_vm1, %v8823_v51, -inf  ;;  %v8839_v4 = vsel %vm231_vm0, %v7665_v55, -inf }
  0x20   : > { %v1860_v2 = vmax.f32 %v1858_v54, %v1859_v57  ;;  %v8842_v5 = vsel %vm231_vm0, %v7667_v56, -inf  ;;  %v1847_v6 = vrot.slane %v1846_v61, 2  ;;  %v1867_v8 = vmax.f32 %v1865_v58, %v1866_v63 }
  0x21   : > { %v1854_v7 = vrot.slane %v1853_v62, 2  ;;  %v1874_v9 = vmax.f32 %v1872_v59, %v1873_v0  ;;  %v1880_v12 = vrot.slane %v1879_v3, 4  ;;  %v997_v13 = vmax.f32 %v8821_v50, %v8839_v4 }
  0x22   : > { %v1861_v11 = vrot.slane %v1860_v2, 2  ;;  %v8848_v14 = vsel %vm231_vm0, %v7669_v1, -inf  ;;  %v1848_v15 = vmax.f32 %v1846_v61, %v1847_v6  ;;  %v1868_v17 = vrot.slane %v1867_v8, 2  ;;  %v7683_v6 = vld [vmem:[%s8769_s18 + $0x190] sm:$0xff] }
  0x23   : > { %v1855_v16 = vmax.f32 %v1853_v62, %v1854_v7  ;;  %v1875_v18 = vrot.slane %v1874_v9, 2  ;;  %v1881_v22 = vmax.f32 %v1879_v3, %v1880_v12  ;;  %v1003_v24 = vmax.f32 %v8842_v5, %v8848_v14 }
  0x24   : > { %v1862_v21 = vmax.f32 %v1860_v2, %v1861_v11  ;;  %v8856_v25 = vsel %vm231_vm0, %v7671_v10, -inf  ;;  %v1849_v26 = vrot.slane %v1848_v15, 1  ;;  %v1869_v28 = vmax.f32 %v1867_v8, %v1868_v17 }
  0x25   : > { %v1856_v27 = vrot.slane %v1855_v16, 1  ;;  %v1876_v29 = vmax.f32 %v1874_v9, %v1875_v18  ;;  %v1882_v32 = vrot.slane %v1881_v22, 2  ;;  %v1008_v33 = vsel %vm231_vm0, %v7673_v19, -inf }
  0x26   : > { %v1863_v31 = vrot.slane %v1862_v21, 1  ;;  %v1013_v34 = vsel %vm231_vm0, %v7675_v20, -inf  ;;  %v1850_v35 = vmax.f32 %v1848_v15, %v1849_v26  ;;  %v1870_v37 = vrot.slane %v1869_v28, 1 }
  0x27   : > { %v1857_v36 = vmax.f32 %v1855_v16, %v1856_v27  ;;  %v1877_v38 = vrot.slane %v1876_v29, 1  ;;  %v1883_v47 = vmax.f32 %v1881_v22, %v1882_v32  ;;  %v1009_v48 = vmax.f32 %v8856_v25, %v1008_v33 }
  0x28   : > { %v1864_v43 = vmax.f32 %v1862_v21, %v1863_v31  ;;  %v1014_v52 = vsel %vm231_vm0, %v7677_v23, -inf  ;;  %v1871_v53 = vmax.f32 %v1869_v28, %v1870_v37  ;;  %v1886_v55 = vmax.f32 %v1850_v35, 0.0 }
  0x29   : > { %v1878_v54 = vmax.f32 %v1876_v29, %v1877_v38  ;;  %v1887_v56 = vmax.f32 %v1857_v36, 0.0  ;;  %v1884_v57 = vrot.slane %v1883_v47, 1  ;;  %v1015_v59 = vmax.f32 %v1013_v34, %v1014_v52 }
  0x2a   : > { %v1888_v58 = vmax.f32 %v1864_v43, 0.0  ;;  %v1019_v61 = vsel %vm231_vm0, %v7679_v30, -inf  ;;  %v1889_v62 = vmax.f32 %v1871_v53, 0.0  ;;  %v1892_v0 = vpack.c.bf16 %v1886_v55, %v1886_v55  ;;  %v8338_v43 = vld [vmem:[%s12040_s1 + $0x74] ss:$8 sps:$4 sm:$0xff]  }
  0x2b   : > { %v1890_v63 = vmax.f32 %v1878_v54, 0.0  ;;  %v1893_v1 = vpack.c.bf16 %v1887_v56, %v1887_v56  ;;  %v1885_v2 = vmax.f32 %v1883_v47, %v1884_v57  ;;  %v1020_v7 = vsel %vm231_vm0, %v7681_v39, -inf  ;;  %v8340_v54 = vld [vmem:[%s12040_s1 + $0x70] ss:$8 sps:$4 sm:$0xff]   ;;  %3741 = vmatprep.subr.bf16.mxu0 %v8338_v43 }
  0x2c   : > { %v1894_v3 = vpack.c.bf16 %v1888_v58, %v1888_v58  ;;  %v1025_v8 = vmax.f32 %v8818_v49, %v8821_v50  ;;  %v1895_v9 = vpack.c.bf16 %v1889_v62, %v1889_v62  ;;  %v1904_v11 = vunpack.c.l.b16 %v1892_v0  ;;  %3742 = vmatpush1.bf16.msra.mxu0 %v8340_v54 }
  0x2d   : > { %v1896_v10 = vpack.c.bf16 %v1890_v63, %v1890_v63  ;;  %v1905_v12 = vunpack.c.l.b16 %v1893_v1  ;;  %v1891_v15 = vmax.f32 %v1885_v2, 0.0  ;;  %v1021_v17 = vmax.f32 %v1019_v61, %v1020_v7 }
  0x2e   : > { %v1906_v16 = vunpack.c.l.b16 %v1894_v3  ;;  %v1027_v18 = vmax.f32 %v8839_v4, %v8842_v5  ;;  %v1907_v19 = vunpack.c.l.b16 %v1895_v9  ;;  %v1029_v22 = vmax.f32 %v8848_v14, %v8856_v25 }
  0x2f   : > { %v1908_v20 = vunpack.c.l.b16 %v1896_v10  ;;  %v1910_v21 = vsel %vm362_vm2, %v1905_v12, %v1904_v11  ;;  %v1897_v23 = vpack.c.bf16 %v1891_v15, %v1891_v15  ;;  %v1031_v27 = vmax.f32 %v1008_v33, %v1013_v34  ;;  %v205_v34 = vld [vmem:[%s8769_s18] sm:$0xff] }
  0x30   : > { %v1911_v26 = vsel %vm364_vm3, %v1906_v16, %v1910_v21  ;;  %v1033_v28 = vmax.f32 %v1014_v52, %v1019_v61  ;;  %v1035_v30 = vsel %vm231_vm0, %v7683_v6, -inf  ;;  %v8880_v31 = vmax.f32 %v991_v60, %v1025_v8 }
  0x31   : > { %v1912_v29 = vsel %vm366_vm4, %v1907_v19, %v1911_v26  ;;  %v8885_v32 = vmax.f32 %v997_v13, %v1027_v18  ;;  %v1909_v25 = vunpack.c.l.b16 %v1897_v23  ;;  %v1036_v36 = vmax.f32 %v1020_v7, %v1035_v30 }
  0x32   : > { %v1913_v35 = vsel %vm368_vm5, %v1908_v20, %v1912_v29  ;;  %v8891_v33 = vmax.f32 %v1003_v24, %v1029_v22  ;;  %v8894_v37 = vmax.f32 %v1009_v48, %v1031_v27  ;;  %v8896_v42 = vmax.f32 %v1015_v59, %v1033_v28  ;;  %v207_v20 = vld [vmem:[%s8769_s18 + $0x10] sm:$0xff] }
  0x33   : > { %v1051_v49 = vsel %vm295_vm1, %v8880_v31, -inf  ;;  %v1058_v50 = vsel %vm295_vm1, %v8885_v32, -inf  ;;  %v1914_v60 = vsel %vm370_vm6, %v1909_v25, %v1913_v35  ;;  %v8903_v4 = vmax.f32 %v1021_v17, %v1036_v36  ;;  %v209_v25 = vld [vmem:[%s8769_s18 + $0x20] sm:$0xff] }
  0x34   : > { %v1052_v13 = vrot.slane %v1051_v49, 4  ;;  %v1059_v5 = vrot.slane %v1058_v50, 4  ;;  %v1915_v14 = vpack.c.b16 %v1914_v60, %v1914_v60  ;;  %v1065_v24 = vsel %vm295_vm1, %v8891_v33, -inf }
  0x35   : > { %v1072_v38 = vsel %vm295_vm1, %v8894_v37, -inf  ;;  %v1079_v39 = vsel %vm295_vm1, %v8896_v42, -inf  ;;  %v1066_v52 = vrot.slane %v1065_v24, 4  ;;  %v1086_v57 = vsel %vm295_vm1, %v8903_v4, -inf }
  0x36   : > { %v1053_v47 = vmax.f32 %v1051_v49, %v1052_v13  ;;  %v1060_v48 = vmax.f32 %v1058_v50, %v1059_v5  ;;  %v1073_v53 = vrot.slane %v1072_v38, 4  ;;  %v1917_v55 = vsel %vm373_vm7, 0, %v1915_v14  ;;  %v211_v14 = vld [vmem:[%s8769_s18 + $0x30] sm:$0xff] }
  0x37   : > { %v1080_v56 = vrot.slane %v1079_v39, 4  ;;  %v8921_v58 = vsel %vm231_vm0, %v205_v34, -inf  ;;  %v8924_v59 = vsel %vm377_vm8, %v1917_v55, 0  ;;  %v1067_v63 = vmax.f32 %v1065_v24, %v1066_v52  ;;  %v213_v24 = vld [vmem:[%s8769_s18 + $0x40] sm:$0xff]  ;;  %v215_v55 = vld [vmem:[%s8769_s18 + $0x50] sm:$0xff] }
  0x38   : > { %v1054_v61 = vrot.slane %v1053_v47, 2  ;;  %v1061_v62 = vrot.slane %v1060_v48, 2  ;;  %v1919_v0 = vshrl.u32 %v8924_v59, 16  ;;  %v1921_v1 = vshll.u32 %v8924_v59, 16 }
  0x39   : > { %v1934_v2 = vrot.slane %v8924_v59, 2  ;;  %v1074_v3 = vmax.f32 %v1072_v38, %v1073_v53  ;;  %v1068_v8 = vrot.slane %v1067_v63, 2  ;;  %v1081_v9 = vmax.f32 %v1079_v39, %v1080_v56  ;;  %v217_v56 = vld [vmem:[%s8769_s18 + $0x60] sm:$0xff] }
  0x3a   : > { %v1055_v6 = vmax.f32 %v1053_v47, %v1054_v61  ;;  %v1062_v7 = vmax.f32 %v1060_v48, %v1061_v62  ;;  %v1923_v10 = vrot.slane %v1921_v1, 1  ;;  %v1929_v11 = vrot.slane %v1919_v0, 1  ;;  %v219_v62 = vld [vmem:[%s8769_s18 + $0x70] sm:$0xff] }
  0x3b   : > { %v7724_v12 = vcombine.low %v1934_v2, %v1934_v2  ;;  %v1075_v15 = vrot.slane %v1074_v3, 2  ;;  %v1069_v18 = vmax.f32 %v1067_v63, %v1068_v8  ;;  %v1082_v19 = vrot.slane %v1081_v9, 2 }
  0x3c   : > { %v1056_v16 = vrot.slane %v1055_v6, 1  ;;  %v1063_v17 = vrot.slane %v1062_v7, 1  ;;  %v1924_v21 = vor.u32 %v1923_v10, %v1919_v0  ;;  %v1087_v26 = vrot.slane %v1086_v57, 4  ;;  %v223_v10 = vld [vmem:[%s8769_s18 + $0x90] sm:$0xff] }
  0x3d   : > { %v1948_v22 = vrot.slane %v7724_v12, 6  ;;  %v1076_v23 = vmax.f32 %v1074_v3, %v1075_v15  ;;  %v1070_v29 = vrot.slane %v1069_v18, 1  ;;  %v1083_v30 = vmax.f32 %v1081_v9, %v1082_v19  ;;  %v227_v12 = vld [vmem:[%s8769_s18 + $0xb0] sm:$0xff] }
  0x3e   : > { %v1057_v27 = vmax.f32 %v1055_v6, %v1056_v16  ;;  %v1064_v28 = vmax.f32 %v1062_v7, %v1063_v17  ;;  %1925 = vrot.lane.b32.xlu1 %v1924_v21, %s8733_s23  ;;  %v1088_v34 = vmax.f32 %v1086_v57, %v1087_v26  ;;  %v1930_v49 = vrot.slane %v1921_v1, 2  ;;  %v221_v7 = vld [vmem:[%s8769_s18 + $0x80] sm:$0xff] }
  0x3f   : > { %v1950_v35 = vrot.slane %v1948_v22, 4  ;;  %1957 = vst.msk [vmem:[#allocation2 + $0x5c] sm:$0xc] %vm1956_vm9, %v1948_v22  ;;  %v1077_v36 = vrot.slane %v1076_v23, 1  ;;  %v1071_v50 = vmax.f32 %v1069_v18, %v1070_v29  ;;  %v1084_v60 = vrot.slane %v1083_v30, 1 }
  0x40   : > { %v1093_v13 = vmax.f32 %v1057_v27, 0.0  ;;  %v1094_v5 = vmax.f32 %v1064_v28, 0.0  ;;  %v1089_v39 = vrot.slane %v1088_v34, 2  ;;  %v1931_v43 = vor.u32 %v1930_v49, %v1929_v11  ;;  %v225_v11 = vld [vmem:[%s8769_s18 + $0xa0] sm:$0xff] }
  0x41   : > { %1959 = vst.msk [vmem:[#allocation2 + $0x68] sm:$0x1] %vm629_vm10, %v1950_v35  ;;  %v1078_v38 = vmax.f32 %v1076_v23, %v1077_v36  ;;  %v233_v47 = vsel %vm231_vm0, %v207_v20, -inf  ;;  %v1085_v48 = vmax.f32 %v1083_v30, %v1084_v60  ;;  %v1095_v52 = vmax.f32 %v1071_v50, 0.0  ;;  %v229_v28 = vld [vmem:[%s8769_s18 + $0xc0] sm:$0xff] }
  0x42   : > { %v1099_v53 = vpack.c.bf16 %v1093_v13, %v1093_v13  ;;  %v1100_v54 = vpack.c.bf16 %v1094_v5, %v1094_v5  ;;  %v1090_v57 = vmax.f32 %v1088_v34, %v1089_v39  ;;  %1932 = vrot.lane.b32.xlu1 %v1931_v43, %s8733_s23  ;;  %v234_v63 = vmax.f32 %v8921_v58, %v233_v47  ;;  %v8341_v49 = vld [vmem:[%s12040_s1 + $0x64] ss:$8 sps:$4 sm:$0xff]  }
  0x43   : > { %v1096_v61 = vmax.f32 %v1078_v38, 0.0  ;;  %v239_v0 = vsel %vm231_vm0, %v209_v25, -inf  ;;  %v1097_v1 = vmax.f32 %v1085_v48, 0.0  ;;  %v1101_v2 = vpack.c.bf16 %v1095_v52, %v1095_v52  ;;  %3743 = vmatprep.subr.bf16.mxu0 %v8341_v49 }
  0x44   : > { %v1111_v3 = vunpack.c.l.b16 %v1099_v53  ;;  %v1112_v6 = vunpack.c.l.b16 %v1100_v54  ;;  %v1091_v8 = vrot.slane %v1090_v57, 1  ;;  %v240_v15 = vsel %vm231_vm0, %v211_v14, -inf  ;;  %v8343_v14 = vld [vmem:[%s12040_s1 + $0x60] ss:$8 sps:$4 sm:$0xff]  }
  0x45   : > { %v1102_v9 = vpack.c.bf16 %v1096_v61, %v1096_v61  ;;  %v245_v16 = vsel %vm231_vm0, %v213_v24, -inf  ;;  %v1103_v17 = vpack.c.bf16 %v1097_v1, %v1097_v1  ;;  %v1113_v18 = vunpack.c.l.b16 %v1101_v2  ;;  %3744 = vmatpush1.bf16.msra.mxu0 %v8343_v14 }
  0x46   : > { %v1117_v58 = vsel %vm362_vm2, %v1112_v6, %v1111_v3  ;;  %v241_v19 = vmax.f32 %v239_v0, %v240_v15  ;;  %v1092_v20 = vmax.f32 %v1090_v57, %v1091_v8  ;;  %v246_v22 = vsel %vm231_vm0, %v215_v55, -inf }
  0x47   : > { %v1114_v21 = vunpack.c.l.b16 %v1102_v9  ;;  %v251_v23 = vsel %vm231_vm0, %v217_v56, -inf  ;;  %v1115_v26 = vunpack.c.l.b16 %v1103_v17  ;;  %v1118_v27 = vsel %vm364_vm3, %v1113_v18, %v1117_v58 }
  0x48   : > { %v247_v29 = vmax.f32 %v245_v16, %v246_v22  ;;  %v252_v30 = vsel %vm231_vm0, %v219_v62, -inf  ;;  %v1098_v25 = vmax.f32 %v1092_v20, 0.0  ;;  %v257_v34 = vsel %vm231_vm0, %v221_v7, -inf }
  0x49   : > { %v1119_v35 = vsel %vm366_vm4, %v1114_v21, %v1118_v27  ;;  %v253_v36 = vmax.f32 %v251_v23, %v252_v30  ;;  %v258_v60 = vsel %vm231_vm0, %v223_v10, -inf  ;;  %v263_v13 = vsel %vm231_vm0, %v225_v11, -inf }
  0x4a   : > { %v1120_v50 = vsel %vm368_vm5, %v1115_v26, %v1119_v35  ;;  %v264_v5 = vsel %vm231_vm0, %v227_v12, -inf  ;;  %v1104_v24 = vpack.c.bf16 %v1098_v25, %v1098_v25  ;;  %v259_v38 = vmax.f32 %v257_v34, %v258_v60 }
  0x4b   : > { %v265_v39 = vmax.f32 %v263_v13, %v264_v5  ;;  %v269_v43 = vmax.f32 %v233_v47, %v239_v0  ;;  %v271_v48 = vmax.f32 %v240_v15, %v245_v16  ;;  %v273_v52 = vmax.f32 %v246_v22, %v251_v23 }
  0x4c   : > { %v275_v53 = vmax.f32 %v252_v30, %v257_v34  ;;  %v277_v54 = vmax.f32 %v258_v60, %v263_v13  ;;  %v1116_v55 = vunpack.c.l.b16 %v1104_v24  ;;  %v279_v56 = vsel %vm231_vm0, %v229_v28, -inf }
  0x4d   : > { %v8968_v57 = vmax.f32 %v234_v63, %v269_v43  ;;  %v1168_v61 = vsel %vm12049_vm11, %v8880_v31, -inf  ;;  %v280_v62 = vmax.f32 %v264_v5, %v279_v56  ;;  %v8972_v1 = vmax.f32 %v241_v19, %v271_v48 }
  0x4e   : > { %v8974_v2 = vmax.f32 %v247_v29, %v273_v52  ;;  %v8976_v47 = vmax.f32 %v253_v36, %v275_v53  ;;  %v1121_v0 = vsel %vm370_vm6, %v1116_v55, %v1120_v50  ;;  %v8979_v3 = vmax.f32 %v259_v38, %v277_v54 }
  0x4f   : > { %v296_v6 = vsel %vm295_vm1, %v8968_v57, -inf  ;;  %v1169_v63 = vrot.slane %v1168_v61, 4  ;;  %v1122_v7 = vpack.c.b16 %v1121_v0, %v1121_v0  ;;  %v8983_v8 = vmax.f32 %v265_v39, %v280_v62 }
  0x50   : > { %v297_v9 = vrot.slane %v296_v6, 4  ;;  %v303_v10 = vsel %vm295_vm1, %v8972_v1, -inf  ;;  %v310_v12 = vsel %vm295_vm1, %v8974_v2, -inf  ;;  %v317_v15 = vsel %vm295_vm1, %v8976_v47, -inf }
  0x51   : > { %v304_v11 = vrot.slane %v303_v10, 4  ;;  %v324_v16 = vsel %vm295_vm1, %v8979_v3, -inf  ;;  %v1124_v17 = vsel %vm373_vm7, 0, %v1122_v7  ;;  %v311_v58 = vrot.slane %v310_v12, 4 }
  0x52   : > { %v298_v18 = vmax.f32 %v296_v6, %v297_v9  ;;  %v318_v19 = vrot.slane %v317_v15, 4  ;;  %v8995_v20 = vsel %vm377_vm8, %v1124_v17, 0  ;;  %v325_v22 = vrot.slane %v324_v16, 4 }
  0x53   : > { %v305_v21 = vmax.f32 %v303_v10, %v304_v11  ;;  %v331_v23 = vsel %vm295_vm1, %v8983_v8, -inf  ;;  %v1126_v26 = vshrl.u32 %v8995_v20, 16  ;;  %v1128_v27 = vshll.u32 %v8995_v20, 16 }
  0x54   : > { %v1141_v28 = vrot.slane %v8995_v20, 2  ;;  %v299_v29 = vrot.slane %v298_v18, 2  ;;  %v312_v25 = vmax.f32 %v310_v12, %v311_v58  ;;  %v319_v35 = vmax.f32 %v317_v15, %v318_v19 }
  0x55   : > { %v306_v30 = vrot.slane %v305_v21, 2  ;;  %v326_v36 = vmax.f32 %v324_v16, %v325_v22  ;;  %v1130_v34 = vrot.slane %v1128_v27, 1  ;;  %v1136_v49 = vrot.slane %v1126_v26, 1 }
  0x56   : > { %v7686_v50 = vcombine.low %v1141_v28, %v1141_v28  ;;  %v1137_v60 = vrot.slane %v1128_v27, 2  ;;  %v300_v13 = vmax.f32 %v298_v18, %v299_v29  ;;  %v313_v14 = vrot.slane %v312_v25, 2 }
  0x57   : > { %v307_v5 = vmax.f32 %v305_v21, %v306_v30  ;;  %v320_v24 = vrot.slane %v319_v35, 2  ;;  %v1131_v38 = vor.u32 %v1130_v34, %v1126_v26  ;;  %v327_v48 = vrot.slane %v326_v36, 2 }
  0x58   : > { %v1155_v39 = vrot.slane %v7686_v50, 5  ;;  %v1138_v43 = vor.u32 %v1137_v60, %v1136_v49  ;;  %v301_v52 = vrot.slane %v300_v13, 1  ;;  %v314_v54 = vmax.f32 %v312_v25, %v313_v14 }
  0x59   : > { %v308_v53 = vrot.slane %v307_v5, 1  ;;  %v321_v55 = vmax.f32 %v319_v35, %v320_v24  ;;  %1132 = vrot.lane.b32.xlu0 %v1131_v38, %s8733_s23  ;;  %v328_v62 = vmax.f32 %v326_v36, %v327_v48  ;;  %v332_v0 = vrot.slane %v331_v23, 4 }
  0x5a   : > { %v1157_v56 = vrot.slane %v1155_v39, 4  ;;  %1164 = vst.msk [vmem:[#allocation2 + $0x50] sm:$0x8] %vm1163_vm12, %v1155_v39  ;;  %v1170_v6 = vmax.f32 %v1168_v61, %v1169_v63  ;;  %v302_v7 = vmax.f32 %v300_v13, %v301_v52  ;;  %v315_v10 = vrot.slane %v314_v54, 1  ;;  %v8344_v61 = vld [vmem:[%s12040_s1 + $0x54] ss:$8 sps:$4 sm:$0xff]  }
  0x5b   : > { %v309_v9 = vmax.f32 %v307_v5, %v308_v53  ;;  %v322_v11 = vrot.slane %v321_v55, 1  ;;  %v329_v12 = vrot.slane %v328_v62, 1  ;;  %v333_v15 = vmax.f32 %v331_v23, %v332_v0  ;;  %v8346_v63 = vld [vmem:[%s12040_s1 + $0x50] ss:$8 sps:$4 sm:$0xff]   ;;  %3745 = vmatprep.subr.bf16.mxu0 %v8344_v61 }
  0x5c   : > { %1167 = vst.msk [vmem:[#allocation2 + $0x5c] sm:$0x3] %vm12063_vm13, %v1157_v56  ;;  %v1171_v16 = vrot.slane %v1170_v6, 2  ;;  %v1175_v17 = vsel %vm12049_vm11, %v8885_v32, -inf  ;;  %v316_v18 = vmax.f32 %v314_v54, %v315_v10  ;;  %v338_v19 = vmax.f32 %v302_v7, 0.0  ;;  %3746 = vmatpush1.bf16.msra.mxu0 %v8346_v63 }
  0x5d   : > { %v323_v58 = vmax.f32 %v321_v55, %v322_v11  ;;  %v339_v21 = vmax.f32 %v309_v9, 0.0  ;;  %1139 = vrot.lane.b32.xlu0 %v1138_v43, %s8733_s23  ;;  %v330_v22 = vmax.f32 %v328_v62, %v329_v12  ;;  %v334_v23 = vrot.slane %v333_v15, 2 }
  0x5e   : > { %v1172_v26 = vmax.f32 %v1170_v6, %v1171_v16  ;;  %v1176_v27 = vrot.slane %v1175_v17, 4  ;;  %v340_v28 = vmax.f32 %v316_v18, 0.0  ;;  %v344_v30 = vpack.c.bf16 %v338_v19, %v338_v19  ;;  %v7735_v16 = vld [vmem:[%s8769_s18 + $0x270] sm:$0xff] }
  0x5f   : > { %v341_v29 = vmax.f32 %v323_v58, 0.0  ;;  %v345_v25 = vpack.c.bf16 %v339_v21, %v339_v21  ;;  %v335_v35 = vmax.f32 %v333_v15, %v334_v23  ;;  %v342_v36 = vmax.f32 %v330_v22, 0.0  ;;  %v7737_v23 = vld [vmem:[%s8769_s18 + $0x280] sm:$0xff] }
  0x60   : > { %v1173_v34 = vrot.slane %v1172_v26, 1  ;;  %v1177_v49 = vmax.f32 %v1175_v17, %v1176_v27  ;;  %v346_v50 = vpack.c.bf16 %v340_v28, %v340_v28  ;;  %v356_v13 = vunpack.c.l.b16 %v344_v30 }
  0x61   : > { %v347_v60 = vpack.c.bf16 %v341_v29, %v341_v29  ;;  %v357_v5 = vunpack.c.l.b16 %v345_v25  ;;  %v336_v14 = vrot.slane %v335_v35, 1  ;;  %v348_v24 = vpack.c.bf16 %v342_v36, %v342_v36 }
  0x62   : > { %v1174_v38 = vmax.f32 %v1172_v26, %v1173_v34  ;;  %v1178_v39 = vrot.slane %v1177_v49, 2  ;;  %v358_v43 = vunpack.c.l.b16 %v346_v50  ;;  %v1182_v53 = vsel %vm12049_vm11, %v8891_v33, -inf }
  0x63   : > { %v359_v48 = vunpack.c.l.b16 %v347_v60  ;;  %v363_v52 = vsel %vm362_vm2, %v357_v5, %v356_v13  ;;  %v337_v54 = vmax.f32 %v335_v35, %v336_v14  ;;  %v360_v55 = vunpack.c.l.b16 %v348_v24  ;;  %v7739_v60 = vld [vmem:[%s8769_s18 + $0x290] sm:$0xff] }
  0x64   : > { %v1179_v56 = vmax.f32 %v1177_v49, %v1178_v39  ;;  %v1183_v62 = vrot.slane %v1182_v53, 4  ;;  %v365_v0 = vsel %vm364_vm3, %v358_v43, %v363_v52  ;;  %v1189_v6 = vsel %vm12049_vm11, %v8894_v37, -inf }
  0x65   : > { %v1196_v7 = vsel %vm12049_vm11, %v8896_v42, -inf  ;;  %v1203_v9 = vsel %vm12049_vm11, %v8903_v4, -inf  ;;  %v343_v10 = vmax.f32 %v337_v54, 0.0  ;;  %v367_v11 = vsel %vm366_vm4, %v359_v48, %v365_v0 }
  0x66   : > { %v1180_v12 = vrot.slane %v1179_v56, 1  ;;  %v1184_v15 = vmax.f32 %v1182_v53, %v1183_v62  ;;  %v369_v17 = vsel %vm368_vm5, %v360_v55, %v367_v11  ;;  %v1190_v18 = vrot.slane %v1189_v6, 4  ;;  %v7741_v53 = vld [vmem:[%s8769_s18 + $0x2a0] sm:$0xff] }
  0x67   : > { %v1197_v58 = vrot.slane %v1196_v7, 4  ;;  %v1204_v19 = vrot.slane %v1203_v9, 4  ;;  %v349_v21 = vpack.c.bf16 %v343_v10, %v343_v10  ;;  %v1210_v22 = vmax.f32 %v1174_v38, 0.0 }
  0x68   : > { %v1181_v61 = vmax.f32 %v1179_v56, %v1180_v12  ;;  %v1185_v63 = vrot.slane %v1184_v15, 2  ;;  %v1191_v26 = vmax.f32 %v1189_v6, %v1190_v18  ;;  %v9029_v29 = vsel %vm231_vm0, %v7735_v16, -inf }
  0x69   : > { %v1198_v27 = vmax.f32 %v1196_v7, %v1197_v58  ;;  %v1205_v28 = vmax.f32 %v1203_v9, %v1204_v19  ;;  %v361_v30 = vunpack.c.l.b16 %v349_v21  ;;  %v1216_v36 = vpack.c.bf16 %v1210_v22, %v1210_v22  ;;  %v7745_v22 = vld [vmem:[%s8769_s18 + $0x2c0] sm:$0xff] }
  0x6a   : > { %v1186_v25 = vmax.f32 %v1184_v15, %v1185_v63  ;;  %v1211_v35 = vmax.f32 %v1181_v61, 0.0  ;;  %v1192_v34 = vrot.slane %v1191_v26, 2  ;;  %v9033_v13 = vsel %vm231_vm0, %v7737_v23, -inf  ;;  %v7743_v63 = vld [vmem:[%s8769_s18 + $0x2b0] sm:$0xff] }
  0x6b   : > { %v1199_v49 = vrot.slane %v1198_v27, 2  ;;  %v1206_v50 = vrot.slane %v1205_v28, 2  ;;  %v371_v5 = vsel %vm370_vm6, %v361_v30, %v369_v17  ;;  %v1228_v38 = vunpack.c.l.b16 %v1216_v36 }
  0x6c   : > { %v1187_v14 = vrot.slane %v1186_v25, 1  ;;  %v1217_v24 = vpack.c.bf16 %v1211_v35, %v1211_v35  ;;  %v372_v39 = vpack.c.b16 %v371_v5, %v371_v5  ;;  %v1193_v43 = vmax.f32 %v1191_v26, %v1192_v34  ;;  %v8347_v26 = vld [vmem:[%s12040_s1 + $0x44] ss:$8 sps:$4 sm:$0xff]   ;;  %v8349_v35 = vld [vmem:[%s12040_s1 + $0x40] ss:$8 sps:$4 sm:$0xff]  }
  0x6d   : > { %v1200_v48 = vmax.f32 %v1198_v27, %v1199_v49  ;;  %v1207_v52 = vmax.f32 %v1205_v28, %v1206_v50  ;;  %v2576_v56 = vmax.f32 %v9029_v29, %v9033_v13  ;;  %v9040_v62 = vsel %vm231_vm0, %v7739_v60, -inf  ;;  %v7747_v60 = vld [vmem:[%s8769_s18 + $0x2d0] sm:$0xff]  ;;  %v7749_v5 = vld [vmem:[%s8769_s18 + $0x2e0] sm:$0xff]  ;;  %3747 = vmatprep.subr.bf16.mxu0 %v8347_v26 }
  0x6e   : > { %v1188_v54 = vmax.f32 %v1186_v25, %v1187_v14  ;;  %v1229_v55 = vunpack.c.l.b16 %v1217_v24  ;;  %v376_v0 = vsel %vm373_vm7, 0, %v372_v39  ;;  %v1194_v6 = vrot.slane %v1193_v43, 1  ;;  %v7751_v14 = vld [vmem:[%s8769_s18 + $0x2f0] sm:$0xff]  ;;  %3748 = vmatpush1.bf16.msra.mxu0 %v8349_v35 }
  0x6f   : > { %v1201_v7 = vrot.slane %v1200_v48, 1  ;;  %v1208_v9 = vrot.slane %v1207_v52, 1  ;;  %v9044_v10 = vsel %vm377_vm8, %v376_v0, 0  ;;  %v9048_v15 = vsel %vm231_vm0, %v7741_v53, -inf  ;;  %v7755_v0 = vld [vmem:[%s8769_s18 + $0x310] sm:$0xff] }
  0x70   : > { %v1212_v11 = vmax.f32 %v1188_v54, 0.0  ;;  %v1234_v12 = vsel %vm362_vm2, %v1229_v55, %v1228_v38  ;;  %v379_v16 = vshrl.u32 %v9044_v10, 16  ;;  %v381_v17 = vshll.u32 %v9044_v10, 16  ;;  %v7753_v55 = vld [vmem:[%s8769_s18 + $0x300] sm:$0xff] }
  0x71   : > { %v394_v18 = vrot.slane %v9044_v10, 2  ;;  %v1195_v58 = vmax.f32 %v1193_v43, %v1194_v6  ;;  %v1202_v19 = vmax.f32 %v1200_v48, %v1201_v7  ;;  %v1209_v21 = vmax.f32 %v1207_v52, %v1208_v9  ;;  %v7757_v6 = vld [vmem:[%s8769_s18 + $0x320] sm:$0xff] }
  0x72   : > { %v1218_v61 = vpack.c.bf16 %v1212_v11, %v1212_v11  ;;  %v2582_v23 = vmax.f32 %v9040_v62, %v9048_v15  ;;  %v389_v27 = vrot.slane %v379_v16, 1  ;;  %v390_v28 = vrot.slane %v381_v17, 2 }
  0x73   : > { %v7648_v30 = vcombine.low %v394_v18, %v394_v18  ;;  %v383_v25 = vrot.slane %v381_v17, 1  ;;  %v1213_v36 = vmax.f32 %v1195_v58, 0.0  ;;  %v1214_v34 = vmax.f32 %v1202_v19, 0.0 }
  0x74   : > { %v1215_v49 = vmax.f32 %v1209_v21, 0.0  ;;  %v1230_v50 = vunpack.c.l.b16 %v1218_v61  ;;  %v391_v24 = vor.u32 %v390_v28, %v389_v27  ;;  %v2586_v39 = vsel %vm231_vm0, %v7743_v63, -inf  ;;  %v7759_v21 = vld [vmem:[%s8769_s18 + $0x330] sm:$0xff] }
  0x75   : > { %410 = vst.msk [vmem:[#allocation2 + $0x50] sm:$0x7] %vm295_vm1, %v7648_v30  ;;  %v384_v38 = vor.u32 %v383_v25, %v379_v16  ;;  %v2587_v43 = vsel %vm231_vm0, %v7745_v22, -inf  ;;  %v1219_v48 = vpack.c.bf16 %v1213_v36, %v1213_v36  ;;  %v1220_v52 = vpack.c.bf16 %v1214_v34, %v1214_v34 }
  0x76   : > { %v1221_v53 = vpack.c.bf16 %v1215_v49, %v1215_v49  ;;  %v1235_v54 = vsel %vm364_vm3, %v1230_v50, %v1234_v12  ;;  %392 = vrot.lane.b32.xlu1 %v391_v24, %s8733_s23  ;;  %v2588_v7 = vmax.f32 %v2586_v39, %v2587_v43  ;;  %v2592_v9 = vsel %vm231_vm0, %v7747_v60, -inf }
  0x77   : > { %385 = vrot.lane.b32.xlu0 %v384_v38, %s8733_s23  ;;  %v2593_v11 = vsel %vm231_vm0, %v7749_v5, -inf  ;;  %v2598_v16 = vsel %vm231_vm0, %v7751_v14, -inf  ;;  %v1231_v17 = vunpack.c.l.b16 %v1219_v48  ;;  %v1232_v18 = vunpack.c.l.b16 %v1220_v52 }
  0x78   : > { %v1233_v58 = vunpack.c.l.b16 %v1221_v53  ;;  %v2594_v19 = vmax.f32 %v2592_v9, %v2593_v11  ;;  %v2599_v12 = vsel %vm231_vm0, %v7753_v55, -inf  ;;  %v2604_v61 = vsel %vm231_vm0, %v7755_v0, -inf }
  0x79   : > { %v2605_v63 = vsel %vm231_vm0, %v7757_v6, -inf  ;;  %v2610_v22 = vmax.f32 %v9033_v13, %v9040_v62  ;;  %v1236_v26 = vsel %vm366_vm4, %v1231_v17, %v1235_v54  ;;  %v2600_v27 = vmax.f32 %v2598_v16, %v2599_v12 }
  0x7a   : > { %v2606_v28 = vmax.f32 %v2604_v61, %v2605_v63  ;;  %v2612_v30 = vmax.f32 %v9048_v15, %v2586_v39  ;;  %v1237_v25 = vsel %vm368_vm5, %v1232_v18, %v1236_v26  ;;  %v2614_v35 = vmax.f32 %v2587_v43, %v2592_v9 }
  0x7b   : > { %v2616_v36 = vmax.f32 %v2593_v11, %v2598_v16  ;;  %v2618_v34 = vmax.f32 %v2599_v12, %v2604_v61  ;;  %v1238_v49 = vsel %vm370_vm6, %v1233_v58, %v1237_v25  ;;  %v2620_v50 = vsel %vm231_vm0, %v7759_v21, -inf  ;;  %v8350_v25 = vld [vmem:[%s12040_s1 + $0x34] ss:$8 sps:$4 sm:$0xff]  }
  0x7c   : > { %v9092_v60 = vmax.f32 %v2576_v56, %v2610_v22  ;;  %v9094_v62 = vmax.f32 %v2582_v23, %v2612_v30  ;;  %v1239_v5 = vpack.c.b16 %v1238_v49, %v1238_v49  ;;  %v2621_v14 = vmax.f32 %v2605_v63, %v2620_v50  ;;  %v8352_v50 = vld [vmem:[%s12040_s1 + $0x30] ss:$8 sps:$4 sm:$0xff]   ;;  %3749 = vmatprep.subr.bf16.mxu0 %v8350_v25 }
  0x7d   : > { %v9096_v24 = vmax.f32 %v2588_v7, %v2614_v35  ;;  %v9098_v15 = vmax.f32 %v2594_v19, %v2616_v36  ;;  %v9100_v38 = vmax.f32 %v2600_v27, %v2618_v34  ;;  %3750 = vmatpush1.bf16.msra.mxu0 %v8352_v50 }
  0x7e   : > { %v2636_v39 = vsel %vm295_vm1, %v9092_v60, -inf  ;;  %v2643_v43 = vsel %vm295_vm1, %v9094_v62, -inf  ;;  %v1241_v29 = vsel %vm373_vm7, 0, %v1239_v5  ;;  %v9107_v13 = vmax.f32 %v2606_v28, %v2621_v14 }
  0x7f   : > { %v2637_v56 = vrot.slane %v2636_v39, 4  ;;  %v2644_v23 = vrot.slane %v2643_v43, 4  ;;  %v9110_v48 = vsel %vm377_vm8, %v1241_v29, 0  ;;  %v2650_v52 = vsel %vm295_vm1, %v9096_v24, -inf }
  0x80   : > { %12082 = vst [vmem:[#allocation4_spill] sm:$0xff] %v9110_v48  ;;  %v2657_v53 = vsel %vm295_vm1, %v9098_v15, -inf  ;;  %v2664_v54 = vsel %vm295_vm1, %v9100_v38, -inf  ;;  %v1243_v55 = vshrl.u32 %v9110_v48, 16  ;;  %v1245_v0 = vshll.u32 %v9110_v48, 16 }
  0x81   : > { %v1258_v6 = vrot.slane %v9110_v48, 2  ;;  %v2638_v7 = vmax.f32 %v2636_v39, %v2637_v56  ;;  %v2645_v9 = vmax.f32 %v2643_v43, %v2644_v23  ;;  %v2651_v11 = vrot.slane %v2650_v52, 4 }
  0x82   : > { %v2658_v16 = vrot.slane %v2657_v53, 4  ;;  %v2665_v17 = vrot.slane %v2664_v54, 4  ;;  %v1253_v18 = vrot.slane %v1243_v55, 1  ;;  %v1254_v58 = vrot.slane %v1245_v0, 2 }
  0x83   : > { %v7688_v19 = vcombine.low %v1258_v6, %v1258_v6  ;;  %v1247_v21 = vrot.slane %v1245_v0, 1  ;;  %v2639_v12 = vrot.slane %v2638_v7, 2  ;;  %v2646_v61 = vrot.slane %v2645_v9, 2 }
  0x84   : > { %v2652_v63 = vmax.f32 %v2650_v52, %v2651_v11  ;;  %v2659_v22 = vmax.f32 %v2657_v53, %v2658_v16  ;;  %v1255_v26 = vor.u32 %v1254_v58, %v1253_v18  ;;  %v2666_v30 = vmax.f32 %v2664_v54, %v2665_v17 }
  0x85   : > { %v1272_v27 = vrot.slane %v7688_v19, 5  ;;  %v1248_v28 = vor.u32 %v1247_v21, %v1243_v55  ;;  %v2640_v35 = vmax.f32 %v2638_v7, %v2639_v12  ;;  %v2647_v36 = vmax.f32 %v2645_v9, %v2646_v61 }
  0x86   : > { %v2653_v34 = vrot.slane %v2652_v63, 2  ;;  %v2660_v49 = vrot.slane %v2659_v22, 2  ;;  %1256 = vrot.lane.b32.xlu1 %v1255_v26, %s8733_s23  ;;  %v2667_v14 = vrot.slane %v2666_v30, 2  ;;  %v2671_v39 = vsel %vm295_vm1, %v9107_v13, -inf }
  0x87   : > { %v1274_v5 = vrot.slane %v1272_v27, 4  ;;  %1280 = vst.msk [vmem:[#allocation2 + $0x74] sm:$0x8] %vm1163_vm12, %v1272_v27  ;;  %1249 = vrot.lane.b32.xlu0 %v1248_v28, %s8733_s23  ;;  %v412_v43 = vsel %vm12049_vm11, %v8968_v57, -inf  ;;  %v2641_v29 = vrot.slane %v2640_v35, 1  ;;  %v2648_v56 = vrot.slane %v2647_v36, 1 }
  0x88   : > { %v2654_v23 = vmax.f32 %v2652_v63, %v2653_v34  ;;  %v2661_v52 = vmax.f32 %v2659_v22, %v2660_v49  ;;  %v2668_v53 = vmax.f32 %v2666_v30, %v2667_v14  ;;  %v2672_v54 = vrot.slane %v2671_v39, 4 }
  0x89   : > { %1282 = vst.msk [vmem:[#allocation2 + $0x80] sm:$0x3] %vm12063_vm13, %v1274_v5  ;;  %v413_v55 = vrot.slane %v412_v43, 4  ;;  %v419_v0 = vsel %vm12049_vm11, %v8972_v1, -inf  ;;  %v2642_v6 = vmax.f32 %v2640_v35, %v2641_v29  ;;  %v2649_v7 = vmax.f32 %v2647_v36, %v2648_v56 }
  0x8a   : > { %v2655_v9 = vrot.slane %v2654_v23, 1  ;;  %v2662_v11 = vrot.slane %v2661_v52, 1  ;;  %v2669_v16 = vrot.slane %v2668_v53, 1  ;;  %v2673_v17 = vmax.f32 %v2671_v39, %v2672_v54 }
  0x8b   : > { %v414_v18 = vmax.f32 %v412_v43, %v413_v55  ;;  %v420_v58 = vrot.slane %v419_v0, 4  ;;  %v2678_v12 = vmax.f32 %v2642_v6, 0.0  ;;  %v2679_v61 = vmax.f32 %v2649_v7, 0.0 }
  0x8c   : > { %v2656_v19 = vmax.f32 %v2654_v23, %v2655_v9  ;;  %v2663_v21 = vmax.f32 %v2661_v52, %v2662_v11  ;;  %v2670_v63 = vmax.f32 %v2668_v53, %v2669_v16  ;;  %v2674_v22 = vrot.slane %v2673_v17, 2 }
  0x8d   : > { %v415_v26 = vrot.slane %v414_v18, 2  ;;  %v421_v27 = vmax.f32 %v419_v0, %v420_v58  ;;  %v2684_v25 = vpack.c.bf16 %v2678_v12, %v2678_v12  ;;  %v2685_v34 = vpack.c.bf16 %v2679_v61, %v2679_v61 }
  0x8e   : > { %v2680_v28 = vmax.f32 %v2656_v19, 0.0  ;;  %v2681_v30 = vmax.f32 %v2663_v21, 0.0  ;;  %v2675_v35 = vmax.f32 %v2673_v17, %v2674_v22  ;;  %v2682_v36 = vmax.f32 %v2670_v63, 0.0 }
  0x8f   : > { %v416_v49 = vmax.f32 %v414_v18, %v415_v26  ;;  %v422_v50 = vrot.slane %v421_v27, 2  ;;  %v2696_v39 = vunpack.c.l.b16 %v2684_v25  ;;  %v2697_v43 = vunpack.c.l.b16 %v2685_v34 }
  0x90   : > { %v2686_v5 = vpack.c.bf16 %v2680_v28, %v2680_v28  ;;  %v2687_v14 = vpack.c.bf16 %v2681_v30, %v2681_v30  ;;  %v2676_v29 = vrot.slane %v2675_v35, 1  ;;  %v2688_v56 = vpack.c.bf16 %v2682_v36, %v2682_v36  ;;  %v8353_v28 = vld [vmem:[%s12040_s1 + $0x134] ss:$8 sps:$4 sm:$0xff]   ;;  %v8355_v36 = vld [vmem:[%s12040_s1 + $0x130] ss:$8 sps:$4 sm:$0xff]  }
  0x91   : > { %v417_v23 = vrot.slane %v416_v49, 1  ;;  %v423_v52 = vmax.f32 %v421_v27, %v422_v50  ;;  %v2702_v55 = vsel %vm362_vm2, %v2697_v43, %v2696_v39  ;;  %v426_v0 = vsel %vm12049_vm11, %v8974_v2, -inf  ;;  %3872 = vmatprep.subr.bf16.mxu1 %v8353_v28  ;;  %v8358_v43 = vld [vmem:[%s12040_s1 + $0x20] ss:$8 sps:$4 sm:$0xff]  }
  0x92   : > { %v2698_v53 = vunpack.c.l.b16 %v2686_v5  ;;  %v2699_v54 = vunpack.c.l.b16 %v2687_v14  ;;  %v2677_v6 = vmax.f32 %v2675_v35, %v2676_v29  ;;  %v2700_v7 = vunpack.c.l.b16 %v2688_v56  ;;  %3873 = vmatpush1.bf16.msra.mxu1 %v8355_v36 }
  0x93   : > { %v418_v9 = vmax.f32 %v416_v49, %v417_v23  ;;  %v424_v11 = vrot.slane %v423_v52, 1  ;;  %v427_v17 = vrot.slane %v426_v0, 4  ;;  %v433_v18 = vsel %vm12049_vm11, %v8976_v47, -inf  ;;  %v8356_v49 = vld [vmem:[%s12040_s1 + $0x24] ss:$8 sps:$4 sm:$0xff]  }
  0x94   : > { %v2703_v16 = vsel %vm364_vm3, %v2698_v53, %v2702_v55  ;;  %v440_v58 = vsel %vm12049_vm11, %v8979_v3, -inf  ;;  %v2683_v19 = vmax.f32 %v2677_v6, 0.0  ;;  %v434_v61 = vrot.slane %v433_v18, 4  ;;  %3751 = vmatprep.subr.bf16.mxu0 %v8356_v49 }
  0x95   : > { %v2704_v21 = vsel %vm366_vm4, %v2699_v54, %v2703_v16  ;;  %v425_v12 = vmax.f32 %v423_v52, %v424_v11  ;;  %v428_v22 = vmax.f32 %v426_v0, %v427_v17  ;;  %v441_v26 = vrot.slane %v440_v58, 4  ;;  %3752 = vmatpush1.bf16.msra.mxu0 %v8358_v43 }
  0x96   : > { %v2705_v63 = vsel %vm368_vm5, %v2700_v7, %v2704_v21  ;;  %v447_v27 = vsel %vm12049_vm11, %v8983_v8, -inf  ;;  %v2689_v30 = vpack.c.bf16 %v2683_v19, %v2683_v19  ;;  %v435_v25 = vmax.f32 %v433_v18, %v434_v61 }
  0x97   : > { %v448_v34 = vrot.slane %v447_v27, 4  ;;  %v454_v35 = vmax.f32 %v418_v9, 0.0  ;;  %v429_v50 = vrot.slane %v428_v22, 2  ;;  %v442_v5 = vmax.f32 %v440_v58, %v441_v26 }
  0x98   : > { %v455_v14 = vmax.f32 %v425_v12, 0.0  ;;  %v1960_v39 = vsel %vm12049_vm11, %v8800_v40, -inf  ;;  %v2701_v29 = vunpack.c.l.b16 %v2689_v30  ;;  %v436_v56 = vrot.slane %v435_v25, 2 }
  0x99   : > { %v449_v23 = vmax.f32 %v447_v27, %v448_v34  ;;  %v460_v52 = vpack.c.bf16 %v454_v35, %v454_v35  ;;  %v430_v53 = vmax.f32 %v428_v22, %v429_v50  ;;  %v443_v54 = vrot.slane %v442_v5, 2 }
  0x9a   : > { %v461_v55 = vpack.c.bf16 %v455_v14, %v455_v14  ;;  %v1961_v0 = vrot.slane %v1960_v39, 4  ;;  %v2706_v6 = vsel %vm370_vm6, %v2701_v29, %v2705_v63  ;;  %v437_v7 = vmax.f32 %v435_v25, %v436_v56 }
  0x9b   : > { %v450_v9 = vrot.slane %v449_v23, 2  ;;  %v472_v11 = vunpack.c.l.b16 %v460_v52  ;;  %v2707_v16 = vpack.c.b16 %v2706_v6, %v2706_v6  ;;  %v431_v17 = vrot.slane %v430_v53, 1 }
  0x9c   : > { %v444_v18 = vmax.f32 %v442_v5, %v443_v54  ;;  %v473_v58 = vunpack.c.l.b16 %v461_v55  ;;  %v438_v19 = vrot.slane %v437_v7, 1  ;;  %v1962_v12 = vmax.f32 %v1960_v39, %v1961_v0 }
  0x9d   : > { %v451_v21 = vmax.f32 %v449_v23, %v450_v9  ;;  %v1967_v61 = vsel %vm12049_vm11, %v8802_v41, -inf  ;;  %v2709_v22 = vsel %vm373_vm7, 0, %v2707_v16  ;;  %v432_v26 = vmax.f32 %v430_v53, %v431_v17 }
  0x9e   : > { %v445_v27 = vrot.slane %v444_v18, 1  ;;  %v478_v63 = vsel %vm362_vm2, %v473_v58, %v472_v11  ;;  %v9169_v28 = vsel %vm377_vm8, %v2709_v22, 0  ;;  %v439_v30 = vmax.f32 %v437_v7, %v438_v19 }
  0x9f   : > { %12083 = vst [vmem:[#allocation5_spill] sm:$0xff] %v9169_v28  ;;  %v452_v25 = vrot.slane %v451_v21, 1  ;;  %v1963_v34 = vrot.slane %v1962_v12, 2  ;;  %v2711_v35 = vshrl.u32 %v9169_v28, 16  ;;  %v2713_v36 = vshll.u32 %v9169_v28, 16 }
  0xa0   : > { %v2726_v49 = vrot.slane %v9169_v28, 2  ;;  %v446_v50 = vmax.f32 %v444_v18, %v445_v27  ;;  %v456_v14 = vmax.f32 %v432_v26, 0.0  ;;  %v457_v39 = vmax.f32 %v439_v30, 0.0 }
  0xa1   : > { %v453_v5 = vmax.f32 %v451_v21, %v452_v25  ;;  %v1964_v43 = vmax.f32 %v1962_v12, %v1963_v34  ;;  %v2721_v29 = vrot.slane %v2711_v35, 1  ;;  %v2722_v56 = vrot.slane %v2713_v36, 2 }
  0xa2   : > { %v7762_v23 = vcombine.low %v2726_v49, %v2726_v49  ;;  %v2715_v52 = vrot.slane %v2713_v36, 1  ;;  %v458_v53 = vmax.f32 %v446_v50, 0.0  ;;  %v462_v55 = vpack.c.bf16 %v456_v14, %v456_v14 }
  0xa3   : > { %v459_v54 = vmax.f32 %v453_v5, 0.0  ;;  %v463_v0 = vpack.c.bf16 %v457_v39, %v457_v39  ;;  %v2723_v6 = vor.u32 %v2722_v56, %v2721_v29  ;;  %v1965_v11 = vrot.slane %v1964_v43, 1 }
  0xa4   : > { %v2740_v7 = vrot.slane %v7762_v23, 7  ;;  %v2716_v9 = vor.u32 %v2715_v52, %v2711_v35  ;;  %v464_v16 = vpack.c.bf16 %v458_v53, %v458_v53  ;;  %v474_v58 = vunpack.c.l.b16 %v462_v55  ;;  %v8361_v55 = vld [vmem:[%s12040_s1 + $0x120] ss:$8 sps:$4 sm:$0xff]  }
  0xa5   : > { %v465_v17 = vpack.c.bf16 %v459_v54, %v459_v54  ;;  %v475_v18 = vunpack.c.l.b16 %v463_v0  ;;  %2724 = vrot.lane.b32.xlu1 %v2723_v6, %s8733_s23  ;;  %v1966_v19 = vmax.f32 %v1964_v43, %v1965_v11  ;;  %v1968_v21 = vrot.slane %v1967_v61, 4  ;;  %v8362_v0 = vld [vmem:[%s12040_s1 + $0x14] ss:$8 sps:$4 sm:$0xff]  }
  0xa6   : > { %2745 = vst.msk [vmem:[#allocation2 + $0x68] sm:$0xe] %vm2744_vm14, %v2740_v7  ;;  %2717 = vrot.lane.b32.xlu0 %v2716_v9, %s8733_s23  ;;  %v1974_v12 = vsel %vm12049_vm11, %v8807_v44, -inf  ;;  %v1981_v22 = vsel %vm12049_vm11, %v8809_v45, -inf  ;;  %v476_v26 = vunpack.c.l.b16 %v464_v16  ;;  %v479_v30 = vsel %vm364_vm3, %v474_v58, %v478_v63  ;;  %v8364_v16 = vld [vmem:[%s12040_s1 + $0x10] ss:$8 sps:$4 sm:$0xff]   ;;  %3753 = vmatprep.subr.bf16.mxu0 %v8362_v0 }
  0xa7   : > { %v477_v27 = vunpack.c.l.b16 %v465_v17  ;;  %v1975_v25 = vrot.slane %v1974_v12, 4  ;;  %v480_v34 = vsel %vm366_vm4, %v475_v18, %v479_v30  ;;  %v1969_v35 = vmax.f32 %v1967_v61, %v1968_v21  ;;  %v8359_v61 = vld [vmem:[%s12040_s1 + $0x124] ss:$8 sps:$4 sm:$0xff]   ;;  %3754 = vmatpush1.bf16.msra.mxu0 %v8364_v16 }
  0xa8   : > { %v1982_v36 = vrot.slane %v1981_v22, 4  ;;  %v1988_v49 = vsel %vm12049_vm11, %v8811_v46, -inf  ;;  %v481_v50 = vsel %vm368_vm5, %v476_v26, %v480_v34  ;;  %v1995_v39 = vsel %vm12049_vm11, %v8823_v51, -inf  ;;  %3874 = vmatprep.subr.bf16.mxu1 %v8359_v61 }
  0xa9   : > { %v1976_v5 = vmax.f32 %v1974_v12, %v1975_v25  ;;  %v1989_v14 = vrot.slane %v1988_v49, 4  ;;  %v482_v43 = vsel %vm370_vm6, %v477_v27, %v481_v50  ;;  %v1970_v29 = vrot.slane %v1969_v35, 2  ;;  %3875 = vmatpush1.bf16.msra.mxu1 %v8361_v55 }
  0xaa   : > { %v1983_v56 = vmax.f32 %v1981_v22, %v1982_v36  ;;  %v1996_v63 = vrot.slane %v1995_v39, 4  ;;  %v483_v23 = vpack.c.b16 %v482_v43, %v482_v43  ;;  %v2002_v54 = vmax.f32 %v1966_v19, 0.0 }
  0xab   : > { %v1977_v52 = vrot.slane %v1976_v5, 2  ;;  %v1990_v53 = vmax.f32 %v1988_v49, %v1989_v14  ;;  %v1971_v6 = vmax.f32 %v1969_v35, %v1970_v29  ;;  %v2746_v11 = vsel %vm12049_vm11, %v9092_v60, -inf }
  0xac   : > { %v1984_v7 = vrot.slane %v1983_v56, 2  ;;  %v1997_v9 = vmax.f32 %v1995_v39, %v1996_v63  ;;  %v485_v17 = vsel %vm373_vm7, 0, %v483_v23  ;;  %v2008_v19 = vpack.c.bf16 %v2002_v54, %v2002_v54 }
  0xad   : > { %v1978_v58 = vmax.f32 %v1976_v5, %v1977_v52  ;;  %v1991_v18 = vrot.slane %v1990_v53, 2  ;;  %v9205_v21 = vsel %vm377_vm8, %v485_v17, 0  ;;  %v1972_v12 = vrot.slane %v1971_v6, 1 }
  0xae   : > { %12084 = vst [vmem:[#allocation6_spill] sm:$0xff] %v9205_v21  ;;  %v1985_v22 = vmax.f32 %v1983_v56, %v1984_v7  ;;  %v1998_v26 = vrot.slane %v1997_v9, 2  ;;  %v487_v27 = vshrl.u32 %v9205_v21, 16  ;;  %v489_v30 = vshll.u32 %v9205_v21, 16 }
  0xaf   : > { %v502_v25 = vrot.slane %v9205_v21, 2  ;;  %v1979_v34 = vrot.slane %v1978_v58, 1  ;;  %v1973_v35 = vmax.f32 %v1971_v6, %v1972_v12  ;;  %v1992_v49 = vmax.f32 %v1990_v53, %v1991_v18  ;;  %v224_v21 = vld [vmem:[%s8769_s18 + $0x98] sm:$0x1f] }
  0xb0   : > { %v1986_v36 = vrot.slane %v1985_v22, 1  ;;  %v1999_v50 = vmax.f32 %v1997_v9, %v1998_v26  ;;  %v497_v5 = vrot.slane %v487_v27, 1  ;;  %v498_v14 = vrot.slane %v489_v30, 2 }
  0xb1   : > { %v7650_v39 = vcombine.low %v502_v25, %v502_v25  ;;  %v491_v43 = vrot.slane %v489_v30, 1  ;;  %v1980_v29 = vmax.f32 %v1978_v58, %v1979_v34  ;;  %v1993_v56 = vrot.slane %v1992_v49, 1 }
  0xb2   : > { %v1987_v63 = vmax.f32 %v1985_v22, %v1986_v36  ;;  %v2000_v61 = vrot.slane %v1999_v50, 1  ;;  %v499_v23 = vor.u32 %v498_v14, %v497_v5  ;;  %v2003_v54 = vmax.f32 %v1973_v35, 0.0 }
  0xb3   : > { %518 = vst.msk [vmem:[#allocation2 + $0x74] sm:$0x7] %vm295_vm1, %v7650_v39  ;;  %v492_v52 = vor.u32 %v491_v43, %v487_v27  ;;  %v2020_v55 = vunpack.c.l.b16 %v2008_v19  ;;  %v1994_v0 = vmax.f32 %v1992_v49, %v1993_v56  ;;  %v2004_v6 = vmax.f32 %v1980_v29, 0.0 }
  0xb4   : > { %v2001_v7 = vmax.f32 %v1999_v50, %v2000_v61  ;;  %v2005_v16 = vmax.f32 %v1987_v63, 0.0  ;;  %500 = vrot.lane.b32.xlu1 %v499_v23, %s8733_s23  ;;  %v2009_v53 = vpack.c.bf16 %v2003_v54, %v2003_v54  ;;  %v2747_v9 = vrot.slane %v2746_v11, 4 }
  0xb5   : > { %493 = vrot.lane.b32.xlu0 %v492_v52, %s8733_s23  ;;  %v2753_v17 = vsel %vm12049_vm11, %v9094_v62, -inf  ;;  %v2760_v58 = vsel %vm12049_vm11, %v9096_v24, -inf  ;;  %v2006_v18 = vmax.f32 %v1994_v0, 0.0  ;;  %v2010_v22 = vpack.c.bf16 %v2004_v6, %v2004_v6 }
  0xb6   : > { %v2007_v12 = vmax.f32 %v2001_v7, 0.0  ;;  %v2011_v19 = vpack.c.bf16 %v2005_v16, %v2005_v16  ;;  %v2021_v26 = vunpack.c.l.b16 %v2009_v53  ;;  %v2748_v27 = vmax.f32 %v2746_v11, %v2747_v9 }
  0xb7   : > { %v2754_v30 = vrot.slane %v2753_v17, 4  ;;  %v2761_v25 = vrot.slane %v2760_v58, 4  ;;  %v2012_v34 = vpack.c.bf16 %v2006_v18, %v2006_v18  ;;  %v2022_v36 = vunpack.c.l.b16 %v2010_v22 }
  0xb8   : > { %v2013_v35 = vpack.c.bf16 %v2007_v12, %v2007_v12  ;;  %v2023_v49 = vunpack.c.l.b16 %v2011_v19  ;;  %v2026_v50 = vsel %vm362_vm2, %v2021_v26, %v2020_v55  ;;  %v2749_v5 = vrot.slane %v2748_v27, 2 }
  0xb9   : > { %v2755_v14 = vmax.f32 %v2753_v17, %v2754_v30  ;;  %v2762_v39 = vmax.f32 %v2760_v58, %v2761_v25  ;;  %v2024_v43 = vunpack.c.l.b16 %v2012_v34  ;;  %v2027_v63 = vsel %vm364_vm3, %v2022_v36, %v2026_v50 }
  0xba   : > { %v2025_v29 = vunpack.c.l.b16 %v2013_v35  ;;  %v2767_v56 = vsel %vm12049_vm11, %v9098_v15, -inf  ;;  %v2028_v11 = vsel %vm366_vm4, %v2023_v49, %v2027_v63  ;;  %v2750_v61 = vmax.f32 %v2748_v27, %v2749_v5 }
  0xbb   : > { %v2756_v23 = vrot.slane %v2755_v14, 2  ;;  %v2763_v52 = vrot.slane %v2762_v39, 2  ;;  %v2029_v54 = vsel %vm368_vm5, %v2024_v43, %v2028_v11  ;;  %v2768_v0 = vrot.slane %v2767_v56, 4 }
  0xbc   : > { %v2774_v55 = vsel %vm12049_vm11, %v9100_v38, -inf  ;;  %v2781_v7 = vsel %vm12049_vm11, %v9107_v13, -inf  ;;  %v2030_v6 = vsel %vm370_vm6, %v2025_v29, %v2029_v54  ;;  %v2751_v16 = vrot.slane %v2750_v61, 1 }
  0xbd   : > { %v2757_v53 = vmax.f32 %v2755_v14, %v2756_v23  ;;  %v2764_v9 = vmax.f32 %v2762_v39, %v2763_v52  ;;  %v2031_v17 = vpack.c.b16 %v2030_v6, %v2030_v6  ;;  %v2769_v58 = vmax.f32 %v2767_v56, %v2768_v0 }
  0xbe   : > { %v2775_v18 = vrot.slane %v2774_v55, 4  ;;  %v2782_v12 = vrot.slane %v2781_v7, 4  ;;  %v2752_v22 = vmax.f32 %v2750_v61, %v2751_v16  ;;  %vm235_vm11 = vcmask 520192  }
  0xbf   : > { %v2758_v19 = vrot.slane %v2757_v53, 1  ;;  %v2765_v26 = vrot.slane %v2764_v9, 1  ;;  %v2033_v27 = vsel %vm373_vm7, 0, %v2031_v17  ;;  %v2770_v30 = vrot.slane %v2769_v58, 2 }
  0xc0   : > { %v2776_v25 = vmax.f32 %v2774_v55, %v2775_v18  ;;  %v2783_v34 = vmax.f32 %v2781_v7, %v2782_v12  ;;  %v9230_v35 = vsel %vm377_vm8, %v2033_v27, 0  ;;  %v2788_v50 = vmax.f32 %v2752_v22, 0.0 }
  0xc1   : > { %12085 = vst [vmem:[#allocation7_spill] sm:$0xff] %v9230_v35  ;;  %v2759_v36 = vmax.f32 %v2757_v53, %v2758_v19  ;;  %v2766_v49 = vmax.f32 %v2764_v9, %v2765_v26  ;;  %v2035_v5 = vshrl.u32 %v9230_v35, 16  ;;  %v2037_v14 = vshll.u32 %v9230_v35, 16 }
  0xc2   : > { %v2050_v39 = vrot.slane %v9230_v35, 2  ;;  %v2771_v43 = vmax.f32 %v2769_v58, %v2770_v30  ;;  %v2777_v29 = vrot.slane %v2776_v25, 2  ;;  %v2784_v63 = vrot.slane %v2783_v34, 2 }
  0xc3   : > { %v2789_v56 = vmax.f32 %v2759_v36, 0.0  ;;  %v2790_v11 = vmax.f32 %v2766_v49, 0.0  ;;  %v2045_v61 = vrot.slane %v2035_v5, 1  ;;  %v2046_v23 = vrot.slane %v2037_v14, 2 }
  0xc4   : > { %v7726_v52 = vcombine.low %v2050_v39, %v2050_v39  ;;  %v2039_v54 = vrot.slane %v2037_v14, 1  ;;  %v2772_v0 = vrot.slane %v2771_v43, 1  ;;  %v2778_v55 = vmax.f32 %v2776_v25, %v2777_v29 }
  0xc5   : > { %v2785_v7 = vmax.f32 %v2783_v34, %v2784_v63  ;;  %v2794_v6 = vpack.c.bf16 %v2788_v50, %v2788_v50  ;;  %v2047_v16 = vor.u32 %v2046_v23, %v2045_v61  ;;  %v2795_v17 = vpack.c.bf16 %v2789_v56, %v2789_v56 }
  0xc6   : > { %v2064_v53 = vrot.slane %v7726_v52, 6  ;;  %v2040_v9 = vor.u32 %v2039_v54, %v2035_v5  ;;  %v2773_v18 = vmax.f32 %v2771_v43, %v2772_v0  ;;  %v2779_v12 = vrot.slane %v2778_v55, 1  ;;  %v8367_v0 = vld [vmem:[%s12040_s1 + $0x110] ss:$8 sps:$4 sm:$0xff]  }
  0xc7   : > { %v2786_v22 = vrot.slane %v2785_v7, 1  ;;  %v2796_v58 = vpack.c.bf16 %v2790_v11, %v2790_v11  ;;  %2048 = vrot.lane.b32.xlu1 %v2047_v16, %s8733_s23  ;;  %v2806_v26 = vunpack.c.l.b16 %v2794_v6  ;;  %v2807_v27 = vunpack.c.l.b16 %v2795_v17  ;;  %v8365_v11 = vld [vmem:[%s12040_s1 + $0x114] ss:$8 sps:$4 sm:$0xff]  }
  0xc8   : > { %v2066_v19 = vrot.slane %v2064_v53, 4  ;;  %2072 = vst.msk [vmem:[#allocation2 + $0x80] sm:$0xc] %vm1956_vm9, %v2064_v53  ;;  %2041 = vrot.lane.b32.xlu0 %v2040_v9, %s8733_s23  ;;  %v1283_v30 = vsel %vm12050_vm15, %v8880_v31, -inf  ;;  %v2780_v25 = vmax.f32 %v2778_v55, %v2779_v12  ;;  %v2791_v36 = vmax.f32 %v2773_v18, 0.0  ;;  %3876 = vmatprep.subr.bf16.mxu1 %v8365_v11 }
  0xc9   : > { %v2787_v34 = vmax.f32 %v2785_v7, %v2786_v22  ;;  %v2808_v49 = vunpack.c.l.b16 %v2796_v58  ;;  %v2812_v50 = vsel %vm362_vm2, %v2807_v27, %v2806_v26  ;;  %v1284_v5 = vrot.slane %v1283_v30, 4  ;;  %v8368_v53 = vld [vmem:[%s12040_s1 + $0x4] ss:$8 sps:$4 sm:$0xff]   ;;  %3877 = vmatpush1.bf16.msra.mxu1 %v8367_v0  ;;  %v8370_v22 = vld [vmem:[%s12040_s1] ss:$8 sps:$4 sm:$0xff]  }
  0xca   : > { %2074 = vst.msk [vmem:[#allocation2 + $0x8c] sm:$0x1] %vm629_vm10, %v2066_v19  ;;  %v1290_v14 = vsel %vm12050_vm15, %v8885_v32, -inf  ;;  %v1297_v39 = vsel %vm12050_vm15, %v8891_v33, -inf  ;;  %v2792_v43 = vmax.f32 %v2780_v25, 0.0  ;;  %v2797_v63 = vpack.c.bf16 %v2791_v36, %v2791_v36  ;;  %3755 = vmatprep.subr.bf16.mxu0 %v8368_v53 }
  0xcb   : > { %v2793_v29 = vmax.f32 %v2787_v34, 0.0  ;;  %v2813_v56 = vsel %vm364_vm3, %v2808_v49, %v2812_v50  ;;  %v1285_v61 = vmax.f32 %v1283_v30, %v1284_v5  ;;  %v1291_v23 = vrot.slane %v1290_v14, 4  ;;  %3756 = vmatpush1.bf16.msra.mxu0 %v8370_v22 }
  0xcc   : > { %v1298_v52 = vrot.slane %v1297_v39, 4  ;;  %v1304_v54 = vsel %vm12050_vm15, %v8894_v37, -inf  ;;  %v2798_v55 = vpack.c.bf16 %v2792_v43, %v2792_v43  ;;  %v2809_v6 = vunpack.c.l.b16 %v2797_v63 }
  0xcd   : > { %v2799_v7 = vpack.c.bf16 %v2793_v29, %v2793_v29  ;;  %v1305_v16 = vrot.slane %v1304_v54, 4  ;;  %v1286_v9 = vrot.slane %v1285_v61, 2  ;;  %v1292_v17 = vmax.f32 %v1290_v14, %v1291_v23 }
  0xce   : > { %v1299_v18 = vmax.f32 %v1297_v39, %v1298_v52  ;;  %v1311_v12 = vsel %vm12050_vm15, %v8896_v42, -inf  ;;  %v2810_v58 = vunpack.c.l.b16 %v2798_v55  ;;  %v2814_v26 = vsel %vm366_vm4, %v2809_v6, %v2813_v56 }
  0xcf   : > { %v2811_v19 = vunpack.c.l.b16 %v2799_v7  ;;  %v1306_v27 = vmax.f32 %v1304_v54, %v1305_v16  ;;  %v1287_v30 = vmax.f32 %v1285_v61, %v1286_v9  ;;  %v1293_v25 = vrot.slane %v1292_v17, 2 }
  0xd0   : > { %v1300_v34 = vrot.slane %v1299_v18, 2  ;;  %v1312_v36 = vrot.slane %v1311_v12, 4  ;;  %v2815_v49 = vsel %vm368_vm5, %v2810_v58, %v2814_v26  ;;  %v1318_v5 = vsel %vm12050_vm15, %v8903_v4, -inf }
  0xd1   : > { %v1307_v50 = vrot.slane %v1306_v27, 2  ;;  %v2075_v14 = vsel %vm12050_vm15, %v8800_v40, -inf  ;;  %v2816_v39 = vsel %vm370_vm6, %v2811_v19, %v2815_v49  ;;  %v1288_v43 = vrot.slane %v1287_v30, 1 }
  0xd2   : > { %v1294_v29 = vmax.f32 %v1292_v17, %v1293_v25  ;;  %v1301_v63 = vmax.f32 %v1299_v18, %v1300_v34  ;;  %v2817_v56 = vpack.c.b16 %v2816_v39, %v2816_v39  ;;  %v1313_v61 = vmax.f32 %v1311_v12, %v1312_v36 }
  0xd3   : > { %v1308_v11 = vmax.f32 %v1306_v27, %v1307_v50  ;;  %v1319_v23 = vrot.slane %v1318_v5, 4  ;;  %v1289_v52 = vmax.f32 %v1287_v30, %v1288_v43  ;;  %v2076_v55 = vrot.slane %v2075_v14, 4 }
  0xd4   : > { %v1295_v54 = vrot.slane %v1294_v29, 1  ;;  %v1302_v0 = vrot.slane %v1301_v63, 1  ;;  %v2819_v7 = vsel %vm373_vm7, 0, %v2817_v56  ;;  %v1314_v16 = vrot.slane %v1313_v61, 2 }
  0xd5   : > { %v1309_v6 = vrot.slane %v1308_v11, 1  ;;  %v1320_v53 = vmax.f32 %v1318_v5, %v1319_v23  ;;  %v9272_v9 = vsel %vm377_vm8, %v2819_v7, 0  ;;  %v1325_v17 = vmax.f32 %v1289_v52, 0.0 }
  0xd6   : > { %12086 = vst [vmem:[#allocation8_spill] sm:$0xff] %v9272_v9  ;;  %v1296_v22 = vmax.f32 %v1294_v29, %v1295_v54  ;;  %v1303_v58 = vmax.f32 %v1301_v63, %v1302_v0  ;;  %v2821_v18 = vshrl.u32 %v9272_v9, 16  ;;  %v2823_v12 = vshll.u32 %v9272_v9, 16 }
  0xd7   : > { %v2836_v19 = vrot.slane %v9272_v9, 2  ;;  %v1310_v26 = vmax.f32 %v1308_v11, %v1309_v6  ;;  %v1315_v27 = vmax.f32 %v1313_v61, %v1314_v16  ;;  %v1321_v30 = vrot.slane %v1320_v53, 2 }
  0xd8   : > { %v1326_v25 = vmax.f32 %v1296_v22, 0.0  ;;  %v1327_v34 = vmax.f32 %v1303_v58, 0.0  ;;  %v2831_v36 = vrot.slane %v2821_v18, 1  ;;  %v2832_v49 = vrot.slane %v2823_v12, 2 }
  0xd9   : > { %v7764_v50 = vcombine.low %v2836_v19, %v2836_v19  ;;  %v2825_v5 = vrot.slane %v2823_v12, 1  ;;  %v1316_v39 = vrot.slane %v1315_v27, 1  ;;  %v1322_v43 = vmax.f32 %v1320_v53, %v1321_v30 }
  0xda   : > { %v1328_v29 = vmax.f32 %v1310_v26, 0.0  ;;  %v1331_v63 = vpack.c.bf16 %v1325_v17, %v1325_v17  ;;  %v2833_v56 = vor.u32 %v2832_v49, %v2831_v36  ;;  %v1332_v54 = vpack.c.bf16 %v1326_v25, %v1326_v25 }
  0xdb   : > { %v2850_v23 = vrot.slane %v7764_v50, 7  ;;  %v2826_v52 = vor.u32 %v2825_v5, %v2821_v18  ;;  %v1317_v0 = vmax.f32 %v1315_v27, %v1316_v39  ;;  %v1323_v7 = vrot.slane %v1322_v43, 1 }
  0xdc   : > { %v1333_v9 = vpack.c.bf16 %v1327_v34, %v1327_v34  ;;  %v1334_v11 = vpack.c.bf16 %v1328_v29, %v1328_v29  ;;  %2834 = vrot.lane.b32.xlu1 %v2833_v56, %s8733_s23  ;;  %v1343_v61 = vunpack.c.l.b16 %v1331_v63  ;;  %v1344_v6 = vunpack.c.l.b16 %v1332_v54 }
  0xdd   : > { %2854 = vst.msk [vmem:[#allocation2 + $0x8c] sm:$0xe] %vm2744_vm14, %v2850_v23  ;;  %2827 = vrot.lane.b32.xlu0 %v2826_v52, %s8733_s23  ;;  %v2077_v16 = vmax.f32 %v2075_v14, %v2076_v55  ;;  %v2082_v53 = vsel %vm12050_vm15, %v8802_v41, -inf  ;;  %v1324_v22 = vmax.f32 %v1322_v43, %v1323_v7  ;;  %v1329_v58 = vmax.f32 %v1317_v0, 0.0 }
  0xde   : > { %v1345_v17 = vunpack.c.l.b16 %v1333_v9  ;;  %v1346_v18 = vunpack.c.l.b16 %v1334_v11  ;;  %v1349_v12 = vsel %vm362_vm2, %v1344_v6, %v1343_v61  ;;  %v2083_v26 = vrot.slane %v2082_v53, 4 }
  0xdf   : > { %v2078_v19 = vrot.slane %v2077_v16, 2  ;;  %v2089_v27 = vsel %vm12050_vm15, %v8807_v44, -inf  ;;  %v1330_v30 = vmax.f32 %v1324_v22, 0.0  ;;  %v1335_v25 = vpack.c.bf16 %v1329_v58, %v1329_v58 }
  0xe0   : > { %v1350_v34 = vsel %vm364_vm3, %v1345_v17, %v1349_v12  ;;  %v2090_v36 = vrot.slane %v2089_v27, 4  ;;  %v2084_v49 = vmax.f32 %v2082_v53, %v2083_v26  ;;  %v2096_v9 = vsel %vm12050_vm15, %v8809_v45, -inf }
  0xe1   : > { %v1351_v14 = vsel %vm366_vm4, %v1346_v18, %v1350_v34  ;;  %v2079_v55 = vmax.f32 %v2077_v16, %v2078_v19  ;;  %v1336_v50 = vpack.c.bf16 %v1330_v30, %v1330_v30  ;;  %v1347_v5 = vunpack.c.l.b16 %v1335_v25 }
  0xe2   : > { %v2091_v39 = vmax.f32 %v2089_v27, %v2090_v36  ;;  %v2097_v43 = vrot.slane %v2096_v9, 4  ;;  %v2085_v63 = vrot.slane %v2084_v49, 2  ;;  %v2103_v56 = vsel %vm12050_vm15, %v8811_v46, -inf }
  0xe3   : > { %v2080_v29 = vrot.slane %v2079_v55, 1  ;;  %v2110_v23 = vsel %vm12050_vm15, %v8823_v51, -inf  ;;  %v1348_v52 = vunpack.c.l.b16 %v1336_v50  ;;  %v1352_v54 = vsel %vm368_vm5, %v1347_v5, %v1351_v14 }
  0xe4   : > { %v2092_v0 = vrot.slane %v2091_v39, 2  ;;  %v2098_v7 = vmax.f32 %v2096_v9, %v2097_v43  ;;  %v2086_v61 = vmax.f32 %v2084_v49, %v2085_v63  ;;  %v2104_v6 = vrot.slane %v2103_v56, 4 }
  0xe5   : > { %v2081_v11 = vmax.f32 %v2079_v55, %v2080_v29  ;;  %v2111_v16 = vrot.slane %v2110_v23, 4  ;;  %v1353_v53 = vsel %vm370_vm6, %v1348_v52, %v1352_v54  ;;  %v520_v17 = vsel %vm12050_vm15, %v8968_v57, -inf }
  0xe6   : > { %v2093_v22 = vmax.f32 %v2091_v39, %v2092_v0  ;;  %v2099_v58 = vrot.slane %v2098_v7, 2  ;;  %v1354_v18 = vpack.c.b16 %v1353_v53, %v1353_v53  ;;  %v2087_v12 = vrot.slane %v2086_v61, 1  ;;  %v8373_v53 = vld [vmem:[%s12040_s1 + $0x100] ss:$8 sps:$4 sm:$0xff]  }
  0xe7   : > { %v2105_v19 = vmax.f32 %v2103_v56, %v2104_v6  ;;  %v2112_v26 = vmax.f32 %v2110_v23, %v2111_v16  ;;  %v2117_v25 = vmax.f32 %v2081_v11, 0.0  ;;  %v521_v34 = vrot.slane %v520_v17, 4 }
  0xe8   : > { %v2094_v27 = vrot.slane %v2093_v22, 1  ;;  %v2100_v30 = vmax.f32 %v2098_v7, %v2099_v58  ;;  %v1356_v36 = vsel %vm373_vm7, 0, %v1354_v18  ;;  %v2088_v14 = vmax.f32 %v2086_v61, %v2087_v12  ;;  %v8371_v7 = vld [vmem:[%s12040_s1 + $0x104] ss:$8 sps:$4 sm:$0xff]  }
  0xe9   : > { %v2106_v55 = vrot.slane %v2105_v19, 2  ;;  %v2113_v49 = vrot.slane %v2112_v26, 2  ;;  %v9299_v9 = vsel %vm377_vm8, %v1356_v36, 0  ;;  %v2123_v39 = vpack.c.bf16 %v2117_v25, %v2117_v25  ;;  %3878 = vmatprep.subr.bf16.mxu1 %v8371_v7  ;;  %v8376_v36 = vld [vmem:[%s12040_s1 + $0xf0] ss:$8 sps:$4 sm:$0xff]  }
  0xea   : > { %12087 = vst [vmem:[#allocation9_spill] sm:$0xff] %v9299_v9  ;;  %v2095_v50 = vmax.f32 %v2093_v22, %v2094_v27  ;;  %v2101_v5 = vrot.slane %v2100_v30, 1  ;;  %v1358_v43 = vshrl.u32 %v9299_v9, 16  ;;  %v1360_v29 = vshll.u32 %v9299_v9, 16  ;;  %3879 = vmatpush1.bf16.msra.mxu1 %v8373_v53 }
  0xeb   : > { %v1373_v63 = vrot.slane %v9299_v9, 2  ;;  %v2107_v56 = vmax.f32 %v2105_v19, %v2106_v55  ;;  %v2114_v52 = vmax.f32 %v2112_v26, %v2113_v49  ;;  %v2118_v54 = vmax.f32 %v2088_v14, 0.0  ;;  %v8374_v19 = vld [vmem:[%s12040_s1 + $0xf4] ss:$8 sps:$4 sm:$0xff]  }
  0xec   : > { %v2102_v23 = vmax.f32 %v2100_v30, %v2101_v5  ;;  %v2119_v0 = vmax.f32 %v2095_v50, 0.0  ;;  %v1368_v11 = vrot.slane %v1358_v43, 1  ;;  %v1369_v61 = vrot.slane %v1360_v29, 2  ;;  %3757 = vmatprep.subr.bf16.mxu0 %v8374_v19 }
  0xed   : > { %v7690_v6 = vcombine.low %v1373_v63, %v1373_v63  ;;  %v1362_v16 = vrot.slane %v1360_v29, 1  ;;  %v2108_v22 = vrot.slane %v2107_v56, 1  ;;  %v2115_v58 = vrot.slane %v2114_v52, 1  ;;  %3758 = vmatpush2.bf16.msra.mxu0 %v8376_v36 }
  0xee   : > { %v2120_v18 = vmax.f32 %v2102_v23, 0.0  ;;  %v2124_v12 = vpack.c.bf16 %v2118_v54, %v2118_v54  ;;  %v1370_v26 = vor.u32 %v1369_v61, %v1368_v11  ;;  %v2125_v25 = vpack.c.bf16 %v2119_v0, %v2119_v0 }
  0xef   : > { %v1387_v27 = vrot.slane %v7690_v6, 5  ;;  %v1363_v30 = vor.u32 %v1362_v16, %v1358_v43  ;;  %v2109_v14 = vmax.f32 %v2107_v56, %v2108_v22  ;;  %v2116_v55 = vmax.f32 %v2114_v52, %v2115_v58 }
  0xf0   : > { %v2126_v49 = vpack.c.bf16 %v2120_v18, %v2120_v18  ;;  %v2135_v50 = vunpack.c.l.b16 %v2123_v39  ;;  %1371 = vrot.lane.b32.xlu1 %v1370_v26, %s8733_s23  ;;  %v2136_v29 = vunpack.c.l.b16 %v2124_v12  ;;  %v2137_v43 = vunpack.c.l.b16 %v2125_v25 }
  0xf1   : > { %v1389_v5 = vrot.slane %v1387_v27, 4  ;;  %1395 = vst.msk [vmem:[#allocation2 + $0x98] sm:$0x8] %vm1163_vm12, %v1387_v27  ;;  %1364 = vrot.lane.b32.xlu0 %v1363_v30, %s8733_s23  ;;  %v522_v63 = vmax.f32 %v520_v17, %v521_v34  ;;  %v2121_v23 = vmax.f32 %v2109_v14, 0.0  ;;  %v2122_v54 = vmax.f32 %v2116_v55, 0.0 }
  0xf2   : > { %v2138_v0 = vunpack.c.l.b16 %v2126_v49  ;;  %v527_v56 = vsel %vm12050_vm15, %v8972_v1, -inf  ;;  %v2141_v39 = vsel %vm362_vm2, %v2136_v29, %v2135_v50  ;;  %v534_v11 = vsel %vm12050_vm15, %v8974_v2, -inf }
  0xf3   : > { %1397 = vst.msk [vmem:[#allocation2 + $0xa4] sm:$0x3] %vm12063_vm13, %v1389_v5  ;;  %v523_v52 = vrot.slane %v522_v63, 2  ;;  %v528_v7 = vrot.slane %v527_v56, 4  ;;  %v2127_v61 = vpack.c.bf16 %v2121_v23, %v2121_v23  ;;  %v2128_v6 = vpack.c.bf16 %v2122_v54, %v2122_v54 }
  0xf4   : > { %v2142_v17 = vsel %vm364_vm3, %v2137_v43, %v2141_v39  ;;  %v535_v34 = vrot.slane %v534_v11, 4  ;;  %v541_v58 = vsel %vm12050_vm15, %v8976_v47, -inf  ;;  %v548_v25 = vsel %vm12050_vm15, %v8979_v3, -inf }
  0xf5   : > { %v2143_v16 = vsel %vm366_vm4, %v2138_v0, %v2142_v17  ;;  %v524_v53 = vmax.f32 %v522_v63, %v523_v52  ;;  %v529_v22 = vmax.f32 %v527_v56, %v528_v7  ;;  %v2139_v18 = vunpack.c.l.b16 %v2127_v61 }
  0xf6   : > { %v2140_v12 = vunpack.c.l.b16 %v2128_v6  ;;  %v536_v19 = vmax.f32 %v534_v11, %v535_v34  ;;  %v542_v26 = vrot.slane %v541_v58, 4  ;;  %v555_v36 = vsel %vm12050_vm15, %v8983_v8, -inf }
  0xf7   : > { %v525_v27 = vrot.slane %v524_v53, 1  ;;  %v530_v30 = vrot.slane %v529_v22, 2  ;;  %v2144_v14 = vsel %vm368_vm5, %v2139_v18, %v2143_v16  ;;  %v549_v50 = vrot.slane %v548_v25, 4 }
  0xf8   : > { %v537_v55 = vrot.slane %v536_v19, 2  ;;  %v543_v49 = vmax.f32 %v541_v58, %v542_v26  ;;  %v2145_v5 = vsel %vm370_vm6, %v2140_v12, %v2144_v14  ;;  %v556_v63 = vrot.slane %v555_v36, 4 }
  0xf9   : > { %v526_v29 = vmax.f32 %v524_v53, %v525_v27  ;;  %v531_v43 = vmax.f32 %v529_v22, %v530_v30  ;;  %v2146_v23 = vpack.c.b16 %v2145_v5, %v2145_v5  ;;  %v550_v56 = vmax.f32 %v548_v25, %v549_v50 }
  0xfa   : > { %v538_v54 = vmax.f32 %v536_v19, %v537_v55  ;;  %v544_v0 = vrot.slane %v543_v49, 2  ;;  %v557_v52 = vmax.f32 %v555_v36, %v556_v63  ;;  %v2855_v11 = vsel %vm12050_vm15, %v9092_v60, -inf }
  0xfb   : > { %v532_v39 = vrot.slane %v531_v43, 1  ;;  %v562_v7 = vmax.f32 %v526_v29, 0.0  ;;  %v2148_v61 = vsel %vm373_vm7, 0, %v2146_v23  ;;  %v551_v34 = vrot.slane %v550_v56, 2 }
  0xfc   : > { %v539_v6 = vrot.slane %v538_v54, 1  ;;  %v545_v17 = vmax.f32 %v543_v49, %v544_v0  ;;  %v9339_v16 = vsel %vm377_vm8, %v2148_v61, 0  ;;  %v558_v22 = vrot.slane %v557_v52, 2 }
  0xfd   : > { %12088 = vst [vmem:[#allocation10_spill] sm:$0xff] %v9339_v16  ;;  %v533_v53 = vmax.f32 %v531_v43, %v532_v39  ;;  %v568_v58 = vpack.c.bf16 %v562_v7, %v562_v7  ;;  %v2150_v18 = vshrl.u32 %v9339_v16, 16  ;;  %v2152_v12 = vshll.u32 %v9339_v16, 16 }
  0xfe   : > { %v2165_v19 = vrot.slane %v9339_v16, 2  ;;  %v540_v26 = vmax.f32 %v538_v54, %v539_v6  ;;  %v546_v27 = vrot.slane %v545_v17, 1  ;;  %v552_v30 = vmax.f32 %v550_v56, %v551_v34 }
  0xff   : > { %v559_v25 = vmax.f32 %v557_v52, %v558_v22  ;;  %v563_v36 = vmax.f32 %v533_v53, 0.0  ;;  %v2160_v14 = vrot.slane %v2150_v18, 1  ;;  %v2161_v55 = vrot.slane %v2152_v12, 2 }
 0x100   : > { %v7728_v49 = vcombine.low %v2165_v19, %v2165_v19  ;;  %v2154_v50 = vrot.slane %v2152_v12, 1  ;;  %v547_v5 = vmax.f32 %v545_v17, %v546_v27  ;;  %v553_v29 = vrot.slane %v552_v30, 1 }
 0x101   : > { %v560_v43 = vrot.slane %v559_v25, 1  ;;  %v564_v63 = vmax.f32 %v540_v26, 0.0  ;;  %v2162_v23 = vor.u32 %v2161_v55, %v2160_v14  ;;  %v569_v7 = vpack.c.bf16 %v563_v36, %v563_v36 }
 0x102   : > { %v2179_v0 = vrot.slane %v7728_v49, 6  ;;  %v2155_v39 = vor.u32 %v2154_v50, %v2150_v18  ;;  %v554_v61 = vmax.f32 %v552_v30, %v553_v29  ;;  %v565_v16 = vmax.f32 %v547_v5, 0.0 }
 0x103   : > { %v561_v9 = vmax.f32 %v559_v25, %v560_v43  ;;  %v570_v54 = vpack.c.bf16 %v564_v63, %v564_v63  ;;  %2163 = vrot.lane.b32.xlu1 %v2162_v23, %s8733_s23  ;;  %v580_v56 = vunpack.c.l.b16 %v568_v58  ;;  %v581_v52 = vunpack.c.l.b16 %v569_v7 }
 0x104   : > { %v2181_v6 = vrot.slane %v2179_v0, 4  ;;  %2187 = vst.msk [vmem:[#allocation2 + $0xa4] sm:$0xc] %vm1956_vm9, %v2179_v0  ;;  %2156 = vrot.lane.b32.xlu0 %v2155_v39, %s8733_s23  ;;  %v2856_v17 = vrot.slane %v2855_v11, 4  ;;  %v566_v34 = vmax.f32 %v554_v61, 0.0  ;;  %v571_v22 = vpack.c.bf16 %v565_v16, %v565_v16 }
 0x105   : > { %v567_v53 = vmax.f32 %v561_v9, 0.0  ;;  %v582_v12 = vunpack.c.l.b16 %v570_v54  ;;  %v586_v18 = vsel %vm362_vm2, %v581_v52, %v580_v56  ;;  %v2862_v26 = vsel %vm12050_vm15, %v9094_v62, -inf }
 0x106   : > { %2189 = vst.msk [vmem:[#allocation2 + $0xb0] sm:$0x1] %vm629_vm10, %v2181_v6  ;;  %v2857_v19 = vmax.f32 %v2855_v11, %v2856_v17  ;;  %v2869_v27 = vsel %vm12050_vm15, %v9096_v24, -inf  ;;  %v572_v30 = vpack.c.bf16 %v566_v34, %v566_v34  ;;  %v583_v58 = vunpack.c.l.b16 %v571_v22 }
 0x107   : > { %v573_v25 = vpack.c.bf16 %v567_v53, %v567_v53  ;;  %v587_v36 = vsel %vm364_vm3, %v582_v12, %v586_v18  ;;  %v2863_v9 = vrot.slane %v2862_v26, 4  ;;  %v2870_v16 = vrot.slane %v2869_v27, 4  ;;  %v8378_v12 = vld [vmem:[%s12040_s1 + $0xe4] ss:$8 sps:$4 sm:$0xff]  }
 0x108   : > { %v2858_v14 = vrot.slane %v2857_v19, 2  ;;  %v2876_v55 = vsel %vm12050_vm15, %v9098_v15, -inf  ;;  %v584_v49 = vunpack.c.l.b16 %v572_v30  ;;  %v588_v11 = vsel %vm366_vm4, %v583_v58, %v587_v36  ;;  %3759 = vmatprep.subr.bf16.mxu0 %v8378_v12 }
 0x109   : > { %v585_v50 = vunpack.c.l.b16 %v573_v25  ;;  %v2877_v5 = vrot.slane %v2876_v55, 4  ;;  %v2864_v43 = vmax.f32 %v2862_v26, %v2863_v9  ;;  %v2871_v63 = vmax.f32 %v2869_v27, %v2870_v16  ;;  %v8380_v27 = vld [vmem:[%s12040_s1 + $0xe0] ss:$8 sps:$4 sm:$0xff]  }
 0x10a   : > { %v2859_v29 = vmax.f32 %v2857_v19, %v2858_v14  ;;  %v2883_v23 = vsel %vm12050_vm15, %v9100_v38, -inf  ;;  %v589_v0 = vsel %vm368_vm5, %v584_v49, %v588_v11  ;;  %v2890_v61 = vsel %vm12050_vm15, %v9107_v13, -inf  ;;  %3760 = vmatpush2.bf16.msra.mxu0 %v8380_v27 }
 0x10b   : > { %v2878_v39 = vmax.f32 %v2876_v55, %v2877_v5  ;;  %v2884_v7 = vrot.slane %v2883_v23, 4  ;;  %v590_v54 = vsel %vm370_vm6, %v585_v50, %v589_v0  ;;  %v2865_v56 = vrot.slane %v2864_v43, 2 }
 0x10c   : > { %v2860_v6 = vrot.slane %v2859_v29, 1  ;;  %v2872_v52 = vrot.slane %v2871_v63, 2  ;;  %v591_v17 = vpack.c.b16 %v590_v54, %v590_v54  ;;  %v2891_v22 = vrot.slane %v2890_v61, 4 }
 0x10d   : > { %v2879_v34 = vrot.slane %v2878_v39, 2  ;;  %v2885_v53 = vmax.f32 %v2883_v23, %v2884_v7  ;;  %v2866_v19 = vmax.f32 %v2864_v43, %v2865_v56  ;;  %vm12076_vm15 = vcmask 523270  }
 0x10e   : > { %v2861_v18 = vmax.f32 %v2859_v29, %v2860_v6  ;;  %v2873_v26 = vmax.f32 %v2871_v63, %v2872_v52  ;;  %v593_v30 = vsel %vm373_vm7, 0, %v591_v17  ;;  %v2892_v36 = vmax.f32 %v2890_v61, %v2891_v22  ;;  %v7660_v17 = vld [vmem:[%s8769_s18 + $0xd8] sm:$0x1f] }
 0x10f   : > { %v2880_v25 = vmax.f32 %v2878_v39, %v2879_v34  ;;  %v2886_v58 = vrot.slane %v2885_v53, 2  ;;  %v9371_v14 = vsel %vm377_vm8, %v593_v30, 0  ;;  %v2867_v9 = vrot.slane %v2866_v19, 1 }
 0x110   : > { %12089 = vst [vmem:[#allocation11_spill] sm:$0xff] %v9371_v14  ;;  %v2874_v16 = vrot.slane %v2873_v26, 1  ;;  %v2897_v55 = vmax.f32 %v2861_v18, 0.0  ;;  %v595_v49 = vshrl.u32 %v9371_v14, 16  ;;  %v597_v50 = vshll.u32 %v9371_v14, 16 }
 0x111   : > { %v610_v11 = vrot.slane %v9371_v14, 2  ;;  %v2881_v5 = vrot.slane %v2880_v25, 1  ;;  %v2868_v29 = vmax.f32 %v2866_v19, %v2867_v9  ;;  %v2887_v63 = vmax.f32 %v2885_v53, %v2886_v58  ;;  %v7662_v18 = vld [vmem:[%s8769_s18 + $0xe8] sm:$0x1f] }
 0x112   : > { %v2875_v43 = vmax.f32 %v2873_v26, %v2874_v16  ;;  %v2893_v23 = vrot.slane %v2892_v36, 2  ;;  %v605_v0 = vrot.slane %v595_v49, 1  ;;  %v606_v39 = vrot.slane %v597_v50, 2  ;;  %v7666_v58 = vld [vmem:[%s8769_s18 + $0x108] sm:$0x1f] }
 0x113   : > { %v7652_v7 = vcombine.low %v610_v11, %v610_v11  ;;  %v599_v61 = vrot.slane %v597_v50, 1  ;;  %v2882_v54 = vmax.f32 %v2880_v25, %v2881_v5  ;;  %v2888_v6 = vrot.slane %v2887_v63, 1  ;;  %v7664_v25 = vld [vmem:[%s8769_s18 + $0xf8] sm:$0x1f] }
 0x114   : > { %v2894_v56 = vmax.f32 %v2892_v36, %v2893_v23  ;;  %v2898_v52 = vmax.f32 %v2868_v29, 0.0  ;;  %v607_v34 = vor.u32 %v606_v39, %v605_v0  ;;  %v2899_v12 = vmax.f32 %v2875_v43, 0.0  ;;  %v7668_v16 = vld [vmem:[%s8769_s18 + $0x118] sm:$0x1f]  ;;  %v7670_v29 = vld [vmem:[%s8769_s18 + $0x128] sm:$0x1f] }
 0x115   : > { %626 = vst.msk [vmem:[#allocation2 + $0x98] sm:$0x7] %vm295_vm1, %v7652_v7  ;;  %v600_v22 = vor.u32 %v599_v61, %v595_v49  ;;  %v2903_v53 = vpack.c.bf16 %v2897_v55, %v2897_v55  ;;  %v2889_v19 = vmax.f32 %v2887_v63, %v2888_v6  ;;  %v2900_v27 = vmax.f32 %v2882_v54, 0.0  ;;  %v7672_v43 = vld [vmem:[%s8769_s18 + $0x138] sm:$0x1f] }
 0x116   : > { %v2895_v26 = vrot.slane %v2894_v56, 1  ;;  %v2904_v30 = vpack.c.bf16 %v2898_v52, %v2898_v52  ;;  %608 = vrot.lane.b32.xlu1 %v607_v34, %s8733_s23  ;;  %v2905_v36 = vpack.c.bf16 %v2899_v12, %v2899_v12  ;;  %v992_v49 = vsel %vm235_vm11, %v7660_v17, -inf  ;;  %v7674_v23 = vld [vmem:[%s8769_s18 + $0x148] sm:$0x1f]  ;;  %v7676_v52 = vld [vmem:[%s8769_s18 + $0x158] sm:$0x1f] }
 0x117   : > { %601 = vrot.lane.b32.xlu0 %v600_v22, %s8733_s23  ;;  %v2915_v9 = vunpack.c.l.b16 %v2903_v53  ;;  %v2901_v50 = vmax.f32 %v2889_v19, 0.0  ;;  %v2906_v11 = vpack.c.bf16 %v2900_v27, %v2900_v27  ;;  %v993_v0 = vsel %vm235_vm11, %v7662_v18, -inf  ;;  %v7678_v17 = vld [vmem:[%s8769_s18 + $0x168] sm:$0x1f]  ;;  %v7680_v22 = vld [vmem:[%s8769_s18 + $0x178] sm:$0x1f] }
 0x118   : > { %v2896_v55 = vmax.f32 %v2894_v56, %v2895_v26  ;;  %v2916_v5 = vunpack.c.l.b16 %v2904_v30  ;;  %v2917_v63 = vunpack.c.l.b16 %v2905_v36  ;;  %v998_v39 = vsel %vm235_vm11, %v7664_v25, -inf  ;;  %v7682_v12 = vld [vmem:[%s8769_s18 + $0x188] sm:$0x1f]  ;;  %v7684_v25 = vld [vmem:[%s8769_s18 + $0x198] sm:$0x1f] }
 0x119   : > { %v999_v7 = vsel %vm235_vm11, %v7666_v58, -inf  ;;  %v2907_v54 = vpack.c.bf16 %v2901_v50, %v2901_v50  ;;  %v2918_v6 = vunpack.c.l.b16 %v2906_v11  ;;  %v994_v53 = vmax.f32 %v992_v49, %v993_v0 }
 0x11a   : > { %v2902_v61 = vmax.f32 %v2896_v55, 0.0  ;;  %v2921_v56 = vsel %vm362_vm2, %v2916_v5, %v2915_v9  ;;  %v1000_v19 = vmax.f32 %v998_v39, %v999_v7  ;;  %v1004_v18 = vsel %vm235_vm11, %v7668_v16, -inf }
 0x11b   : > { %v2922_v34 = vsel %vm364_vm3, %v2917_v63, %v2921_v56  ;;  %v2919_v27 = vunpack.c.l.b16 %v2907_v54  ;;  %v1005_v58 = vsel %vm235_vm11, %v7670_v29, -inf  ;;  %v1010_v9 = vsel %vm235_vm11, %v7672_v43, -inf }
 0x11c   : > { %v2908_v26 = vpack.c.bf16 %v2902_v61, %v2902_v61  ;;  %v2923_v30 = vsel %vm366_vm4, %v2918_v6, %v2922_v34  ;;  %v1006_v36 = vmax.f32 %v1004_v18, %v1005_v58  ;;  %v1011_v55 = vsel %vm235_vm11, %v7674_v23, -inf }
 0x11d   : > { %v1016_v50 = vsel %vm235_vm11, %v7676_v52, -inf  ;;  %v2924_v49 = vsel %vm368_vm5, %v2919_v27, %v2923_v30  ;;  %v1012_v5 = vmax.f32 %v1010_v9, %v1011_v55  ;;  %v1017_v16 = vsel %vm235_vm11, %v7678_v17, -inf }
 0x11e   : > { %v2920_v11 = vunpack.c.l.b16 %v2908_v26  ;;  %v1018_v63 = vmax.f32 %v1016_v50, %v1017_v16  ;;  %v1022_v61 = vsel %vm235_vm11, %v7680_v22, -inf  ;;  %v1023_v54 = vsel %vm235_vm11, %v7682_v12, -inf }
 0x11f   : > { %v1026_v6 = vmax.f32 %v993_v0, %v998_v39  ;;  %v1024_v56 = vmax.f32 %v1022_v61, %v1023_v54  ;;  %v1028_v43 = vmax.f32 %v999_v7, %v1004_v18  ;;  %v1030_v34 = vmax.f32 %v1005_v58, %v1010_v9 }
 0x120   : > { %v2925_v29 = vsel %vm370_vm6, %v2920_v11, %v2924_v49  ;;  %v1032_v14 = vmax.f32 %v1011_v55, %v1016_v50  ;;  %v1034_v52 = vmax.f32 %v1017_v16, %v1022_v61  ;;  %v1037_v26 = vsel %vm235_vm11, %v7684_v25, -inf }
 0x121   : > { %v2926_v23 = vpack.c.b16 %v2925_v29, %v2925_v29  ;;  %v1038_v27 = vmax.f32 %v1023_v54, %v1037_v26  ;;  %v9410_v30 = vmax.f32 %v994_v53, %v1026_v6  ;;  %v9412_v17 = vmax.f32 %v1000_v19, %v1028_v43  ;;  %v206_v43 = vld [vmem:[%s8769_s18 + $0x8] sm:$0x1f]  ;;  %v208_v26 = vld [vmem:[%s8769_s18 + $0x18] sm:$0x1f] }
 0x122   : > { %v9414_v35 = vmax.f32 %v1006_v36, %v1030_v34  ;;  %v9417_v0 = vmax.f32 %v1012_v5, %v1032_v14  ;;  %v9419_v39 = vmax.f32 %v1018_v63, %v1034_v52  ;;  %v1398_v7 = vsel %vm12076_vm15, %v8880_v31, -inf }
 0x123   : > { %v2928_v22 = vsel %vm373_vm7, 0, %v2926_v23  ;;  %v9426_v18 = vmax.f32 %v1024_v56, %v1038_v27  ;;  %v1399_v53 = vsel %vm629_vm10, %v9410_v30, -inf  ;;  %v1407_v19 = vsel %vm12076_vm15, %v8885_v32, -inf }
 0x124   : > { %v9424_v12 = vsel %vm377_vm8, %v2928_v22, 0  ;;  %v1400_v36 = vmax.f32 %v1398_v7, %v1399_v53  ;;  %v1408_v31 = vsel %vm629_vm10, %v9412_v17, -inf  ;;  %v1416_v9 = vsel %vm12076_vm15, %v8891_v33, -inf }
 0x125   : > { %12090 = vst [vmem:[#allocation12_spill] sm:$0xff] %v9424_v12  ;;  %v2930_v25 = vshrl.u32 %v9424_v12, 16  ;;  %v2932_v14 = vshll.u32 %v9424_v12, 16  ;;  %v2945_v58 = vrot.slane %v9424_v12, 2  ;;  %v1417_v55 = vsel %vm629_vm10, %v9414_v35, -inf }
 0x126   : > { %v1425_v32 = vsel %vm12076_vm15, %v8894_v37, -inf  ;;  %v1401_v16 = vrot.slane %v1400_v36, 4  ;;  %v1409_v63 = vmax.f32 %v1407_v19, %v1408_v31  ;;  %v1418_v61 = vmax.f32 %v1416_v9, %v1417_v55  ;;  %v8383_v31 = vld [vmem:[%s12040_s1 + $0xd0] ss:$8 sps:$4 sm:$0xff]  }
 0x127   : > { %v2940_v50 = vrot.slane %v2930_v25, 1  ;;  %v2941_v11 = vrot.slane %v2932_v14, 2  ;;  %v7766_v49 = vcombine.low %v2945_v58, %v2945_v58  ;;  %v2934_v5 = vrot.slane %v2932_v14, 1 }
 0x128   : > { %v1426_v54 = vsel %vm629_vm10, %v9417_v0, -inf  ;;  %v1402_v34 = vmax.f32 %v1400_v36, %v1401_v16  ;;  %v1410_v23 = vrot.slane %v1409_v63, 4  ;;  %v1419_v37 = vrot.slane %v1418_v61, 4  ;;  %v210_v36 = vld [vmem:[%s8769_s18 + $0x28] sm:$0x1f] }
 0x129   : > { %v2942_v6 = vor.u32 %v2941_v11, %v2940_v50  ;;  %v2959_v29 = vrot.slane %v7766_v49, 7  ;;  %v2935_v33 = vor.u32 %v2934_v5, %v2930_v25  ;;  %v1427_v56 = vmax.f32 %v1425_v32, %v1426_v54 }
 0x12a   : > { %v1434_v52 = vsel %vm12076_vm15, %v8896_v42, -inf  ;;  %v1435_v22 = vsel %vm629_vm10, %v9419_v39, -inf  ;;  %v1443_v7 = vsel %vm12076_vm15, %v8903_v4, -inf  ;;  %v1444_v53 = vsel %vm629_vm10, %v9426_v18, -inf  ;;  %v8381_v42 = vld [vmem:[%s12040_s1 + $0xd4] ss:$8 sps:$4 sm:$0xff]  }
 0x12b   : > { %2963 = vst.msk [vmem:[#allocation2 + $0xb0] sm:$0xe] %vm2744_vm14, %v2959_v29  ;;  %2943 = vrot.lane.b32.xlu1 %v2942_v6, %s8733_s23  ;;  %2936 = vrot.lane.b32.xlu0 %v2935_v33, %s8733_s23  ;;  %v1428_v27 = vrot.slane %v1427_v56, 4  ;;  %v1403_v19 = vrot.slane %v1402_v34, 2  ;;  %v1411_v25 = vmax.f32 %v1409_v63, %v1410_v23  ;;  %v1420_v14 = vmax.f32 %v1418_v61, %v1419_v37  ;;  %v212_v4 = vld [vmem:[%s8769_s18 + $0x38] sm:$0x1f] }
 0x12c   : > { %v1436_v58 = vmax.f32 %v1434_v52, %v1435_v22  ;;  %v1445_v55 = vmax.f32 %v1443_v7, %v1444_v53  ;;  %v9467_v32 = vsel %vm235_vm11, %v206_v43, -inf  ;;  %v9470_v50 = vsel %vm235_vm11, %v208_v26, -inf  ;;  %3761 = vmatprep.subr.bf16.mxu0 %v8381_v42  ;;  %v214_v63 = vld [vmem:[%s8769_s18 + $0x48] sm:$0x1f]  ;;  %v216_v23 = vld [vmem:[%s8769_s18 + $0x58] sm:$0x1f] }
 0x12d   : > { %v1429_v9 = vmax.f32 %v1427_v56, %v1428_v27  ;;  %v1404_v11 = vmax.f32 %v1402_v34, %v1403_v19  ;;  %v1412_v49 = vrot.slane %v1411_v25, 2  ;;  %v1421_v5 = vrot.slane %v1420_v14, 2  ;;  %3762 = vmatpush2.bf16.msra.mxu0 %v8383_v31  ;;  %v218_v26 = vld [vmem:[%s8769_s18 + $0x68] sm:$0x1f] }
 0x12e   : > { %v1437_v16 = vrot.slane %v1436_v58, 4  ;;  %v1446_v54 = vrot.slane %v1445_v55, 4  ;;  %v9476_v29 = vsel %vm235_vm11, %v210_v36, -inf  ;;  %v9481_v27 = vsel %vm235_vm11, %v212_v4, -inf  ;;  %v220_v36 = vld [vmem:[%s8769_s18 + $0x78] sm:$0x1f] }
 0x12f   : > { %v1430_v61 = vrot.slane %v1429_v9, 2  ;;  %v1405_v33 = vrot.slane %v1404_v11, 1  ;;  %v1413_v56 = vmax.f32 %v1411_v25, %v1412_v49  ;;  %v1422_v43 = vmax.f32 %v1420_v14, %v1421_v5  ;;  %v222_v31 = vld [vmem:[%s8769_s18 + $0x88] sm:$0x1f] }
 0x130   : > { %v1438_v34 = vmax.f32 %v1436_v58, %v1437_v16  ;;  %v1447_v52 = vmax.f32 %v1445_v55, %v1446_v54  ;;  %v9484_v22 = vsel %vm235_vm11, %v214_v63, -inf  ;;  %v244_v14 = vmax.f32 %v9476_v29, %v9481_v27 }
 0x131   : > { %v1431_v37 = vmax.f32 %v1429_v9, %v1430_v61  ;;  %v1406_v7 = vmax.f32 %v1404_v11, %v1405_v33  ;;  %v1414_v53 = vrot.slane %v1413_v56, 1  ;;  %v1423_v42 = vrot.slane %v1422_v43, 1 }
 0x132   : > { %v1439_v19 = vrot.slane %v1438_v34, 2  ;;  %v1448_v25 = vrot.slane %v1447_v52, 2  ;;  %v249_v58 = vsel %vm235_vm11, %v216_v23, -inf  ;;  %v254_v63 = vsel %vm235_vm11, %v218_v26, -inf  ;;  %v226_v26 = vld [vmem:[%s8769_s18 + $0xa8] sm:$0x1f] }
 0x133   : > { %v1432_v6 = vrot.slane %v1431_v37, 1  ;;  %v1415_v9 = vmax.f32 %v1413_v56, %v1414_v53  ;;  %v1424_v55 = vmax.f32 %v1422_v43, %v1423_v42  ;;  %v1452_v49 = vmax.f32 %v1406_v7, 0.0  ;;  %v228_v7 = vld [vmem:[%s8769_s18 + $0xb8] sm:$0x1f] }
 0x134   : > { %v1440_v4 = vmax.f32 %v1438_v34, %v1439_v19  ;;  %v1449_v16 = vmax.f32 %v1447_v52, %v1448_v25  ;;  %v250_v11 = vmax.f32 %v9484_v22, %v249_v58  ;;  %v255_v56 = vsel %vm235_vm11, %v220_v36, -inf  ;;  %v8388_v36 = vld [vmem:[%s12040_s1 + $0xc4] ss:$8 sps:$4 sm:$0xff]  }
 0x135   : > { %v1433_v5 = vmax.f32 %v1431_v37, %v1432_v6  ;;  %v1453_v54 = vmax.f32 %v1415_v9, 0.0  ;;  %v1454_v33 = vmax.f32 %v1424_v55, 0.0  ;;  %v1458_v12 = vpack.c.bf16 %v1452_v49, %v1452_v49  ;;  %v8387_v6 = vld [vmem:[%s12040_s1 + $0x1b4] ss:$8 sps:$4 sm:$0xff]   ;;  %3763 = vmatprep.subr.bf16.mxu0 %v8388_v36 }
 0x136   : > { %v1441_v61 = vrot.slane %v1440_v4, 1  ;;  %v1450_v28 = vrot.slane %v1449_v16, 1  ;;  %v260_v43 = vsel %vm235_vm11, %v222_v31, -inf  ;;  %v256_v19 = vmax.f32 %v254_v63, %v255_v56  ;;  %4462 = vmatprep.subr.bf16.mxu1 %v8387_v6 }
 0x137   : > { %v1455_v48 = vmax.f32 %v1433_v5, 0.0  ;;  %v1459_v23 = vpack.c.bf16 %v1453_v54, %v1453_v54  ;;  %v1460_v37 = vpack.c.bf16 %v1454_v33, %v1454_v33  ;;  %v1470_v52 = vunpack.c.l.b16 %v1458_v12  ;;  %v8390_v12 = vld [vmem:[%s12040_s1 + $0xc0] ss:$8 sps:$4 sm:$0xff]  }
 0x138   : > { %v1442_v34 = vmax.f32 %v1440_v4, %v1441_v61  ;;  %v1451_v53 = vmax.f32 %v1449_v16, %v1450_v28  ;;  %v261_v25 = vsel %vm235_vm11, %v224_v21, -inf  ;;  %v267_v5 = vsel %vm235_vm11, %v228_v7, -inf  ;;  %v230_v61 = vld [vmem:[%s8769_s18 + $0xc8] sm:$0x1f]  ;;  %3764 = vmatpush2.bf16.msra.mxu0 %v8390_v12 }
 0x139   : > { %v1461_v42 = vpack.c.bf16 %v1455_v48, %v1455_v48  ;;  %v1471_v9 = vunpack.c.l.b16 %v1459_v23  ;;  %v1472_v55 = vunpack.c.l.b16 %v1460_v37  ;;  %v262_v4 = vmax.f32 %v260_v43, %v261_v25 }
 0x13a   : > { %v1456_v31 = vmax.f32 %v1442_v34, 0.0  ;;  %v1457_v49 = vmax.f32 %v1451_v53, 0.0  ;;  %v266_v48 = vsel %vm235_vm11, %v226_v26, -inf  ;;  %v270_v33 = vmax.f32 %v9470_v50, %v9476_v29 }
 0x13b   : > { %v1473_v28 = vunpack.c.l.b16 %v1461_v42  ;;  %v1476_v16 = vsel %vm362_vm2, %v1471_v9, %v1470_v52  ;;  %v268_v54 = vmax.f32 %v266_v48, %v267_v5  ;;  %v272_v23 = vmax.f32 %v9481_v27, %v9484_v22 }
 0x13c   : > { %v1462_v21 = vpack.c.bf16 %v1456_v31, %v1456_v31  ;;  %v1463_v6 = vpack.c.bf16 %v1457_v49, %v1457_v49  ;;  %v1477_v34 = vsel %vm364_vm3, %v1472_v55, %v1476_v16  ;;  %v274_v37 = vmax.f32 %v249_v58, %v254_v63 }
 0x13d   : > { %v1478_v7 = vsel %vm366_vm4, %v1473_v28, %v1477_v34  ;;  %v276_v53 = vmax.f32 %v255_v56, %v260_v43  ;;  %v278_v42 = vmax.f32 %v261_v25, %v266_v48  ;;  %v281_v52 = vsel %vm235_vm11, %v230_v61, -inf }
 0x13e   : > { %v1474_v26 = vunpack.c.l.b16 %v1462_v21  ;;  %v1475_v36 = vunpack.c.l.b16 %v1463_v6  ;;  %v12091_v31 = vmax.f32 %v9467_v32, %v9470_v50  ;;  %v9524_v9 = vmax.f32 %v244_v14, %v272_v23 }
 0x13f   : > { %v282_v12 = vmax.f32 %v267_v5, %v281_v52  ;;  %v9527_v27 = vmax.f32 %v250_v11, %v274_v37  ;;  %v9529_v22 = vmax.f32 %v256_v19, %v276_v53  ;;  %v9532_v63 = vmax.f32 %v262_v4, %v278_v42 }
 0x140   : > { %v9522_v29 = vmax.f32 %v12091_v31, %v270_v33  ;;  %v1479_v55 = vsel %vm368_vm5, %v1474_v26, %v1478_v7  ;;  %v628_v56 = vsel %vm12076_vm15, %v8968_v57, -inf  ;;  %v638_v11 = vsel %vm12076_vm15, %v8972_v1, -inf }
 0x141   : > { %v1480_v58 = vsel %vm370_vm6, %v1475_v36, %v1479_v55  ;;  %v9538_v14 = vmax.f32 %v268_v54, %v282_v12  ;;  %v639_v19 = vsel %vm629_vm10, %v9524_v9, -inf  ;;  %v647_v25 = vsel %vm12076_vm15, %v8974_v2, -inf }
 0x142   : > { %v630_v32 = vsel %vm629_vm10, %v9522_v29, -inf  ;;  %v1481_v50 = vpack.c.b16 %v1480_v58, %v1480_v58  ;;  %v648_v4 = vsel %vm629_vm10, %v9527_v27, -inf  ;;  %v656_v57 = vsel %vm12076_vm15, %v8976_v47, -inf }
 0x143   : > { %v631_v43 = vmax.f32 %v628_v56, %v630_v32  ;;  %v640_v48 = vmax.f32 %v638_v11, %v639_v19  ;;  %v649_v5 = vmax.f32 %v647_v25, %v648_v4  ;;  %v657_v1 = vsel %vm629_vm10, %v9529_v22, -inf  ;;  %v7698_v19 = vld [vmem:[%s8769_s18 + $0x1a8] sm:$0x1f] }
 0x144   : > { %v1483_v49 = vsel %vm373_vm7, 0, %v1481_v50  ;;  %v665_v2 = vsel %vm12076_vm15, %v8979_v3, -inf  ;;  %v666_v16 = vsel %vm629_vm10, %v9532_v63, -inf  ;;  %v658_v23 = vmax.f32 %v656_v57, %v657_v1 }
 0x145   : > { %v632_v28 = vrot.slane %v631_v43, 4  ;;  %v9552_v21 = vsel %vm377_vm8, %v1483_v49, 0  ;;  %v641_v6 = vrot.slane %v640_v48, 4  ;;  %v650_v34 = vrot.slane %v649_v5, 4 }
 0x146   : > { %12092 = vst [vmem:[#allocation13_spill] sm:$0xff] %v9552_v21  ;;  %v1485_v61 = vshrl.u32 %v9552_v21, 16  ;;  %v1487_v47 = vshll.u32 %v9552_v21, 16  ;;  %v1500_v54 = vrot.slane %v9552_v21, 2  ;;  %v667_v37 = vmax.f32 %v665_v2, %v666_v16  ;;  %v7702_v16 = vld [vmem:[%s8769_s18 + $0x1c8] sm:$0x1f] }
 0x147   : > { %v633_v33 = vmax.f32 %v631_v43, %v632_v28  ;;  %v642_v36 = vmax.f32 %v640_v48, %v641_v6  ;;  %v651_v52 = vmax.f32 %v649_v5, %v650_v34  ;;  %v659_v31 = vrot.slane %v658_v23, 4  ;;  %v7700_v28 = vld [vmem:[%s8769_s18 + $0x1b8] sm:$0x1f] }
 0x148   : > { %v1495_v26 = vrot.slane %v1485_v61, 1  ;;  %v1496_v7 = vrot.slane %v1487_v47, 2  ;;  %v7692_v53 = vcombine.low %v1500_v54, %v1500_v54  ;;  %v1489_v42 = vrot.slane %v1487_v47, 1 }
 0x149   : > { %v634_v3 = vrot.slane %v633_v33, 2  ;;  %v668_v56 = vrot.slane %v667_v37, 4  ;;  %v643_v50 = vrot.slane %v642_v36, 2  ;;  %v652_v43 = vrot.slane %v651_v52, 2 }
 0x14a   : > { %v1497_v55 = vor.u32 %v1496_v7, %v1495_v26  ;;  %v1514_v12 = vrot.slane %v7692_v53, 5  ;;  %v1490_v58 = vor.u32 %v1489_v42, %v1485_v61  ;;  %v660_v11 = vmax.f32 %v658_v23, %v659_v31  ;;  %v8394_v61 = vld [vmem:[%s12040_s1 + $0xb4] ss:$8 sps:$4 sm:$0xff]  }
 0x14b   : > { %v635_v32 = vmax.f32 %v633_v33, %v634_v3  ;;  %v669_v4 = vmax.f32 %v667_v37, %v668_v56  ;;  %v674_v57 = vsel %vm12076_vm15, %v8983_v8, -inf  ;;  %v675_v49 = vsel %vm629_vm10, %v9538_v14, -inf  ;;  %v8396_v33 = vld [vmem:[%s12040_s1 + $0xb0] ss:$8 sps:$4 sm:$0xff]   ;;  %3765 = vmatprep.subr.bf16.mxu0 %v8394_v61 }
 0x14c   : > { %v1516_v25 = vrot.slane %v1514_v12, 4  ;;  %1522 = vst.msk [vmem:[#allocation2 + $0xbc] sm:$0x8] %vm1163_vm12, %v1514_v12  ;;  %1498 = vrot.lane.b32.xlu1 %v1497_v55, %s8733_s23  ;;  %1491 = vrot.lane.b32.xlu0 %v1490_v58, %s8733_s23  ;;  %v644_v5 = vmax.f32 %v642_v36, %v643_v50  ;;  %v653_v1 = vmax.f32 %v651_v52, %v652_v43  ;;  %v661_v2 = vrot.slane %v660_v11, 2  ;;  %v7704_v7 = vld [vmem:[%s8769_s18 + $0x1d8] sm:$0x1f] }
 0x14d   : > { %v636_v48 = vrot.slane %v635_v32, 1  ;;  %v670_v47 = vrot.slane %v669_v4, 2  ;;  %v676_v54 = vmax.f32 %v674_v57, %v675_v49  ;;  %v9578_v8 = vsel %vm235_vm11, %v7698_v19, -inf  ;;  %3766 = vmatpush2.bf16.msra.mxu0 %v8396_v33  ;;  %v7706_v58 = vld [vmem:[%s8769_s18 + $0x1e8] sm:$0x1f] }
 0x14e   : > { %1524 = vst.msk [vmem:[#allocation2 + $0xc8] sm:$0x3] %vm12063_vm13, %v1516_v25  ;;  %v645_v34 = vrot.slane %v644_v5, 1  ;;  %v654_v23 = vrot.slane %v653_v1, 1  ;;  %v662_v37 = vmax.f32 %v660_v11, %v661_v2  ;;  %v12064_v26 = vmov 0  }
 0x14f   : > { %v637_v6 = vmax.f32 %v635_v32, %v636_v48  ;;  %3896 = vmatprep.mubr.bf16.mxu1 %v12064_v26  ;;  %180 = vst [vmem:[#allocation2] sm:$0xff] %v12064_v26  ;;  %v671_v53 = vmax.f32 %v669_v4, %v670_v47  ;;  %v677_v42 = vrot.slane %v676_v54, 4  ;;  %v9587_v3 = vsel %vm235_vm11, %v7700_v28, -inf  ;;  %v7708_v57 = vld [vmem:[%s8769_s18 + $0x1f8] sm:$0x1f] }
 0x150   : > { %v9590_v36 = vsel %vm235_vm11, %v7702_v16, -inf  ;;  %v646_v52 = vmax.f32 %v644_v5, %v645_v34  ;;  %v655_v31 = vmax.f32 %v653_v1, %v654_v23  ;;  %v663_v55 = vrot.slane %v662_v37, 1  ;;  %v7710_v49 = vld [vmem:[%s8769_s18 + $0x208] sm:$0x1f]  ;;  %v7716_v34 = vld [vmem:[%s8769_s18 + $0x238] sm:$0x1f] }
 0x151   : > { %v683_v12 = vmax.f32 %v637_v6, 0.0  ;;  %v672_v56 = vrot.slane %v671_v53, 1  ;;  %v678_v32 = vmax.f32 %v676_v54, %v677_v42  ;;  %v1787_v50 = vmax.f32 %v9578_v8, %v9587_v3  ;;  %v7712_v54 = vld [vmem:[%s8769_s18 + $0x218] sm:$0x1f]  ;;  %v7714_v8 = vld [vmem:[%s8769_s18 + $0x228] sm:$0x1f] }
 0x152   : > { %v1792_v43 = vsel %vm235_vm11, %v7704_v7, -inf  ;;  %v664_v11 = vmax.f32 %v662_v37, %v663_v55  ;;  %v684_v19 = vmax.f32 %v646_v52, 0.0  ;;  %v685_v25 = vmax.f32 %v655_v31, 0.0  ;;  %v7718_v52 = vld [vmem:[%s8769_s18 + $0x248] sm:$0x1f] }
 0x153   : > { %v689_v4 = vpack.c.bf16 %v683_v12, %v683_v12  ;;  %v673_v28 = vmax.f32 %v671_v53, %v672_v56  ;;  %v679_v48 = vrot.slane %v678_v32, 2  ;;  %v1793_v5 = vmax.f32 %v9590_v36, %v1792_v43 }
 0x154   : > { %v1797_v1 = vsel %vm235_vm11, %v7706_v58, -inf  ;;  %v686_v2 = vmax.f32 %v664_v11, 0.0  ;;  %v690_v16 = vpack.c.bf16 %v684_v19, %v684_v19  ;;  %v691_v61 = vpack.c.bf16 %v685_v25, %v685_v25  ;;  %v7720_v58 = vld [vmem:[%s8769_s18 + $0x258] sm:$0x1f] }
 0x155   : > { %v701_v47 = vunpack.c.l.b16 %v689_v4  ;;  %v680_v33 = vmax.f32 %v678_v32, %v679_v48  ;;  %v687_v6 = vmax.f32 %v673_v28, 0.0  ;;  %v1798_v23 = vsel %vm235_vm11, %v7708_v57, -inf  ;;  %v7722_v48 = vld [vmem:[%s8769_s18 + $0x268] sm:$0x1f] }
 0x156   : > { %v1803_v37 = vsel %vm235_vm11, %v7710_v49, -inf  ;;  %v692_v7 = vpack.c.bf16 %v686_v2, %v686_v2  ;;  %v702_v53 = vunpack.c.l.b16 %v690_v16  ;;  %v703_v42 = vunpack.c.l.b16 %v691_v61 }
 0x157   : > { %v1799_v31 = vmax.f32 %v1797_v1, %v1798_v23  ;;  %v681_v55 = vrot.slane %v680_v33, 1  ;;  %v693_v12 = vpack.c.bf16 %v687_v6, %v687_v6  ;;  %v1804_v56 = vsel %vm235_vm11, %v7712_v54, -inf }
 0x158   : > { %v1809_v11 = vsel %vm235_vm11, %v7714_v8, -inf  ;;  %v704_v32 = vunpack.c.l.b16 %v692_v7  ;;  %v707_v19 = vsel %vm362_vm2, %v702_v53, %v701_v47  ;;  %v1805_v25 = vmax.f32 %v1803_v37, %v1804_v56 }
 0x159   : > { %v1810_v4 = vsel %vm235_vm11, %v7716_v34, -inf  ;;  %v682_v57 = vmax.f32 %v680_v33, %v681_v55  ;;  %v705_v49 = vunpack.c.l.b16 %v693_v12  ;;  %v708_v28 = vsel %vm364_vm3, %v703_v42, %v707_v19 }
 0x15a   : > { %v1811_v2 = vmax.f32 %v1809_v11, %v1810_v4  ;;  %v709_v16 = vsel %vm366_vm4, %v704_v32, %v708_v28  ;;  %v1815_v61 = vsel %vm235_vm11, %v7718_v52, -inf  ;;  %v1816_v54 = vsel %vm235_vm11, %v7720_v58, -inf }
 0x15b   : > { %v1819_v8 = vmax.f32 %v9587_v3, %v9590_v36  ;;  %v688_v6 = vmax.f32 %v682_v57, 0.0  ;;  %v710_v47 = vsel %vm368_vm5, %v705_v49, %v709_v16  ;;  %v1817_v7 = vmax.f32 %v1815_v61, %v1816_v54  ;;  %v8403_v57 = vld [vmem:[%s12040_s1 + $0xa0] ss:$8 sps:$4 sm:$0xff]  }
 0x15c   : > { %v1821_v34 = vmax.f32 %v1792_v43, %v1797_v1  ;;  %v1823_v33 = vmax.f32 %v1798_v23, %v1803_v37  ;;  %v1825_v53 = vmax.f32 %v1804_v56, %v1809_v11  ;;  %v1827_v55 = vmax.f32 %v1810_v4, %v1815_v61 }
 0x15d   : > { %v1830_v42 = vsel %vm235_vm11, %v7722_v48, -inf  ;;  %v694_v12 = vpack.c.bf16 %v688_v6, %v688_v6  ;;  %v9620_v32 = vmax.f32 %v1787_v50, %v1819_v8  ;;  %v2190_v36 = vsel %vm12076_vm15, %v8800_v40, -inf  ;;  %v8401_v40 = vld [vmem:[%s12040_s1 + $0xa4] ss:$8 sps:$4 sm:$0xff]  }
 0x15e   : > { %v1831_v19 = vmax.f32 %v1816_v54, %v1830_v42  ;;  %v9622_v52 = vmax.f32 %v1793_v5, %v1821_v34  ;;  %v9624_v58 = vmax.f32 %v1799_v31, %v1823_v33  ;;  %v9626_v28 = vmax.f32 %v1805_v25, %v1825_v53  ;;  %3767 = vmatprep.subr.bf16.mxu0 %v8401_v40 }
 0x15f   : > { %v9628_v3 = vmax.f32 %v1811_v2, %v1827_v55  ;;  %v706_v43 = vunpack.c.l.b16 %v694_v12  ;;  %v2191_v23 = vsel %vm629_vm10, %v9620_v32, -inf  ;;  %v2199_v50 = vsel %vm12076_vm15, %v8802_v41, -inf  ;;  %3768 = vmatpush2.bf16.msra.mxu0 %v8403_v57 }
 0x160   : > { %v9632_v1 = vmax.f32 %v1817_v7, %v1831_v19  ;;  %v2192_v5 = vmax.f32 %v2190_v36, %v2191_v23  ;;  %v2200_v37 = vsel %vm629_vm10, %v9622_v52, -inf  ;;  %v2208_v31 = vsel %vm12076_vm15, %v8807_v44, -inf }
 0x161   : > { %v2209_v56 = vsel %vm629_vm10, %v9624_v58, -inf  ;;  %v711_v11 = vsel %vm370_vm6, %v706_v43, %v710_v47  ;;  %v2201_v25 = vmax.f32 %v2199_v50, %v2200_v37  ;;  %v2217_v41 = vsel %vm12076_vm15, %v8809_v45, -inf }
 0x162   : > { %v2210_v4 = vmax.f32 %v2208_v31, %v2209_v56  ;;  %v712_v49 = vpack.c.b16 %v711_v11, %v711_v11  ;;  %v2193_v44 = vrot.slane %v2192_v5, 4  ;;  %v2218_v48 = vsel %vm629_vm10, %v9626_v28, -inf }
 0x163   : > { %v2226_v2 = vsel %vm12076_vm15, %v8811_v46, -inf  ;;  %v2202_v16 = vrot.slane %v2201_v25, 4  ;;  %v2219_v54 = vmax.f32 %v2217_v41, %v2218_v48  ;;  %v2227_v8 = vsel %vm629_vm10, %v9628_v3, -inf  ;;  %v7738_v48 = vld [vmem:[%s8769_s18 + $0x288] sm:$0x1f] }
 0x164   : > { %v2211_v61 = vrot.slane %v2210_v4, 4  ;;  %v714_v45 = vsel %vm373_vm7, 0, %v712_v49  ;;  %v2194_v6 = vmax.f32 %v2192_v5, %v2193_v44  ;;  %v2228_v47 = vmax.f32 %v2226_v2, %v2227_v8  ;;  %v7740_v8 = vld [vmem:[%s8769_s18 + $0x298] sm:$0x1f] }
 0x165   : > { %v2235_v7 = vsel %vm12076_vm15, %v8823_v51, -inf  ;;  %v9663_v34 = vsel %vm377_vm8, %v714_v45, 0  ;;  %v2203_v33 = vmax.f32 %v2201_v25, %v2202_v16  ;;  %v2220_v53 = vrot.slane %v2219_v54, 4 }
 0x166   : > { %12093 = vst [vmem:[#allocation14_spill] sm:$0xff] %v9663_v34  ;;  %v2212_v46 = vmax.f32 %v2210_v4, %v2211_v61  ;;  %v716_v55 = vshrl.u32 %v9663_v34, 16  ;;  %v718_v42 = vshll.u32 %v9663_v34, 16  ;;  %v731_v12 = vrot.slane %v9663_v34, 2  ;;  %v7736_v4 = vld [vmem:[%s8769_s18 + $0x278] sm:$0x1f] }
 0x167   : > { %v2195_v19 = vrot.slane %v2194_v6, 2  ;;  %v2204_v36 = vrot.slane %v2203_v33, 2  ;;  %v2221_v23 = vmax.f32 %v2219_v54, %v2220_v53  ;;  %v2229_v50 = vrot.slane %v2228_v47, 4 }
 0x168   : > { %v2213_v43 = vrot.slane %v2212_v46, 2  ;;  %v726_v51 = vrot.slane %v716_v55, 1  ;;  %v727_v5 = vrot.slane %v718_v42, 2  ;;  %v7654_v37 = vcombine.low %v731_v12, %v731_v12 }
 0x169   : > { %v720_v31 = vrot.slane %v718_v42, 1  ;;  %v2196_v56 = vmax.f32 %v2194_v6, %v2195_v19  ;;  %v2205_v40 = vmax.f32 %v2203_v33, %v2204_v36  ;;  %v2222_v25 = vrot.slane %v2221_v23, 2 }
 0x16a   : > { %v2214_v11 = vmax.f32 %v2212_v46, %v2213_v43  ;;  %v728_v41 = vor.u32 %v727_v5, %v726_v51  ;;  %747 = vst.msk [vmem:[#allocation2 + $0xbc] sm:$0x7] %vm295_vm1, %v7654_v37  ;;  %v2230_v49 = vmax.f32 %v2228_v47, %v2229_v50  ;;  %v2236_v44 = vsel %vm629_vm10, %v9632_v1, -inf  ;;  %v7744_v5 = vld [vmem:[%s8769_s18 + $0x2b8] sm:$0x1f] }
 0x16b   : > { %v721_v57 = vor.u32 %v720_v31, %v716_v55  ;;  %v2197_v2 = vrot.slane %v2196_v56, 1  ;;  %v2206_v16 = vrot.slane %v2205_v40, 1  ;;  %v2223_v54 = vmax.f32 %v2221_v23, %v2222_v25 }
 0x16c   : > { %v2215_v61 = vrot.slane %v2214_v11, 1  ;;  %729 = vrot.lane.b32.xlu1 %v728_v41, %s8733_s23  ;;  %v2231_v45 = vrot.slane %v2230_v49, 2  ;;  %v2237_v6 = vmax.f32 %v2235_v7, %v2236_v44  ;;  %vm181_vm13 = vcmask 519168   ;;  %v7742_v7 = vld [vmem:[%s8769_s18 + $0x2a8] sm:$0x1f] }
 0x16d   : > { %722 = vrot.lane.b32.xlu0 %v721_v57, %s8733_s23  ;;  %v9677_v33 = vsel %vm235_vm11, %v7736_v4, -inf  ;;  %v2198_v47 = vmax.f32 %v2196_v56, %v2197_v2  ;;  %v2207_v46 = vmax.f32 %v2205_v40, %v2206_v16  ;;  %v2224_v55 = vrot.slane %v2223_v54, 1  ;;  %182 = vst.msk [vmem:[#allocation2 + $0x8] sm:$0xf] %vm181_vm13, %v12064_v26  ;;  %184 = vst.msk [vmem:[#allocation2 + $0x14] sm:$0xf] %vm181_vm13, %v12064_v26 }
 0x16e   : > { %v2216_v53 = vmax.f32 %v2214_v11, %v2215_v61  ;;  %186 = vst.msk [vmem:[#allocation2 + $0x20] sm:$0xf] %vm181_vm13, %v12064_v26  ;;  %188 = vst.msk [vmem:[#allocation2 + $0x2c] sm:$0xf] %vm181_vm13, %v12064_v26  ;;  %v2232_v42 = vmax.f32 %v2230_v49, %v2231_v45  ;;  %v2238_v12 = vrot.slane %v2237_v6, 4  ;;  %v9705_v19 = vsel %vm235_vm11, %v7738_v48, -inf }
 0x16f   : > { %190 = vst.msk [vmem:[#allocation2 + $0x38] sm:$0xf] %vm181_vm13, %v12064_v26  ;;  %192 = vst.msk [vmem:[#allocation2 + $0x44] sm:$0xf] %vm181_vm13, %v12064_v26  ;;  %v9708_v36 = vsel %vm235_vm11, %v7740_v8, -inf  ;;  %v2225_v43 = vmax.f32 %v2223_v54, %v2224_v55  ;;  %v2244_v23 = vmax.f32 %v2198_v47, 0.0 }
 0x170   : > { %194 = vst.msk [vmem:[#allocation2 + $0x128] sm:$0xf] %vm181_vm13, %v12064_v26  ;;  %196 = vst.msk [vmem:[#allocation2 + $0x134] sm:$0xf] %vm181_vm13, %v12064_v26  ;;  %v2245_v50 = vmax.f32 %v2207_v46, 0.0  ;;  %v2246_v51 = vmax.f32 %v2216_v53, 0.0  ;;  %v2239_v31 = vmax.f32 %v2237_v6, %v2238_v12 }
 0x171   : > { %198 = vst.msk [vmem:[#allocation2 + $0x140] sm:$0xf] %vm181_vm13, %v12064_v26  ;;  %200 = vst.msk [vmem:[#allocation2 + $0x14c] sm:$0xf] %vm181_vm13, %v12064_v26  ;;  %v2233_v37 = vrot.slane %v2232_v42, 1  ;;  %v9716_v25 = vsel %vm235_vm11, %v7742_v7, -inf  ;;  %v2250_v41 = vpack.c.bf16 %v2244_v23, %v2244_v23 }
 0x172   : > { %202 = vst.msk [vmem:[#allocation2 + $0x158] sm:$0xf] %vm181_vm13, %v12064_v26  ;;  %204 = vst.msk [vmem:[#allocation2 + $0x164] sm:$0xf] %vm181_vm13, %v12064_v26  ;;  %v7746_v56 = vld [vmem:[%s8769_s18 + $0x2c8] sm:$0x1f]  ;;  %v2251_v57 = vpack.c.bf16 %v2245_v50, %v2245_v50  ;;  %v2252_v49 = vpack.c.bf16 %v2246_v51, %v2246_v51  ;;  %v2585_v54 = vmax.f32 %v9708_v36, %v9716_v25 }
 0x173   : > { %v7748_v40 = vld [vmem:[%s8769_s18 + $0x2d8] sm:$0x1f]  ;;  %v2247_v4 = vmax.f32 %v2225_v43, 0.0  ;;  %v7750_v44 = vld [vmem:[%s8769_s18 + $0x2e8] sm:$0x1f]  ;;  %v2234_v48 = vmax.f32 %v2232_v42, %v2233_v37  ;;  %v2240_v2 = vrot.slane %v2239_v31, 2  ;;  %v2262_v47 = vunpack.c.l.b16 %v2250_v41 }
 0x174   : > { %v7752_v16 = vld [vmem:[%s8769_s18 + $0x2f8] sm:$0x1f]  ;;  %v7754_v61 = vld [vmem:[%s8769_s18 + $0x308] sm:$0x1f]  ;;  %v2589_v8 = vsel %vm235_vm11, %v7744_v5, -inf  ;;  %v2263_v46 = vunpack.c.l.b16 %v2251_v57  ;;  %v2264_v53 = vunpack.c.l.b16 %v2252_v49  ;;  %v2590_v50 = vsel %vm235_vm11, %v7746_v56, -inf }
 0x175   : > { %v8385_v45 = vld [vmem:[%s12040_s1 + $0x1b0] ss:$8 sps:$4 sm:$0xff]   ;;  %v2253_v6 = vpack.c.bf16 %v2247_v4, %v2247_v4  ;;  %v8393_v7 = vld [vmem:[%s12040_s1 + $0x1a4] ss:$8 sps:$4 sm:$0xff]   ;;  %v8407_v42 = vld [vmem:[%s12040_s1 + $0x94] ss:$8 sps:$4 sm:$0xff]   ;;  %v2241_v43 = vmax.f32 %v2239_v31, %v2240_v2  ;;  %v2611_v51 = vmax.f32 %v9705_v19, %v9708_v36  ;;  %v2591_v41 = vmax.f32 %v2589_v8, %v2590_v50 }
 0x176   : > { %v7756_v55 = vld [vmem:[%s8769_s18 + $0x318] sm:$0x1f]  ;;  %v2248_v23 = vmax.f32 %v2234_v48, 0.0  ;;  %v2268_v37 = vsel %vm362_vm2, %v2263_v46, %v2262_v47  ;;  %v8377_v4 = vld [vmem:[#allocation2 + $0x8] ss:$12 sps:$4 sm:$0xff]   ;;  %v2595_v57 = vsel %vm235_vm11, %v7748_v40, -inf  ;;  %3769 = vmatprep.subr.bf16.mxu0 %v8407_v42 }
 0x177   : > { %v8409_v12 = vld [vmem:[%s12040_s1 + $0x90] ss:$8 sps:$4 sm:$0xff]   ;;  %v2265_v5 = vunpack.c.l.b16 %v2253_v6  ;;  %v2242_v49 = vrot.slane %v2241_v43, 1  ;;  %v2269_v26 = vsel %vm364_vm3, %v2264_v53, %v2268_v37  ;;  %v7758_v31 = vld [vmem:[%s8769_s18 + $0x328] sm:$0x1f]  ;;  %v2596_v48 = vsel %vm235_vm11, %v7750_v44, -inf  ;;  %7840 = vmatmul.mubr.msk.bf16.vlgmr.msra.gmra.mxu1 %vm231_vm0, %v8377_v4 }
 0x178   : > { %v2254_v11 = vpack.c.bf16 %v2248_v23, %v2248_v23  ;;  %3770 = vmatpush2.bf16.msra.mxu0 %v8409_v12  ;;  %v2597_v36 = vmax.f32 %v2595_v57, %v2596_v48  ;;  %v2601_v2 = vsel %vm235_vm11, %v7752_v16, -inf  ;;  %v2602_v6 = vsel %vm235_vm11, %v7754_v61, -inf  ;;  %v7760_v46 = vld [vmem:[%s8769_s18 + $0x338] sm:$0x1f]  ;;  %4463 = vmatpush1.bf16.msra.mxu1 %v8385_v45  ;;  %v8414_v37 = vld [vmem:[%s12040_s1 + $0x84] ss:$8 sps:$4 sm:$0xff]  }
 0x179   : > { %v2270_v56 = vsel %vm366_vm4, %v2265_v5, %v2269_v26  ;;  %v2243_v47 = vmax.f32 %v2241_v43, %v2242_v49  ;;  %v2603_v42 = vmax.f32 %v2601_v2, %v2602_v6  ;;  %v2607_v23 = vsel %vm235_vm11, %v7756_v55, -inf  ;;  %v8391_v26 = vld [vmem:[%s12040_s1 + $0x1a0] ss:$8 sps:$4 sm:$0xff]   ;;  %4464 = vmatprep.subr.bf16.mxu1 %v8393_v7  ;;  %3771 = vmatprep.subr.bf16.mxu0 %v8414_v37 }
 0x17a   : > { %v2266_v40 = vunpack.c.l.b16 %v2254_v11  ;;  %v12094_v53 = vmov 0   ;;  %v2608_v44 = vsel %vm235_vm11, %v7758_v31, -inf  ;;  %v2613_v12 = vmax.f32 %v9716_v25, %v2589_v8  ;;  %v8400_v11 = vld [vmem:[%s12040_s1 + $0x194] ss:$8 sps:$4 sm:$0xff]   ;;  %v8416_v25 = vld [vmem:[%s12040_s1 + $0x80] ss:$8 sps:$4 sm:$0xff]  }
 0x17b   : > { %3906 = vmatprep.mubr.bf16.mxu1 %v12094_v53  ;;  %v2615_v16 = vmax.f32 %v2590_v50, %v2595_v57  ;;  %v2617_v5 = vmax.f32 %v2596_v48, %v2601_v2  ;;  %v2249_v61 = vmax.f32 %v2243_v47, 0.0  ;;  %v2609_v43 = vmax.f32 %v2607_v23, %v2608_v44  ;;  %v8384_v49 = vld [vmem:[#allocation2 + $0x20] ss:$12 sps:$4 sm:$0xff]  }
 0x17c   : > { %v2271_v55 = vsel %vm368_vm5, %v2266_v40, %v2270_v56  ;;  %v2619_v45 = vmax.f32 %v2602_v6, %v2607_v23  ;;  %v2622_v8 = vsel %vm235_vm11, %v7760_v46, -inf  ;;  %v12095_v7 = vmax.f32 %v9677_v33, %v9705_v19  ;;  %4465 = vmatpush1.bf16.msra.mxu1 %v8391_v26  ;;  %v8398_v6 = vld [vmem:[%s12040_s1 + $0x190] ss:$8 sps:$4 sm:$0xff]   ;;  %v8404_v46 = vld [vmem:[%s12040_s1 + $0x180] ss:$8 sps:$4 sm:$0xff]   ;;  %3772 = vmatpush2.bf16.msra.mxu0 %v8416_v25 }
 0x17d   : > { %v9773_v4 = vmax.f32 %v2585_v54, %v2613_v12  ;;  %v9775_v57 = vmax.f32 %v2591_v41, %v2615_v16  ;;  %v2255_v31 = vpack.c.bf16 %v2249_v61, %v2249_v61  ;;  %v2623_v48 = vmax.f32 %v2608_v44, %v2622_v8  ;;  %4466 = vmatprep.subr.bf16.mxu1 %v8400_v11  ;;  %v8406_v41 = vld [vmem:[%s12040_s1 + $0x184] ss:$8 sps:$4 sm:$0xff]   ;;  %v8413_v44 = vld [vmem:[%s12040_s1 + $0x174] ss:$8 sps:$4 sm:$0xff]  }
 0x17e   : > { %v9771_v50 = vmax.f32 %v12095_v7, %v2611_v51  ;;  %v9777_v56 = vmax.f32 %v2597_v36, %v2617_v5  ;;  %v9779_v2 = vmax.f32 %v2603_v42, %v2619_v45  ;;  %v2964_v33 = vsel %vm12076_vm15, %v9092_v60, -inf  ;;  %v8397_v45 = vld [vmem:[#allocation2 + $0x38] ss:$12 sps:$4 sm:$0xff]  }
 0x17f   : > { %v2973_v54 = vsel %vm12076_vm15, %v9094_v62, -inf  ;;  %v2974_v51 = vsel %vm629_vm10, %v9773_v4, -inf  ;;  %v2267_v36 = vunpack.c.l.b16 %v2255_v31  ;;  %v9795_v47 = vmax.f32 %v2609_v43, %v2623_v48  ;;  %7841 = vmatmul.mubr.msk.bf16.gmra.mxu1 %vm231_vm0, %v8384_v49  ;;  %v8411_v7 = vld [vmem:[%s12040_s1 + $0x170] ss:$8 sps:$4 sm:$0xff]  }
 0x180   : > { %v2965_v19 = vsel %vm629_vm10, %v9771_v50, -inf  ;;  %v2975_v60 = vmax.f32 %v2973_v54, %v2974_v51  ;;  %v2982_v62 = vsel %vm12076_vm15, %v9096_v24, -inf  ;;  %v2983_v42 = vsel %vm629_vm10, %v9775_v57, -inf  ;;  %3916 = vmatprep.mubr.bf16.mxu1 %v12094_v53  ;;  %4467 = vmatpush1.bf16.msra.mxu1 %v8398_v6  ;;  %v8419_v6 = vld [vmem:[%s12040_s1 + $0x164] ss:$8 sps:$4 sm:$0xff]  }
 0x181   : > { %v2966_v40 = vmax.f32 %v2964_v33, %v2965_v19  ;;  %v2991_v23 = vsel %vm12076_vm15, %v9098_v15, -inf  ;;  %v2992_v26 = vsel %vm629_vm10, %v9777_v56, -inf  ;;  %v2272_v12 = vsel %vm370_vm6, %v2267_v36, %v2271_v55  ;;  %4468 = vmatprep.subr.bf16.mxu1 %v8406_v41 }
 0x182   : > { %v2976_v5 = vrot.slane %v2975_v60, 4  ;;  %v2984_v24 = vmax.f32 %v2982_v62, %v2983_v42  ;;  %v2273_v11 = vpack.c.b16 %v2272_v12, %v2272_v12  ;;  %v2993_v61 = vmax.f32 %v2991_v23, %v2992_v26 }
 0x183   : > { %v2967_v16 = vrot.slane %v2966_v40, 4  ;;  %v3000_v15 = vsel %vm12076_vm15, %v9100_v38, -inf  ;;  %v3001_v43 = vsel %vm629_vm10, %v9779_v2, -inf  ;;  %v3009_v48 = vsel %vm12076_vm15, %v9107_v13, -inf }
 0x184   : > { %v2977_v25 = vmax.f32 %v2975_v60, %v2976_v5  ;;  %v2985_v8 = vrot.slane %v2984_v24, 4  ;;  %v3002_v55 = vmax.f32 %v3000_v15, %v3001_v43  ;;  %v2275_v49 = vsel %vm373_vm7, 0, %v2273_v11  ;;  %4469 = vmatpush1.bf16.msra.mxu1 %v8404_v46 }
 0x185   : > { %v2968_v37 = vmax.f32 %v2966_v40, %v2967_v16  ;;  %v2994_v31 = vrot.slane %v2993_v61, 4  ;;  %v3010_v38 = vsel %vm629_vm10, %v9795_v47, -inf  ;;  %v9830_v33 = vsel %vm377_vm8, %v2275_v49, 0  ;;  %4470 = vmatprep.subr.bf16.mxu1 %v8413_v44  ;;  %v8417_v44 = vld [vmem:[%s12040_s1 + $0x160] ss:$8 sps:$4 sm:$0xff]  }
 0x186   : > { %12096 = vst [vmem:[#allocation15_spill] sm:$0xff] %v9830_v33  ;;  %v2978_v54 = vrot.slane %v2977_v25, 2  ;;  %v2986_v51 = vmax.f32 %v2984_v24, %v2985_v8  ;;  %v2277_v41 = vshrl.u32 %v9830_v33, 16  ;;  %v2279_v36 = vshll.u32 %v9830_v33, 16 }
 0x187   : > { %v2969_v19 = vrot.slane %v2968_v37, 2  ;;  %v2292_v13 = vrot.slane %v9830_v33, 2  ;;  %v2995_v40 = vmax.f32 %v2993_v61, %v2994_v31  ;;  %v3003_v23 = vrot.slane %v3002_v55, 4  ;;  %7842 = vmatmul.mubr.msk.bf16.gmra.mxu1 %vm231_vm0, %v8397_v45  ;;  %v8423_v45 = vld [vmem:[%s12040_s1 + $0x154] ss:$8 sps:$4 sm:$0xff]  }
 0x188   : > { %v2979_v62 = vmax.f32 %v2977_v25, %v2978_v54  ;;  %v2987_v42 = vrot.slane %v2986_v51, 2  ;;  %v2287_v26 = vrot.slane %v2277_v41, 1  ;;  %v2288_v12 = vrot.slane %v2279_v36, 2  ;;  %3926 = vmatprep.mubr.bf16.mxu1 %v12094_v53  ;;  %4471 = vmatpush1.bf16.msra.mxu1 %v8411_v7 }
 0x189   : > { %v2970_v60 = vmax.f32 %v2968_v37, %v2969_v19  ;;  %v7730_v16 = vcombine.low %v2292_v13, %v2292_v13  ;;  %v2281_v5 = vrot.slane %v2279_v36, 1  ;;  %v2996_v15 = vrot.slane %v2995_v40, 2  ;;  %4472 = vmatprep.subr.bf16.mxu1 %v8419_v6  ;;  %v8410_v6 = vld [vmem:[#allocation2 + $0x50] ss:$12 sps:$4 sm:$0xff]  }
 0x18a   : > { %v2980_v46 = vrot.slane %v2979_v62, 1  ;;  %v2988_v11 = vmax.f32 %v2986_v51, %v2987_v42  ;;  %v2289_v61 = vor.u32 %v2288_v12, %v2287_v26  ;;  %v3004_v25 = vmax.f32 %v3002_v55, %v3003_v23 }
 0x18b   : > { %v2971_v24 = vrot.slane %v2970_v60, 1  ;;  %v2306_v43 = vrot.slane %v7730_v16, 6  ;;  %v2282_v37 = vor.u32 %v2281_v5, %v2277_v41  ;;  %v2997_v19 = vmax.f32 %v2995_v40, %v2996_v15  ;;  %v8421_v40 = vld [vmem:[%s12040_s1 + $0x150] ss:$8 sps:$4 sm:$0xff]  }
 0x18c   : > { %v2981_v49 = vmax.f32 %v2979_v62, %v2980_v46  ;;  %v2989_v31 = vrot.slane %v2988_v11, 1  ;;  %2290 = vrot.lane.b32.xlu1 %v2289_v61, %s8733_s23  ;;  %v3005_v7 = vrot.slane %v3004_v25, 2  ;;  %v3011_v51 = vmax.f32 %v3009_v48, %v3010_v38  ;;  %4473 = vmatpush1.bf16.msra.mxu1 %v8417_v44  ;;  %v8426_v38 = vld [vmem:[%s12040_s1 + $0x144] ss:$8 sps:$4 sm:$0xff]  }
 0x18d   : > { %v2972_v8 = vmax.f32 %v2970_v60, %v2971_v24  ;;  %v2308_v54 = vrot.slane %v2306_v43, 4  ;;  %2314 = vst.msk [vmem:[#allocation2 + $0xc8] sm:$0xc] %vm1956_vm9, %v2306_v43  ;;  %2283 = vrot.lane.b32.xlu0 %v2282_v37, %s8733_s23  ;;  %v1525_v55 = vsel %vm295_vm1, %v9410_v30, -inf  ;;  %v2998_v36 = vrot.slane %v2997_v19, 1  ;;  %4474 = vmatprep.subr.bf16.mxu1 %v8423_v45 }
 0x18e   : > { %v2990_v41 = vmax.f32 %v2988_v11, %v2989_v31  ;;  %v3019_v60 = vmax.f32 %v2981_v49, 0.0  ;;  %v3006_v62 = vmax.f32 %v3004_v25, %v3005_v7  ;;  %v3012_v42 = vrot.slane %v3011_v51, 4  ;;  %v8424_v25 = vld [vmem:[%s12040_s1 + $0x140] ss:$8 sps:$4 sm:$0xff]  }
 0x18f   : > { %v3018_v13 = vmax.f32 %v2972_v8, 0.0  ;;  %2316 = vst.msk [vmem:[#allocation2 + $0xd4] sm:$0x1] %vm629_vm10, %v2308_v54  ;;  %v1526_v23 = vrot.slane %v1525_v55, 4  ;;  %v1532_v48 = vsel %vm295_vm1, %v9412_v17, -inf  ;;  %v2999_v26 = vmax.f32 %v2997_v19, %v2998_v36  ;;  %7843 = vmatmul.mubr.msk.bf16.gmra.mxu1 %vm231_vm0, %v8410_v6 }
 0x190   : > { %v3020_v12 = vmax.f32 %v2990_v41, 0.0  ;;  %v3025_v5 = vpack.c.bf16 %v3019_v60, %v3019_v60  ;;  %v3007_v24 = vrot.slane %v3006_v62, 1  ;;  %v3013_v46 = vmax.f32 %v3011_v51, %v3012_v42  ;;  %3936 = vmatprep.mubr.bf16.mxu1 %v12094_v53  ;;  %4475 = vmatpush1.bf16.msra.mxu1 %v8421_v40  ;;  %v8420_v19 = vld [vmem:[#allocation2 + $0x68] ss:$12 sps:$4 sm:$0xff]  }
 0x191   : > { %v3024_v16 = vpack.c.bf16 %v3018_v13, %v3018_v13  ;;  %v1527_v11 = vmax.f32 %v1525_v55, %v1526_v23  ;;  %v1533_v15 = vrot.slane %v1532_v48, 4  ;;  %v3021_v44 = vmax.f32 %v2999_v26, 0.0  ;;  %4476 = vmatprep.subr.bf16.mxu1 %v8426_v38  ;;  %v8430_v54 = vld [vmem:[%s12040_s1 + $0x234] ss:$8 sps:$4 sm:$0xff]  }
 0x192   : > { %v3026_v61 = vpack.c.bf16 %v3020_v12, %v3020_v12  ;;  %v3037_v37 = vunpack.c.l.b16 %v3025_v5  ;;  %v3008_v45 = vmax.f32 %v3006_v62, %v3007_v24  ;;  %v3014_v8 = vrot.slane %v3013_v46, 2 }
 0x193   : > { %v3036_v43 = vunpack.c.l.b16 %v3024_v16  ;;  %v1528_v49 = vrot.slane %v1527_v11, 2  ;;  %v1534_v31 = vmax.f32 %v1532_v48, %v1533_v15  ;;  %v3027_v7 = vpack.c.bf16 %v3021_v44, %v3021_v44  ;;  %v8428_v48 = vld [vmem:[%s12040_s1 + $0x230] ss:$8 sps:$4 sm:$0xff]  }
 0x194   : > { %v3038_v51 = vunpack.c.l.b16 %v3026_v61  ;;  %v1539_v6 = vsel %vm295_vm1, %v9414_v35, -inf  ;;  %v3015_v41 = vmax.f32 %v3013_v46, %v3014_v8  ;;  %v3022_v36 = vmax.f32 %v3008_v45, 0.0  ;;  %4477 = vmatpush1.bf16.msra.mxu1 %v8424_v25 }
 0x195   : > { %v3042_v55 = vsel %vm362_vm2, %v3037_v37, %v3036_v43  ;;  %v1529_v13 = vmax.f32 %v1527_v11, %v1528_v49  ;;  %v1535_v60 = vrot.slane %v1534_v31, 2  ;;  %v3039_v40 = vunpack.c.l.b16 %v3027_v7  ;;  %4478 = vmatprep.subr.bf16.mxu1 %v8430_v54 }
 0x196   : > { %v3043_v62 = vsel %vm364_vm3, %v3038_v51, %v3042_v55  ;;  %v1540_v42 = vrot.slane %v1539_v6, 4  ;;  %v1546_v23 = vsel %vm295_vm1, %v9417_v0, -inf  ;;  %v3016_v38 = vrot.slane %v3015_v41, 1 }
 0x197   : > { %v3028_v26 = vpack.c.bf16 %v3022_v36, %v3022_v36  ;;  %v1530_v12 = vrot.slane %v1529_v13, 1  ;;  %v1536_v16 = vmax.f32 %v1534_v31, %v1535_v60  ;;  %v3044_v5 = vsel %vm366_vm4, %v3039_v40, %v3043_v62  ;;  %7844 = vmatmul.mubr.msk.bf16.gmra.mxu1 %vm231_vm0, %v8420_v19  ;;  %v8427_v36 = vld [vmem:[#allocation2 + $0x80] ss:$12 sps:$4 sm:$0xff]  }
 0x198   : > { %v1541_v24 = vmax.f32 %v1539_v6, %v1540_v42  ;;  %v1547_v46 = vrot.slane %v1546_v23, 4  ;;  %v1553_v11 = vsel %vm295_vm1, %v9419_v39, -inf  ;;  %v3017_v15 = vmax.f32 %v3015_v41, %v3016_v38  ;;  %3946 = vmatprep.mubr.bf16.mxu1 %v12094_v53  ;;  %4479 = vmatpush2.bf16.msra.mxu1 %v8428_v48  ;;  %v8431_v62 = vld [vmem:[%s12040_s1 + $0x220] ss:$8 sps:$4 sm:$0xff]   ;;  %v8433_v42 = vld [vmem:[%s12040_s1 + $0x224] ss:$8 sps:$4 sm:$0xff]  }
 0x199   : > { %v3040_v44 = vunpack.c.l.b16 %v3028_v26  ;;  %v1531_v61 = vmax.f32 %v1529_v13, %v1530_v12  ;;  %v1537_v43 = vrot.slane %v1536_v16, 1  ;;  %v1554_v45 = vrot.slane %v1553_v11, 4  ;;  %4480 = vmatprep.subr.bf16.mxu1 %v8433_v42  ;;  %v8438_v42 = vld [vmem:[%s12040_s1 + $0x200] ss:$8 sps:$4 sm:$0xff]  }
 0x19a   : > { %v1542_v37 = vrot.slane %v1541_v24, 2  ;;  %v1548_v25 = vmax.f32 %v1546_v23, %v1547_v46  ;;  %v1560_v8 = vsel %vm295_vm1, %v9426_v18, -inf  ;;  %v3023_v49 = vmax.f32 %v3017_v15, 0.0  ;;  %v8437_v46 = vld [vmem:[%s12040_s1 + $0x214] ss:$8 sps:$4 sm:$0xff]  }
 0x19b   : > { %v3045_v31 = vsel %vm368_vm5, %v3040_v44, %v3044_v5  ;;  %v1538_v54 = vmax.f32 %v1536_v16, %v1537_v43  ;;  %v1561_v7 = vrot.slane %v1560_v8, 4  ;;  %v1555_v6 = vmax.f32 %v1553_v11, %v1554_v45  ;;  %v8435_v43 = vld [vmem:[%s12040_s1 + $0x210] ss:$8 sps:$4 sm:$0xff]  }
 0x19c   : > { %v1543_v51 = vmax.f32 %v1541_v24, %v1542_v37  ;;  %v1549_v55 = vrot.slane %v1548_v25, 2  ;;  %v1567_v41 = vmax.f32 %v1531_v61, 0.0  ;;  %v3029_v19 = vpack.c.bf16 %v3023_v49, %v3023_v49  ;;  %4481 = vmatpush2.bf16.msra.mxu1 %v8431_v62  ;;  %v8440_v49 = vld [vmem:[%s12040_s1 + $0x204] ss:$8 sps:$4 sm:$0xff]  }
 0x19d   : > { %v1562_v13 = vmax.f32 %v1560_v8, %v1561_v7  ;;  %v1568_v60 = vmax.f32 %v1538_v54, 0.0  ;;  %v748_v40 = vsel %vm295_vm1, %v9522_v29, -inf  ;;  %v1556_v38 = vrot.slane %v1555_v6, 2  ;;  %4482 = vmatprep.subr.bf16.mxu1 %v8437_v46  ;;  %v8434_v62 = vld [vmem:[#allocation2 + $0x98] ss:$12 sps:$4 sm:$0xff]  }
 0x19e   : > { %v1544_v23 = vrot.slane %v1543_v51, 1  ;;  %v1550_v48 = vmax.f32 %v1548_v25, %v1549_v55  ;;  %v1573_v26 = vpack.c.bf16 %v1567_v41, %v1567_v41  ;;  %v3041_v12 = vunpack.c.l.b16 %v3029_v19 }
 0x19f   : > { %v1563_v16 = vrot.slane %v1562_v13, 2  ;;  %v1574_v5 = vpack.c.bf16 %v1568_v60, %v1568_v60  ;;  %v749_v24 = vrot.slane %v748_v40, 4  ;;  %v1557_v44 = vmax.f32 %v1555_v6, %v1556_v38  ;;  %7845 = vmatmul.mubr.msk.bf16.gmra.mxu1 %vm231_vm0, %v8427_v36 }
 0x1a0   : > { %v1545_v11 = vmax.f32 %v1543_v51, %v1544_v23  ;;  %v1551_v15 = vrot.slane %v1550_v48, 1  ;;  %v1585_v61 = vunpack.c.l.b16 %v1573_v26  ;;  %v3046_v37 = vsel %vm370_vm6, %v3041_v12, %v3045_v31  ;;  %3956 = vmatprep.mubr.bf16.mxu1 %v12094_v53  ;;  %4483 = vmatpush2.bf16.msra.mxu1 %v8435_v43  ;;  %v8444_v26 = vld [vmem:[%s12040_s1 + $0x1f4] ss:$8 sps:$4 sm:$0xff]  }
 0x1a1   : > { %v1564_v25 = vmax.f32 %v1562_v13, %v1563_v16  ;;  %v1586_v45 = vunpack.c.l.b16 %v1574_v5  ;;  %v750_v8 = vmax.f32 %v748_v40, %v749_v24  ;;  %v3047_v54 = vpack.c.b16 %v3046_v37, %v3046_v37  ;;  %4484 = vmatprep.subr.bf16.mxu1 %v8440_v49  ;;  %v8457_v12 = vld [vmem:[%s12040_s1 + $0x274] ss:$8 sps:$4 sm:$0xff]  }
 0x1a2   : > { %v1552_v7 = vmax.f32 %v1550_v48, %v1551_v15  ;;  %v1558_v51 = vrot.slane %v1557_v44, 1  ;;  %v1569_v55 = vmax.f32 %v1545_v11, 0.0  ;;  %v755_v19 = vsel %vm295_vm1, %v9524_v9, -inf  ;;  %4593 = vmatprep.subr.bf16.mxu0 %v8457_v12 }
 0x1a3   : > { %v1565_v6 = vrot.slane %v1564_v25, 1  ;;  %v1591_v41 = vsel %vm362_vm2, %v1586_v45, %v1585_v61  ;;  %v751_v31 = vrot.slane %v750_v8, 2  ;;  %v3049_v36 = vsel %vm373_vm7, 0, %v3047_v54 }
 0x1a4   : > { %v1559_v13 = vmax.f32 %v1557_v44, %v1558_v51  ;;  %v1570_v60 = vmax.f32 %v1552_v7, 0.0  ;;  %v1575_v40 = vpack.c.bf16 %v1569_v55, %v1569_v55  ;;  %v9910_v53 = vsel %vm377_vm8, %v3049_v36, 0  ;;  %4485 = vmatpush2.bf16.msra.mxu1 %v8438_v42  ;;  %v8442_v51 = vld [vmem:[%s12040_s1 + $0x1f0] ss:$8 sps:$4 sm:$0xff]  }
 0x1a5   : > { %12097 = vst [vmem:[#allocation16_spill] sm:$0xff] %v9910_v53  ;;  %v1566_v23 = vmax.f32 %v1564_v25, %v1565_v6  ;;  %v752_v48 = vmax.f32 %v750_v8, %v751_v31  ;;  %v756_v38 = vrot.slane %v755_v19, 4  ;;  %v3051_v16 = vshrl.u32 %v9910_v53, 16  ;;  %4486 = vmatprep.subr.bf16.mxu1 %v8444_v26 }
 0x1a6   : > { %v3053_v5 = vshll.u32 %v9910_v53, 16  ;;  %v3066_v24 = vrot.slane %v9910_v53, 2  ;;  %v1571_v46 = vmax.f32 %v1559_v13, 0.0  ;;  %v1576_v15 = vpack.c.bf16 %v1570_v60, %v1570_v60  ;;  %v9926_v13 = vld [vmem:[#allocation2] sm:$0xff] }
 0x1a7   : > { %v1572_v11 = vmax.f32 %v1566_v23, 0.0  ;;  %v1587_v44 = vunpack.c.l.b16 %v1575_v40  ;;  %v753_v61 = vrot.slane %v752_v48, 1  ;;  %v3061_v43 = vrot.slane %v3051_v16, 1  ;;  %7846 = vmatmul.mubr.msk.bf16.gmra.mxu1 %vm231_vm0, %v8434_v62  ;;  %v8447_v60 = vld [vmem:[%s12040_s1 + $0x1e4] ss:$8 sps:$4 sm:$0xff]  }
 0x1a8   : > { %v3062_v37 = vrot.slane %v3053_v5, 2  ;;  %v7768_v25 = vcombine.low %v3066_v24, %v3066_v24  ;;  %v3055_v45 = vrot.slane %v3053_v5, 1  ;;  %v1577_v8 = vpack.c.bf16 %v1571_v46, %v1571_v46  ;;  %3966 = vmatprep.mubr.bf16.mxu1 %v9926_v13  ;;  %v8441_v24 = vld [vmem:[#allocation2 + $0xb0] ss:$12 sps:$4 sm:$0xff]   ;;  %4487 = vmatpush2.bf16.msra.mxu1 %v8442_v51 }
 0x1a9   : > { %v1578_v49 = vpack.c.bf16 %v1572_v11, %v1572_v11  ;;  %v1588_v54 = vunpack.c.l.b16 %v1576_v15  ;;  %v1592_v7 = vsel %vm364_vm3, %v1587_v44, %v1591_v41  ;;  %v754_v36 = vmax.f32 %v752_v48, %v753_v61  ;;  %v8445_v61 = vld [vmem:[%s12040_s1 + $0x1e0] ss:$8 sps:$4 sm:$0xff]   ;;  %4488 = vmatprep.subr.bf16.mxu1 %v8447_v60  ;;  %v8449_v60 = vld [vmem:[%s12040_s1 + $0x1d0] ss:$8 sps:$4 sm:$0xff]  }
 0x1aa   : > { %v3063_v55 = vor.u32 %v3062_v37, %v3061_v43  ;;  %v3080_v6 = vrot.slane %v7768_v25, 7  ;;  %v3056_v31 = vor.u32 %v3055_v45, %v3051_v16  ;;  %v1589_v41 = vunpack.c.l.b16 %v1577_v8  ;;  %v8451_v8 = vld [vmem:[%s12040_s1 + $0x1d4] ss:$8 sps:$4 sm:$0xff]  }
 0x1ab   : > { %v1590_v40 = vunpack.c.l.b16 %v1578_v49  ;;  %v1593_v62 = vsel %vm366_vm4, %v1588_v54, %v1592_v7  ;;  %v757_v42 = vmax.f32 %v755_v19, %v756_v38  ;;  %v762_v23 = vsel %vm295_vm1, %v9527_v27, -inf }
 0x1ac   : > { %3084 = vst.msk [vmem:[#allocation2 + $0xd4] sm:$0xe] %vm2744_vm14, %v3080_v6  ;;  %3064 = vrot.lane.b32.xlu1 %v3063_v55, %s8733_s23  ;;  %3057 = vrot.lane.b32.xlu0 %v3056_v31, %s8733_s23  ;;  %v769_v48 = vsel %vm295_vm1, %v9529_v22, -inf  ;;  %v776_v26 = vsel %vm295_vm1, %v9532_v63, -inf  ;;  %v783_v12 = vsel %vm295_vm1, %v9538_v14, -inf  ;;  %v1594_v19 = vsel %vm368_vm5, %v1589_v41, %v1593_v62 }
 0x1ad   : > { %v758_v38 = vrot.slane %v757_v42, 2  ;;  %v763_v16 = vrot.slane %v762_v23, 4  ;;  %v770_v5 = vrot.slane %v769_v48, 4  ;;  %v1595_v46 = vsel %vm370_vm6, %v1590_v40, %v1594_v19  ;;  %4489 = vmatpush2.bf16.msra.mxu1 %v8445_v61 }
 0x1ae   : > { %v777_v11 = vrot.slane %v776_v26, 4  ;;  %v784_v15 = vrot.slane %v783_v12, 4  ;;  %v790_v44 = vmax.f32 %v754_v36, 0.0  ;;  %v1596_v43 = vpack.c.b16 %v1595_v46, %v1595_v46  ;;  %4490 = vmatprep.subr.bf16.mxu1 %v8451_v8 }
 0x1af   : > { %v759_v37 = vmax.f32 %v757_v42, %v758_v38  ;;  %v764_v25 = vmax.f32 %v762_v23, %v763_v16  ;;  %v771_v45 = vmax.f32 %v769_v48, %v770_v5  ;;  %v2317_v51 = vsel %vm295_vm1, %v9620_v32, -inf  ;;  %7847 = vmatmul.mubr.msk.bf16.gmra.mxu1 %vm231_vm0, %v8441_v24  ;;  %v8454_v23 = vld [vmem:[%s12040_s1 + $0x1c4] ss:$8 sps:$4 sm:$0xff]  }
 0x1b0   : > { %v778_v49 = vmax.f32 %v776_v26, %v777_v11  ;;  %v785_v54 = vmax.f32 %v783_v12, %v784_v15  ;;  %v9952_v7 = vpack.c.bf16 %v790_v44, %v790_v44  ;;  %v1598_v55 = vsel %vm373_vm7, 0, %v1596_v43  ;;  %3976 = vmatprep.mubr.bf16.mxu1 %v9926_v13 }
 0x1b1   : > { %v760_v6 = vrot.slane %v759_v37, 1  ;;  %v765_v31 = vrot.slane %v764_v25, 2  ;;  %v772_v36 = vrot.slane %v771_v45, 2  ;;  %v9962_v41 = vsel %vm377_vm8, %v1598_v55, 0  ;;  %4491 = vmatpush2.bf16.msra.mxu1 %v8449_v60 }
 0x1b2   : > { %12098 = vst [vmem:[#allocation17_spill] sm:$0xff] %v9962_v41  ;;  %v779_v40 = vrot.slane %v778_v49, 2  ;;  %v786_v62 = vrot.slane %v785_v54, 2  ;;  %v808_v42 = vunpack.c.l.b16 %v9952_v7  ;;  %v1600_v48 = vshrl.u32 %v9962_v41, 16  ;;  %4492 = vmatprep.subr.bf16.mxu1 %v8454_v23 }
 0x1b3   : > { %v1602_v26 = vshll.u32 %v9962_v41, 16  ;;  %v1615_v12 = vrot.slane %v9962_v41, 2  ;;  %v761_v19 = vmax.f32 %v759_v37, %v760_v6  ;;  %v766_v38 = vmax.f32 %v764_v25, %v765_v31  ;;  %v8448_v46 = vld [vmem:[#allocation2 + $0xc8] ss:$12 sps:$4 sm:$0xff]  }
 0x1b4   : > { %v773_v16 = vmax.f32 %v771_v45, %v772_v36  ;;  %v780_v5 = vmax.f32 %v778_v49, %v779_v40  ;;  %v787_v24 = vmax.f32 %v785_v54, %v786_v62  ;;  %v1610_v11 = vrot.slane %v1600_v48, 1  ;;  %v8452_v37 = vld [vmem:[%s12040_s1 + $0x1c0] ss:$8 sps:$4 sm:$0xff]  }
 0x1b5   : > { %v1611_v15 = vrot.slane %v1602_v26, 2  ;;  %v7694_v44 = vcombine.low %v1615_v12, %v1615_v12  ;;  %v1604_v61 = vrot.slane %v1602_v26, 1  ;;  %v767_v43 = vrot.slane %v766_v38, 1  ;;  %4493 = vmatpush2.bf16.msra.mxu1 %v8452_v37 }
 0x1b6   : > { %v774_v7 = vrot.slane %v773_v16, 1  ;;  %v781_v55 = vrot.slane %v780_v5, 1  ;;  %v788_v53 = vrot.slane %v787_v24, 1  ;;  %v791_v41 = vmax.f32 %v761_v19, 0.0 }
 0x1b7   : > { %v1612_v33 = vor.u32 %v1611_v15, %v1610_v11  ;;  %v1629_v34 = vrot.slane %v7694_v44, 5  ;;  %v1605_v21 = vor.u32 %v1604_v61, %v1600_v48  ;;  %v768_v25 = vmax.f32 %v766_v38, %v767_v43  ;;  %7848 = vmatmul.mubr.msk.bf16.gmra.mxu1 %vm231_vm0, %v8448_v46 }
 0x1b8   : > { %v775_v45 = vmax.f32 %v773_v16, %v774_v7  ;;  %v782_v8 = vmax.f32 %v780_v5, %v781_v55  ;;  %v789_v49 = vmax.f32 %v787_v24, %v788_v53  ;;  %v797_v6 = vpack.c.bf16 %v791_v41, %v791_v41 }
 0x1b9   : > { %v1631_v54 = vrot.slane %v1629_v34, 4  ;;  %1637 = vst.msk [vmem:[#allocation2 + $0xe0] sm:$0x8] %vm1163_vm12, %v1629_v34  ;;  %1613 = vrot.lane.b32.xlu1 %v1612_v33, %s8733_s23  ;;  %1606 = vrot.lane.b32.xlu0 %v1605_v21, %s8733_s23  ;;  %v2318_v31 = vrot.slane %v2317_v51, 4  ;;  %v2324_v36 = vsel %vm295_vm1, %v9622_v52, -inf  ;;  %v792_v60 = vmax.f32 %v768_v25, 0.0 }
 0x1ba   : > { %v793_v40 = vmax.f32 %v775_v45, 0.0  ;;  %v794_v62 = vmax.f32 %v782_v8, 0.0  ;;  %v795_v23 = vmax.f32 %v789_v49, 0.0  ;;  %vm12099_vm11 = vcmask 517120  }
 0x1bb   : > { %1639 = vst.msk [vmem:[#allocation2 + $0xec] sm:$0x3] %vm12099_vm11, %v1631_v54  ;;  %v809_v53 = vunpack.c.l.b16 %v797_v6  ;;  %v2319_v48 = vmax.f32 %v2317_v51, %v2318_v31  ;;  %v2325_v34 = vrot.slane %v2324_v36, 4  ;;  %v2331_v33 = vsel %vm295_vm1, %v9624_v58, -inf }
 0x1bc   : > { %v798_v21 = vpack.c.bf16 %v792_v60, %v792_v60  ;;  %v799_v41 = vpack.c.bf16 %v793_v40, %v793_v40  ;;  %v800_v26 = vpack.c.bf16 %v794_v62, %v794_v62  ;;  %v801_v12 = vpack.c.bf16 %v795_v23, %v795_v23 }
 0x1bd   : > { %v814_v19 = vsel %vm362_vm2, %v809_v53, %v808_v42  ;;  %v2320_v38 = vrot.slane %v2319_v48, 2  ;;  %v2326_v16 = vmax.f32 %v2324_v36, %v2325_v34  ;;  %v2332_v5 = vrot.slane %v2331_v33, 4 }
 0x1be   : > { %v810_v24 = vunpack.c.l.b16 %v798_v21  ;;  %v811_v46 = vunpack.c.l.b16 %v799_v41  ;;  %v812_v11 = vunpack.c.l.b16 %v800_v26  ;;  %v813_v15 = vunpack.c.l.b16 %v801_v12 }
 0x1bf   : > { %v2321_v44 = vmax.f32 %v2319_v48, %v2320_v38  ;;  %v2327_v51 = vrot.slane %v2326_v16, 2  ;;  %v2333_v61 = vmax.f32 %v2331_v33, %v2332_v5  ;;  %v2338_v43 = vsel %vm295_vm1, %v9626_v28, -inf }
 0x1c0   : > { %v815_v7 = vsel %vm364_vm3, %v810_v24, %v814_v19  ;;  %v2339_v55 = vrot.slane %v2338_v43, 4  ;;  %v2345_v37 = vsel %vm295_vm1, %v9628_v3, -inf  ;;  %v2352_v42 = vsel %vm295_vm1, %v9632_v1, -inf }
 0x1c1   : > { %v816_v25 = vsel %vm366_vm4, %v811_v46, %v815_v7  ;;  %v2322_v45 = vrot.slane %v2321_v44, 1  ;;  %v2328_v8 = vmax.f32 %v2326_v16, %v2327_v51  ;;  %v2334_v49 = vrot.slane %v2333_v61, 2 }
 0x1c2   : > { %v817_v54 = vsel %vm368_vm5, %v812_v11, %v816_v25  ;;  %v2340_v6 = vmax.f32 %v2338_v43, %v2339_v55  ;;  %v2346_v31 = vrot.slane %v2345_v37, 4  ;;  %v2353_v36 = vrot.slane %v2352_v42, 4 }
 0x1c3   : > { %v818_v60 = vsel %vm370_vm6, %v813_v15, %v817_v54  ;;  %v2323_v40 = vmax.f32 %v2321_v44, %v2322_v45  ;;  %v2329_v62 = vrot.slane %v2328_v8, 1  ;;  %v2335_v23 = vmax.f32 %v2333_v61, %v2334_v49 }
 0x1c4   : > { %v819_v53 = vpack.c.b16 %v818_v60, %v818_v60  ;;  %v2341_v48 = vrot.slane %v2340_v6, 2  ;;  %v2347_v34 = vmax.f32 %v2345_v37, %v2346_v31  ;;  %v2354_v33 = vmax.f32 %v2352_v42, %v2353_v36 }
 0x1c5   : > { %v2330_v21 = vmax.f32 %v2328_v8, %v2329_v62  ;;  %v2336_v41 = vrot.slane %v2335_v23, 1  ;;  %v2359_v26 = vmax.f32 %v2323_v40, 0.0  ;;  %v3085_v12 = vsel %vm295_vm1, %v9771_v50, -inf }
 0x1c6   : > { %v821_v19 = vsel %vm373_vm7, 0, %v819_v53  ;;  %v2342_v38 = vmax.f32 %v2340_v6, %v2341_v48  ;;  %v2348_v16 = vrot.slane %v2347_v34, 2  ;;  %v2355_v5 = vrot.slane %v2354_v33, 2 }
 0x1c7   : > { %v9999_v24 = vsel %vm377_vm8, %v821_v19, 0  ;;  %v2337_v46 = vmax.f32 %v2335_v23, %v2336_v41  ;;  %v2360_v11 = vmax.f32 %v2330_v21, 0.0  ;;  %v2365_v15 = vpack.c.bf16 %v2359_v26, %v2359_v26 }
 0x1c8   : > { %v823_v44 = vshrl.u32 %v9999_v24, 16  ;;  %v825_v51 = vshll.u32 %v9999_v24, 16  ;;  %v838_v61 = vrot.slane %v9999_v24, 2  ;;  %v2343_v43 = vrot.slane %v2342_v38, 1 }
 0x1c9   : > { %v2349_v7 = vmax.f32 %v2347_v34, %v2348_v16  ;;  %v2356_v55 = vmax.f32 %v2354_v33, %v2355_v5  ;;  %v2361_v37 = vmax.f32 %v2337_v46, 0.0  ;;  %v2366_v42 = vpack.c.bf16 %v2360_v11, %v2360_v11 }
 0x1ca   : > { %v833_v25 = vrot.slane %v823_v44, 1  ;;  %v834_v45 = vrot.slane %v825_v51, 2  ;;  %v7656_v8 = vcombine.low %v838_v61, %v838_v61  ;;  %v827_v49 = vrot.slane %v825_v51, 1 }
 0x1cb   : > { %v2344_v54 = vmax.f32 %v2342_v38, %v2343_v43  ;;  %v2350_v6 = vrot.slane %v2349_v7, 1  ;;  %v2357_v31 = vrot.slane %v2356_v55, 1  ;;  %v2367_v36 = vpack.c.bf16 %v2361_v37, %v2361_v37  ;;  %v8465_v37 = vld [vmem:[%s12040_s1 + $0x2f4] ss:$8 sps:$4 sm:$0xff]  }
 0x1cc   : > { %v835_v60 = vor.u32 %v834_v45, %v833_v25  ;;  %854 = vst.msk [vmem:[#allocation2 + $0xe0] sm:$0x7] %vm295_vm1, %v7656_v8  ;;  %v828_v40 = vor.u32 %v827_v49, %v823_v44  ;;  %v2377_v62 = vunpack.c.l.b16 %v2365_v15  ;;  %v2378_v23 = vunpack.c.l.b16 %v2366_v42  ;;  %5255 = vmatprep.subr.bf16.mxu1 %v8465_v37  ;;  %v8463_v37 = vld [vmem:[%s12040_s1 + $0x2f0] ss:$8 sps:$4 sm:$0xff]  }
 0x1cd   : > { %v2351_v53 = vmax.f32 %v2349_v7, %v2350_v6  ;;  %v2358_v48 = vmax.f32 %v2356_v55, %v2357_v31  ;;  %v2362_v34 = vmax.f32 %v2344_v54, 0.0  ;;  %v2379_v33 = vunpack.c.l.b16 %v2367_v36 }
 0x1ce   : > { %836 = vrot.lane.b32.xlu1 %v835_v60, %s8733_s23  ;;  %829 = vrot.lane.b32.xlu0 %v828_v40, %s8733_s23  ;;  %v2383_v21 = vsel %vm362_vm2, %v2378_v23, %v2377_v62  ;;  %v3086_v41 = vrot.slane %v3085_v12, 4  ;;  %v3092_v26 = vsel %vm295_vm1, %v9773_v4, -inf  ;;  %v3099_v19 = vsel %vm295_vm1, %v9775_v57, -inf }
 0x1cf   : > { %v2363_v38 = vmax.f32 %v2351_v53, 0.0  ;;  %v2364_v16 = vmax.f32 %v2358_v48, 0.0  ;;  %v2368_v5 = vpack.c.bf16 %v2362_v34, %v2362_v34  ;;  %v2384_v46 = vsel %vm364_vm3, %v2379_v33, %v2383_v21 }
 0x1d0   : > { %v3087_v11 = vmax.f32 %v3085_v12, %v3086_v41  ;;  %v3093_v15 = vrot.slane %v3092_v26, 4  ;;  %v3100_v44 = vrot.slane %v3099_v19, 4  ;;  %v3106_v51 = vsel %vm295_vm1, %v9777_v56, -inf }
 0x1d1   : > { %v2369_v61 = vpack.c.bf16 %v2363_v38, %v2363_v38  ;;  %v2370_v43 = vpack.c.bf16 %v2364_v16, %v2364_v16  ;;  %v2380_v7 = vunpack.c.l.b16 %v2368_v5  ;;  %v3107_v55 = vrot.slane %v3106_v51, 4  ;;  %v8455_v5 = vld [vmem:[%s12040_s1 + $0x270] ss:$8 sps:$4 sm:$0xff]  }
 0x1d2   : > { %v3088_v42 = vrot.slane %v3087_v11, 2  ;;  %v3094_v25 = vmax.f32 %v3092_v26, %v3093_v15  ;;  %v3101_v45 = vmax.f32 %v3099_v19, %v3100_v44  ;;  %v3113_v8 = vsel %vm295_vm1, %v9779_v2, -inf }
 0x1d3   : > { %v2381_v12 = vunpack.c.l.b16 %v2369_v61  ;;  %v2382_v49 = vunpack.c.l.b16 %v2370_v43  ;;  %v2385_v54 = vsel %vm366_vm4, %v2380_v7, %v2384_v46  ;;  %v3108_v6 = vmax.f32 %v3106_v51, %v3107_v55  ;;  %v8462_v51 = vld [vmem:[%s12040_s1 + $0x264] ss:$8 sps:$4 sm:$0xff]  }
 0x1d4   : > { %v3089_v31 = vmax.f32 %v3087_v11, %v3088_v42  ;;  %v3095_v36 = vrot.slane %v3094_v25, 2  ;;  %v3102_v60 = vrot.slane %v3101_v45, 2  ;;  %v3114_v40 = vrot.slane %v3113_v8, 4 }
 0x1d5   : > { %v2386_v62 = vsel %vm368_vm5, %v2381_v12, %v2385_v54  ;;  %v3109_v23 = vrot.slane %v3108_v6, 2  ;;  %v3120_v53 = vsel %vm295_vm1, %v9795_v47, -inf  ;;  %v10026_v48 = vcombine.low %v9926_v13, %v9926_v13 }
 0x1d6   : > { %v2387_v34 = vsel %vm370_vm6, %v2382_v49, %v2386_v62  ;;  %v3090_v33 = vrot.slane %v3089_v31, 1  ;;  %v3096_v21 = vmax.f32 %v3094_v25, %v3095_v36  ;;  %v3103_v41 = vmax.f32 %v3101_v45, %v3102_v60 }
 0x1d7   : > { %v2388_v26 = vpack.c.b16 %v2387_v34, %v2387_v34  ;;  %v3110_v19 = vmax.f32 %v3108_v6, %v3109_v23  ;;  %v3115_v38 = vmax.f32 %v3113_v8, %v3114_v40  ;;  %v3121_v16 = vrot.slane %v3120_v53, 4  ;;  %v8470_v8 = vld [vmem:[%s12040_s1 + $0x2e4] ss:$8 sps:$4 sm:$0xff]   ;;  %v8468_v23 = vld [vmem:[%s12040_s1 + $0x2e0] ss:$8 sps:$4 sm:$0xff]  }
 0x1d8   : > { %v3091_v46 = vmax.f32 %v3089_v31, %v3090_v33  ;;  %v3097_v11 = vrot.slane %v3096_v21, 1  ;;  %v3104_v15 = vrot.slane %v3103_v41, 1  ;;  %v10034_v44 = vcombine.high %v9926_v13, %v9926_v13  ;;  %v8460_v31 = vld [vmem:[%s12040_s1 + $0x260] ss:$8 sps:$4 sm:$0xff]  }
 0x1d9   : > { %v2390_v61 = vsel %vm373_vm7, 0, %v2388_v26  ;;  %v3111_v43 = vrot.slane %v3110_v19, 1  ;;  %v3116_v7 = vrot.slane %v3115_v38, 2  ;;  %v3122_v55 = vmax.f32 %v3120_v53, %v3121_v16 }
 0x1da   : > { %v10044_v42 = vsel %vm377_vm8, %v2390_v61, 0  ;;  %v3098_v25 = vmax.f32 %v3096_v21, %v3097_v11  ;;  %v3105_v45 = vmax.f32 %v3103_v41, %v3104_v15  ;;  %v3127_v13 = vmax.f32 %v3091_v46, 0.0  ;;  %3773 = vmatprep.mubr.bf16.mxu0 %v10034_v44  ;;  %4494 = vmatprep.mubr.bf16.mxu1 %v10034_v44  ;;  %v8478_v41 = vld [vmem:[%s12040_s1 + $0x254] ss:$8 sps:$4 sm:$0xff]  }
 0x1db   : > { %v2392_v12 = vshrl.u32 %v10044_v42, 16  ;;  %v2394_v49 = vshll.u32 %v10044_v42, 16  ;;  %v2407_v54 = vrot.slane %v10044_v42, 2  ;;  %v3112_v6 = vmax.f32 %v3110_v19, %v3111_v43  ;;  %3774 = vmatmul.mubr.bf16.vlgmr.msra.gmra.mxu0 %v10026_v48  ;;  %4495 = vmatmul.mubr.bf16.vlgmr.msra.gmra.mxu1 %v10026_v48  ;;  %v8475_v61 = vld [vmem:[%s12040_s1 + $0x2d4] ss:$8 sps:$4 sm:$0xff]  }
 0x1dc   : > { %v3117_v36 = vmax.f32 %v3115_v38, %v3116_v7  ;;  %v3123_v60 = vrot.slane %v3122_v55, 2  ;;  %v3128_v40 = vmax.f32 %v3098_v25, 0.0  ;;  %v3129_v62 = vmax.f32 %v3105_v45, 0.0  ;;  %3783 = vmatprep.mubr.bf16.mxu0 %v10034_v44  ;;  %4594 = vmatpush1.bf16.msra.mxu0 %v8455_v5 }
 0x1dd   : > { %v2402_v53 = vrot.slane %v2392_v12, 1  ;;  %v2403_v34 = vrot.slane %v2394_v49, 2  ;;  %v7732_v33 = vcombine.low %v2407_v54, %v2407_v54  ;;  %v2396_v21 = vrot.slane %v2394_v49, 1  ;;  %4595 = vmatprep.subr.bf16.mxu0 %v8462_v51  ;;  %5256 = vmatpush1.bf16.msra.mxu1 %v8463_v37 }
 0x1de   : > { %v3118_v26 = vrot.slane %v3117_v36, 1  ;;  %v3124_v19 = vmax.f32 %v3122_v55, %v3123_v60  ;;  %v3130_v38 = vmax.f32 %v3112_v6, 0.0  ;;  %v3133_v16 = vpack.c.bf16 %v3127_v13, %v3127_v13  ;;  %5257 = vmatprep.subr.bf16.mxu1 %v8470_v8  ;;  %v8476_v55 = vld [vmem:[%s12040_s1 + $0x250] ss:$8 sps:$4 sm:$0xff]  }
 0x1df   : > { %v2404_v5 = vor.u32 %v2403_v34, %v2402_v53  ;;  %v2421_v46 = vrot.slane %v7732_v33, 6  ;;  %v2397_v11 = vor.u32 %v2396_v21, %v2392_v12  ;;  %v3134_v15 = vpack.c.bf16 %v3128_v40, %v3128_v40  ;;  %v8503_v12 = vld [vmem:[%s12040_s1 + $0x244] ss:$8 sps:$4 sm:$0xff]  }
 0x1e0   : > { %v3119_v43 = vmax.f32 %v3117_v36, %v3118_v26  ;;  %v3125_v51 = vrot.slane %v3124_v19, 1  ;;  %v3135_v7 = vpack.c.bf16 %v3129_v62, %v3129_v62  ;;  %v3136_v37 = vpack.c.bf16 %v3130_v38, %v3130_v38  ;;  %4596 = vmatpush1.bf16.msra.mxu0 %v8460_v31  ;;  %v8473_v36 = vld [vmem:[%s12040_s1 + $0x2d0] ss:$8 sps:$4 sm:$0xff]  }
 0x1e1   : > { %v2423_v25 = vrot.slane %v2421_v46, 4  ;;  %2429 = vst.msk [vmem:[#allocation2 + $0xec] sm:$0xc] %vm1956_vm9, %v2421_v46  ;;  %2405 = vrot.lane.b32.xlu1 %v2404_v5, %s8733_s23  ;;  %2398 = vrot.lane.b32.xlu0 %v2397_v11, %s8733_s23  ;;  %v3145_v45 = vunpack.c.l.b16 %v3133_v16  ;;  %v3146_v13 = vunpack.c.l.b16 %v3134_v15  ;;  %vm12100_vm13 = vcmask 520194  }
 0x1e2   : > { %v1640_v8 = vsel %vm12100_vm13, %v9410_v30, -inf  ;;  %v3126_v49 = vmax.f32 %v3124_v19, %v3125_v51  ;;  %v3131_v54 = vmax.f32 %v3119_v43, 0.0  ;;  %v3147_v6 = vunpack.c.l.b16 %v3135_v7  ;;  %5258 = vmatpush1.bf16.msra.mxu1 %v8468_v23  ;;  %4597 = vmatprep.subr.bf16.mxu0 %v8478_v41  ;;  %vm12101_vm11 = vmmov %vm12100_vm13  ;;  %v8481_v23 = vld [vmem:[%s12040_s1 + $0x2c4] ss:$8 sps:$4 sm:$0xff]   ;;  %v10108_v51 = vpop.permute.xlu1 %1925  ;;  %v8484_v7 = vld [vmem:[%s12040_s1 + $0x2b4] ss:$8 sps:$4 sm:$0xff]  }
 0x1e3   : > { %v3148_v31 = vunpack.c.l.b16 %v3136_v37  ;;  %2431 = vst.msk [vmem:[#allocation2 + $0xf8] sm:$0x1] %vm629_vm10, %v2423_v25  ;;  %v3151_v60 = vsel %vm362_vm2, %v3146_v13, %v3145_v45  ;;  %v1641_v40 = vrot.slane %v1640_v8, 4  ;;  %v1647_v30 = vsel %vm12101_vm11, %v9412_v17, -inf  ;;  %vm12102_vm13 = vmmov %vm12101_vm11  ;;  %3784 = vmatmul.mubr.bf16.gmra.mxu0 %v10026_v48  ;;  %5259 = vmatprep.subr.bf16.mxu1 %v8475_v61  ;;  %v8501_v17 = vld [vmem:[%s12040_s1 + $0x240] ss:$8 sps:$4 sm:$0xff]  }
 0x1e4   : > { %v1654_v62 = vsel %vm12102_vm13, %v9414_v35, -inf  ;;  %v3132_v53 = vmax.f32 %v3126_v49, 0.0  ;;  %v3137_v34 = vpack.c.bf16 %v3131_v54, %v3131_v54  ;;  %v3152_v33 = vsel %vm364_vm3, %v3147_v6, %v3151_v60  ;;  %3793 = vmatprep.mubr.bf16.mxu0 %v10034_v44  ;;  %4598 = vmatpush1.bf16.msra.mxu0 %v8476_v55  ;;  %v8479_v44 = vld [vmem:[%s12040_s1 + $0x2c0] ss:$8 sps:$4 sm:$0xff]   ;;  %vm12103_vm13 = vmmov %vm12101_vm11 }
 0x1e5   : > { %v1648_v21 = vrot.slane %v1647_v30, 4  ;;  %v3153_v35 = vsel %vm366_vm4, %v3148_v31, %v3152_v33  ;;  %v1642_v41 = vmax.f32 %v1640_v8, %v1641_v40  ;;  %v1655_v26 = vrot.slane %v1654_v62, 4  ;;  %4599 = vmatprep.subr.bf16.mxu0 %v8503_v12  ;;  %vm12104_vm15 = vmmov %vm12101_vm11  ;;  %v8482_v31 = vld [vmem:[%s12040_s1 + $0x2b0] ss:$8 sps:$4 sm:$0xff]  }
 0x1e6   : > { %v1661_v19 = vsel %vm12101_vm11, %v9417_v0, -inf  ;;  %v3138_v38 = vpack.c.bf16 %v3132_v53, %v3132_v53  ;;  %v3149_v16 = vunpack.c.l.b16 %v3137_v34  ;;  %5260 = vmatpush1.bf16.msra.mxu1 %v8473_v36  ;;  %v1668_v61 = vsel %vm12103_vm13, %v9419_v39, -inf  ;;  %v10110_v0 = vpop.permute.xlu0 %1132  ;;  %vm12106_vm13 = vmmov %vm12101_vm11 }
 0x1e7   : > { %v1649_v5 = vmax.f32 %v1647_v30, %v1648_v21  ;;  %v1662_v46 = vrot.slane %v1661_v19, 4  ;;  %v1643_v11 = vrot.slane %v1642_v41, 2  ;;  %v1656_v15 = vmax.f32 %v1654_v62, %v1655_v26  ;;  %5261 = vmatprep.subr.bf16.mxu1 %v8481_v23  ;;  %v8491_v62 = vld [vmem:[%s12040_s1 + $0x2a4] ss:$8 sps:$4 sm:$0xff]  }
 0x1e8   : > { %v1675_v43 = vsel %vm12104_vm15, %v9426_v18, -inf  ;;  %v3150_v37 = vunpack.c.l.b16 %v3138_v38  ;;  %v3154_v55 = vsel %vm368_vm5, %v3149_v16, %v3153_v35  ;;  %4600 = vmatpush1.bf16.msra.mxu0 %v8501_v17  ;;  %v1669_v8 = vrot.slane %v1668_v61, 4  ;;  %vm12105_vm15 = vmmov %vm12101_vm11 }
 0x1e9   : > { %v1650_v25 = vrot.slane %v1649_v5, 2  ;;  %v1663_v45 = vmax.f32 %v1661_v19, %v1662_v46  ;;  %v1644_v13 = vmax.f32 %v1642_v41, %v1643_v11  ;;  %v1657_v39 = vrot.slane %v1656_v15, 2  ;;  %v10130_v41 = vpop.permute.xlu1 %1932 }
 0x1ea   : > { %v1676_v12 = vrot.slane %v1675_v43, 4  ;;  %v3155_v18 = vsel %vm370_vm6, %v3150_v37, %v3154_v55  ;;  %v10119_v6 = vsel %vm12105_vm15, %v9522_v29, -inf  ;;  %5262 = vmatpush1.bf16.msra.mxu1 %v8479_v44  ;;  %v1670_v30 = vmax.f32 %v1668_v61, %v1669_v8  ;;  %v10132_v26 = vpop.permute.xlu0 %1139  ;;  %v8495_v61 = vld [vmem:[%s12040_s1 + $0x294] ss:$8 sps:$4 sm:$0xff]   ;;  %vm12107_vm15 = vmmov %vm12101_vm11 }
 0x1eb   : > { %v1651_v49 = vmax.f32 %v1649_v5, %v1650_v25  ;;  %v1664_v54 = vrot.slane %v1663_v45, 2  ;;  %v3156_v36 = vpack.c.b16 %v3155_v18, %v3155_v18  ;;  %v1645_v60 = vrot.slane %v1644_v13, 1  ;;  %3794 = vmatmul.mubr.bf16.gmra.mxu0 %v10026_v48  ;;  %5263 = vmatprep.subr.bf16.mxu1 %v8484_v7  ;;  %v8489_v5 = vld [vmem:[%s12040_s1 + $0x2a0] ss:$8 sps:$4 sm:$0xff]   ;;  %v8525_v8 = vld [vmem:[%s12040_s1 + $0x3b4] ss:$8 sps:$4 sm:$0xff]  }
 0x1ec   : > { %v1658_v40 = vmax.f32 %v1656_v15, %v1657_v39  ;;  %v1677_v29 = vmax.f32 %v1675_v43, %v1676_v12  ;;  %v856_v34 = vrot.slane %v10119_v6, 4  ;;  %v1671_v35 = vrot.slane %v1670_v30, 2  ;;  %5386 = vmatprep.subr.bf16.mxu0 %v8525_v8 }
 0x1ed   : > { %v1652_v23 = vrot.slane %v1651_v49, 1  ;;  %v1665_v53 = vmax.f32 %v1663_v45, %v1664_v54  ;;  %v3158_v33 = vsel %vm373_vm7, 0, %v3156_v36  ;;  %v1646_v21 = vmax.f32 %v1644_v13, %v1645_v60 }
 0x1ee   : > { %v1659_v17 = vrot.slane %v1658_v40, 1  ;;  %v10135_v48 = vsel %vm377_vm8, %v3158_v33, 0  ;;  %v1678_v16 = vrot.slane %v1677_v29, 2  ;;  %5264 = vmatpush1.bf16.msra.mxu1 %v8482_v31  ;;  %v1672_v7 = vmax.f32 %v1670_v30, %v1671_v35  ;;  %v8493_v31 = vld [vmem:[%s12040_s1 + $0x290] ss:$8 sps:$4 sm:$0xff]  }
 0x1ef   : > { %v1653_v19 = vmax.f32 %v1651_v49, %v1652_v23  ;;  %v1666_v38 = vrot.slane %v1665_v53, 1  ;;  %v3160_v46 = vshrl.u32 %v10135_v48, 16  ;;  %v3162_v44 = vshll.u32 %v10135_v48, 16  ;;  %5265 = vmatprep.subr.bf16.mxu1 %v8491_v62  ;;  %v10152_v62 = vpop.permute.xlu1 %392  ;;  %v10154_v23 = vpop.permute.xlu0 %385 }
 0x1f0   : > { %v3175_v11 = vrot.slane %v10135_v48, 2  ;;  %v1660_v15 = vmax.f32 %v1658_v40, %v1659_v17  ;;  %v1679_v37 = vmax.f32 %v1677_v29, %v1678_v16  ;;  %v1682_v55 = vmax.f32 %v1646_v21, 0.0 }
 0x1f1   : > { %v1667_v43 = vmax.f32 %v1665_v53, %v1666_v38  ;;  %v3170_v25 = vrot.slane %v3160_v46, 1  ;;  %v3171_v45 = vrot.slane %v3162_v44, 2  ;;  %v3164_v39 = vrot.slane %v3162_v44, 1  ;;  %v8499_v53 = vld [vmem:[%s12040_s1 + $0x284] ss:$8 sps:$4 sm:$0xff]  }
 0x1f2   : > { %v7770_v13 = vcombine.low %v3175_v11, %v3175_v11  ;;  %v1673_v12 = vrot.slane %v1672_v7, 1  ;;  %v1680_v18 = vrot.slane %v1679_v37, 1  ;;  %v1683_v49 = vmax.f32 %v1653_v19, 0.0  ;;  %5266 = vmatpush1.bf16.msra.mxu1 %v8489_v5 }
 0x1f3   : > { %v1684_v54 = vmax.f32 %v1660_v15, 0.0  ;;  %v3172_v36 = vor.u32 %v3171_v45, %v3170_v25  ;;  %v3165_v40 = vor.u32 %v3164_v39, %v3160_v46  ;;  %v1685_v30 = vmax.f32 %v1667_v43, 0.0  ;;  %5267 = vmatprep.subr.bf16.mxu1 %v8495_v61  ;;  %v8497_v15 = vld [vmem:[%s12040_s1 + $0x280] ss:$8 sps:$4 sm:$0xff]  }
 0x1f4   : > { %v3189_v60 = vrot.slane %v7770_v13, 7  ;;  %v1674_v29 = vmax.f32 %v1672_v7, %v1673_v12  ;;  %v1681_v33 = vmax.f32 %v1679_v37, %v1680_v18  ;;  %v1688_v21 = vpack.c.bf16 %v1682_v55, %v1682_v55  ;;  %v10175_v12 = vpop.permute.xlu1 %1256  ;;  %v10177_v18 = vpop.permute.xlu0 %1249 }
 0x1f5   : > { %v1689_v17 = vpack.c.bf16 %v1683_v49, %v1683_v49  ;;  %3173 = vrot.lane.b32.xlu1 %v3172_v36, %s8733_s23  ;;  %3166 = vrot.lane.b32.xlu0 %v3165_v40, %s8733_s23  ;;  %v1690_v35 = vpack.c.bf16 %v1684_v54, %v1684_v54  ;;  %v1691_v19 = vpack.c.bf16 %v1685_v30, %v1685_v30  ;;  %v862_v16 = vsel %vm12101_vm11, %v9524_v9, -inf }
 0x1f6   : > { %3193 = vst.msk [vmem:[#allocation2 + $0xf8] sm:$0xe] %vm2744_vm14, %v3189_v60  ;;  %v857_v38 = vmax.f32 %v10119_v6, %v856_v34  ;;  %v1686_v5 = vmax.f32 %v1674_v29, 0.0  ;;  %v1687_v46 = vmax.f32 %v1681_v33, 0.0  ;;  %v1700_v44 = vunpack.c.l.b16 %v1688_v21  ;;  %5268 = vmatpush1.bf16.msra.mxu1 %v8493_v31  ;;  %v8507_v6 = vld [vmem:[%s12040_s1 + $0x374] ss:$8 sps:$4 sm:$0xff]  }
 0x1f7   : > { %v1701_v11 = vunpack.c.l.b16 %v1689_v17  ;;  %v1702_v61 = vunpack.c.l.b16 %v1690_v35  ;;  %v1703_v43 = vunpack.c.l.b16 %v1691_v19  ;;  %v863_v37 = vrot.slane %v862_v16, 4  ;;  %5269 = vmatprep.subr.bf16.mxu1 %v8499_v53  ;;  %v8512_v29 = vld [vmem:[%s12040_s1 + $0x364] ss:$8 sps:$4 sm:$0xff]  }
 0x1f8   : > { %v858_v7 = vrot.slane %v857_v38, 2  ;;  %v1692_v34 = vpack.c.bf16 %v1686_v5, %v1686_v5  ;;  %v1693_v9 = vpack.c.bf16 %v1687_v46, %v1687_v46  ;;  %v869_v25 = vsel %vm12106_vm13, %v9527_v27, -inf  ;;  %v8505_v27 = vld [vmem:[%s12040_s1 + $0x370] ss:$8 sps:$4 sm:$0xff]   ;;  %vm12108_vm13 = vmmov %vm12101_vm11 }
 0x1f9   : > { %v1706_v55 = vsel %vm362_vm2, %v1701_v11, %v1700_v44  ;;  %v864_v39 = vmax.f32 %v862_v16, %v863_v37  ;;  %v870_v8 = vrot.slane %v869_v25, 4  ;;  %v876_v36 = vsel %vm12107_vm15, %v9529_v22, -inf  ;;  %v8517_v37 = vld [vmem:[%s12040_s1 + $0x354] ss:$8 sps:$4 sm:$0xff]  }
 0x1fa   : > { %v1707_v45 = vsel %vm364_vm3, %v1702_v61, %v1706_v55  ;;  %v859_v13 = vmax.f32 %v857_v38, %v858_v7  ;;  %v1704_v49 = vunpack.c.l.b16 %v1692_v34  ;;  %v1705_v54 = vunpack.c.l.b16 %v1693_v9  ;;  %5270 = vmatpush1.bf16.msra.mxu1 %v8497_v15  ;;  %v10209_v7 = vpop.permute.xlu0 %2717 }
 0x1fb   : > { %v1708_v31 = vsel %vm366_vm4, %v1703_v43, %v1707_v45  ;;  %v865_v40 = vrot.slane %v864_v39, 2  ;;  %v871_v30 = vmax.f32 %v869_v25, %v870_v8  ;;  %v877_v53 = vrot.slane %v876_v36, 4  ;;  %5271 = vmatprep.subr.bf16.mxu1 %v8507_v6  ;;  %v10207_v43 = vpop.permute.xlu1 %2724 }
 0x1fc   : > { %v860_v60 = vrot.slane %v859_v13, 1  ;;  %v1709_v33 = vsel %vm368_vm5, %v1704_v49, %v1708_v31  ;;  %v883_v21 = vsel %vm12101_vm11, %v9532_v63, -inf  ;;  %v890_v22 = vsel %vm12108_vm13, %v9538_v14, -inf  ;;  %v8510_v63 = vld [vmem:[%s12040_s1 + $0x360] ss:$8 sps:$4 sm:$0xff]   ;;  %vm12116_vm13 = vmmov %vm12101_vm11 }
 0x1fd   : > { %v10196_v17 = vsel %vm231_vm0, %v8924_v59, %v10108_v51  ;;  %v1710_v35 = vsel %vm370_vm6, %v1705_v54, %v1709_v33  ;;  %v866_v38 = vmax.f32 %v864_v39, %v865_v40  ;;  %v872_v16 = vrot.slane %v871_v30, 2  ;;  %v8515_v31 = vld [vmem:[%s12040_s1 + $0x350] ss:$8 sps:$4 sm:$0xff]  }
 0x1fe   : > { %v861_v19 = vmax.f32 %v859_v13, %v860_v60  ;;  %v1711_v5 = vpack.c.b16 %v1710_v35, %v1710_v35  ;;  %v878_v46 = vmax.f32 %v876_v36, %v877_v53  ;;  %v884_v44 = vrot.slane %v883_v21, 4  ;;  %5272 = vmatpush2.bf16.msra.mxu1 %v8505_v27 }
 0x1ff   : > { %v891_v11 = vrot.slane %v890_v22, 4  ;;  %v867_v14 = vrot.slane %v866_v38, 1  ;;  %v873_v15 = vmax.f32 %v871_v30, %v872_v16  ;;  %v10205_v51 = vsel %vm231_vm0, %v8995_v20, %v10110_v0  ;;  %5273 = vmatprep.subr.bf16.mxu1 %v8512_v29  ;;  %v8520_v30 = vld [vmem:[%s12040_s1 + $0x344] ss:$8 sps:$4 sm:$0xff]   ;;  %v10227_v16 = vpop.permute.xlu1 %500 }
 0x200   : > { %v897_v61 = vmax.f32 %v861_v19, 0.0  ;;  %v1713_v6 = vsel %vm373_vm7, 0, %v1711_v5  ;;  %v879_v34 = vrot.slane %v878_v46, 2  ;;  %v885_v9 = vmax.f32 %v883_v21, %v884_v44  ;;  %v10229_v5 = vpop.permute.xlu0 %493 }
 0x201   : > { %v892_v55 = vmax.f32 %v890_v22, %v891_v11  ;;  %v10216_v25 = vsel %vm377_vm8, %v1713_v6, 0  ;;  %v868_v45 = vmax.f32 %v866_v38, %v867_v14  ;;  %v874_v0 = vrot.slane %v873_v15, 1  ;;  %v8518_v14 = vld [vmem:[%s12040_s1 + $0x340] ss:$8 sps:$4 sm:$0xff]  }
 0x202   : > { %v903_v13 = vpack.c.bf16 %v897_v61, %v897_v61  ;;  %v1715_v39 = vshrl.u32 %v10216_v25, 16  ;;  %v1717_v8 = vshll.u32 %v10216_v25, 16  ;;  %v1730_v49 = vrot.slane %v10216_v25, 2  ;;  %5274 = vmatpush2.bf16.msra.mxu1 %v8510_v63 }
 0x203   : > { %v880_v54 = vmax.f32 %v878_v46, %v879_v34  ;;  %v875_v36 = vmax.f32 %v873_v15, %v874_v0  ;;  %v886_v27 = vrot.slane %v885_v9, 2  ;;  %v893_v60 = vrot.slane %v892_v55, 2  ;;  %5275 = vmatprep.subr.bf16.mxu1 %v8517_v37  ;;  %v8529_v34 = vld [vmem:[%s12040_s1 + $0x334] ss:$8 sps:$4 sm:$0xff]  }
 0x204   : > { %v898_v40 = vmax.f32 %v868_v45, 0.0  ;;  %v1725_v53 = vrot.slane %v1715_v39, 1  ;;  %v1726_v29 = vrot.slane %v1717_v8, 2  ;;  %v7696_v33 = vcombine.low %v1730_v49, %v1730_v49 }
 0x205   : > { %v1719_v21 = vrot.slane %v1717_v8, 1  ;;  %v881_v22 = vrot.slane %v880_v54, 1  ;;  %v887_v35 = vmax.f32 %v885_v9, %v886_v27  ;;  %v894_v19 = vmax.f32 %v892_v55, %v893_v60 }
 0x206   : > { %v899_v38 = vmax.f32 %v875_v36, 0.0  ;;  %v1727_v46 = vor.u32 %v1726_v29, %v1725_v53  ;;  %v1744_v44 = vrot.slane %v7696_v33, 5  ;;  %v904_v63 = vpack.c.bf16 %v898_v40, %v898_v40  ;;  %5276 = vmatpush2.bf16.msra.mxu1 %v8515_v31  ;;  %v2049_v29 = vpop.permute.xlu1 %2048  ;;  %v2042_v33 = vpop.permute.xlu0 %2041 }
 0x207   : > { %v1720_v11 = vor.u32 %v1719_v21, %v1715_v39  ;;  %v882_v15 = vmax.f32 %v880_v54, %v881_v22  ;;  %v888_v61 = vrot.slane %v887_v35, 1  ;;  %v895_v37 = vrot.slane %v894_v19, 1  ;;  %5277 = vmatprep.subr.bf16.mxu1 %v8520_v30 }
 0x208   : > { %v905_v6 = vpack.c.bf16 %v899_v38, %v899_v38  ;;  %v1746_v9 = vrot.slane %v1744_v44, 4  ;;  %1752 = vst.msk [vmem:[#allocation2 + $0x104] sm:$0x8] %vm1163_vm12, %v1744_v44  ;;  %1728 = vrot.lane.b32.xlu1 %v1727_v46, %s8733_s23  ;;  %v915_v55 = vunpack.c.l.b16 %v903_v13  ;;  %v916_v45 = vunpack.c.l.b16 %v904_v63  ;;  %vm12115_vm12 = vmmov %vm12101_vm11 }
 0x209   : > { %1721 = vrot.lane.b32.xlu0 %v1720_v11, %s8733_s23  ;;  %v1928_v0 = vrot.slane %v8924_v59, 1  ;;  %v889_v39 = vmax.f32 %v887_v35, %v888_v61  ;;  %v896_v8 = vmax.f32 %v894_v19, %v895_v37  ;;  %v900_v49 = vmax.f32 %v882_v15, 0.0  ;;  %v8527_v59 = vld [vmem:[%s12040_s1 + $0x330] ss:$8 sps:$4 sm:$0xff]  }
 0x20a   : > { %v917_v54 = vunpack.c.l.b16 %v905_v6  ;;  %vm12109_vm15 = vcmask 517120   ;;  %v921_v31 = vsel %vm362_vm2, %v916_v45, %v915_v55  ;;  %v1135_v27 = vrot.slane %v8995_v20, 1  ;;  %5278 = vmatpush2.bf16.msra.mxu1 %v8518_v14  ;;  %v12110_v14 = vld [vmem:[#allocation4_spill] sm:$0xff]  ;;  %v12111_v6 = vld [vmem:[#allocation5_spill] sm:$0xff] }
 0x20b   : > { %1754 = vst.msk [vmem:[#allocation2 + $0x110] sm:$0x3] %vm12109_vm15, %v1746_v9  ;;  %v1939_v36 = vsel %vm231_vm0, %v1928_v0, %v10130_v41  ;;  %v388_v60 = vrot.slane %v9044_v10, 1  ;;  %v901_v13 = vmax.f32 %v889_v39, 0.0  ;;  %v902_v40 = vmax.f32 %v896_v8, 0.0  ;;  %5279 = vmatprep.subr.bf16.mxu1 %v8529_v34  ;;  %v12112_v39 = vld [vmem:[#allocation6_spill] sm:$0xff]  ;;  %vm12117_vm15 = vmmov %vm12101_vm11 }
 0x20c   : > { %v906_v30 = vpack.c.bf16 %v900_v49, %v900_v49  ;;  %v922_v53 = vsel %vm364_vm3, %v917_v54, %v921_v31  ;;  %v8532_v41 = vld [vmem:[%s12040_s1 + $0x324] ss:$8 sps:$4 sm:$0xff]   ;;  %v7723_v20 = vcombine.low %v10196_v17, %v1939_v36  ;;  %v1146_v21 = vsel %vm231_vm0, %v1135_v27, %v10132_v26  ;;  %v2835_v49 = vpop.permute.xlu1 %2834  ;;  %v2828_v54 = vpop.permute.xlu0 %2827 }
 0x20d   : > { %v399_v22 = vsel %vm231_vm0, %v388_v60, %v10152_v62  ;;  %v396_v35 = vsel %vm231_vm0, %v9044_v10, %v10154_v23  ;;  %v907_v19 = vpack.c.bf16 %v901_v13, %v901_v13  ;;  %v908_v38 = vpack.c.bf16 %v902_v40, %v902_v40  ;;  %v8530_v62 = vld [vmem:[%s12040_s1 + $0x320] ss:$8 sps:$4 sm:$0xff]   ;;  %v8536_v60 = vld [vmem:[%s12040_s1 + $0x310] ss:$8 sps:$4 sm:$0xff]  }
 0x20e   : > { %v918_v46 = vunpack.c.l.b16 %v906_v30  ;;  %v7685_v44 = vcombine.low %v10205_v51, %v1146_v21  ;;  %v1947_v11 = vrot.slane %v7723_v20, 6  ;;  %v7647_v63 = vcombine.low %v396_v35, %v399_v22  ;;  %5280 = vmatpush2.bf16.msra.mxu1 %v8527_v59  ;;  %v8538_v51 = vld [vmem:[%s12040_s1 + $0x314] ss:$8 sps:$4 sm:$0xff]   ;;  %v12114_v20 = vld [vmem:[#allocation8_spill] sm:$0xff] }
 0x20f   : > { %v1252_v15 = vrot.slane %v12110_v14, 1  ;;  %v1260_v26 = vsel %vm231_vm0, %v12110_v14, %v10177_v18  ;;  %v919_v17 = vunpack.c.l.b16 %v907_v19  ;;  %v920_v10 = vunpack.c.l.b16 %v908_v38  ;;  %5281 = vmatprep.subr.bf16.mxu1 %v8532_v41 }
 0x210   : > { %v923_v23 = vsel %vm366_vm4, %v918_v46, %v922_v53  ;;  %v1154_v61 = vrot.slane %v7685_v44, 5  ;;  %v1949_v37 = vrot.slane %v1947_v11, 4  ;;  %1955 = vst [vmem:[#allocation2 + $0x54] sm:$0xcc] %v1947_v11  ;;  %409 = vst [vmem:[#allocation2 + $0x48] sm:$0x77] %v7647_v63  ;;  %v2728_v9 = vsel %vm231_vm0, %v12111_v6, %v10209_v7 }
 0x211   : > { %v1263_v18 = vsel %vm231_vm0, %v1252_v15, %v10175_v12  ;;  %v2720_v34 = vrot.slane %v12111_v6, 1  ;;  %v924_v55 = vsel %vm368_vm5, %v919_v17, %v923_v23  ;;  %v496_v8 = vrot.slane %v12112_v39, 1  ;;  %v12113_v7 = vld [vmem:[#allocation7_spill] sm:$0xff] }
 0x212   : > { %v1156_v45 = vrot.slane %v1154_v61, 4  ;;  %1162 = vst [vmem:[#allocation2 + $0x48] sm:$0x88] %v1154_v61  ;;  %v7687_v0 = vcombine.low %v1260_v26, %v1263_v18  ;;  %v925_v31 = vsel %vm370_vm6, %v920_v10, %v924_v55  ;;  %1958 = vst [vmem:[#allocation2 + $0x60] sm:$0x11] %v1949_v37  ;;  %v504_v36 = vsel %vm231_vm0, %v12112_v39, %v10229_v5  ;;  %v1372_v26 = vpop.permute.xlu1 %1371  ;;  %v10325_v55 = vld [vmem:[#allocation2] sm:$0xff] }
 0x213   : > { %v2731_v12 = vsel %vm231_vm0, %v2720_v34, %v10207_v43  ;;  %v2044_v27 = vrot.slane %v12113_v7, 1  ;;  %5282 = vmatpush2.bf16.msra.mxu1 %v8530_v62  ;;  %v926_v59 = vpack.c.b16 %v925_v31, %v925_v31  ;;  %v507_v30 = vsel %vm231_vm0, %v496_v8, %v10227_v16  ;;  %v8541_v43 = vld [vmem:[%s12040_s1 + $0x304] ss:$8 sps:$4 sm:$0xff]   ;;  %v8539_v44 = vld [vmem:[%s12040_s1 + $0x300] ss:$8 sps:$4 sm:$0xff]   ;;  %v1365_v62 = vpop.permute.xlu0 %1364 }
 0x214   : > { %1165 = vst [vmem:[#allocation2 + $0x54] sm:$0x33] %v1156_v45  ;;  %v1271_v13 = vrot.slane %v7687_v0, 5  ;;  %v7761_v40 = vcombine.low %v2728_v9, %v2731_v12  ;;  %5283 = vmatprep.subr.bf16.mxu1 %v8538_v51  ;;  %v7649_v5 = vcombine.low %v504_v36, %v507_v30  ;;  %v2052_v41 = vsel %vm231_vm0, %v12113_v7, %v2042_v33 }
 0x215   : > { %v2055_v53 = vsel %vm231_vm0, %v2044_v27, %v2049_v29  ;;  %v2830_v21 = vrot.slane %v12114_v20, 1  ;;  %v928_v22 = vsel %vm373_vm7, 0, %v926_v59  ;;  %v2838_v29 = vsel %vm231_vm0, %v12114_v20, %v2828_v54 }
 0x216   : > { %v1273_v35 = vrot.slane %v1271_v13, 4  ;;  %1279 = vst [vmem:[#allocation2 + $0x6c] sm:$0x88] %v1271_v13  ;;  %v2739_v19 = vrot.slane %v7761_v40, 7  ;;  %v7725_v38 = vcombine.low %v2052_v41, %v2055_v53  ;;  %v10303_v16 = vsel %vm377_vm8, %v928_v22, 0  ;;  %v12119_v13 = vld [vmem:[#allocation9_spill] sm:$0xff]  ;;  %v10345_v30 = vpop.permute.xlu1 %2163 }
 0x217   : > { %517 = vst [vmem:[#allocation2 + $0x6c] sm:$0x77] %v7649_v5  ;;  %v2841_v46 = vsel %vm231_vm0, %v2830_v21, %v2835_v49  ;;  %v2432_v33 = vsel %vm12115_vm12, %v9620_v32, -inf  ;;  %5284 = vmatpush2.bf16.msra.mxu1 %v8536_v60  ;;  %v930_v11 = vshrl.u32 %v10303_v16, 16  ;;  %v932_v63 = vshll.u32 %v10303_v16, 16  ;;  %vm12118_vm12 = vmmov %vm12101_vm11 }
 0x218   : > { %v945_v14 = vrot.slane %v10303_v16, 2  ;;  %1281 = vst [vmem:[#allocation2 + $0x78] sm:$0x33] %v1273_v35  ;;  %2743 = vst [vmem:[#allocation2 + $0x60] sm:$0xee] %v2739_v19  ;;  %v2063_v15 = vrot.slane %v7725_v38, 6  ;;  %5285 = vmatprep.subr.bf16.mxu1 %v8541_v43  ;;  %v7763_v10 = vcombine.low %v2838_v29, %v2841_v46  ;;  %v10347_v43 = vpop.permute.xlu0 %2156 }
 0x219   : > { %v8549_v32 = vld [vmem:[%s12040_s1 + $0x434] ss:$8 sps:$4 sm:$0xff]   ;;  %v3315_v17 = vld [vmem:[#allocation2 + $0x48] sm:$0xff]  ;;  %v2433_v23 = vrot.slane %v2432_v33, 4  ;;  %v2439_v61 = vsel %vm12101_vm11, %v9622_v52, -inf  ;;  %v2446_v51 = vsel %vm12116_vm13, %v9624_v58, -inf  ;;  %vm12120_vm13 = vmmov %vm12101_vm11 }
 0x21a   : > { %v940_v37 = vrot.slane %v930_v11, 1  ;;  %v941_v18 = vrot.slane %v932_v63, 2  ;;  %v7658_v6 = vcombine.low %v945_v14, %v945_v14  ;;  %v934_v34 = vrot.slane %v932_v63, 1  ;;  %2071 = vst [vmem:[#allocation2 + $0x78] sm:$0xcc] %v2063_v15 }
 0x21b   : > { %v10323_v9 = vld [vmem:[#allocation2 + $0x54] sm:$0xff]  ;;  %v7893_v45 = vcombine.high %v10325_v55, %v3315_v17  ;;  %v7892_v0 = vcombine.low %v10325_v55, %v3315_v17  ;;  %v2065_v39 = vrot.slane %v2063_v15, 4  ;;  %v2849_v8 = vrot.slane %v7763_v10, 7  ;;  %5286 = vmatpush2.bf16.msra.mxu1 %v8539_v44 }
 0x21c   : > { %v942_v52 = vor.u32 %v941_v18, %v940_v37  ;;  %961 = vst.msk [vmem:[#allocation2 + $0x104] sm:$0x7] %vm295_vm1, %v7658_v6  ;;  %v935_v58 = vor.u32 %v934_v34, %v930_v11  ;;  %v10331_v49 = vcombine.high %v3315_v17, %v10323_v9  ;;  %v10334_v54 = vcombine.low %v3315_v17, %v10323_v9 }
 0x21d   : > { %6048 = vmatprep.subr.bf16.mxu1 %v8549_v32  ;;  %4504 = vmatprep.mubr.bf16.mxu1 %v7893_v45  ;;  %2073 = vst [vmem:[#allocation2 + $0x84] sm:$0x11] %v2065_v39  ;;  %2853 = vst [vmem:[#allocation2 + $0x84] sm:$0xee] %v2849_v8  ;;  %v2434_v31 = vmax.f32 %v2432_v33, %v2433_v23  ;;  %v2440_v12 = vrot.slane %v2439_v61, 4  ;;  %v2447_v36 = vrot.slane %v2446_v51, 4 }
 0x21e   : > { %v2453_v7 = vsel %vm12117_vm15, %v9626_v28, -inf  ;;  %943 = vrot.lane.b32.xlu1 %v942_v52, %s8733_s23  ;;  %936 = vrot.lane.b32.xlu0 %v935_v58, %s8733_s23  ;;  %v2460_v60 = vsel %vm12118_vm12, %v9628_v3, -inf  ;;  %v2467_v59 = vsel %vm12101_vm11, %v9632_v1, -inf  ;;  %v1367_v40 = vrot.slane %v12119_v13, 1  ;;  %vm12121_vm15 = vmmov %vm12101_vm11 }
 0x21f   : > { %v2454_v27 = vrot.slane %v2453_v7, 4  ;;  %3803 = vmatprep.mubr.bf16.mxu0 %v10331_v49  ;;  %4505 = vmatmul.mubr.bf16.gmra.mxu1 %v7892_v0  ;;  %v2435_v28 = vrot.slane %v2434_v31, 2  ;;  %v2441_v5 = vmax.f32 %v2439_v61, %v2440_v12  ;;  %v2448_v53 = vmax.f32 %v2446_v51, %v2447_v36  ;;  %v10350_v20 = vld [vmem:[#allocation2 + $0x60] sm:$0xff]  ;;  %v10362_v61 = vpop.permute.xlu1 %608  ;;  %v10364_v51 = vpop.permute.xlu0 %601  ;;  %vm12122_vm12 = vmmov %vm12101_vm11 }
 0x220   : > { %v2461_v41 = vrot.slane %v2460_v60, 4  ;;  %3804 = vmatmul.mubr.bf16.gmra.mxu0 %v10334_v54  ;;  %v2468_v21 = vrot.slane %v2467_v59, 4  ;;  %v1378_v1 = vsel %vm231_vm0, %v1367_v40, %v1372_v26  ;;  %v7896_v22 = vcombine.high %v10323_v9, %v10350_v20 }
 0x221   : > { %v2455_v3 = vmax.f32 %v2453_v7, %v2454_v27  ;;  %v2436_v35 = vmax.f32 %v2434_v31, %v2435_v28  ;;  %v2442_v19 = vrot.slane %v2441_v5, 2  ;;  %v2449_v38 = vrot.slane %v2448_v53, 2 }
 0x222   : > { %v2462_v46 = vmax.f32 %v2460_v60, %v2461_v41  ;;  %v2469_v33 = vmax.f32 %v2467_v59, %v2468_v21  ;;  %4514 = vmatprep.mubr.bf16.mxu1 %v7896_v22  ;;  %v1375_v44 = vsel %vm231_vm0, %v12119_v13, %v1365_v62  ;;  %v7895_v11 = vcombine.low %v10323_v9, %v10350_v20 }
 0x223   : > { %v2456_v29 = vrot.slane %v2455_v3, 2  ;;  %v2437_v63 = vrot.slane %v2436_v35, 1  ;;  %v2443_v14 = vmax.f32 %v2441_v5, %v2442_v19  ;;  %v2450_v15 = vmax.f32 %v2448_v53, %v2449_v38  ;;  %v10368_v53 = vpop.permute.xlu1 %2943  ;;  %v10370_v41 = vpop.permute.xlu0 %2936 }
 0x224   : > { %v2463_v26 = vrot.slane %v2462_v46, 2  ;;  %v2470_v17 = vrot.slane %v2469_v33, 2  ;;  %v7689_v10 = vcombine.low %v1375_v44, %v1378_v1  ;;  %v3194_v23 = vsel %vm12120_vm13, %v9771_v50, -inf  ;;  %vm12123_vm13 = vmmov %vm12101_vm11 }
 0x225   : > { %v2457_v32 = vmax.f32 %v2455_v3, %v2456_v29  ;;  %v2438_v37 = vmax.f32 %v2436_v35, %v2437_v63  ;;  %v2444_v18 = vrot.slane %v2443_v14, 1  ;;  %v2451_v62 = vrot.slane %v2450_v15, 1 }
 0x226   : > { %v2464_v6 = vmax.f32 %v2462_v46, %v2463_v26  ;;  %v2471_v9 = vmax.f32 %v2469_v33, %v2470_v17  ;;  %v1386_v45 = vrot.slane %v7689_v10, 5  ;;  %v3195_v0 = vrot.slane %v3194_v23, 4 }
 0x227   : > { %v2458_v34 = vrot.slane %v2457_v32, 1  ;;  %v2445_v39 = vmax.f32 %v2443_v14, %v2444_v18  ;;  %v2452_v8 = vmax.f32 %v2450_v15, %v2451_v62  ;;  %v2474_v58 = vmax.f32 %v2438_v37, 0.0  ;;  %4515 = vmatmul.mubr.bf16.gmra.mxu1 %v7895_v11 }
 0x228   : > { %v2465_v52 = vrot.slane %v2464_v6, 1  ;;  %v2472_v12 = vrot.slane %v2471_v9, 1  ;;  %v1388_v50 = vrot.slane %v1386_v45, 4  ;;  %1394 = vst [vmem:[#allocation2 + $0x90] sm:$0x88] %v1386_v45  ;;  %v3196_v36 = vmax.f32 %v3194_v23, %v3195_v0 }
 0x229   : > { %v2459_v31 = vmax.f32 %v2457_v32, %v2458_v34  ;;  %v2475_v27 = vmax.f32 %v2445_v39, 0.0  ;;  %v2476_v60 = vmax.f32 %v2452_v8, 0.0  ;;  %v2480_v59 = vpack.c.bf16 %v2474_v58, %v2474_v58  ;;  %v10380_v34 = vpop.permute.xlu0 %1491  ;;  %v10388_v58 = vld [vmem:[#allocation2 + $0x6c] sm:$0xff] }
 0x22a   : > { %v2466_v7 = vmax.f32 %v2464_v6, %v2465_v52  ;;  %v2473_v13 = vmax.f32 %v2471_v9, %v2472_v12  ;;  %1396 = vst [vmem:[#allocation2 + $0x9c] sm:$0x33] %v1388_v50  ;;  %v3197_v28 = vrot.slane %v3196_v36, 2  ;;  %v3201_v5 = vsel %vm12121_vm15, %v9773_v4, -inf  ;;  %v10378_v6 = vpop.permute.xlu1 %1498  ;;  %vm12124_vm15 = vmmov %vm12101_vm11 }
 0x22b   : > { %v2477_v40 = vmax.f32 %v2459_v31, 0.0  ;;  %v2481_v21 = vpack.c.bf16 %v2475_v27, %v2475_v27  ;;  %v2482_v1 = vpack.c.bf16 %v2476_v60, %v2476_v60  ;;  %v2492_v22 = vunpack.c.l.b16 %v2480_v59 }
 0x22c   : > { %v2478_v3 = vmax.f32 %v2466_v7, 0.0  ;;  %v2479_v35 = vmax.f32 %v2473_v13, 0.0  ;;  %v3198_v38 = vmax.f32 %v3196_v36, %v3197_v28  ;;  %v3202_v46 = vrot.slane %v3201_v5, 4 }
 0x22d   : > { %v2483_v19 = vpack.c.bf16 %v2477_v40, %v2477_v40  ;;  %v2493_v33 = vunpack.c.l.b16 %v2481_v21  ;;  %v2494_v44 = vunpack.c.l.b16 %v2482_v1  ;;  %v3208_v11 = vsel %vm12122_vm12, %v9775_v57, -inf }
 0x22e   : > { %v2484_v29 = vpack.c.bf16 %v2478_v3, %v2478_v3  ;;  %v2485_v63 = vpack.c.bf16 %v2479_v35, %v2479_v35  ;;  %v3199_v14 = vrot.slane %v3198_v38, 1  ;;  %v3203_v15 = vmax.f32 %v3201_v5, %v3202_v46  ;;  %v10396_v1 = vpop.permute.xlu1 %729 }
 0x22f   : > { %v2495_v4 = vunpack.c.l.b16 %v2483_v19  ;;  %v2498_v32 = vsel %vm362_vm2, %v2493_v33, %v2492_v22  ;;  %v3209_v17 = vrot.slane %v3208_v11, 4  ;;  %v3215_v10 = vsel %vm12101_vm11, %v9777_v56, -inf  ;;  %v10398_v22 = vpop.permute.xlu0 %722 }
 0x230   : > { %v2496_v26 = vunpack.c.l.b16 %v2484_v29  ;;  %v2497_v23 = vunpack.c.l.b16 %v2485_v63  ;;  %v2499_v37 = vsel %vm364_vm3, %v2494_v44, %v2498_v32  ;;  %v3200_v18 = vmax.f32 %v3198_v38, %v3199_v14 }
 0x231   : > { %v3204_v62 = vrot.slane %v3203_v15, 2  ;;  %v2500_v57 = vsel %vm366_vm4, %v2495_v4, %v2499_v37  ;;  %v3210_v9 = vmax.f32 %v3208_v11, %v3209_v17  ;;  %v3216_v45 = vrot.slane %v3215_v10, 4 }
 0x232   : > { %v3222_v0 = vsel %vm12123_vm13, %v9779_v2, -inf  ;;  %v2501_v39 = vsel %vm368_vm5, %v2496_v26, %v2500_v57  ;;  %v3229_v52 = vsel %vm12124_vm15, %v9795_v47, -inf  ;;  %v3236_v59 = vmax.f32 %v3200_v18, 0.0 }
 0x233   : > { %v3205_v8 = vmax.f32 %v3203_v15, %v3204_v62  ;;  %v3223_v56 = vrot.slane %v3222_v0, 4  ;;  %v2502_v31 = vsel %vm370_vm6, %v2497_v23, %v2501_v39  ;;  %v3211_v12 = vrot.slane %v3210_v9, 2  ;;  %v10407_v39 = vpop.permute.xlu1 %2290 }
 0x234   : > { %v3217_v50 = vmax.f32 %v3215_v10, %v3216_v45  ;;  %v3230_v36 = vrot.slane %v3229_v52, 4  ;;  %v2503_v7 = vpack.c.b16 %v2502_v31, %v2502_v31  ;;  %v10393_v28 = vcombine.high %v10350_v20, %v10388_v58 }
 0x235   : > { %v3206_v27 = vrot.slane %v3205_v8, 1  ;;  %v3224_v60 = vmax.f32 %v3222_v0, %v3223_v56  ;;  %v3212_v13 = vmax.f32 %v3210_v9, %v3211_v12  ;;  %v3242_v21 = vpack.c.bf16 %v3236_v59, %v3236_v59 }
 0x236   : > { %v3218_v2 = vrot.slane %v3217_v50, 2  ;;  %v3231_v40 = vmax.f32 %v3229_v52, %v3230_v36  ;;  %v2505_v47 = vsel %vm373_vm7, 0, %v2503_v7  ;;  %3813 = vmatprep.mubr.bf16.mxu0 %v10393_v28  ;;  %vm7531_vm13 = vcmask 1041408  }
 0x237   : > { %v3207_v5 = vmax.f32 %v3205_v8, %v3206_v27  ;;  %v3225_v3 = vrot.slane %v3224_v60, 2  ;;  %v10401_v35 = vsel %vm377_vm8, %v2505_v47, 0  ;;  %v3213_v19 = vrot.slane %v3212_v13, 1  ;;  %v10409_v8 = vpop.permute.xlu0 %2283 }
 0x238   : > { %v3219_v38 = vmax.f32 %v3217_v50, %v3218_v2  ;;  %v3232_v46 = vrot.slane %v3231_v40, 2  ;;  %v2507_v29 = vshrl.u32 %v10401_v35, 16  ;;  %v2509_v33 = vshll.u32 %v10401_v35, 16 }
 0x239   : > { %v2522_v44 = vrot.slane %v10401_v35, 2  ;;  %v3226_v11 = vmax.f32 %v3224_v60, %v3225_v3  ;;  %v3214_v63 = vmax.f32 %v3212_v13, %v3213_v19  ;;  %v3237_v15 = vmax.f32 %v3207_v5, 0.0  ;;  %v12125_v5 = vld [vmem:[#allocation10_spill] sm:$0xff]  ;;  %v12126_v19 = vld [vmem:[#allocation11_spill] sm:$0xff] }
 0x23a   : > { %v3220_v4 = vrot.slane %v3219_v38, 1  ;;  %v3233_v14 = vmax.f32 %v3231_v40, %v3232_v46  ;;  %v2517_v26 = vrot.slane %v2507_v29, 1  ;;  %v2518_v32 = vrot.slane %v2509_v33, 2  ;;  %v4037_v40 = vld [vmem:[#allocation2 + $0x78] sm:$0xff] }
 0x23b   : > { %v7734_v17 = vcombine.low %v2522_v44, %v2522_v44  ;;  %v2511_v10 = vrot.slane %v2509_v33, 1  ;;  %v3227_v37 = vrot.slane %v3226_v11, 1  ;;  %v3238_v62 = vmax.f32 %v3214_v63, 0.0  ;;  %v10427_v44 = vld [vmem:[#allocation2 + $0x84] sm:$0xff] }
 0x23c   : > { %v3221_v23 = vmax.f32 %v3219_v38, %v3220_v4  ;;  %v3234_v18 = vrot.slane %v3233_v14, 1  ;;  %v2519_v57 = vor.u32 %v2518_v32, %v2517_v26  ;;  %v3243_v0 = vpack.c.bf16 %v3237_v15, %v3237_v15  ;;  %v3058_v15 = vpop.permute.xlu0 %3057 }
 0x23d   : > { %v2536_v9 = vrot.slane %v7734_v17, 6  ;;  %v2512_v45 = vor.u32 %v2511_v10, %v2507_v29  ;;  %v3228_v56 = vmax.f32 %v3226_v11, %v3227_v37  ;;  %v3244_v12 = vpack.c.bf16 %v3238_v62, %v3238_v62  ;;  %v12127_v37 = vld [vmem:[#allocation12_spill] sm:$0xff] }
 0x23e   : > { %v3235_v52 = vmax.f32 %v3233_v14, %v3234_v18  ;;  %v3239_v31 = vmax.f32 %v3221_v23, 0.0  ;;  %2520 = vrot.lane.b32.xlu1 %v2519_v57, %s8733_s23  ;;  %v3254_v36 = vunpack.c.l.b16 %v3242_v21  ;;  %v3255_v7 = vunpack.c.l.b16 %v3243_v0  ;;  %v3065_v14 = vpop.permute.xlu1 %3064 }
 0x23f   : > { %v2538_v50 = vrot.slane %v2536_v9, 4  ;;  %2544 = vst.msk [vmem:[#allocation2 + $0x110] sm:$0xc] %vm1956_vm9, %v2536_v9  ;;  %2513 = vrot.lane.b32.xlu0 %v2512_v45, %s8733_s23  ;;  %v10416_v27 = vcombine.low %v10350_v20, %v10388_v58  ;;  %v3240_v60 = vmax.f32 %v3228_v56, 0.0  ;;  %v3256_v2 = vunpack.c.l.b16 %v3244_v12  ;;  %v10450_v45 = vpop.f32.mrf.mxu1  ;;  %v12128_v56 = vld [vmem:[#allocation13_spill] sm:$0xff] }
 0x240   : > { %v3241_v59 = vmax.f32 %v3235_v52, 0.0  ;;  %v3245_v13 = vpack.c.bf16 %v3239_v31, %v3239_v31  ;;  %v3260_v47 = vsel %vm362_vm2, %v3255_v7, %v3254_v36  ;;  %v2159_v3 = vrot.slane %v12125_v5, 1  ;;  %v12129_v36 = vld [vmem:[#allocation14_spill] sm:$0xff] }
 0x241   : > { %2546 = vst.msk [vmem:[#allocation2 + $0x11c] sm:$0x1] %vm629_vm10, %v2538_v50  ;;  %3814 = vmatmul.mubr.bf16.gmra.mxu0 %v10416_v27  ;;  %v2167_v21 = vsel %vm231_vm0, %v12125_v5, %v10347_v43  ;;  %v604_v20 = vrot.slane %v12126_v19, 1  ;;  %v3246_v38 = vpack.c.bf16 %v3240_v60, %v3240_v60  ;;  %v3261_v33 = vsel %vm364_vm3, %v3256_v2, %v3260_v47 }
 0x242   : > { %v3247_v46 = vpack.c.bf16 %v3241_v59, %v3241_v59  ;;  %v3257_v29 = vunpack.c.l.b16 %v3245_v13  ;;  %v2170_v11 = vsel %vm231_vm0, %v2159_v3, %v10345_v30  ;;  %v7899_v4 = vcombine.high %v10388_v58, %v4037_v40  ;;  %v12130_v59 = vld [vmem:[#allocation15_spill] sm:$0xff]  ;;  %v1614_v2 = vpop.permute.xlu1 %1613 }
 0x243   : > { %v615_v63 = vsel %vm231_vm0, %v604_v20, %v10362_v61  ;;  %v612_v43 = vsel %vm231_vm0, %v12126_v19, %v10364_v51  ;;  %v3258_v26 = vunpack.c.l.b16 %v3246_v38  ;;  %v7727_v10 = vcombine.low %v2167_v21, %v2170_v11  ;;  %v10474_v21 = vpop.f32.mrf.mxu1 }
 0x244   : > { %v3259_v32 = vunpack.c.l.b16 %v3247_v46  ;;  %v3262_v17 = vsel %vm366_vm4, %v3257_v29, %v3261_v33  ;;  %4524 = vmatprep.mubr.bf16.mxu1 %v7899_v4  ;;  %v7651_v23 = vcombine.low %v612_v43, %v615_v63  ;;  %v7898_v30 = vcombine.low %v10388_v58, %v4037_v40  ;;  %v12132_v43 = vld [vmem:[#allocation17_spill] sm:$0xff] }
 0x245   : > { %v2939_v18 = vrot.slane %v12127_v37, 1  ;;  %v10441_v61 = vcombine.high %v4037_v40, %v10427_v44  ;;  %v3263_v62 = vsel %vm368_vm5, %v3258_v26, %v3262_v17  ;;  %v2178_v57 = vrot.slane %v7727_v10, 6 }
 0x246   : > { %v2947_v51 = vsel %vm231_vm0, %v12127_v37, %v10370_v41  ;;  %v10448_v9 = vcombine.low %v4037_v40, %v10427_v44  ;;  %v3264_v0 = vsel %vm370_vm6, %v3259_v32, %v3263_v62  ;;  %625 = vst [vmem:[#allocation2 + $0x90] sm:$0x77] %v7651_v23  ;;  %4525 = vmatmul.mubr.bf16.gmra.mxu1 %v7898_v30  ;;  %v1494_v52 = vrot.slane %v12128_v56, 1  ;;  %v1607_v40 = vpop.permute.xlu0 %1606  ;;  %v10491_v30 = vpop.f32.mrf.mxu1  ;;  %vm12171_vm6 = vmmov %vm12101_vm11 }
 0x247   : > { %v2950_v58 = vsel %vm231_vm0, %v2939_v18, %v10368_v53  ;;  %3823 = vmatprep.mubr.bf16.mxu0 %v10441_v61  ;;  %v1502_v41 = vsel %vm231_vm0, %v12128_v56, %v10380_v34  ;;  %v3265_v31 = vpack.c.b16 %v3264_v0, %v3264_v0  ;;  %v2180_v12 = vrot.slane %v2178_v57, 4  ;;  %2186 = vst [vmem:[#allocation2 + $0x9c] sm:$0xcc] %v2178_v57  ;;  %v837_v57 = vpop.permute.xlu1 %836  ;;  %vm12175_vm11 = vmmov %vm12171_vm6 }
 0x248   : > { %v7765_v50 = vcombine.low %v2947_v51, %v2950_v58  ;;  %v725_v7 = vrot.slane %v12129_v36, 1  ;;  %v1505_v60 = vsel %vm231_vm0, %v1494_v52, %v10378_v6  ;;  %v733_v53 = vsel %vm231_vm0, %v12129_v36, %v10398_v22 }
 0x249   : > { %3824 = vmatmul.mubr.bf16.gmra.mxu0 %v10448_v9  ;;  %v2286_v13 = vrot.slane %v12130_v59, 1  ;;  %v2294_v34 = vsel %vm231_vm0, %v12130_v59, %v10409_v8  ;;  %v3267_v47 = vsel %vm373_vm7, 0, %v3265_v31  ;;  %2188 = vst [vmem:[#allocation2 + $0xa8] sm:$0x11] %v2180_v12  ;;  %v7691_v3 = vcombine.low %v1502_v41, %v1505_v60  ;;  %v12131_v8 = vld [vmem:[#allocation16_spill] sm:$0xff] }
 0x24a   : > { %v2958_v5 = vrot.slane %v7765_v50, 7  ;;  %v736_v6 = vsel %vm231_vm0, %v725_v7, %v10396_v1  ;;  %v10477_v22 = vsel %vm377_vm8, %v3267_v47, 0  ;;  %v3060_v38 = vrot.slane %v12131_v8, 1  ;;  %v830_v51 = vpop.permute.xlu0 %829 }
 0x24b   : > { %v7653_v19 = vcombine.low %v733_v53, %v736_v6  ;;  %v2297_v20 = vsel %vm231_vm0, %v2286_v13, %v10407_v39  ;;  %v3269_v46 = vshrl.u32 %v10477_v22, 16  ;;  %v3271_v29 = vshll.u32 %v10477_v22, 16 }
 0x24c   : > { %v3284_v33 = vrot.slane %v10477_v22, 2  ;;  %2962 = vst [vmem:[#allocation2 + $0xa8] sm:$0xee] %v2958_v5  ;;  %v1513_v11 = vrot.slane %v7691_v3, 5  ;;  %v7729_v1 = vcombine.low %v2294_v34, %v2297_v20  ;;  %v3071_v63 = vsel %vm231_vm0, %v3060_v38, %v3065_v14  ;;  %v10516_v34 = vpop.f32.mrf.mxu1 }
 0x24d   : > { %746 = vst [vmem:[#allocation2 + $0xb4] sm:$0x77] %v7653_v19  ;;  %v3068_v4 = vsel %vm231_vm0, %v12131_v8, %v3058_v15  ;;  %v1609_v26 = vrot.slane %v12132_v43, 1  ;;  %v3279_v39 = vrot.slane %v3269_v46, 1  ;;  %v3280_v32 = vrot.slane %v3271_v29, 2  ;;  %v10489_v23 = vld [vmem:[#allocation2 + $0x90] sm:$0xff] }
 0x24e   : > { %v7772_v17 = vcombine.low %v3284_v33, %v3284_v33  ;;  %v3273_v10 = vrot.slane %v3271_v29, 1  ;;  %1521 = vst [vmem:[#allocation2 + $0xb4] sm:$0x88] %v1513_v11  ;;  %v1515_v37 = vrot.slane %v1513_v11, 4  ;;  %v3329_v18 = vld [vmem:[#allocation2 + $0x9c] sm:$0xff]  ;;  %v7902_v62 = vcombine.high %v10427_v44, %v10489_v23  ;;  %v10527_v29 = vpop.f32.mrf.mxu1 }
 0x24f   : > { %v7901_v14 = vcombine.low %v10427_v44, %v10489_v23  ;;  %v2305_v15 = vrot.slane %v7729_v1, 6  ;;  %v3281_v0 = vor.u32 %v3280_v32, %v3279_v39  ;;  %v10498_v52 = vcombine.high %v10489_v23, %v3329_v18 }
 0x250   : > { %v3298_v58 = vrot.slane %v7772_v17, 7  ;;  %v3274_v56 = vor.u32 %v3273_v10, %v3269_v46  ;;  %1523 = vst [vmem:[#allocation2 + $0xc0] sm:$0x33] %v1515_v37  ;;  %4534 = vmatprep.mubr.bf16.mxu1 %v7902_v62  ;;  %v10501_v41 = vcombine.low %v10489_v23, %v3329_v18  ;;  %v7767_v12 = vcombine.low %v3068_v4, %v3071_v63 }
 0x251   : > { %v2307_v31 = vrot.slane %v2305_v15, 4  ;;  %2313 = vst [vmem:[#allocation2 + $0xc0] sm:$0xcc] %v2305_v15  ;;  %v1620_v50 = vsel %vm231_vm0, %v1609_v26, %v1614_v2  ;;  %3282 = vrot.lane.b32.xlu1 %v3281_v0, %s8733_s23  ;;  %v1617_v44 = vsel %vm231_vm0, %v12132_v43, %v1607_v40  ;;  %v832_v36 = vrot.slane %v9999_v24, 1  ;;  %3833 = vmatprep.mubr.bf16.mxu0 %v10498_v52  ;;  %v10536_v43 = vpop.f32.mrf.mxu1 }
 0x252   : > { %3302 = vst.msk [vmem:[#allocation2 + $0x11c] sm:$0xe] %vm2744_vm14, %v3298_v58  ;;  %3275 = vrot.lane.b32.xlu0 %v3274_v56, %s8733_s23  ;;  %v840_v7 = vsel %vm231_vm0, %v9999_v24, %v830_v51  ;;  %v2401_v60 = vrot.slane %v10044_v42, 1  ;;  %4535 = vmatmul.mubr.bf16.gmra.mxu1 %v7901_v14  ;;  %v3079_v59 = vrot.slane %v7767_v12, 7  ;;  %v7693_v13 = vcombine.low %v1617_v44, %v1620_v50  ;;  %v8526_v51 = vld [vmem:[#allocation2 + $0x2c] ss:$12 sps:$4 sm:$0xff]  }
 0x253   : > { %2315 = vst [vmem:[#allocation2 + $0xcc] sm:$0x11] %v2307_v31  ;;  %v10514_v53 = vld [vmem:[#allocation2 + $0xa8] sm:$0xff]  ;;  %3834 = vmatmul.mubr.bf16.gmra.mxu0 %v10501_v41  ;;  %v843_v40 = vsel %vm231_vm0, %v832_v36, %v837_v57  ;;  %v2406_v3 = vpop.permute.xlu1 %2405  ;;  %v2399_v6 = vpop.permute.xlu0 %2398  ;;  %v3169_v14 = vrot.slane %v10135_v48, 1  ;;  %v8523_v56 = vld [vmem:[%s12040_s1 + $0x3b0] ss:$8 sps:$4 sm:$0xff]  }
 0x254   : > { %v7905_v2 = vcombine.high %v3329_v18, %v10514_v53  ;;  %3083 = vst [vmem:[#allocation2 + $0xcc] sm:$0xee] %v3079_v59  ;;  %v1628_v24 = vrot.slane %v7693_v13, 5  ;;  %v7655_v5 = vcombine.low %v840_v7, %v843_v40  ;;  %v2412_v20 = vsel %vm231_vm0, %v2401_v60, %v2406_v3  ;;  %v10547_v10 = vpop.f32.mrf.mxu1  ;;  %v8545_v50 = vld [vmem:[%s12040_s1 + $0x3a4] ss:$8 sps:$4 sm:$0xff]  }
 0x255   : > { %v3333_v47 = vld [vmem:[#allocation2 + $0xb4] sm:$0xff]  ;;  %v2409_v8 = vsel %vm231_vm0, %v10044_v42, %v2399_v6  ;;  %v7904_v1 = vcombine.low %v3329_v18, %v10514_v53  ;;  %v8543_v60 = vld [vmem:[%s12040_s1 + $0x3a0] ss:$8 sps:$4 sm:$0xff]   ;;  %v8535_v13 = vld [vmem:[#allocation2 + $0x44] ss:$12 sps:$4 sm:$0xff]   ;;  %vm7249_vm2 = vcmask 1042432  }
 0x256   : > { %4544 = vmatprep.mubr.bf16.mxu1 %v7905_v2  ;;  %v10522_v19 = vcombine.high %v10514_v53, %v3333_v47  ;;  %v1630_v38 = vrot.slane %v1628_v24, 4  ;;  %1636 = vst [vmem:[#allocation2 + $0xd8] sm:$0x88] %v1628_v24  ;;  %853 = vst [vmem:[#allocation2 + $0xd8] sm:$0x77] %v7655_v5  ;;  %v7731_v46 = vcombine.low %v2409_v8, %v2412_v20  ;;  %v10555_v62 = vpop.f32.mrf.mxu1  ;;  %vm7279_vm3 = vcmask 1047558  }
 0x257   : > { %v10531_v33 = vcombine.low %v10514_v53, %v3333_v47  ;;  %v8557_v2 = vld [vmem:[%s12040_s1 + $0x390] ss:$8 sps:$4 sm:$0xff]   ;;  %v8579_v40 = vld [vmem:[%s12040_s1 + $0x384] ss:$8 sps:$4 sm:$0xff]   ;;  %v8577_v5 = vld [vmem:[%s12040_s1 + $0x380] ss:$8 sps:$4 sm:$0xff]  }
 0x258   : > { %3843 = vmatprep.mubr.bf16.mxu0 %v10522_v19  ;;  %v4049_v11 = vld [vmem:[#allocation2 + $0xc0] sm:$0xff]  ;;  %1638 = vst [vmem:[#allocation2 + $0xe4] sm:$0x33] %v1630_v38  ;;  %v2420_v4 = vrot.slane %v7731_v46, 6  ;;  %v10564_v57 = vpop.f32.mrf.mxu1  ;;  %v8598_v6 = vld [vmem:[%s12040_s1 + $0x4f4] ss:$8 sps:$4 sm:$0xff]  }
 0x259   : > { %v10534_v63 = vcombine.high %v3333_v47, %v4049_v11  ;;  %v10544_v17 = vcombine.low %v3333_v47, %v4049_v11  ;;  %v8542_v46 = vld [vmem:[#allocation2 + $0x5c] ss:$12 sps:$4 sm:$0xff]   ;;  %vm7264_vm4 = vcmask 1044482   ;;  %vm7312_vm5 = vcmask 1046532  }
 0x25a   : > { %4545 = vmatmul.mubr.bf16.gmra.mxu1 %v7904_v1  ;;  %v2422_v42 = vrot.slane %v2420_v4, 4  ;;  %2428 = vst [vmem:[#allocation2 + $0xe4] sm:$0xcc] %v2420_v4  ;;  %v10576_v36 = vpop.f32.mrf.mxu1  ;;  %vm12172_vm9 = vcmask 523270   ;;  %vm12173_vm14 = vcmask 522244  }
 0x25b   : > { %3844 = vmatmul.mubr.bf16.gmra.mxu0 %v10531_v33  ;;  %4554 = vmatprep.mubr.bf16.mxu1 %v10534_v63  ;;  %v3337_v26 = vld [vmem:[#allocation2 + $0xcc] sm:$0xff]  ;;  %vm12174_vm12 = vmmov %vm12172_vm9 }
 0x25c   : > { %2430 = vst [vmem:[#allocation2 + $0xf0] sm:$0x11] %v2422_v42  ;;  %v10540_v39 = vcombine.high %v4049_v11, %v3337_v26  ;;  %v10549_v37 = vcombine.low %v4049_v11, %v3337_v26  ;;  %v10586_v59 = vpop.f32.mrf.mxu1  ;;  %v1724_v11 = vrot.slane %v10216_v25, 1  ;;  %vm12176_vm15 = vmmov %vm12173_vm14 }
 0x25d   : > { %v10542_v32 = vld [vmem:[#allocation2 + $0xd8] sm:$0xff] }
 0x25e   : > { %3853 = vmatprep.mubr.bf16.mxu0 %v10540_v39  ;;  %v10552_v18 = vcombine.high %v3337_v26, %v10542_v32  ;;  %v10562_v15 = vcombine.low %v3337_v26, %v10542_v32  ;;  %v10594_v24 = vpop.f32.mrf.mxu1 }
 0x260   : > { %v10616_v38 = vpop.f32.mrf.mxu1 }
 0x261   : > { %v10596_v47 = vld [vmem:[#allocation2 + $0xe4] sm:$0xff] }
 0x262   : > { %4555 = vmatmul.mubr.bf16.gmra.mxu1 %v10544_v17  ;;  %v10622_v1 = vpop.f32.mrf.mxu1 }
 0x263   : > { %3854 = vmatmul.mubr.bf16.gmra.mxu0 %v10549_v37  ;;  %4564 = vmatprep.mubr.bf16.mxu1 %v10552_v18 }
 0x264   : > { %4617 = vmatprep.mubr.bf16.mxu0 %v10325_v55 }
 0x267   : > { %v3174_v0 = vpop.permute.xlu1 %3173  ;;  %v3167_v58 = vpop.permute.xlu0 %3166 }
 0x268   : > { %v3180_v31 = vsel %vm231_vm0, %v3169_v14, %v3174_v0  ;;  %v3177_v12 = vsel %vm231_vm0, %v10135_v48, %v3167_v58  ;;  %v8559_v48 = vld [vmem:[%s12040_s1 + $0x394] ss:$8 sps:$4 sm:$0xff]   ;;  %v8547_v0 = vld [vmem:[%s12040_s1 + $0x430] ss:$8 sps:$4 sm:$0xff]  }
 0x269   : > { %v7769_v44 = vcombine.low %v3177_v12, %v3180_v31  ;;  %v10635_v31 = vpop.f32.mrf.mxu1 }
 0x26a   : > { %4565 = vmatmul.mubr.bf16.gmra.mxu1 %v10562_v15 }
 0x26b   : > { %7956 = vmatmul.mubr.msk.bf16.vlgmr.msra.gmra.mxu0 %vm231_vm0, %v8526_v51  ;;  %v3188_v7 = vrot.slane %v7769_v44, 7  ;;  %v10646_v44 = vpop.f32.mrf.mxu1 }
 0x26c   : > { %5387 = vmatpush1.bf16.msra.mxu0 %v8523_v56  ;;  %4627 = vmatprep.mubr.bf16.mxu0 %v10325_v55  ;;  %v8552_v56 = vld [vmem:[%s12040_s1 + $0x424] ss:$8 sps:$4 sm:$0xff]  }
 0x26d   : > { %5388 = vmatprep.subr.bf16.mxu0 %v8545_v50  ;;  %3192 = vst [vmem:[#allocation2 + $0xf0] sm:$0xee] %v3188_v7  ;;  %v8556_v50 = vld [vmem:[%s12040_s1 + $0x414] ss:$8 sps:$4 sm:$0xff]   ;;  %v8562_v7 = vld [vmem:[%s12040_s1 + $0x404] ss:$8 sps:$4 sm:$0xff]  }
 0x270   : > { %5389 = vmatpush1.bf16.msra.mxu0 %v8543_v60  ;;  %v10655_v60 = vpop.f32.mrf.mxu1 }
 0x271   : > { %5390 = vmatprep.subr.bf16.mxu0 %v8559_v48  ;;  %v8560_v48 = vld [vmem:[%s12040_s1 + $0x400] ss:$8 sps:$4 sm:$0xff]  }
 0x273   : > { %7957 = vmatmul.mubr.msk.bf16.gmra.mxu0 %vm231_vm0, %v8535_v13  ;;  %v8566_v13 = vld [vmem:[%s12040_s1 + $0x3f4] ss:$8 sps:$4 sm:$0xff]  }
 0x274   : > { %4637 = vmatprep.mubr.bf16.mxu0 %v10325_v55  ;;  %5391 = vmatpush1.bf16.msra.mxu0 %v8557_v2  ;;  %v10603_v3 = vld [vmem:[#allocation2 + $0xf0] sm:$0xff]  ;;  %v10666_v2 = vpop.f32.mrf.mxu1 }
 0x275   : > { %5392 = vmatprep.subr.bf16.mxu0 %v8579_v40  ;;  %v10610_v20 = vcombine.high %v10596_v47, %v10603_v3  ;;  %v10614_v8 = vcombine.low %v10596_v47, %v10603_v3  ;;  %v8563_v40 = vld [vmem:[#allocation2 + $0xa4] ss:$12 sps:$4 sm:$0xff]  }
 0x277   : > { %4574 = vmatprep.mubr.bf16.mxu1 %v10610_v20 }
 0x278   : > { %5393 = vmatpush1.bf16.msra.mxu0 %v8577_v5  ;;  %4575 = vmatmul.mubr.bf16.gmra.mxu1 %v10614_v8  ;;  %v8569_v5 = vld [vmem:[%s12040_s1 + $0x3e4] ss:$8 sps:$4 sm:$0xff]  }
 0x279   : > { %6179 = vmatprep.subr.bf16.mxu0 %v8598_v6  ;;  %5287 = vmatprep.mubr.bf16.mxu1 %v10331_v49  ;;  %v8546_v49 = vld [vmem:[#allocation2 + $0x74] ss:$12 sps:$4 sm:$0xff]   ;;  %v10676_v6 = vpop.f32.mrf.mxu1 }
 0x27a   : > { %v1729_v4 = vpop.permute.xlu1 %1728  ;;  %12133 = vst [vmem:[#allocation4_spill] sm:$0xff] %v10676_v6  ;;  %v8674_v6 = vld [vmem:[%s12040_s1 + $0x5b0] ss:$8 sps:$4 sm:$0xff]  }
 0x27b   : > { %v1722_v42 = vpop.permute.xlu0 %1721  ;;  %7958 = vmatmul.mubr.msk.bf16.gmra.mxu0 %vm231_vm0, %v8542_v46  ;;  %v1735_v26 = vsel %vm231_vm0, %v1724_v11, %v1729_v4 }
 0x27c   : > { %v1732_v14 = vsel %vm231_vm0, %v10216_v25, %v1722_v42  ;;  %4647 = vmatprep.mubr.bf16.mxu0 %v10325_v55  ;;  %v8550_v25 = vld [vmem:[%s12040_s1 + $0x420] ss:$8 sps:$4 sm:$0xff]  }
 0x27d   : > { %v7695_v51 = vcombine.low %v1732_v14, %v1735_v26  ;;  %v8567_v14 = vld [vmem:[%s12040_s1 + $0x3e0] ss:$8 sps:$4 sm:$0xff]  }
 0x27f   : > { %v1743_v58 = vrot.slane %v7695_v51, 5  ;;  %v8573_v51 = vld [vmem:[%s12040_s1 + $0x3d4] ss:$8 sps:$4 sm:$0xff]  }
 0x280   : > { %5288 = vmatmul.mubr.bf16.vlgmr.msra.gmra.mxu1 %v10334_v54  ;;  %v8554_v54 = vld [vmem:[%s12040_s1 + $0x410] ss:$8 sps:$4 sm:$0xff]  }
 0x281   : > { %v1745_v12 = vrot.slane %v1743_v58, 4  ;;  %1751 = vst [vmem:[#allocation2 + $0xfc] sm:$0x88] %v1743_v58  ;;  %5297 = vmatprep.mubr.bf16.mxu1 %v10393_v28  ;;  %6049 = vmatpush1.bf16.msra.mxu1 %v8547_v0  ;;  %v8553_v28 = vld [vmem:[#allocation2 + $0x8c] ss:$12 sps:$4 sm:$0xff]   ;;  %v10690_v0 = vpop.f32.mrf.mxu1 }
 0x282   : > { %6050 = vmatprep.subr.bf16.mxu1 %v8552_v56  ;;  %v8583_v56 = vld [vmem:[%s12040_s1 + $0x4b4] ss:$8 sps:$4 sm:$0xff]  }
 0x283   : > { %1753 = vst [vmem:[#allocation2 + $0x108] sm:$0x33] %v1745_v12  ;;  %7959 = vmatmul.mubr.msk.bf16.gmra.mxu0 %vm231_vm0, %v8546_v49  ;;  %v10699_v58 = vpop.f32.mrf.mxu1  ;;  %v8574_v49 = vld [vmem:[%s12040_s1 + $0x3c0] ss:$8 sps:$4 sm:$0xff]  }
 0x284   : > { %4657 = vmatprep.mubr.bf16.mxu0 %v10325_v55  ;;  %12134 = vst [vmem:[#allocation5_spill] sm:$0xff] %v10699_v58  ;;  %v8667_v58 = vld [vmem:[%s12040_s1 + $0x5c0] ss:$8 sps:$4 sm:$0xff]  }
 0x285   : > { %6051 = vmatpush1.bf16.msra.mxu1 %v8550_v25  ;;  %v10710_v12 = vpop.f32.mrf.mxu1 }
 0x286   : > { %6052 = vmatprep.subr.bf16.mxu1 %v8556_v50  ;;  %v8580_v50 = vld [vmem:[#allocation2 + $0xd4] ss:$12 sps:$4 sm:$0xff]  }
 0x288   : > { %5298 = vmatmul.mubr.bf16.gmra.mxu1 %v10416_v27  ;;  %v939_v27 = vrot.slane %v10303_v16, 1 }
 0x289   : > { %5307 = vmatprep.mubr.bf16.mxu1 %v10441_v61  ;;  %6053 = vmatpush1.bf16.msra.mxu1 %v8554_v54  ;;  %v8564_v61 = vld [vmem:[%s12040_s1 + $0x3f0] ss:$8 sps:$4 sm:$0xff]   ;;  %v8587_v54 = vld [vmem:[%s12040_s1 + $0x4a4] ss:$8 sps:$4 sm:$0xff]  }
 0x28a   : > { %6054 = vmatprep.subr.bf16.mxu1 %v8562_v7  ;;  %v10722_v7 = vpop.f32.mrf.mxu1 }
 0x28b   : > { %7960 = vmatmul.mubr.msk.bf16.gmra.mxu0 %vm231_vm0, %v8553_v28  ;;  %12135 = vst [vmem:[#allocation6_spill] sm:$0xff] %v10722_v7 }
 0x28c   : > { %4667 = vmatprep.mubr.bf16.mxu0 %v10325_v55 }
 0x28d   : > { %6055 = vmatpush1.bf16.msra.mxu1 %v8560_v48 }
 0x28e   : > { %6056 = vmatprep.subr.bf16.mxu1 %v8566_v13  ;;  %v8585_v13 = vld [vmem:[%s12040_s1 + $0x4a0] ss:$8 sps:$4 sm:$0xff]  }
 0x290   : > { %v944_v46 = vpop.permute.xlu1 %943  ;;  %v937_v11 = vpop.permute.xlu0 %936  ;;  %5308 = vmatmul.mubr.bf16.gmra.mxu1 %v10448_v9  ;;  %v8570_v9 = vld [vmem:[#allocation2 + $0xbc] ss:$12 sps:$4 sm:$0xff]  }
 0x291   : > { %v950_v4 = vsel %vm231_vm0, %v939_v27, %v944_v46  ;;  %v947_v42 = vsel %vm231_vm0, %v10303_v16, %v937_v11  ;;  %5317 = vmatprep.mubr.bf16.mxu1 %v10498_v52  ;;  %6057 = vmatpush1.bf16.msra.mxu1 %v8564_v61  ;;  %v8571_v16 = vld [vmem:[%s12040_s1 + $0x3d0] ss:$8 sps:$4 sm:$0xff]   ;;  %v8576_v52 = vld [vmem:[%s12040_s1 + $0x3c4] ss:$8 sps:$4 sm:$0xff]  }
 0x292   : > { %v7657_v26 = vcombine.low %v947_v42, %v950_v4  ;;  %6058 = vmatprep.subr.bf16.mxu1 %v8569_v5  ;;  %v8588_v46 = vld [vmem:[#allocation2 + $0xec] ss:$12 sps:$4 sm:$0xff]  }
 0x293   : > { %7961 = vmatmul.mubr.msk.bf16.gmra.mxu0 %vm231_vm0, %v8563_v40  ;;  %v8590_v40 = vld [vmem:[%s12040_s1 + $0x490] ss:$8 sps:$4 sm:$0xff]  }
 0x294   : > { %960 = vst [vmem:[#allocation2 + $0xfc] sm:$0x77] %v7657_v26  ;;  %4677 = vmatprep.mubr.bf16.mxu0 %v10325_v55  ;;  %v8593_v26 = vld [vmem:[%s12040_s1 + $0x480] ss:$8 sps:$4 sm:$0xff]  }
 0x295   : > { %6059 = vmatpush1.bf16.msra.mxu1 %v8567_v14 }
 0x296   : > { %6060 = vmatprep.subr.bf16.mxu1 %v8573_v51 }
 0x298   : > { %5318 = vmatmul.mubr.bf16.gmra.mxu1 %v10501_v41  ;;  %v8581_v41 = vld [vmem:[%s12040_s1 + $0x4b0] ss:$8 sps:$4 sm:$0xff]  }
 0x299   : > { %5327 = vmatprep.mubr.bf16.mxu1 %v10522_v19  ;;  %6061 = vmatpush1.bf16.msra.mxu1 %v8571_v16 }
 0x29a   : > { %6062 = vmatprep.subr.bf16.mxu1 %v8576_v52  ;;  %v2516_v52 = vrot.slane %v10401_v35, 1 }
 0x29b   : > { %7962 = vmatmul.mubr.msk.bf16.gmra.mxu0 %vm231_vm0, %v8570_v9  ;;  %v10713_v25 = vpop.f32.mrf.mxu0 }
 0x29c   : > { %4687 = vmatprep.mubr.bf16.mxu0 %v10325_v55 }
 0x29d   : > { %6063 = vmatpush1.bf16.msra.mxu1 %v8574_v49  ;;  %v3777_v19 = vpop.f32.mrf.mxu0  ;;  %v10774_v49 = vld [vmem:[#allocation2 + $0xfc] sm:$0xff] }
 0x29e   : > { %6064 = vmatprep.subr.bf16.mxu1 %v8583_v56  ;;  %v3901_v28 = vadd.f32 %v10474_v21, %v3777_v19  ;;  %v8592_v21 = vld [vmem:[%s12040_s1 + $0x494] ss:$8 sps:$4 sm:$0xff]   ;;  %v8600_v56 = vld [vmem:[%s12040_s1 + $0x470] ss:$8 sps:$4 sm:$0xff]  }
 0x29f   : > { %v10724_v48 = vpop.f32.mrf.mxu0  ;;  %v8599_v19 = vld [vmem:[#allocation2 + $0x50] ss:$12 sps:$4 sm:$0xff]  }
 0x2a0   : > { %5328 = vmatmul.mubr.bf16.gmra.mxu1 %v10531_v33  ;;  %3988 = vst.msk [vmem:[#allocation3 + $0x8] sm:$0xff] %vm231_vm0, %v3901_v28  ;;  %v10737_v33 = vpop.f32.mrf.mxu1 }
 0x2a1   : > { %5337 = vmatprep.mubr.bf16.mxu1 %v10540_v39  ;;  %6065 = vmatpush2.bf16.msra.mxu1 %v8581_v41  ;;  %v3781_v27 = vpop.f32.mrf.mxu0  ;;  %v8023_v41 = vcombine.low %v10542_v32, %v10596_v47 }
 0x2a2   : > { %6066 = vmatprep.subr.bf16.mxu1 %v8587_v54  ;;  %v3905_v61 = vadd.f32 %v10516_v34, %v3781_v27  ;;  %v8595_v34 = vld [vmem:[%s12040_s1 + $0x484] ss:$8 sps:$4 sm:$0xff]   ;;  %v10750_v4 = vpop.f32.mrf.mxu1 }
 0x2a3   : > { %7963 = vmatmul.mubr.msk.bf16.gmra.mxu0 %vm231_vm0, %v8580_v50  ;;  %v10740_v39 = vpop.f32.mrf.mxu0  ;;  %12136 = vst [vmem:[#allocation7_spill] sm:$0xff] %v10750_v4  ;;  %v8605_v50 = vld [vmem:[%s12040_s1 + $0x464] ss:$8 sps:$4 sm:$0xff]  }
 0x2a4   : > { %4697 = vmatprep.mubr.bf16.mxu0 %v10325_v55  ;;  %3990 = vst.msk [vmem:[#allocation3 + $0x18] sm:$0xff] %vm231_vm0, %v3905_v61  ;;  %v8024_v55 = vcombine.high %v10542_v32, %v10596_v47  ;;  %v10766_v16 = vpop.f32.mrf.mxu1  ;;  %v8596_v61 = vld [vmem:[%s12040_s1 + $0x4f0] ss:$8 sps:$4 sm:$0xff]  }
 0x2a5   : > { %6067 = vmatpush2.bf16.msra.mxu1 %v8585_v13  ;;  %v3787_v5 = vpop.f32.mrf.mxu0 }
 0x2a6   : > { %6068 = vmatprep.subr.bf16.mxu1 %v8592_v21  ;;  %v3911_v11 = vadd.f32 %v10536_v43, %v3787_v5  ;;  %v8602_v43 = vld [vmem:[%s12040_s1 + $0x474] ss:$8 sps:$4 sm:$0xff]   ;;  %v10786_v28 = vpop.f32.mrf.mxu1  ;;  %v8027_v21 = vcombine.high %v10603_v3, %v10774_v49 }
 0x2a7   : > { %v10754_v42 = vpop.f32.mrf.mxu0  ;;  %12137 = vst [vmem:[#allocation8_spill] sm:$0xff] %v10786_v28  ;;  %v11035_v28 = vld [vmem:[%s12040_s1 + $0x610] ss:$8 sps:$4 sm:$0xff]  }
 0x2a8   : > { %5338 = vmatmul.mubr.bf16.gmra.mxu1 %v10549_v37  ;;  %3992 = vst.msk [vmem:[#allocation3 + $0x28] sm:$0xff] %vm231_vm0, %v3911_v11  ;;  %v10768_v37 = vld [vmem:[#allocation2] sm:$0xff] }
 0x2a9   : > { %5347 = vmatprep.mubr.bf16.mxu1 %v8024_v55  ;;  %6069 = vmatpush2.bf16.msra.mxu1 %v8590_v40  ;;  %v3791_v14 = vpop.f32.mrf.mxu0  ;;  %v8619_v55 = vld [vmem:[%s12040_s1 + $0x4e0] ss:$8 sps:$4 sm:$0xff]  }
 0x2aa   : > { %6070 = vmatprep.subr.bf16.mxu1 %v8595_v34  ;;  %v3915_v51 = vadd.f32 %v10555_v62, %v3791_v14  ;;  %v10814_v14 = vpop.f32.mrf.mxu1 }
 0x2ab   : > { %7964 = vmatmul.mubr.msk.bf16.gmra.mxu0 %vm231_vm0, %v8588_v46  ;;  %v10771_v9 = vpop.f32.mrf.mxu0  ;;  %v8603_v46 = vld [vmem:[%s12040_s1 + $0x460] ss:$8 sps:$4 sm:$0xff]  }
 0x2ac   : > { %5410 = vmatprep.mubr.bf16.mxu0 %v10768_v37  ;;  %3994 = vst.msk [vmem:[#allocation3 + $0x38] sm:$0xff] %vm231_vm0, %v3915_v51 }
 0x2ad   : > { %6071 = vmatpush2.bf16.msra.mxu1 %v8593_v26  ;;  %v3797_v62 = vpop.f32.mrf.mxu0 }
 0x2ae   : > { %6072 = vmatprep.subr.bf16.mxu1 %v8602_v43  ;;  %v3921_v54 = vadd.f32 %v10576_v36, %v3797_v62  ;;  %v8621_v36 = vld [vmem:[%s12040_s1 + $0x4e4] ss:$8 sps:$4 sm:$0xff]   ;;  %v8635_v43 = vld [vmem:[%s12040_s1 + $0x4d4] ss:$8 sps:$4 sm:$0xff]  }
 0x2af   : > { %v10800_v40 = vpop.f32.mrf.mxu0  ;;  %v8617_v62 = vld [vmem:[%s12040_s1 + $0x444] ss:$8 sps:$4 sm:$0xff]  }
 0x2b0   : > { %v2521_v13 = vpop.permute.xlu1 %2520  ;;  %5348 = vmatmul.mubr.bf16.gmra.mxu1 %v8023_v41  ;;  %3996 = vst.msk [vmem:[#allocation3 + $0x48] sm:$0xff] %vm231_vm0, %v3921_v54  ;;  %v10828_v41 = vpop.f32.mrf.mxu1  ;;  %v8625_v54 = vld [vmem:[%s12040_s1 + $0x574] ss:$8 sps:$4 sm:$0xff]  }
 0x2b1   : > { %v2514_v27 = vpop.permute.xlu0 %2513  ;;  %v2527_v32 = vsel %vm231_vm0, %v2516_v52, %v2521_v13  ;;  %5357 = vmatprep.mubr.bf16.mxu1 %v8027_v21  ;;  %6073 = vmatpush2.bf16.msra.mxu1 %v8600_v56  ;;  %v3801_v34 = vpop.f32.mrf.mxu0  ;;  %v8609_v52 = vld [vmem:[%s12040_s1 + $0x450] ss:$8 sps:$4 sm:$0xff]   ;;  %v8026_v56 = vcombine.low %v10603_v3, %v10774_v49  ;;  %12138 = vst [vmem:[#allocation9_spill] sm:$0xff] %v10828_v41  ;;  %v8655_v3 = vld [vmem:[%s12040_s1 + $0x4c4] ss:$8 sps:$4 sm:$0xff]  }
 0x2b2   : > { %v2524_v47 = vsel %vm231_vm0, %v10401_v35, %v2514_v27  ;;  %6074 = vmatprep.subr.bf16.mxu1 %v8605_v50  ;;  %v8611_v35 = vld [vmem:[%s12040_s1 + $0x454] ss:$8 sps:$4 sm:$0xff]   ;;  %v3925_v26 = vadd.f32 %v10594_v24, %v3801_v34  ;;  %v8615_v50 = vld [vmem:[%s12040_s1 + $0x440] ss:$8 sps:$4 sm:$0xff]   ;;  %v10844_v13 = vpop.f32.mrf.mxu1 }
 0x2b3   : > { %v7733_v5 = vcombine.low %v2524_v47, %v2527_v32  ;;  %8072 = vmatmul.mubr.msk.bf16.vlgmr.msra.gmra.mxu0 %vm231_vm0, %v8599_v19  ;;  %v8608_v24 = vld [vmem:[#allocation2 + $0x68] ss:$12 sps:$4 sm:$0xff]   ;;  %v8633_v19 = vld [vmem:[%s12040_s1 + $0x4d0] ss:$8 sps:$4 sm:$0xff]   ;;  %v3278_v32 = vrot.slane %v10477_v22, 1 }
 0x2b4   : > { %6180 = vmatpush1.bf16.msra.mxu0 %v8596_v61  ;;  %5420 = vmatprep.mubr.bf16.mxu0 %v10768_v37  ;;  %3998 = vst.msk [vmem:[#allocation3 + $0x58] sm:$0xff] %vm231_vm0, %v3925_v26  ;;  %v8653_v27 = vld [vmem:[%s12040_s1 + $0x4c0] ss:$8 sps:$4 sm:$0xff]   ;;  %v10852_v21 = vld [vmem:[%s12040_s1 + $0x634] ss:$8 sps:$4 sm:$0xff]   ;;  %v3972_v47 = vpop.f32.mrf.mxu1 }
 0x2b5   : > { %v2535_v11 = vrot.slane %v7733_v5, 6  ;;  %6181 = vmatprep.subr.bf16.mxu0 %v8621_v36  ;;  %6075 = vmatpush2.bf16.msra.mxu1 %v8603_v46  ;;  %v8618_v61 = vld [vmem:[#allocation2 + $0x80] ss:$12 sps:$4 sm:$0xff]   ;;  %v8622_v26 = vld [vmem:[#allocation2 + $0x98] ss:$12 sps:$4 sm:$0xff]  }
 0x2b6   : > { %6076 = vmatprep.subr.bf16.mxu1 %v8611_v35  ;;  %v10861_v34 = vpop.f32.mrf.mxu1  ;;  %v5613_v47 = vld [vmem:[#allocation2 + $0x84] sm:$0xff] }
 0x2b7   : > { %v2537_v51 = vrot.slane %v2535_v11, 4  ;;  %2543 = vst [vmem:[#allocation2 + $0x108] sm:$0xcc] %v2535_v11 }
 0x2b8   : > { %6182 = vmatpush1.bf16.msra.mxu0 %v8619_v55  ;;  %5358 = vmatmul.mubr.bf16.gmra.mxu1 %v8026_v56  ;;  %v8629_v56 = vld [vmem:[#allocation2 + $0xb0] ss:$12 sps:$4 sm:$0xff]  }
 0x2b9   : > { %2545 = vst [vmem:[#allocation2 + $0x114] sm:$0x11] %v2537_v51  ;;  %6183 = vmatprep.subr.bf16.mxu0 %v8635_v43  ;;  %6077 = vmatpush2.bf16.msra.mxu1 %v8609_v52  ;;  %v3978_v43 = vpop.f32.mrf.mxu1 }
 0x2ba   : > { %6078 = vmatprep.subr.bf16.mxu1 %v8617_v62 }
 0x2bb   : > { %8073 = vmatmul.mubr.msk.bf16.gmra.mxu0 %vm231_vm0, %v8608_v24  ;;  %v10865_v51 = vpop.f32.mrf.mxu1 }
 0x2bc   : > { %5430 = vmatprep.mubr.bf16.mxu0 %v10768_v37  ;;  %6184 = vmatpush1.bf16.msra.mxu0 %v8633_v19 }
 0x2bd   : > { %6185 = vmatprep.subr.bf16.mxu0 %v8655_v3  ;;  %6079 = vmatpush2.bf16.msra.mxu1 %v8615_v50  ;;  %v8614_v3 = vld [vmem:[#allocation2 + $0x70] ss:$12 sps:$4 sm:$0xff]  }
 0x2be   : > { %6841 = vmatprep.subr.bf16.mxu1 %v8625_v54  ;;  %v10867_v52 = vld [vmem:[#allocation2 + $0x108] sm:$0xff] }
 0x2bf   : > { %v8639_v54 = vld [vmem:[#allocation2 + $0xc8] ss:$12 sps:$4 sm:$0xff]  }
 0x2c0   : > { %6186 = vmatpush1.bf16.msra.mxu0 %v8653_v27 }
 0x2c1   : > { %6972 = vmatprep.subr.bf16.mxu0 %v10852_v21 }
 0x2c3   : > { %v3283_v36 = vpop.permute.xlu1 %3282  ;;  %8074 = vmatmul.mubr.msk.bf16.gmra.mxu0 %vm231_vm0, %v8618_v61  ;;  %v8623_v61 = vld [vmem:[%s12040_s1 + $0x570] ss:$8 sps:$4 sm:$0xff]  }
 0x2c4   : > { %v3276_v5 = vpop.permute.xlu0 %3275  ;;  %v3289_v46 = vsel %vm231_vm0, %v3278_v32, %v3283_v36  ;;  %5440 = vmatprep.mubr.bf16.mxu0 %v10768_v37  ;;  %v8612_v32 = vld [vmem:[#allocation2 + $0x6c] ss:$12 sps:$4 sm:$0xff]  }
 0x2c5   : > { %v3286_v35 = vsel %vm231_vm0, %v10477_v22, %v3276_v5  ;;  %v3982_v22 = vpop.f32.mrf.mxu1  ;;  %v8628_v36 = vld [vmem:[%s12040_s1 + $0x564] ss:$8 sps:$4 sm:$0xff]   ;;  %v8125_v5 = vcombine.high %v5613_v47, %v10489_v23 }
 0x2c6   : > { %v7771_v11 = vcombine.low %v3286_v35, %v3289_v46  ;;  %v8626_v35 = vld [vmem:[%s12040_s1 + $0x560] ss:$8 sps:$4 sm:$0xff]   ;;  %v8124_v22 = vcombine.low %v5613_v47, %v10489_v23 }
 0x2c7   : > { %v10883_v50 = vpop.f32.mrf.mxu1  ;;  %v8636_v47 = vld [vmem:[%s12040_s1 + $0x540] ss:$8 sps:$4 sm:$0xff]  }
 0x2c8   : > { %v3297_v55 = vrot.slane %v7771_v11, 7  ;;  %v8632_v11 = vld [vmem:[%s12040_s1 + $0x554] ss:$8 sps:$4 sm:$0xff]  }
 0x2c9   : > { %v10885_v27 = vpop.f32.mrf.mxu1 }
 0x2ca   : > { %3301 = vst [vmem:[#allocation2 + $0x114] sm:$0xee] %v3297_v55  ;;  %v8646_v55 = vld [vmem:[#allocation2 + $0xe0] ss:$12 sps:$4 sm:$0xff]  }
 0x2cb   : > { %8075 = vmatmul.mubr.msk.bf16.gmra.mxu0 %vm231_vm0, %v8622_v26  ;;  %v10896_v46 = vpop.f32.mrf.mxu1 }
 0x2cc   : > { %5450 = vmatprep.mubr.bf16.mxu0 %v10768_v37 }
 0x2cd   : > { %v10904_v26 = vpop.f32.mrf.mxu1 }
 0x2d1   : > { %v10869_v24 = vld [vmem:[#allocation2 + $0x114] sm:$0xff] }
 0x2d2   : > { %v10873_v62 = vcombine.high %v10867_v52, %v10869_v24  ;;  %v10877_v19 = vcombine.low %v10867_v52, %v10869_v24 }
 0x2d3   : > { %8076 = vmatmul.mubr.msk.bf16.gmra.mxu0 %vm231_vm0, %v8629_v56  ;;  %v8630_v56 = vld [vmem:[%s12040_s1 + $0x550] ss:$8 sps:$4 sm:$0xff]  }
 0x2d4   : > { %12139 = vst [vmem:[#allocation10_spill] sm:$0xff] %v10877_v19  ;;  %5367 = vmatprep.mubr.bf16.mxu1 %v10873_v62  ;;  %5460 = vmatprep.mubr.bf16.mxu0 %v10768_v37 }
 0x2d5   : > { %5368 = vmatmul.mubr.bf16.gmra.mxu1 %v10877_v19 }
 0x2d6   : > { %6080 = vmatprep.mubr.bf16.mxu1 %v8614_v3  ;;  %v10912_v3 = vld [vmem:[#allocation2 + $0x9c] sm:$0xff] }
 0x2db   : > { %8077 = vmatmul.mubr.msk.bf16.gmra.mxu0 %vm231_vm0, %v8639_v54  ;;  %v8638_v54 = vld [vmem:[%s12040_s1 + $0x544] ss:$8 sps:$4 sm:$0xff]  }
 0x2dc   : > { %5470 = vmatprep.mubr.bf16.mxu0 %v10768_v37 }
 0x2dd   : > { %6081 = vmatmul.mubr.bf16.vlgmr.msra.gmra.mxu1 %v8612_v32  ;;  %v8128_v32 = vcombine.high %v10912_v3, %v10514_v53 }
 0x2de   : > { %6090 = vmatprep.mubr.bf16.mxu1 %v8125_v5  ;;  %6842 = vmatpush1.bf16.msra.mxu1 %v8623_v61  ;;  %v10922_v5 = vpop.f32.mrf.mxu1 }
 0x2df   : > { %6843 = vmatprep.subr.bf16.mxu1 %v8628_v36 }
 0x2e0   : > { %v10906_v43 = vpop.f32.mrf.mxu0 }
 0x2e2   : > { %6844 = vmatpush1.bf16.msra.mxu1 %v8626_v35  ;;  %v3807_v61 = vpop.f32.mrf.mxu0 }
 0x2e3   : > { %6845 = vmatprep.subr.bf16.mxu1 %v8632_v11  ;;  %8078 = vmatmul.mubr.msk.bf16.gmra.mxu0 %vm231_vm0, %v8646_v55  ;;  %v3931_v36 = vadd.f32 %v10622_v1, %v3807_v61  ;;  %v8642_v1 = vld [vmem:[%s12040_s1 + $0x534] ss:$8 sps:$4 sm:$0xff]   ;;  %v8656_v11 = vld [vmem:[#allocation2 + $0xf8] ss:$12 sps:$4 sm:$0xff]  }
 0x2e4   : > { %5480 = vmatprep.mubr.bf16.mxu0 %v10768_v37  ;;  %v10924_v23 = vpop.f32.mrf.mxu0  ;;  %v8645_v61 = vld [vmem:[%s12040_s1 + $0x524] ss:$8 sps:$4 sm:$0xff]  }
 0x2e5   : > { %6091 = vmatmul.mubr.bf16.gmra.mxu1 %v8124_v22  ;;  %4000 = vst.msk [vmem:[#allocation3 + $0x68] sm:$0xff] %vm231_vm0, %v3931_v36  ;;  %v10934_v22 = vpop.f32.mrf.mxu1  ;;  %v8663_v36 = vld [vmem:[#allocation2 + $0x110] ss:$12 sps:$4 sm:$0xff]  }
 0x2e6   : > { %6100 = vmatprep.mubr.bf16.mxu1 %v8128_v32  ;;  %6846 = vmatpush1.bf16.msra.mxu1 %v8630_v56  ;;  %v3811_v35 = vpop.f32.mrf.mxu0  ;;  %v8640_v56 = vld [vmem:[%s12040_s1 + $0x530] ss:$8 sps:$4 sm:$0xff]   ;;  %v8643_v32 = vld [vmem:[%s12040_s1 + $0x520] ss:$8 sps:$4 sm:$0xff]  }
 0x2e7   : > { %6847 = vmatprep.subr.bf16.mxu1 %v8638_v54  ;;  %v3935_v55 = vadd.f32 %v10646_v44, %v3811_v35  ;;  %v8127_v54 = vcombine.low %v10912_v3, %v10514_v53  ;;  %v10946_v44 = vpop.f32.mrf.mxu1  ;;  %v8649_v53 = vld [vmem:[%s12040_s1 + $0x514] ss:$8 sps:$4 sm:$0xff]  }
 0x2e9   : > { %4002 = vst.msk [vmem:[#allocation3 + $0x78] sm:$0xff] %vm231_vm0, %v3935_v55  ;;  %v8659_v55 = vld [vmem:[%s12040_s1 + $0x5f4] ss:$8 sps:$4 sm:$0xff]  }
 0x2ea   : > { %6848 = vmatpush1.bf16.msra.mxu1 %v8636_v47  ;;  %v10956_v47 = vpop.f32.mrf.mxu1 }
 0x2eb   : > { %6849 = vmatprep.subr.bf16.mxu1 %v8642_v1  ;;  %8079 = vmatmul.mubr.msk.bf16.gmra.mxu0 %vm231_vm0, %v8656_v11  ;;  %v8647_v1 = vld [vmem:[%s12040_s1 + $0x510] ss:$8 sps:$4 sm:$0xff]   ;;  %v8650_v11 = vld [vmem:[%s12040_s1 + $0x500] ss:$8 sps:$4 sm:$0xff]  }
 0x2ec   : > { %5490 = vmatprep.mubr.bf16.mxu0 %v10768_v37  ;;  %v10966_v35 = vpop.f32.mrf.mxu1 }
 0x2ed   : > { %6101 = vmatmul.mubr.bf16.gmra.mxu1 %v8127_v54  ;;  %v8673_v54 = vld [vmem:[#allocation2 + $0x74] ss:$12 sps:$4 sm:$0xff]  }
 0x2ee   : > { %6110 = vmatprep.mubr.bf16.mxu1 %v10534_v63  ;;  %6850 = vmatpush1.bf16.msra.mxu1 %v8640_v56  ;;  %v8652_v63 = vld [vmem:[%s12040_s1 + $0x504] ss:$8 sps:$4 sm:$0xff]   ;;  %v10976_v56 = vpop.f32.mrf.mxu1 }
 0x2ef   : > { %6851 = vmatprep.subr.bf16.mxu1 %v8645_v61  ;;  %v8662_v61 = vld [vmem:[%s12040_s1 + $0x5e4] ss:$8 sps:$4 sm:$0xff]  }
 0x2f2   : > { %6852 = vmatpush1.bf16.msra.mxu1 %v8643_v32  ;;  %v10989_v32 = vpop.f32.mrf.mxu1 }
 0x2f3   : > { %6853 = vmatprep.subr.bf16.mxu1 %v8649_v53  ;;  %8080 = vmatmul.mubr.msk.bf16.gmra.mxu0 %vm231_vm0, %v8663_v36  ;;  %v10995_v53 = vld [vmem:[%s12040_s1 + $0x624] ss:$8 sps:$4 sm:$0xff]   ;;  %v11002_v36 = vld [vmem:[%s12040_s1 + $0x620] ss:$8 sps:$4 sm:$0xff]  }
 0x2f4   : > { %6203 = vmatprep.mubr.bf16.mxu0 %v10768_v37 }
 0x2f5   : > { %6111 = vmatmul.mubr.bf16.gmra.mxu1 %v10544_v17  ;;  %v10981_v17 = vld [vmem:[%s12040_s1 + $0x630] ss:$8 sps:$4 sm:$0xff]  }
 0x2f6   : > { %6120 = vmatprep.mubr.bf16.mxu1 %v10552_v18  ;;  %6854 = vmatpush1.bf16.msra.mxu1 %v8647_v1  ;;  %v8657_v18 = vld [vmem:[%s12040_s1 + $0x5f0] ss:$8 sps:$4 sm:$0xff]   ;;  %v8660_v1 = vld [vmem:[%s12040_s1 + $0x5e0] ss:$8 sps:$4 sm:$0xff]  }
 0x2f7   : > { %6855 = vmatprep.subr.bf16.mxu1 %v8652_v63  ;;  %v11011_v63 = vld [vmem:[%s12040_s1 + $0x614] ss:$8 sps:$4 sm:$0xff]  }
 0x2fa   : > { %6856 = vmatpush1.bf16.msra.mxu1 %v8650_v11  ;;  %v11016_v11 = vpop.f32.mrf.mxu1 }
 0x2fb   : > { %6857 = vmatprep.subr.bf16.mxu1 %v8659_v55  ;;  %8188 = vmatmul.mubr.msk.bf16.vlgmr.msra.gmra.mxu0 %vm231_vm0, %v8673_v54  ;;  %v8664_v54 = vld [vmem:[%s12040_s1 + $0x5d0] ss:$8 sps:$4 sm:$0xff]  }
 0x2fc   : > { %6973 = vmatpush1.bf16.msra.mxu0 %v10981_v17  ;;  %6213 = vmatprep.mubr.bf16.mxu0 %v10768_v37  ;;  %v11030_v41 = vpop.f32.mrf.mxu1 }
 0x2fd   : > { %6121 = vmatmul.mubr.bf16.gmra.mxu1 %v10562_v15  ;;  %v8666_v15 = vld [vmem:[%s12040_s1 + $0x5d4] ss:$8 sps:$4 sm:$0xff]   ;;  %6974 = vmatprep.subr.bf16.mxu0 %v10995_v53 }
 0x2fe   : > { %6130 = vmatprep.mubr.bf16.mxu1 %v10610_v20  ;;  %6858 = vmatpush2.bf16.msra.mxu1 %v8657_v18  ;;  %v8680_v20 = vld [vmem:[#allocation2 + $0x8c] ss:$12 sps:$4 sm:$0xff]  }
 0x2ff   : > { %6859 = vmatprep.subr.bf16.mxu1 %v8662_v61  ;;  %v8669_v18 = vld [vmem:[%s12040_s1 + $0x5c4] ss:$8 sps:$4 sm:$0xff]  }
 0x300   : > { %6975 = vmatpush1.bf16.msra.mxu0 %v11002_v36 }
 0x301   : > { %v11020_v55 = vpop.f32.mrf.mxu0  ;;  %6976 = vmatprep.subr.bf16.mxu0 %v11011_v63 }
 0x302   : > { %6860 = vmatpush2.bf16.msra.mxu1 %v8660_v1  ;;  %v8140_v1 = vcombine.high %v10774_v49, %v10867_v52 }
 0x303   : > { %6861 = vmatprep.subr.bf16.mxu1 %v8666_v15  ;;  %v3817_v61 = vpop.f32.mrf.mxu0  ;;  %8189 = vmatmul.mubr.msk.bf16.gmra.mxu0 %vm231_vm0, %v8680_v20  ;;  %v11044_v15 = vld [vmem:[%s12040_s1 + $0x604] ss:$8 sps:$4 sm:$0xff]  }
 0x304   : > { %v3941_v4 = vadd.f32 %v10666_v2, %v3817_v61  ;;  %6223 = vmatprep.mubr.bf16.mxu0 %v10768_v37  ;;  %v8676_v2 = vld [vmem:[%s12040_s1 + $0x5b4] ss:$8 sps:$4 sm:$0xff]   ;;  %6977 = vmatpush1.bf16.msra.mxu0 %v11035_v28 }
 0x305   : > { %6131 = vmatmul.mubr.bf16.gmra.mxu1 %v10614_v8  ;;  %v11047_v7 = vpop.f32.mrf.mxu0  ;;  %v11063_v8 = vld [vmem:[%s12040_s1 + $0x600] ss:$8 sps:$4 sm:$0xff]   ;;  %6978 = vmatprep.subr.bf16.mxu0 %v11044_v15 }
 0x306   : > { %12140 = vst [vmem:[#allocation11_spill] sm:$0xff] %v11047_v7  ;;  %6140 = vmatprep.mubr.bf16.mxu1 %v8140_v1  ;;  %6862 = vmatpush2.bf16.msra.mxu1 %v8664_v54  ;;  %4004 = vst.msk [vmem:[#allocation3 + $0x88] sm:$0xff] %vm231_vm0, %v3941_v4  ;;  %v11057_v61 = vpop.f32.mrf.mxu1  ;;  %v8687_v1 = vld [vmem:[#allocation2 + $0xa4] ss:$12 sps:$4 sm:$0xff]   ;;  %v8139_v7 = vcombine.low %v10774_v49, %v10867_v52  ;;  %v8677_v52 = vld [vmem:[%s12040_s1 + $0x5a0] ss:$8 sps:$4 sm:$0xff]  }
 0x307   : > { %6863 = vmatprep.subr.bf16.mxu1 %v8669_v18  ;;  %v3821_v20 = vpop.f32.mrf.mxu0 }
 0x308   : > { %v3945_v54 = vadd.f32 %v10690_v0, %v3821_v20  ;;  %v11067_v4 = vpop.f32.mrf.mxu1  ;;  %v8679_v0 = vld [vmem:[%s12040_s1 + $0x5a4] ss:$8 sps:$4 sm:$0xff]   ;;  %6979 = vmatpush1.bf16.msra.mxu0 %v11063_v8 }
 0x309   : > { %v11069_v18 = vpop.f32.mrf.mxu0 }
 0x30a   : > { %12141 = vst [vmem:[#allocation12_spill] sm:$0xff] %v11069_v18  ;;  %6864 = vmatpush2.bf16.msra.mxu1 %v8667_v58  ;;  %4006 = vst.msk [vmem:[#allocation3 + $0x98] sm:$0xff] %vm231_vm0, %v3945_v54  ;;  %v8143_v58 = vcombine.high %v10869_v24, %v10768_v37  ;;  %v11085_v54 = vpop.f32.mrf.mxu1 }
 0x30b   : > { %6865 = vmatprep.subr.bf16.mxu1 %v8676_v2  ;;  %v3827_v20 = vpop.f32.mrf.mxu0  ;;  %8190 = vmatmul.mubr.msk.bf16.gmra.mxu0 %vm231_vm0, %v8687_v1  ;;  %v8694_v1 = vld [vmem:[#allocation2 + $0xbc] ss:$12 sps:$4 sm:$0xff]  }
 0x30c   : > { %v3951_v18 = vadd.f32 %v10710_v12, %v3827_v20  ;;  %6233 = vmatprep.mubr.bf16.mxu0 %v10768_v37  ;;  %v8683_v12 = vld [vmem:[%s12040_s1 + $0x594] ss:$8 sps:$4 sm:$0xff]   ;;  %v11098_v20 = vpop.f32.mrf.mxu1 }
 0x30d   : > { %6141 = vmatmul.mubr.bf16.gmra.mxu1 %v8139_v7  ;;  %v11087_v19 = vpop.f32.mrf.mxu0 }
 0x30e   : > { %12142 = vst [vmem:[#allocation13_spill] sm:$0xff] %v11087_v19  ;;  %6150 = vmatprep.mubr.bf16.mxu1 %v8143_v58  ;;  %6866 = vmatpush2.bf16.msra.mxu1 %v8674_v6  ;;  %4008 = vst.msk [vmem:[#allocation3 + $0xa8] sm:$0xff] %vm231_vm0, %v3951_v18  ;;  %v11102_v6 = vcombine.high %v10768_v37, %v10768_v37  ;;  %v8681_v18 = vld [vmem:[%s12040_s1 + $0x590] ss:$8 sps:$4 sm:$0xff]  }
 0x30f   : > { %6867 = vmatprep.subr.bf16.mxu1 %v8679_v0  ;;  %v3831_v7 = vpop.f32.mrf.mxu0  ;;  %v8142_v0 = vcombine.low %v10869_v24, %v10768_v37  ;;  %v8684_v24 = vld [vmem:[%s12040_s1 + $0x580] ss:$8 sps:$4 sm:$0xff]  }
 0x310   : > { %v3955_v2 = vadd.f32 %v10737_v33, %v3831_v7  ;;  %12143 = vst [vmem:[#allocation14_spill] sm:$0xff] %v11102_v6  ;;  %v8686_v33 = vld [vmem:[%s12040_s1 + $0x584] ss:$8 sps:$4 sm:$0xff]  }
 0x312   : > { %6868 = vmatpush2.bf16.msra.mxu1 %v8677_v52  ;;  %4010 = vst.msk [vmem:[#allocation3 + $0xb8] sm:$0xff] %vm231_vm0, %v3955_v2  ;;  %v11113_v58 = vpop.f32.mrf.mxu1 }
 0x313   : > { %6869 = vmatprep.subr.bf16.mxu1 %v8683_v12  ;;  %12144 = vst [vmem:[#allocation15_spill] sm:$0xff] %v11113_v58  ;;  %v11115_v52 = vpop.f32.mrf.mxu0  ;;  %8191 = vmatmul.mubr.msk.bf16.gmra.mxu0 %vm231_vm0, %v8694_v1  ;;  %v8698_v1 = vld [vmem:[#allocation2 + $0xd4] ss:$12 sps:$4 sm:$0xff]  }
 0x314   : > { %12145 = vst [vmem:[#allocation16_spill] sm:$0xff] %v11115_v52  ;;  %v11118_v7 = vpop.f32.mrf.mxu1  ;;  %6243 = vmatprep.mubr.bf16.mxu0 %v10768_v37 }
 0x315   : > { %6151 = vmatmul.mubr.bf16.gmra.mxu1 %v8142_v0  ;;  %12146 = vst [vmem:[#allocation17_spill] sm:$0xff] %v11118_v7  ;;  %v3837_v12 = vpop.f32.mrf.mxu0  ;;  %v11132_v0 = vcombine.low %v10768_v37, %v10768_v37  ;;  %v6402_v7 = vld [vmem:[#allocation2 + $0x90] sm:$0xff] }
 0x316   : > { %6160 = vmatprep.mubr.bf16.mxu1 %v11102_v6  ;;  %6870 = vmatpush2.bf16.msra.mxu1 %v8681_v18  ;;  %v3961_v2 = vadd.f32 %v10766_v16, %v3837_v12  ;;  %v11126_v19 = vpop.f32.mrf.mxu1  ;;  %v8238_v16 = vcombine.high %v6402_v7, %v10912_v3 }
 0x317   : > { %6871 = vmatprep.subr.bf16.mxu1 %v8686_v33  ;;  %v11128_v52 = vpop.f32.mrf.mxu0  ;;  %12148 = vst [vmem:[#allocation19_spill] sm:$0xff] %v11132_v0 }
 0x318   : > { %12147 = vst [vmem:[#allocation18_spill] sm:$0xff] %v11128_v52  ;;  %4012 = vst.msk [vmem:[#allocation3 + $0xc8] sm:$0xff] %vm231_vm0, %v3961_v2  ;;  %v11135_v18 = vpop.f32.mrf.mxu1  ;;  %v8705_v52 = vld [vmem:[#allocation2 + $0xec] ss:$12 sps:$4 sm:$0xff]  }
 0x319   : > { %v3841_v6 = vpop.f32.mrf.mxu0 }
 0x31a   : > { %6872 = vmatpush2.bf16.msra.mxu1 %v8684_v24  ;;  %v3965_v33 = vadd.f32 %v10814_v14, %v3841_v6  ;;  %v11138_v58 = vpop.f32.mrf.mxu1 }
 0x31b   : > { %12149 = vst [vmem:[#allocation20_spill] sm:$0xff] %v11138_v58  ;;  %8319 = vmatprep.subr.bf16.mxu1 %v10852_v21  ;;  %v11142_v12 = vpop.f32.mrf.mxu0  ;;  %8192 = vmatmul.mubr.msk.bf16.gmra.mxu0 %vm231_vm0, %v8698_v1  ;;  %v8237_v58 = vcombine.low %v6402_v7, %v10912_v3 }
 0x31c   : > { %12150 = vst [vmem:[#allocation21_spill] sm:$0xff] %v11142_v12  ;;  %4014 = vst.msk [vmem:[#allocation3 + $0xd8] sm:$0xff] %vm231_vm0, %v3965_v33  ;;  %v11147_v2 = vpop.f32.mrf.mxu1  ;;  %6253 = vmatprep.mubr.bf16.mxu0 %v10768_v37 }
 0x31d   : > { %6161 = vmatmul.mubr.bf16.gmra.mxu1 %v11132_v0  ;;  %12151 = vst [vmem:[#allocation22_spill] sm:$0xff] %v11147_v2  ;;  %v3847_v14 = vpop.f32.mrf.mxu0  ;;  %v8690_v0 = vld [vmem:[#allocation2 + $0xac] ss:$12 sps:$4 sm:$0xff]  }
 0x31e   : > { %6873 = vmatprep.mubr.bf16.mxu1 %v8238_v16  ;;  %v11150_v6 = vpop.f32.mrf.mxu1  ;;  %v3971_v21 = vadd.f32 %v10844_v13, %v3847_v14 }
 0x31f   : > { %v3849_v24 = vpop.f32.mrf.mxu0 }
 0x320   : > { %4016 = vst.msk [vmem:[#allocation3 + $0xe8] sm:$0xff] %vm231_vm0, %v3971_v21  ;;  %v11154_v12 = vpop.f32.mrf.mxu1  ;;  %v8706_v21 = vld [vmem:[#allocation2 + $0x104] ss:$12 sps:$4 sm:$0xff]   ;;  %v8688_v24 = vld [vmem:[#allocation2 + $0xa8] ss:$12 sps:$4 sm:$0xff]  }
 0x321   : > { %v3851_v1 = vpop.f32.mrf.mxu0 }
 0x322   : > { %v3975_v33 = vadd.f32 %v10861_v34, %v3851_v1  ;;  %v11158_v2 = vpop.f32.mrf.mxu1 }
 0x323   : > { %v3855_v16 = vpop.f32.mrf.mxu0  ;;  %8193 = vmatmul.mubr.msk.bf16.gmra.mxu0 %vm231_vm0, %v8705_v52 }
 0x324   : > { %4018 = vst.msk [vmem:[#allocation3 + $0xf8] sm:$0xff] %vm231_vm0, %v3975_v33  ;;  %v11162_v13 = vpop.f32.mrf.mxu1  ;;  %6263 = vmatprep.mubr.bf16.mxu0 %v10768_v37 }
 0x325   : > { %6874 = vmatmul.mubr.bf16.vlgmr.msra.gmra.mxu1 %v8237_v58  ;;  %v3857_v14 = vpop.f32.mrf.mxu0 }
 0x326   : > { %6883 = vmatprep.mubr.bf16.mxu1 %v8690_v0  ;;  %8323 = vmatpush1.bf16.msra.mxu1 %v10981_v17  ;;  %v11166_v3 = vpop.f32.mrf.mxu1  ;;  %v3981_v34 = vadd.f32 %v10865_v51, %v3857_v14  ;;  %v8697_v17 = vld [vmem:[#allocation2 + $0xc4] ss:$12 sps:$4 sm:$0xff]   ;;  %v8710_v14 = vld [vmem:[#allocation2 + $0x11c] ss:$12 sps:$4 sm:$0xff]  }
 0x327   : > { %8320 = vmatprep.subr.bf16.mxu1 %v10995_v53  ;;  %v3859_v7 = vpop.f32.mrf.mxu0  ;;  %v3899_v53 = vadd.f32 %v10450_v45, %v10713_v25  ;;  %v4709_v45 = vld [vmem:[#allocation3 + $0x8] sm:$0xff] }
 0x328   : > { %4020 = vst.msk [vmem:[#allocation3 + $0x108] sm:$0xff] %vm231_vm0, %v3981_v34  ;;  %v11171_v58 = vpop.f32.mrf.mxu1 }
 0x329   : > { %v3861_v52 = vpop.f32.mrf.mxu0 }
 0x32a   : > { %8324 = vmatpush1.bf16.msra.mxu1 %v11002_v36  ;;  %v3985_v0 = vadd.f32 %v10883_v50, %v3861_v52  ;;  %v11176_v1 = vpop.f32.mrf.mxu1  ;;  %v8701_v52 = vld [vmem:[#allocation2 + $0xdc] ss:$12 sps:$4 sm:$0xff]  }
 0x32b   : > { %8321 = vmatprep.subr.bf16.mxu1 %v11011_v63  ;;  %v4619_v51 = vpop.f32.mrf.mxu0  ;;  %8194 = vmatmul.mubr.msk.bf16.gmra.mxu0 %vm231_vm0, %v8706_v21 }
 0x32c   : > { %4022 = vst.msk [vmem:[#allocation3 + $0x118] sm:$0xff] %vm231_vm0, %v3985_v0  ;;  %v4620_v33 = vadd.f32 %v4619_v51, %v10885_v27  ;;  %6273 = vmatprep.mubr.bf16.mxu0 %v10768_v37  ;;  %v11189_v16 = vpop.f32.mrf.mxu1  ;;  %v3903_v27 = vadd.f32 %v10491_v30, %v10724_v48  ;;  %v4711_v0 = vld [vmem:[#allocation3 + $0x18] sm:$0xff]  ;;  %v3909_v30 = vadd.f32 %v10527_v29, %v10740_v39  ;;  %v6418_v39 = vld [vmem:[#allocation2 + $0xf0] sm:$0xff] }
 0x32d   : > { %6884 = vmatmul.mubr.bf16.gmra.mxu1 %v8688_v24  ;;  %v4621_v50 = vpop.f32.mrf.mxu0  ;;  %v3913_v29 = vadd.f32 %v10547_v10, %v10754_v42  ;;  %v3919_v10 = vadd.f32 %v10564_v57, %v10771_v9  ;;  %v8712_v57 = vld [vmem:[#allocation2 + $0x98] ss:$12 sps:$4 sm:$0xff]   ;;  %v3923_v9 = vadd.f32 %v10586_v59, %v10800_v40  ;;  %v3929_v59 = vadd.f32 %v10616_v38, %v10906_v43  ;;  %v4721_v38 = vld [vmem:[#allocation3 + $0x68] sm:$0xff] }
 0x32e   : > { %6893 = vmatprep.mubr.bf16.mxu1 %v8697_v17  ;;  %8325 = vmatpush1.bf16.msra.mxu1 %v11035_v28  ;;  %v11185_v36 = vadd.f32 %v4620_v33, %v3899_v53  ;;  %v4622_v63 = vadd.f32 %v4621_v50, %v10896_v46  ;;  %v8695_v28 = vld [vmem:[#allocation2 + $0xc0] ss:$12 sps:$4 sm:$0xff]   ;;  %v4570_v24 = vpop.f32.mrf.mxu1  ;;  %v4713_v33 = vld [vmem:[#allocation3 + $0x28] sm:$0xff] }
 0x32f   : > { %8322 = vmatprep.subr.bf16.mxu1 %v11044_v15  ;;  %v4623_v25 = vpop.f32.mrf.mxu0 }
 0x330   : > { %v4745_v34 = vadd.f32 %v4709_v45, %v4622_v63  ;;  %v4624_v7 = vadd.f32 %v4623_v25, %v10904_v26  ;;  %v11208_v53 = vpop.f32.mrf.mxu1  ;;  %v8711_v63 = vld [vmem:[#allocation2 + $0x134] ss:$12 sps:$4 sm:$0xff]  }
 0x331   : > { %v4625_v21 = vpop.f32.mrf.mxu0 }
 0x332   : > { %8326 = vmatpush1.bf16.msra.mxu1 %v11063_v8  ;;  %4781 = vst.msk [vmem:[#allocation3 + $0x8] sm:$0xff] %vm231_vm0, %v4745_v34  ;;  %v11196_v46 = vadd.f32 %v4624_v7, %v3903_v27  ;;  %v4626_v15 = vadd.f32 %v4625_v21, %v10922_v5  ;;  %v8699_v27 = vld [vmem:[#allocation2 + $0xd8] ss:$12 sps:$4 sm:$0xff]   ;;  %v8250_v7 = vcombine.high %v6418_v39, %v10774_v49 }
 0x333   : > { %v4629_v17 = vpop.f32.mrf.mxu0  ;;  %8195 = vmatmul.mubr.msk.bf16.gmra.mxu0 %vm231_vm0, %v8710_v14 }
 0x334   : > { %v4747_v48 = vadd.f32 %v4711_v0, %v4626_v15  ;;  %v4630_v26 = vadd.f32 %v4629_v17, %v10934_v22  ;;  %6283 = vmatprep.mubr.bf16.mxu0 %v10768_v37 }
 0x335   : > { %6894 = vmatmul.mubr.bf16.gmra.mxu1 %v8695_v28  ;;  %v4631_v8 = vpop.f32.mrf.mxu0  ;;  %v4715_v28 = vld [vmem:[#allocation3 + $0x38] sm:$0xff] }
 0x336   : > { %6903 = vmatprep.mubr.bf16.mxu1 %v8701_v52  ;;  %4783 = vst.msk [vmem:[#allocation3 + $0x18] sm:$0xff] %vm231_vm0, %v4747_v48  ;;  %v11205_v5 = vadd.f32 %v4630_v26, %v3909_v30  ;;  %v4632_v51 = vadd.f32 %v4631_v8, %v10946_v44  ;;  %v4717_v30 = vld [vmem:[#allocation3 + $0x48] sm:$0xff] }
 0x337   : > { %v4633_v50 = vpop.f32.mrf.mxu0 }
 0x338   : > { %v4749_v22 = vadd.f32 %v4713_v33, %v4632_v51  ;;  %v4634_v45 = vadd.f32 %v4633_v50, %v10956_v47  ;;  %v4576_v25 = vpop.f32.mrf.mxu1  ;;  %v8249_v33 = vcombine.low %v6418_v39, %v10774_v49 }
 0x339   : > { %v4635_v14 = vpop.f32.mrf.mxu0 }
 0x33a   : > { %4785 = vst.msk [vmem:[#allocation3 + $0x28] sm:$0xff] %vm231_vm0, %v4749_v22  ;;  %v11214_v34 = vadd.f32 %v4634_v45, %v3913_v29  ;;  %v4636_v44 = vadd.f32 %v4635_v14, %v10966_v35  ;;  %v11218_v21 = vpop.f32.mrf.mxu1  ;;  %v4719_v29 = vld [vmem:[#allocation3 + $0x58] sm:$0xff]  ;;  %v8713_v14 = vld [vmem:[#allocation2 + $0xb0] ss:$12 sps:$4 sm:$0xff]  }
 0x33b   : > { %v4639_v15 = vpop.f32.mrf.mxu0  ;;  %8196 = vmatmul.mubr.msk.bf16.gmra.mxu0 %vm231_vm0, %v8711_v63 }
 0x33c   : > { %v4751_v42 = vadd.f32 %v4715_v28, %v4636_v44  ;;  %v4640_v47 = vadd.f32 %v4639_v15, %v10976_v56  ;;  %6996 = vmatprep.mubr.bf16.mxu0 %v10768_v37  ;;  %v4580_v52 = vpop.f32.mrf.mxu1 }
 0x33d   : > { %6904 = vmatmul.mubr.bf16.gmra.mxu1 %v8699_v27  ;;  %v4641_v35 = vpop.f32.mrf.mxu0 }
 0x33e   : > { %6913 = vmatprep.mubr.bf16.mxu1 %v8250_v7  ;;  %4787 = vst.msk [vmem:[#allocation3 + $0x38] sm:$0xff] %vm231_vm0, %v4751_v42  ;;  %v11226_v24 = vadd.f32 %v4640_v47, %v3919_v10  ;;  %v4642_v0 = vadd.f32 %v4641_v35, %v10989_v32  ;;  %v11229_v17 = vpop.f32.mrf.mxu1  ;;  %v4723_v10 = vld [vmem:[#allocation3 + $0x78] sm:$0xff]  ;;  %v12154_v35 = vld [vmem:[#allocation14_spill] sm:$0xff] }
 0x33f   : > { %v4643_v48 = vpop.f32.mrf.mxu0  ;;  %v12153_v47 = vld [vmem:[#allocation15_spill] sm:$0xff] }
 0x340   : > { %v4753_v56 = vadd.f32 %v4717_v30, %v4642_v0  ;;  %v4644_v26 = vadd.f32 %v4643_v48, %v11016_v11  ;;  %v11234_v8 = vpop.f32.mrf.mxu1  ;;  %v12155_v48 = vld [vmem:[#allocation17_spill] sm:$0xff] }
 0x341   : > { %v4645_v51 = vpop.f32.mrf.mxu0 }
 0x342   : > { %4789 = vst.msk [vmem:[#allocation3 + $0x48] sm:$0xff] %vm231_vm0, %v4753_v56  ;;  %v11238_v50 = vadd.f32 %v4644_v26, %v3923_v9  ;;  %v4646_v32 = vadd.f32 %v4645_v51, %v11030_v41  ;;  %v11241_v63 = vpop.f32.mrf.mxu1  ;;  %v8714_v56 = vld [vmem:[#allocation2 + $0xc8] ss:$12 sps:$4 sm:$0xff]   ;;  %v12156_v26 = vld [vmem:[#allocation11_spill] sm:$0xff] }
 0x343   : > { %v4649_v22 = vpop.f32.mrf.mxu0  ;;  %8304 = vmatmul.mubr.msk.bf16.vlgmr.msra.gmra.mxu0 %vm231_vm0, %v8712_v57  ;;  %v12157_v51 = vld [vmem:[#allocation4_spill] sm:$0xff] }
 0x344   : > { %v4755_v40 = vadd.f32 %v4719_v29, %v4646_v32  ;;  %v4650_v11 = vadd.f32 %v4649_v22, %v11057_v61  ;;  %7006 = vmatprep.mubr.bf16.mxu0 %v10768_v37  ;;  %v11249_v49 = vpop.f32.mrf.mxu1  ;;  %v3933_v61 = vadd.f32 %v10635_v31, %v10924_v23  ;;  %v3939_v31 = vadd.f32 %v10655_v60, %v11020_v55  ;;  %v12152_v23 = vld [vmem:[#allocation10_spill] sm:$0xff]  ;;  %v4725_v60 = vld [vmem:[#allocation3 + $0x88] sm:$0xff] }
 0x345   : > { %6914 = vmatmul.mubr.bf16.gmra.mxu1 %v8249_v33  ;;  %v4651_v41 = vpop.f32.mrf.mxu0  ;;  %v3943_v33 = vadd.f32 %v12157_v51, %v12156_v26 }
 0x346   : > { %6923 = vmatprep.mubr.bf16.mxu1 %v10873_v62  ;;  %4791 = vst.msk [vmem:[#allocation3 + $0x58] sm:$0xff] %vm231_vm0, %v4755_v40  ;;  %v11252_v39 = vadd.f32 %v4650_v11, %v3929_v59  ;;  %v4652_v45 = vadd.f32 %v4651_v41, %v11067_v4  ;;  %v11255_v25 = vpop.f32.mrf.mxu1 }
 0x347   : > { %v4653_v43 = vpop.f32.mrf.mxu0 }
 0x348   : > { %v4757_v27 = vadd.f32 %v4721_v38, %v4652_v45  ;;  %v4654_v62 = vadd.f32 %v4653_v43, %v11085_v54  ;;  %v11260_v44 = vpop.f32.mrf.mxu1  ;;  %v4727_v45 = vld [vmem:[#allocation3 + $0x98] sm:$0xff]  ;;  %v12158_v43 = vld [vmem:[#allocation12_spill] sm:$0xff] }
 0x349   : > { %v4655_v7 = vpop.f32.mrf.mxu0 }
 0x34a   : > { %4793 = vst.msk [vmem:[#allocation3 + $0x68] sm:$0xff] %vm231_vm0, %v4757_v27  ;;  %v11263_v28 = vadd.f32 %v4654_v62, %v3933_v61  ;;  %v4656_v4 = vadd.f32 %v4655_v7, %v11098_v20  ;;  %v11266_v15 = vpop.f32.mrf.mxu1  ;;  %v12160_v27 = vld [vmem:[#allocation19_spill] sm:$0xff]  ;;  %v12161_v62 = vld [vmem:[#allocation20_spill] sm:$0xff] }
 0x34b   : > { %v4659_v42 = vpop.f32.mrf.mxu0  ;;  %8305 = vmatmul.mubr.msk.bf16.gmra.mxu0 %vm231_vm0, %v8713_v14  ;;  %v12159_v14 = vld [vmem:[#allocation5_spill] sm:$0xff] }
 0x34c   : > { %v4759_v54 = vadd.f32 %v4723_v10, %v4656_v4  ;;  %v4660_v52 = vadd.f32 %v4659_v42, %v12153_v47  ;;  %7016 = vmatprep.mubr.bf16.mxu0 %v10768_v37  ;;  %v11275_v0 = vpop.f32.mrf.mxu1  ;;  %v3949_v61 = vadd.f32 %v12159_v14, %v12158_v43  ;;  %v12162_v42 = vld [vmem:[#allocation22_spill] sm:$0xff] }
 0x34d   : > { %6924 = vmatmul.mubr.bf16.gmra.mxu1 %v12152_v23  ;;  %v4661_v20 = vpop.f32.mrf.mxu0 }
 0x34e   : > { %6933 = vmatprep.mubr.bf16.mxu1 %v12154_v35  ;;  %4795 = vst.msk [vmem:[#allocation3 + $0x78] sm:$0xff] %vm231_vm0, %v4759_v54  ;;  %v11278_v30 = vadd.f32 %v4660_v52, %v3939_v31  ;;  %v4662_v57 = vadd.f32 %v4661_v20, %v12155_v48  ;;  %v11281_v9 = vpop.f32.mrf.mxu1  ;;  %v4729_v54 = vld [vmem:[#allocation3 + $0xa8] sm:$0xff]  ;;  %v8716_v52 = vld [vmem:[#allocation2 + $0xe0] ss:$12 sps:$4 sm:$0xff]   ;;  %v12164_v48 = vld [vmem:[#allocation6_spill] sm:$0xff] }
 0x34f   : > { %v4663_v55 = vpop.f32.mrf.mxu0  ;;  %v12163_v20 = vld [vmem:[#allocation13_spill] sm:$0xff] }
 0x350   : > { %v4761_v32 = vadd.f32 %v4725_v60, %v4662_v57  ;;  %v4664_v29 = vadd.f32 %v4663_v55, %v11126_v19  ;;  %v11286_v22 = vpop.f32.mrf.mxu1  ;;  %v3953_v57 = vadd.f32 %v12164_v48, %v12163_v20 }
 0x351   : > { %v4665_v59 = vpop.f32.mrf.mxu0 }
 0x352   : > { %4797 = vst.msk [vmem:[#allocation3 + $0x88] sm:$0xff] %vm231_vm0, %v4761_v32  ;;  %v11289_v40 = vadd.f32 %v4664_v29, %v3943_v33  ;;  %v4666_v11 = vadd.f32 %v4665_v59, %v11135_v18  ;;  %v11292_v41 = vpop.f32.mrf.mxu1  ;;  %v4731_v29 = vld [vmem:[#allocation3 + $0xb8] sm:$0xff] }
 0x353   : > { %v4669_v38 = vpop.f32.mrf.mxu0  ;;  %8306 = vmatmul.mubr.msk.bf16.gmra.mxu0 %vm231_vm0, %v8714_v56 }
 0x354   : > { %v4763_v19 = vadd.f32 %v4727_v45, %v4666_v11  ;;  %v4670_v7 = vadd.f32 %v4669_v38, %v12161_v62  ;;  %7026 = vmatprep.mubr.bf16.mxu0 %v10768_v37  ;;  %v11301_v4 = vpop.f32.mrf.mxu1  ;;  %v12165_v11 = vld [vmem:[#allocation16_spill] sm:$0xff]  ;;  %v12166_v45 = vld [vmem:[#allocation7_spill] sm:$0xff] }
 0x355   : > { %6934 = vmatmul.mubr.bf16.gmra.mxu1 %v12160_v27  ;;  %v4671_v18 = vpop.f32.mrf.mxu0  ;;  %v3959_v38 = vadd.f32 %v12166_v45, %v12165_v11 }
 0x356   : > { %6943 = vmatprep.mubr.bf16.mxu1 %v12154_v35  ;;  %4799 = vst.msk [vmem:[#allocation3 + $0x98] sm:$0xff] %vm231_vm0, %v4763_v19  ;;  %v11304_v10 = vadd.f32 %v4670_v7, %v3949_v61  ;;  %v4672_v31 = vadd.f32 %v4671_v18, %v12162_v42  ;;  %v11307_v23 = vpop.f32.mrf.mxu1  ;;  %v4733_v7 = vld [vmem:[#allocation3 + $0xc8] sm:$0xff]  ;;  %v8718_v42 = vld [vmem:[#allocation2 + $0xf8] ss:$12 sps:$4 sm:$0xff]  }
 0x357   : > { %v4673_v47 = vpop.f32.mrf.mxu0 }
 0x358   : > { %v4765_v60 = vadd.f32 %v4729_v54, %v4672_v31  ;;  %v4674_v55 = vadd.f32 %v4673_v47, %v11150_v6  ;;  %v11312_v56 = vpop.f32.mrf.mxu1  ;;  %v12167_v31 = vld [vmem:[#allocation18_spill] sm:$0xff] }
 0x359   : > { %v4675_v26 = vpop.f32.mrf.mxu0 }
 0x35a   : > { %4801 = vst.msk [vmem:[#allocation3 + $0xa8] sm:$0xff] %vm231_vm0, %v4765_v60  ;;  %v11315_v51 = vadd.f32 %v4674_v55, %v3953_v57  ;;  %v4676_v33 = vadd.f32 %v4675_v26, %v11154_v12  ;;  %v11318_v32 = vpop.f32.mrf.mxu1  ;;  %v4735_v57 = vld [vmem:[#allocation3 + $0xd8] sm:$0xff]  ;;  %v12169_v55 = vld [vmem:[#allocation21_spill] sm:$0xff] }
 0x35b   : > { %v4679_v59 = vpop.f32.mrf.mxu0  ;;  %8307 = vmatmul.mubr.msk.bf16.gmra.mxu0 %vm231_vm0, %v8716_v52  ;;  %v12170_v26 = vld [vmem:[#allocation9_spill] sm:$0xff] }
 0x35c   : > { %v4767_v6 = vadd.f32 %v4731_v29, %v4676_v33  ;;  %v4680_v43 = vadd.f32 %v4679_v59, %v11158_v2  ;;  %7036 = vmatprep.mubr.bf16.mxu0 %v10768_v37  ;;  %v11327_v14 = vpop.f32.mrf.mxu1  ;;  %v12168_v2 = vld [vmem:[#allocation8_spill] sm:$0xff]  ;;  %v3969_v33 = vadd.f32 %v12170_v26, %v12169_v55  ;;  %v8724_v59 = vld [vmem:[#allocation2] sm:$0xff] }
 0x35d   : > { %6944 = vmatmul.mubr.bf16.gmra.mxu1 %v12160_v27  ;;  %v4681_v12 = vpop.f32.mrf.mxu0  ;;  %v3963_v54 = vadd.f32 %v12168_v2, %v12167_v31  ;;  %v4739_v2 = vld [vmem:[#allocation3 + $0xf8] sm:$0xff] }
 0x35e   : > { %6953 = vmatprep.mubr.bf16.mxu1 %v12154_v35  ;;  %4803 = vst.msk [vmem:[#allocation3 + $0xb8] sm:$0xff] %vm231_vm0, %v4767_v6  ;;  %v11330_v61 = vadd.f32 %v4680_v43, %v3959_v38  ;;  %v4682_v19 = vadd.f32 %v4681_v12, %v11162_v13  ;;  %v11333_v62 = vpop.f32.mrf.mxu1  ;;  %v4737_v43 = vld [vmem:[#allocation3 + $0xe8] sm:$0xff] }
 0x35f   : > { %v4683_v18 = vpop.f32.mrf.mxu0 }
 0x360   : > { %v4769_v37 = vadd.f32 %v4733_v7, %v4682_v19  ;;  %v4684_v35 = vadd.f32 %v4683_v18, %v11166_v3  ;;  %v11338_v47 = vpop.f32.mrf.mxu1  ;;  %v8715_v19 = vld [vmem:[#allocation2 + $0x128] ss:$12 sps:$4 sm:$0xff]  }
 0x361   : > { %v4685_v52 = vpop.f32.mrf.mxu0 }
 0x362   : > { %4805 = vst.msk [vmem:[#allocation3 + $0xc8] sm:$0xff] %vm231_vm0, %v4769_v37  ;;  %v11341_v20 = vadd.f32 %v4684_v35, %v3963_v54  ;;  %v4686_v13 = vadd.f32 %v4685_v52, %v11171_v58  ;;  %v11344_v48 = vpop.f32.mrf.mxu1 }
 0x363   : > { %v4689_v60 = vpop.f32.mrf.mxu0  ;;  %8308 = vmatmul.mubr.msk.bf16.gmra.mxu0 %vm231_vm0, %v8718_v42 }
 0x364   : > { %v4771_v3 = vadd.f32 %v4735_v57, %v4686_v13  ;;  %v4690_v29 = vadd.f32 %v4689_v60, %v11176_v1  ;;  %7046 = vmatprep.mubr.bf16.mxu0 %v8724_v59  ;;  %v11351_v11 = vpop.f32.mrf.mxu1  ;;  %v4741_v13 = vld [vmem:[#allocation3 + $0x108] sm:$0xff] }
 0x365   : > { %6954 = vmatmul.mubr.bf16.gmra.mxu1 %v12160_v27  ;;  %v4691_v58 = vpop.f32.mrf.mxu0  ;;  %v8720_v27 = vld [vmem:[#allocation2 + $0x110] ss:$12 sps:$4 sm:$0xff]  }
 0x366   : > { %7056 = vmatprep.mubr.bf16.mxu1 %v8724_v59  ;;  %4807 = vst.msk [vmem:[#allocation3 + $0xd8] sm:$0xff] %vm231_vm0, %v4771_v3  ;;  %v11354_v45 = vadd.f32 %v4690_v29, %v3969_v33  ;;  %v4692_v38 = vadd.f32 %v4691_v58, %v11189_v16  ;;  %v11357_v6 = vpop.f32.mrf.mxu1  ;;  %v4743_v3 = vld [vmem:[#allocation3 + $0x118] sm:$0xff] }
 0x367   : > { %v4693_v12 = vpop.f32.mrf.mxu0 }
 0x368   : > { %v4773_v7 = vadd.f32 %v4737_v43, %v4692_v38  ;;  %v11359_v1 = vpop.f32.mrf.mxu1 }
 0x369   : > { %v4695_v18 = vpop.f32.mrf.mxu0 }
 0x36a   : > { %4809 = vst.msk [vmem:[#allocation3 + $0xe8] sm:$0xff] %vm231_vm0, %v4773_v7  ;;  %v4696_v42 = vadd.f32 %v4695_v18, %v11208_v53  ;;  %v11363_v31 = vpop.f32.mrf.mxu1  ;;  %v8717_v53 = vld [vmem:[#allocation2 + $0x140] ss:$12 sps:$4 sm:$0xff]   ;;  %v8719_v7 = vld [vmem:[#allocation2 + $0x158] ss:$12 sps:$4 sm:$0xff]  }
 0x36b   : > { %v4699_v54 = vpop.f32.mrf.mxu0  ;;  %8309 = vmatmul.mubr.msk.bf16.gmra.mxu0 %vm231_vm0, %v8720_v27 }
 0x36c   : > { %v4775_v16 = vadd.f32 %v4739_v2, %v4696_v42  ;;  %v11367_v37 = vpop.f32.mrf.mxu1 }
 0x36d   : > { %8310 = vmatmul.mubr.msk.bf16.vlgmr.msra.gmra.mxu1 %vm231_vm0, %v8715_v19  ;;  %v4701_v35 = vpop.f32.mrf.mxu0  ;;  %v5502_v19 = vld [vmem:[#allocation3 + $0x8] sm:$0xff] }
 0x36e   : > { %7066 = vmatprep.mubr.bf16.mxu1 %v8724_v59  ;;  %4811 = vst.msk [vmem:[#allocation3 + $0xf8] sm:$0xff] %vm231_vm0, %v4775_v16  ;;  %v4702_v52 = vadd.f32 %v4701_v35, %v11218_v21  ;;  %v11371_v60 = vpop.f32.mrf.mxu1 }
 0x36f   : > { %v4703_v57 = vpop.f32.mrf.mxu0 }
 0x370   : > { %v4777_v55 = vadd.f32 %v4741_v13, %v4702_v52  ;;  %v11376_v58 = vpop.f32.mrf.mxu1  ;;  %v5506_v57 = vld [vmem:[#allocation3 + $0x28] sm:$0xff] }
 0x371   : > { %v4705_v26 = vpop.f32.mrf.mxu0 }
 0x372   : > { %4813 = vst.msk [vmem:[#allocation3 + $0x108] sm:$0xff] %vm231_vm0, %v4777_v55  ;;  %v4706_v33 = vadd.f32 %v4705_v26, %v11229_v17  ;;  %v11384_v18 = vpop.f32.mrf.mxu1 }
 0x373   : > { %v5412_v29 = vpop.f32.mrf.mxu0 }
 0x374   : > { %v4779_v38 = vadd.f32 %v4743_v3, %v4706_v33  ;;  %v5413_v21 = vadd.f32 %v5412_v29, %v11234_v8  ;;  %v5508_v29 = vld [vmem:[#allocation3 + $0x38] sm:$0xff] }
 0x375   : > { %8311 = vmatmul.mubr.msk.bf16.gmra.mxu1 %vm231_vm0, %v8717_v53  ;;  %v5414_v43 = vpop.f32.mrf.mxu0 }
 0x376   : > { %7076 = vmatprep.mubr.bf16.mxu1 %v8724_v59  ;;  %4815 = vst.msk [vmem:[#allocation3 + $0x118] sm:$0xff] %vm231_vm0, %v4779_v38  ;;  %v11381_v12 = vadd.f32 %v5413_v21, %v11185_v36  ;;  %v5415_v27 = vadd.f32 %v5414_v43, %v11241_v63  ;;  %v5504_v36 = vld [vmem:[#allocation3 + $0x18] sm:$0xff]  ;;  %v11393_v63 = vpop.f32.mrf.mxu1 }
 0x377   : > { %v5416_v17 = vpop.f32.mrf.mxu0 }
 0x378   : > { %v5538_v42 = vadd.f32 %v5502_v19, %v5415_v27  ;;  %v5417_v2 = vadd.f32 %v5416_v17, %v11249_v49  ;;  %v5510_v19 = vld [vmem:[#allocation3 + $0x48] sm:$0xff] }
 0x379   : > { %v5418_v54 = vpop.f32.mrf.mxu0 }
 0x37a   : > { %5574 = vst.msk [vmem:[#allocation3 + $0x8] sm:$0xff] %vm231_vm0, %v5538_v42  ;;  %v11389_v8 = vadd.f32 %v5417_v2, %v11196_v46  ;;  %v5419_v59 = vadd.f32 %v5418_v54, %v11255_v25  ;;  %v11401_v25 = vpop.f32.mrf.mxu1  ;;  %v5512_v54 = vld [vmem:[#allocation3 + $0x58] sm:$0xff] }
 0x37b   : > { %v5422_v16 = vpop.f32.mrf.mxu0 }
 0x37c   : > { %v5540_v35 = vadd.f32 %v5504_v36, %v5419_v59  ;;  %v5423_v52 = vadd.f32 %v5422_v16, %v11260_v44  ;;  %v11409_v38 = vpop.f32.mrf.mxu1 }
 0x37d   : > { %8312 = vmatmul.mubr.msk.bf16.gmra.mxu1 %vm231_vm0, %v8719_v7  ;;  %v5424_v13 = vpop.f32.mrf.mxu0 }
 0x37e   : > { %5576 = vst.msk [vmem:[#allocation3 + $0x18] sm:$0xff] %vm231_vm0, %v5540_v35  ;;  %v11398_v49 = vadd.f32 %v5423_v52, %v11205_v5  ;;  %v5425_v46 = vadd.f32 %v5424_v13, %v11266_v15  ;;  %v11417_v17 = vpop.f32.mrf.mxu1  ;;  %v5514_v52 = vld [vmem:[#allocation3 + $0x68] sm:$0xff] }
 0x37f   : > { %v5426_v53 = vpop.f32.mrf.mxu0 }
 0x380   : > { %v5542_v55 = vadd.f32 %v5506_v57, %v5425_v46  ;;  %v5427_v26 = vadd.f32 %v5426_v53, %v11275_v0  ;;  %v5363_v59 = vpop.f32.mrf.mxu1 }
 0x381   : > { %v5428_v33 = vpop.f32.mrf.mxu0 }
 0x382   : > { %5578 = vst.msk [vmem:[#allocation3 + $0x28] sm:$0xff] %vm231_vm0, %v5542_v55  ;;  %v11406_v44 = vadd.f32 %v5427_v26, %v11214_v34  ;;  %v5429_v3 = vadd.f32 %v5428_v33, %v11281_v9  ;;  %v5516_v55 = vld [vmem:[#allocation3 + $0x78] sm:$0xff] }
 0x383   : > { %v5432_v5 = vpop.f32.mrf.mxu0 }
 0x384   : > { %v5544_v15 = vadd.f32 %v5508_v29, %v5429_v3  ;;  %v5433_v21 = vadd.f32 %v5432_v5, %v11286_v22 }
 0x385   : > { %v5434_v43 = vpop.f32.mrf.mxu0 }
 0x386   : > { %5580 = vst.msk [vmem:[#allocation3 + $0x38] sm:$0xff] %vm231_vm0, %v5544_v15  ;;  %v11414_v0 = vadd.f32 %v5433_v21, %v11226_v24  ;;  %v5435_v27 = vadd.f32 %v5434_v43, %v11292_v41 }
 0x387   : > { %v5436_v34 = vpop.f32.mrf.mxu0 }
 0x388   : > { %v5546_v9 = vadd.f32 %v5510_v19, %v5435_v27  ;;  %v5437_v7 = vadd.f32 %v5436_v34, %v11301_v4 }
 0x389   : > { %v5438_v42 = vpop.f32.mrf.mxu0 }
 0x38a   : > { %5582 = vst.msk [vmem:[#allocation3 + $0x48] sm:$0xff] %vm231_vm0, %v5546_v9  ;;  %v11422_v22 = vadd.f32 %v5437_v7, %v11238_v50  ;;  %v5439_v2 = vadd.f32 %v5438_v42, %v11307_v23  ;;  %v11431_v50 = vpop.f32.mrf.mxu1 }
 0x38b   : > { %v5442_v24 = vpop.f32.mrf.mxu0 }
 0x38c   : > { %v5548_v36 = vadd.f32 %v5512_v54, %v5439_v2  ;;  %v5443_v41 = vadd.f32 %v5442_v24, %v11312_v56  ;;  %v5522_v24 = vld [vmem:[#allocation3 + $0xa8] sm:$0xff] }
 0x38d   : > { %v5444_v16 = vpop.f32.mrf.mxu0 }
 0x38e   : > { %5584 = vst.msk [vmem:[#allocation3 + $0x58] sm:$0xff] %vm231_vm0, %v5548_v36  ;;  %v11428_v35 = vadd.f32 %v5443_v41, %v11252_v39  ;;  %v5445_v4 = vadd.f32 %v5444_v16, %v11318_v32 }
 0x38f   : > { %v5446_v13 = vpop.f32.mrf.mxu0 }
 0x390   : > { %v5550_v46 = vadd.f32 %v5514_v52, %v5445_v4  ;;  %v5447_v23 = vadd.f32 %v5446_v13, %v11327_v14  ;;  %v5524_v52 = vld [vmem:[#allocation3 + $0xb8] sm:$0xff] }
 0x391   : > { %v5448_v57 = vpop.f32.mrf.mxu0 }
 0x392   : > { %5586 = vst.msk [vmem:[#allocation3 + $0x68] sm:$0xff] %vm231_vm0, %v5550_v46  ;;  %v11436_v56 = vadd.f32 %v5447_v23, %v11263_v28  ;;  %v5449_v53 = vadd.f32 %v5448_v57, %v11333_v62  ;;  %v5518_v28 = vld [vmem:[#allocation3 + $0x88] sm:$0xff] }
 0x393   : > { %v5452_v39 = vpop.f32.mrf.mxu0 }
 0x394   : > { %v5552_v33 = vadd.f32 %v5516_v55, %v5449_v53  ;;  %v5453_v32 = vadd.f32 %v5452_v39, %v11338_v47  ;;  %v5526_v55 = vld [vmem:[#allocation3 + $0xc8] sm:$0xff] }
 0x395   : > { %v5369_v26 = vpop.f32.mrf.mxu1  ;;  %v5454_v3 = vpop.f32.mrf.mxu0 }
 0x396   : > { %5588 = vst.msk [vmem:[#allocation3 + $0x78] sm:$0xff] %vm231_vm0, %v5552_v33  ;;  %v11444_v14 = vadd.f32 %v5453_v32, %v11278_v30  ;;  %v5455_v5 = vadd.f32 %v5454_v3, %v11344_v48  ;;  %v5520_v30 = vld [vmem:[#allocation3 + $0x98] sm:$0xff] }
 0x397   : > { %v11440_v29 = vpop.f32.mrf.mxu1  ;;  %v5456_v15 = vpop.f32.mrf.mxu0 }
 0x398   : > { %v5554_v62 = vadd.f32 %v5518_v28, %v5455_v5  ;;  %v5457_v43 = vadd.f32 %v5456_v15, %v11351_v11  ;;  %v5528_v5 = vld [vmem:[#allocation3 + $0xd8] sm:$0xff] }
 0x399   : > { %v5373_v21 = vpop.f32.mrf.mxu1  ;;  %v5458_v27 = vpop.f32.mrf.mxu0 }
 0x39a   : > { %5590 = vst.msk [vmem:[#allocation3 + $0x88] sm:$0xff] %vm231_vm0, %v5554_v62  ;;  %v11452_v47 = vadd.f32 %v5457_v43, %v11289_v40  ;;  %v5459_v34 = vadd.f32 %v5458_v27, %v11357_v6  ;;  %v5530_v27 = vld [vmem:[#allocation3 + $0xe8] sm:$0xff] }
 0x39b   : > { %v11448_v19 = vpop.f32.mrf.mxu1  ;;  %v5462_v9 = vpop.f32.mrf.mxu0 }
 0x39c   : > { %v5556_v48 = vadd.f32 %v5520_v30, %v5459_v34  ;;  %v5463_v42 = vadd.f32 %v5462_v9, %v11359_v1 }
 0x39d   : > { %v11455_v7 = vpop.f32.mrf.mxu1  ;;  %v5464_v2 = vpop.f32.mrf.mxu0 }
 0x39e   : > { %5592 = vst.msk [vmem:[#allocation3 + $0x98] sm:$0xff] %vm231_vm0, %v5556_v48  ;;  %v11462_v11 = vadd.f32 %v5463_v42, %v11304_v10  ;;  %v5465_v40 = vadd.f32 %v5464_v2, %v11363_v31  ;;  %v5532_v42 = vld [vmem:[#allocation3 + $0xf8] sm:$0xff] }
 0x39f   : > { %v11458_v54 = vpop.f32.mrf.mxu1  ;;  %v5466_v59 = vpop.f32.mrf.mxu0 }
 0x3a0   : > { %v5558_v36 = vadd.f32 %v5522_v24, %v5465_v40  ;;  %v5467_v41 = vadd.f32 %v5466_v59, %v11367_v37 }
 0x3a1   : > { %v11465_v6 = vpop.f32.mrf.mxu1  ;;  %v5468_v16 = vpop.f32.mrf.mxu0 }
 0x3a2   : > { %5594 = vst.msk [vmem:[#allocation3 + $0xa8] sm:$0xff] %vm231_vm0, %v5558_v36  ;;  %v11472_v1 = vadd.f32 %v5467_v41, %v11315_v51  ;;  %v5469_v10 = vadd.f32 %v5468_v16, %v11371_v60  ;;  %v5534_v36 = vld [vmem:[#allocation3 + $0x108] sm:$0xff] }
 0x3a3   : > { %v11468_v4 = vpop.f32.mrf.mxu1  ;;  %v5472_v13 = vpop.f32.mrf.mxu0 }
 0x3a4   : > { %v5560_v46 = vadd.f32 %v5524_v52, %v5469_v10  ;;  %v5473_v23 = vadd.f32 %v5472_v13, %v11376_v58 }
 0x3a5   : > { %v11475_v31 = vpop.f32.mrf.mxu1  ;;  %v5474_v57 = vpop.f32.mrf.mxu0 }
 0x3a6   : > { %5596 = vst.msk [vmem:[#allocation3 + $0xb8] sm:$0xff] %vm231_vm0, %v5560_v46  ;;  %v11482_v37 = vadd.f32 %v5473_v23, %v11330_v61  ;;  %v5475_v51 = vadd.f32 %v5474_v57, %v11384_v18  ;;  %v5536_v46 = vld [vmem:[#allocation3 + $0x118] sm:$0xff] }
 0x3a7   : > { %v11478_v53 = vpop.f32.mrf.mxu1  ;;  %v5476_v39 = vpop.f32.mrf.mxu0 }
 0x3a8   : > { %v5562_v26 = vadd.f32 %v5526_v55, %v5475_v51  ;;  %v5477_v33 = vadd.f32 %v5476_v39, %v11393_v63 }
 0x3a9   : > { %v11485_v60 = vpop.f32.mrf.mxu1  ;;  %v5478_v32 = vpop.f32.mrf.mxu0 }
 0x3aa   : > { %5598 = vst.msk [vmem:[#allocation3 + $0xc8] sm:$0xff] %vm231_vm0, %v5562_v26  ;;  %v11492_v58 = vadd.f32 %v5477_v33, %v11341_v20  ;;  %v5479_v61 = vadd.f32 %v5478_v32, %v11401_v25  ;;  %v6295_v32 = vld [vmem:[#allocation3 + $0x8] sm:$0xff] }
 0x3ab   : > { %v11488_v3 = vpop.f32.mrf.mxu1  ;;  %v5482_v28 = vpop.f32.mrf.mxu0 }
 0x3ac   : > { %v5564_v15 = vadd.f32 %v5528_v5, %v5479_v61  ;;  %v5483_v21 = vadd.f32 %v5482_v28, %v11409_v38 }
 0x3ad   : > { %v11495_v18 = vpop.f32.mrf.mxu1  ;;  %v5484_v62 = vpop.f32.mrf.mxu0 }
 0x3ae   : > { %5600 = vst.msk [vmem:[#allocation3 + $0xd8] sm:$0xff] %vm231_vm0, %v5564_v15  ;;  %v11502_v63 = vadd.f32 %v5483_v21, %v11354_v45  ;;  %v5485_v20 = vadd.f32 %v5484_v62, %v11417_v17  ;;  %v6297_v62 = vld [vmem:[#allocation3 + $0x18] sm:$0xff] }
 0x3af   : > { %v11498_v43 = vpop.f32.mrf.mxu1  ;;  %v5486_v34 = vpop.f32.mrf.mxu0 }
 0x3b0   : > { %v5566_v30 = vadd.f32 %v5530_v27, %v5485_v20 }
 0x3b1   : > { %v11505_v25 = vpop.f32.mrf.mxu1  ;;  %v5488_v9 = vpop.f32.mrf.mxu0 }
 0x3b2   : > { %5602 = vst.msk [vmem:[#allocation3 + $0xe8] sm:$0xff] %vm231_vm0, %v5566_v30  ;;  %v5489_v38 = vadd.f32 %v5488_v9, %v11431_v50 }
 0x3b3   : > { %v11507_v48 = vpop.f32.mrf.mxu1  ;;  %v5492_v2 = vpop.f32.mrf.mxu0 }
 0x3b4   : > { %v5568_v45 = vadd.f32 %v5532_v42, %v5489_v38  ;;  %v6299_v38 = vld [vmem:[#allocation3 + $0x28] sm:$0xff] }
 0x3b5   : > { %v11511_v40 = vpop.f32.mrf.mxu1  ;;  %v5494_v24 = vpop.f32.mrf.mxu0 }
 0x3b6   : > { %5604 = vst.msk [vmem:[#allocation3 + $0xf8] sm:$0xff] %vm231_vm0, %v5568_v45  ;;  %v5495_v17 = vadd.f32 %v5494_v24, %v11440_v29 }
 0x3b7   : > { %v11513_v59 = vpop.f32.mrf.mxu1  ;;  %v5496_v41 = vpop.f32.mrf.mxu0 }
 0x3b8   : > { %v5570_v10 = vadd.f32 %v5534_v36, %v5495_v17  ;;  %v6301_v36 = vld [vmem:[#allocation3 + $0x38] sm:$0xff] }
 0x3b9   : > { %v11517_v16 = vpop.f32.mrf.mxu1  ;;  %v5498_v52 = vpop.f32.mrf.mxu0 }
 0x3ba   : > { %5606 = vst.msk [vmem:[#allocation3 + $0x108] sm:$0xff] %vm231_vm0, %v5570_v10  ;;  %v5499_v50 = vadd.f32 %v5498_v52, %v11448_v19 }
 0x3bb   : > { %v11519_v13 = vpop.f32.mrf.mxu1  ;;  %v6205_v23 = vpop.f32.mrf.mxu0 }
 0x3bc   : > { %v5572_v51 = vadd.f32 %v5536_v46, %v5499_v50  ;;  %v6206_v55 = vadd.f32 %v6205_v23, %v11455_v7  ;;  %v6303_v23 = vld [vmem:[#allocation3 + $0x48] sm:$0xff] }
 0x3bd   : > { %v11523_v57 = vpop.f32.mrf.mxu1  ;;  %v6207_v29 = vpop.f32.mrf.mxu0 }
 0x3be   : > { %5608 = vst.msk [vmem:[#allocation3 + $0x118] sm:$0xff] %vm231_vm0, %v5572_v51  ;;  %v11530_v26 = vadd.f32 %v6206_v55, %v11381_v12  ;;  %v6208_v33 = vadd.f32 %v6207_v29, %v11458_v54 }
 0x3bf   : > { %v11526_v39 = vpop.f32.mrf.mxu1  ;;  %v6209_v61 = vpop.f32.mrf.mxu0 }
 0x3c0   : > { %v6331_v5 = vadd.f32 %v6295_v32, %v6208_v33  ;;  %v6210_v28 = vadd.f32 %v6209_v61, %v11465_v6  ;;  %v6305_v61 = vld [vmem:[#allocation3 + $0x58] sm:$0xff] }
 0x3c1   : > { %v11533_v19 = vpop.f32.mrf.mxu1  ;;  %v6211_v15 = vpop.f32.mrf.mxu0 }
 0x3c2   : > { %6367 = vst.msk [vmem:[#allocation3 + $0x8] sm:$0xff] %vm231_vm0, %v6331_v5  ;;  %v11540_v7 = vadd.f32 %v6210_v28, %v11389_v8  ;;  %v6212_v12 = vadd.f32 %v6211_v15, %v11468_v4 }
 0x3c3   : > { %v11536_v21 = vpop.f32.mrf.mxu1  ;;  %v6215_v20 = vpop.f32.mrf.mxu0 }
 0x3c4   : > { %v6333_v27 = vadd.f32 %v6297_v62, %v6212_v12  ;;  %v6216_v34 = vadd.f32 %v6215_v20, %v11475_v31  ;;  %v6307_v20 = vld [vmem:[#allocation3 + $0x68] sm:$0xff] }
 0x3c5   : > { %v11543_v54 = vpop.f32.mrf.mxu1  ;;  %v6217_v30 = vpop.f32.mrf.mxu0 }
 0x3c6   : > { %6369 = vst.msk [vmem:[#allocation3 + $0x18] sm:$0xff] %vm231_vm0, %v6333_v27  ;;  %v11550_v6 = vadd.f32 %v6216_v34, %v11398_v49  ;;  %v6218_v8 = vadd.f32 %v6217_v30, %v11478_v53 }
 0x3c7   : > { %v11546_v9 = vpop.f32.mrf.mxu1  ;;  %v6219_v42 = vpop.f32.mrf.mxu0 }
 0x3c8   : > { %v6335_v2 = vadd.f32 %v6299_v38, %v6218_v8  ;;  %v6220_v45 = vadd.f32 %v6219_v42, %v11485_v60 }
 0x3c9   : > { %v11553_v4 = vpop.f32.mrf.mxu1  ;;  %v6221_v24 = vpop.f32.mrf.mxu0 }
 0x3ca   : > { %6371 = vst.msk [vmem:[#allocation3 + $0x28] sm:$0xff] %vm231_vm0, %v6335_v2  ;;  %v11560_v31 = vadd.f32 %v6220_v45, %v11406_v44  ;;  %v6222_v49 = vadd.f32 %v6221_v24, %v11488_v3 }
 0x3cb   : > { %v11556_v17 = vpop.f32.mrf.mxu1  ;;  %v6225_v41 = vpop.f32.mrf.mxu0 }
 0x3cc   : > { %v6337_v10 = vadd.f32 %v6301_v36, %v6222_v49  ;;  %v6226_v52 = vadd.f32 %v6225_v41, %v11495_v18 }
 0x3cd   : > { %v11563_v53 = vpop.f32.mrf.mxu1  ;;  %v6227_v50 = vpop.f32.mrf.mxu0 }
 0x3ce   : > { %6373 = vst.msk [vmem:[#allocation3 + $0x38] sm:$0xff] %vm231_vm0, %v6337_v10  ;;  %v11570_v60 = vadd.f32 %v6226_v52, %v11414_v0  ;;  %v6228_v44 = vadd.f32 %v6227_v50, %v11498_v43 }
 0x3cf   : > { %v11566_v46 = vpop.f32.mrf.mxu1  ;;  %v6229_v51 = vpop.f32.mrf.mxu0 }
 0x3d0   : > { %v6339_v55 = vadd.f32 %v6303_v23, %v6228_v44  ;;  %v6230_v29 = vadd.f32 %v6229_v51, %v11505_v25 }
 0x3d1   : > { %v11573_v3 = vpop.f32.mrf.mxu1  ;;  %v6231_v33 = vpop.f32.mrf.mxu0 }
 0x3d2   : > { %6375 = vst.msk [vmem:[#allocation3 + $0x48] sm:$0xff] %vm231_vm0, %v6339_v55  ;;  %v11580_v18 = vadd.f32 %v6230_v29, %v11422_v22  ;;  %v6232_v0 = vadd.f32 %v6231_v33, %v11507_v48 }
 0x3d3   : > { %v11576_v32 = vpop.f32.mrf.mxu1  ;;  %v6235_v5 = vpop.f32.mrf.mxu0 }
 0x3d4   : > { %v6341_v28 = vadd.f32 %v6305_v61, %v6232_v0  ;;  %v6236_v15 = vadd.f32 %v6235_v5, %v11511_v40  ;;  %v6315_v5 = vld [vmem:[#allocation3 + $0xa8] sm:$0xff] }
 0x3d5   : > { %v11583_v43 = vpop.f32.mrf.mxu1  ;;  %v6237_v12 = vpop.f32.mrf.mxu0 }
 0x3d6   : > { %6377 = vst.msk [vmem:[#allocation3 + $0x58] sm:$0xff] %vm231_vm0, %v6341_v28  ;;  %v11590_v25 = vadd.f32 %v6236_v15, %v11428_v35  ;;  %v6238_v22 = vadd.f32 %v6237_v12, %v11513_v59  ;;  %v6309_v35 = vld [vmem:[#allocation3 + $0x78] sm:$0xff] }
 0x3d7   : > { %v11586_v62 = vpop.f32.mrf.mxu1  ;;  %v6239_v27 = vpop.f32.mrf.mxu0 }
 0x3d8   : > { %v6343_v34 = vadd.f32 %v6307_v20, %v6238_v22  ;;  %v6240_v30 = vadd.f32 %v6239_v27, %v11517_v16 }
 0x3d9   : > { %v6156_v48 = vpop.f32.mrf.mxu1  ;;  %v6241_v8 = vpop.f32.mrf.mxu0 }
 0x3da   : > { %6379 = vst.msk [vmem:[#allocation3 + $0x68] sm:$0xff] %vm231_vm0, %v6343_v34  ;;  %v11598_v40 = vadd.f32 %v6240_v30, %v11436_v56  ;;  %v6242_v42 = vadd.f32 %v6241_v8, %v11519_v13  ;;  %v6311_v56 = vld [vmem:[#allocation3 + $0x88] sm:$0xff] }
 0x3db   : > { %v11594_v38 = vpop.f32.mrf.mxu1  ;;  %v6245_v2 = vpop.f32.mrf.mxu0 }
 0x3dc   : > { %v6345_v59 = vadd.f32 %v6309_v35, %v6242_v42  ;;  %v6246_v24 = vadd.f32 %v6245_v2, %v11523_v57  ;;  %v6319_v35 = vld [vmem:[#allocation3 + $0xc8] sm:$0xff] }
 0x3dd   : > { %v6162_v45 = vpop.f32.mrf.mxu1  ;;  %v6247_v49 = vpop.f32.mrf.mxu0 }
 0x3de   : > { %6381 = vst.msk [vmem:[#allocation3 + $0x78] sm:$0xff] %vm231_vm0, %v6345_v59  ;;  %v11606_v16 = vadd.f32 %v6246_v24, %v11444_v14  ;;  %v6248_v41 = vadd.f32 %v6247_v49, %v11526_v39  ;;  %v6313_v14 = vld [vmem:[#allocation3 + $0x98] sm:$0xff] }
 0x3df   : > { %v11602_v36 = vpop.f32.mrf.mxu1  ;;  %v6249_v10 = vpop.f32.mrf.mxu0 }
 0x3e0   : > { %v6347_v13 = vadd.f32 %v6311_v56, %v6248_v41  ;;  %v6250_v50 = vadd.f32 %v6249_v10, %v11533_v19  ;;  %v6321_v41 = vld [vmem:[#allocation3 + $0xd8] sm:$0xff] }
 0x3e1   : > { %v6166_v52 = vpop.f32.mrf.mxu1  ;;  %v6251_v44 = vpop.f32.mrf.mxu0 }
 0x3e2   : > { %6383 = vst.msk [vmem:[#allocation3 + $0x88] sm:$0xff] %vm231_vm0, %v6347_v13  ;;  %v11614_v57 = vadd.f32 %v6250_v50, %v11452_v47  ;;  %v6252_v51 = vadd.f32 %v6251_v44, %v11536_v21  ;;  %v6323_v44 = vld [vmem:[#allocation3 + $0xe8] sm:$0xff] }
 0x3e3   : > { %v11610_v23 = vpop.f32.mrf.mxu1  ;;  %v6255_v55 = vpop.f32.mrf.mxu0 }
 0x3e4   : > { %v6349_v39 = vadd.f32 %v6313_v14, %v6252_v51  ;;  %v6256_v33 = vadd.f32 %v6255_v55, %v11543_v54 }
 0x3e5   : > { %v11617_v29 = vpop.f32.mrf.mxu1  ;;  %v6257_v0 = vpop.f32.mrf.mxu0 }
 0x3e6   : > { %6385 = vst.msk [vmem:[#allocation3 + $0x98] sm:$0xff] %vm231_vm0, %v6349_v39  ;;  %v11624_v19 = vadd.f32 %v6256_v33, %v11462_v11  ;;  %v6258_v47 = vadd.f32 %v6257_v0, %v11546_v9  ;;  %v6317_v11 = vld [vmem:[#allocation3 + $0xb8] sm:$0xff] }
 0x3e7   : > { %v11620_v61 = vpop.f32.mrf.mxu1  ;;  %v6259_v28 = vpop.f32.mrf.mxu0  ;;  %v6325_v33 = vld [vmem:[#allocation3 + $0xf8] sm:$0xff] }
 0x3e8   : > { %v6351_v15 = vadd.f32 %v6315_v5, %v6258_v47  ;;  %v6260_v12 = vadd.f32 %v6259_v28, %v11553_v4 }
 0x3e9   : > { %v11627_v21 = vpop.f32.mrf.mxu1  ;;  %v6261_v22 = vpop.f32.mrf.mxu0 }
 0x3ea   : > { %6387 = vst.msk [vmem:[#allocation3 + $0xa8] sm:$0xff] %vm231_vm0, %v6351_v15  ;;  %v6352_v54 = vadd.f32 %v6260_v12, %v11472_v1  ;;  %v6262_v27 = vadd.f32 %v6261_v22, %v11556_v17  ;;  %v6327_v15 = vld [vmem:[#allocation3 + $0x108] sm:$0xff] }
 0x3eb   : > { %v11630_v20 = vpop.f32.mrf.mxu1  ;;  %v6265_v48 = vpop.f32.mrf.mxu0 }
 0x3ec   : > { %6388 = vst [vmem:[#allocation3 + $0xb0] sm:$0xff] %v6352_v54  ;;  %v6353_v9 = vadd.f32 %v6317_v11, %v6262_v27  ;;  %v6266_v30 = vadd.f32 %v6265_v48, %v11563_v53  ;;  %v6329_v48 = vld [vmem:[#allocation3 + $0x118] sm:$0xff] }
 0x3ed   : > { %v11635_v34 = vpop.f32.mrf.mxu1  ;;  %v6267_v8 = vpop.f32.mrf.mxu0 }
 0x3ee   : > { %6389 = vst.msk [vmem:[#allocation3 + $0xb8] sm:$0xff] %vm231_vm0, %v6353_v9  ;;  %v11642_v4 = vadd.f32 %v6266_v30, %v11482_v37  ;;  %v6268_v1 = vadd.f32 %v6267_v8, %v11566_v46 }
 0x3ef   : > { %v11638_v42 = vpop.f32.mrf.mxu1  ;;  %v6269_v17 = vpop.f32.mrf.mxu0 }
 0x3f0   : > { %v6355_v45 = vadd.f32 %v6319_v35, %v6268_v1  ;;  %v6270_v59 = vadd.f32 %v6269_v17, %v11573_v3 }
 0x3f1   : > { %v11645_v2 = vpop.f32.mrf.mxu1  ;;  %v6271_v24 = vpop.f32.mrf.mxu0 }
 0x3f2   : > { %6391 = vst.msk [vmem:[#allocation3 + $0xc8] sm:$0xff] %vm231_vm0, %v6355_v45  ;;  %v11652_v53 = vadd.f32 %v6270_v59, %v11492_v58  ;;  %v6272_v37 = vadd.f32 %v6271_v24, %v11576_v32  ;;  %v7088_v59 = vld [vmem:[#allocation3 + $0x8] sm:$0xff] }
 0x3f3   : > { %v11648_v49 = vpop.f32.mrf.mxu1  ;;  %v6275_v56 = vpop.f32.mrf.mxu0 }
 0x3f4   : > { %v6357_v10 = vadd.f32 %v6321_v41, %v6272_v37  ;;  %v6276_v52 = vadd.f32 %v6275_v56, %v11583_v43 }
 0x3f5   : > { %v11655_v46 = vpop.f32.mrf.mxu1  ;;  %v6277_v13 = vpop.f32.mrf.mxu0 }
 0x3f6   : > { %6393 = vst.msk [vmem:[#allocation3 + $0xd8] sm:$0xff] %vm231_vm0, %v6357_v10  ;;  %v11662_v3 = vadd.f32 %v6276_v52, %v11502_v63  ;;  %v6278_v58 = vadd.f32 %v6277_v13, %v11586_v62  ;;  %v7090_v52 = vld [vmem:[#allocation3 + $0x18] sm:$0xff] }
 0x3f7   : > { %v11658_v50 = vpop.f32.mrf.mxu1  ;;  %v6279_v51 = vpop.f32.mrf.mxu0 }
 0x3f8   : > { %v6359_v14 = vadd.f32 %v6323_v44, %v6278_v58 }
 0x3f9   : > { %v11665_v32 = vpop.f32.mrf.mxu1  ;;  %v6281_v55 = vpop.f32.mrf.mxu0 }
 0x3fa   : > { %6395 = vst.msk [vmem:[#allocation3 + $0xe8] sm:$0xff] %vm231_vm0, %v6359_v14  ;;  %v6282_v43 = vadd.f32 %v6281_v55, %v11594_v38  ;;  %v7092_v55 = vld [vmem:[#allocation3 + $0x28] sm:$0xff] }
 0x3fb   : > { %v11667_v39 = vpop.f32.mrf.mxu1  ;;  %v6285_v0 = vpop.f32.mrf.mxu0 }
 0x3fc   : > { %v6361_v63 = vadd.f32 %v6325_v33, %v6282_v43 }
 0x3fd   : > { %v11671_v47 = vpop.f32.mrf.mxu1  ;;  %v6287_v5 = vpop.f32.mrf.mxu0 }
 0x3fe   : > { %6397 = vst.msk [vmem:[#allocation3 + $0xf8] sm:$0xff] %vm231_vm0, %v6361_v63  ;;  %v6288_v62 = vadd.f32 %v6287_v5, %v11602_v36 }
 0x3ff   : > { %v11673_v28 = vpop.f32.mrf.mxu1  ;;  %v6289_v12 = vpop.f32.mrf.mxu0 }
 0x400   : > { %v6363_v54 = vadd.f32 %v6327_v15, %v6288_v62  ;;  %v7227_v12 = vlaneseq }
 0x401   : > { %v11677_v22 = vpop.f32.mrf.mxu1  ;;  %v6291_v27 = vpop.f32.mrf.mxu0 }
 0x402   : > { %6399 = vst.msk [vmem:[#allocation3 + $0x108] sm:$0xff] %vm231_vm0, %v6363_v54  ;;  %v6292_v38 = vadd.f32 %v6291_v27, %v11610_v23 }
 0x403   : > { %v11679_v11 = vpop.f32.mrf.mxu1  ;;  %v6998_v9 = vpop.f32.mrf.mxu0 }
 0x404   : > { %v6365_v8 = vadd.f32 %v6329_v48, %v6292_v38  ;;  %v6999_v1 = vadd.f32 %v6998_v9, %v11617_v29 }
 0x405   : > { %v11683_v30 = vpop.f32.mrf.mxu1  ;;  %v7000_v36 = vpop.f32.mrf.mxu0 }
 0x406   : > { %6401 = vst.msk [vmem:[#allocation3 + $0x118] sm:$0xff] %vm231_vm0, %v6365_v8  ;;  %v11690_v17 = vadd.f32 %v6999_v1, %v11530_v26  ;;  %v7001_v45 = vadd.f32 %v7000_v36, %v11620_v61  ;;  %v7228_v1 = vshrl.u32 %v7227_v12, 7 }
 0x407   : > { %v11686_v35 = vpop.f32.mrf.mxu1  ;;  %v7002_v24 = vpop.f32.mrf.mxu0 }
 0x408   : > { %v7124_v37 = vadd.f32 %v7088_v59, %v7001_v45  ;;  %v7003_v41 = vadd.f32 %v7002_v24, %v11627_v21 }
 0x409   : > { %v11693_v23 = vpop.f32.mrf.mxu1  ;;  %v7004_v56 = vpop.f32.mrf.mxu0 }
 0x40a   : > { %7160 = vst.msk [vmem:[#allocation3 + $0x8] sm:$0xff] %vm231_vm0, %v7124_v37  ;;  %v11700_v29 = vadd.f32 %v7003_v41, %v11540_v7  ;;  %v7005_v26 = vadd.f32 %v7004_v56, %v11630_v20  ;;  %v7229_v56 = vsub.s32 0, %v7228_v1 }
 0x40b   : > { %v11696_v10 = vpop.f32.mrf.mxu1  ;;  %v7008_v13 = vpop.f32.mrf.mxu0 }
 0x40c   : > { %v7126_v58 = vadd.f32 %v7090_v52, %v7005_v26  ;;  %v7009_v44 = vadd.f32 %v7008_v13, %v11635_v34 }
 0x40d   : > { %v11703_v61 = vpop.f32.mrf.mxu1  ;;  %v7010_v51 = vpop.f32.mrf.mxu0 }
 0x40e   : > { %7162 = vst.msk [vmem:[#allocation3 + $0x18] sm:$0xff] %vm231_vm0, %v7126_v58  ;;  %v11710_v21 = vadd.f32 %v7009_v44, %v11550_v6  ;;  %v7011_v7 = vadd.f32 %v7010_v51, %v11638_v42  ;;  %v7094_v6 = vld [vmem:[#allocation3 + $0x38] sm:$0xff] }
 0x40f   : > { %v11706_v14 = vpop.f32.mrf.mxu1  ;;  %v7012_v43 = vpop.f32.mrf.mxu0 }
 0x410   : > { %v7128_v33 = vadd.f32 %v7092_v55, %v7011_v7  ;;  %v7013_v0 = vadd.f32 %v7012_v43, %v11645_v2 }
 0x411   : > { %v11713_v20 = vpop.f32.mrf.mxu1  ;;  %v7014_v63 = vpop.f32.mrf.mxu0 }
 0x412   : > { %7164 = vst.msk [vmem:[#allocation3 + $0x28] sm:$0xff] %vm231_vm0, %v7128_v33  ;;  %v7129_v34 = vadd.f32 %v7013_v0, %v11560_v31  ;;  %v7015_v62 = vadd.f32 %v7014_v63, %v11648_v49  ;;  %v7096_v49 = vld [vmem:[#allocation3 + $0x48] sm:$0xff] }
 0x413   : > { %v11716_v5 = vpop.f32.mrf.mxu1  ;;  %v7018_v15 = vpop.f32.mrf.mxu0 }
 0x414   : > { %v7208_v54 = vmax.f32 %v11690_v17, %v7129_v34  ;;  %v7130_v27 = vadd.f32 %v7094_v6, %v7015_v62  ;;  %v7019_v38 = vadd.f32 %v7018_v15, %v11655_v46  ;;  %v7102_v62 = vld [vmem:[#allocation3 + $0x78] sm:$0xff] }
 0x415   : > { %v11721_v42 = vpop.f32.mrf.mxu1  ;;  %v7020_v2 = vpop.f32.mrf.mxu0 }
 0x416   : > { %7166 = vst.msk [vmem:[#allocation3 + $0x38] sm:$0xff] %vm231_vm0, %v7130_v27  ;;  %v7131_v9 = vadd.f32 %v7019_v38, %v11570_v60  ;;  %v7021_v31 = vadd.f32 %v7020_v2, %v11658_v50  ;;  %v7098_v50 = vld [vmem:[#allocation3 + $0x58] sm:$0xff]  ;;  %v7233_v38 = vsub.s32 1, %v7228_v1 }
 0x417   : > { %v11725_v48 = vpop.f32.mrf.mxu1  ;;  %v7022_v8 = vpop.f32.mrf.mxu0 }
 0x418   : > { %v7210_v45 = vmax.f32 %v11700_v29, %v7131_v9  ;;  %v7132_v17 = vadd.f32 %v7096_v49, %v7021_v31  ;;  %v7023_v59 = vadd.f32 %v7022_v8, %v11665_v32  ;;  %v7195_v32 = vld [vmem:[%s12041_s2] sm:$0x3] }
 0x419   : > { %v11730_v36 = vpop.f32.mrf.mxu1  ;;  %v7024_v46 = vpop.f32.mrf.mxu0  ;;  %v11753_v51 = vrot.slane %v7195_v32, %v7229_v56 }
 0x41a   : > { %7168 = vst.msk [vmem:[#allocation3 + $0x48] sm:$0xff] %vm231_vm0, %v7132_v17  ;;  %v7133_v37 = vadd.f32 %v7023_v59, %v11580_v18  ;;  %v7025_v60 = vadd.f32 %v7024_v46, %v11667_v39  ;;  %v11778_v46 = vrot.slane %v7195_v32, %v7233_v38 }
 0x41b   : > { %v11734_v24 = vpop.f32.mrf.mxu1  ;;  %v7028_v41 = vpop.f32.mrf.mxu0 }
 0x41c   : > { %v7212_v52 = vmax.f32 %v11710_v21, %v7133_v37  ;;  %v7134_v29 = vadd.f32 %v7098_v50, %v7025_v60  ;;  %v7029_v13 = vadd.f32 %v7028_v41, %v11671_v47  ;;  %v7100_v21 = vld [vmem:[#allocation3 + $0x68] sm:$0xff] }
 0x41d   : > { %v11739_v26 = vpop.f32.mrf.mxu1  ;;  %v7030_v58 = vpop.f32.mrf.mxu0  ;;  %v7203_v27 = vld [vmem:[#allocation3 + $0x38] sm:$0xff]  ;;  %v7104_v50 = vld [vmem:[#allocation3 + $0x88] sm:$0xff] }
 0x41e   : > { %7170 = vst.msk [vmem:[#allocation3 + $0x58] sm:$0xff] %vm231_vm0, %v7134_v29  ;;  %v11750_v18 = vadd.f32 %v7029_v13, %v11590_v25  ;;  %v7031_v39 = vadd.f32 %v7030_v58, %v11673_v28 }
 0x41f   : > { %v11746_v44 = vpop.f32.mrf.mxu1  ;;  %v7032_v7 = vpop.f32.mrf.mxu0 }
 0x420   : > { %v7220_v47 = vmax.f32 %v7208_v54, %v11750_v18  ;;  %v7136_v43 = vadd.f32 %v7100_v21, %v7031_v39  ;;  %v7033_v33 = vadd.f32 %v7032_v7, %v11677_v22 }
 0x421   : > { %v6949_v55 = vpop.f32.mrf.mxu1  ;;  %v7034_v0 = vpop.f32.mrf.mxu0  ;;  %v7205_v41 = vld [vmem:[#allocation3 + $0x48] sm:$0xff] }
 0x422   : > { %7172 = vst.msk [vmem:[#allocation3 + $0x68] sm:$0xff] %vm231_vm0, %v7136_v43  ;;  %v11761_v25 = vadd.f32 %v7033_v33, %v11598_v40  ;;  %v7035_v28 = vadd.f32 %v7034_v0, %v11679_v11  ;;  %v7237_v34 = vadd.f32 %v11753_v51, %v7220_v47  ;;  %v7197_v40 = vld [vmem:[#allocation3 + $0x8] sm:$0xff] }
 0x423   : > { %v11757_v63 = vpop.f32.mrf.mxu1  ;;  %v7038_v6 = vpop.f32.mrf.mxu0  ;;  %v7209_v17 = vmax.f32 %v7197_v40, %v7203_v27 }
 0x424   : > { %v7222_v12 = vmax.f32 %v7210_v45, %v11761_v25  ;;  %v7138_v54 = vadd.f32 %v7102_v62, %v7035_v28  ;;  %v7039_v22 = vadd.f32 %v7038_v6, %v11683_v30  ;;  %v7243_v31 = vmax.f32 %v7237_v34, 0.0  ;;  %v7112_v62 = vld [vmem:[#allocation3 + $0xc8] sm:$0xff] }
 0x425   : > { %v6955_v15 = vpop.f32.mrf.mxu1  ;;  %v7040_v2 = vpop.f32.mrf.mxu0 }
 0x426   : > { %7174 = vst.msk [vmem:[#allocation3 + $0x78] sm:$0xff] %vm231_vm0, %v7138_v54  ;;  %v7239_v11 = vadd.f32 %v11753_v51, %v7222_v12  ;;  %v11772_v49 = vadd.f32 %v7039_v22, %v11606_v16  ;;  %v7041_v30 = vadd.f32 %v7040_v2, %v11686_v35  ;;  %v7280_v13 = vsel %vm7279_vm3, %v7243_v31, -inf }
 0x427   : > { %v11767_v9 = vpop.f32.mrf.mxu1  ;;  %v7042_v8 = vpop.f32.mrf.mxu0  ;;  %v7265_v33 = vsel %vm7264_vm4, %v7243_v31, -inf }
 0x428   : > { %v7043_v1 = vadd.f32 %v7042_v8, %v11693_v23  ;;  %v11780_v37 = vmax.f32 %v7239_v11, 0.0  ;;  %v11783_v60 = vmax.f32 %v7212_v52, %v11772_v49  ;;  %v7140_v29 = vadd.f32 %v7104_v50, %v7041_v30  ;;  %v7199_v52 = vld [vmem:[#allocation3 + $0x18] sm:$0xff] }
 0x429   : > { %v6959_v45 = vpop.f32.mrf.mxu1  ;;  %v11776_v59 = vld [vmem:[#allocation3 + $0x68] sm:$0xff]  ;;  %v7250_v23 = vsel %vm7249_vm2, %v7243_v31, -inf  ;;  %v7211_v7 = vmax.f32 %v7199_v52, %v7205_v41  ;;  %v7266_v12 = vrot.slane %v7265_v33, 4  ;;  %v7114_v31 = vld [vmem:[#allocation3 + $0xd8] sm:$0xff] }
 0x42a   : > { %v7221_v56 = vmax.f32 %v7209_v17, %v11776_v59  ;;  %v11789_v35 = vadd.f32 %v7043_v1, %v11614_v57  ;;  %v7281_v32 = vsel %vm373_vm7, %v11780_v37, -inf  ;;  %7176 = vst.msk [vmem:[#allocation3 + $0x88] sm:$0xff] %vm231_vm0, %v7140_v29  ;;  %v7251_v43 = vrot.slane %v7250_v23, 4 }
 0x42b   : > { %v11785_v16 = vpop.f32.mrf.mxu1  ;;  %v7282_v39 = vmax.f32 %v7280_v13, %v7281_v32  ;;  %v7298_v38 = vsel %vm7249_vm2, %v11780_v37, -inf  ;;  %v7267_v45 = vmax.f32 %v7265_v33, %v7266_v12 }
 0x42c   : > { %v7238_v55 = vadd.f32 %v11778_v46, %v7221_v56  ;;  %v7252_v27 = vmax.f32 %v7250_v23, %v7251_v43  ;;  %v7299_v56 = vrot.slane %v7298_v38, 4 }
 0x42d   : > { %v7058_v58 = vpop.f32.mrf.mxu1  ;;  %v11798_v57 = vld [vmem:[#allocation3 + $0x78] sm:$0xff]  ;;  %v7283_v40 = vrot.slane %v7282_v39, 4 }
 0x42e   : > { %v7059_v21 = vadd.f32 %v7058_v58, %v11721_v42  ;;  %v7223_v34 = vmax.f32 %v7211_v7, %v11798_v57  ;;  %v7244_v54 = vmax.f32 %v7238_v55, 0.0  ;;  %v7253_v1 = vrot.slane %v7252_v27, 2  ;;  %v7207_v58 = vld [vmem:[#allocation3 + $0x58] sm:$0xff] }
 0x42f   : > { %v7060_v47 = vpop.f32.mrf.mxu1  ;;  %v7284_v23 = vmax.f32 %v7282_v39, %v7283_v40  ;;  %v7300_v43 = vmax.f32 %v7298_v38, %v7299_v56  ;;  %v7241_v38 = vadd.f32 %v11753_v51, %v11783_v60  ;;  %v7044_v56 = vpop.f32.mrf.mxu0 }
 0x430   : > { %v11802_v0 = vadd.f32 %v7059_v21, %v11642_v4  ;;  %v7061_v28 = vadd.f32 %v7060_v47, %v11725_v48  ;;  %v7313_v4 = vsel %vm7312_vm5, %v11780_v37, -inf  ;;  %v7257_v30 = vsel %vm295_vm1, %v7244_v54, -inf }
 0x431   : > { %v7062_v6 = vpop.f32.mrf.mxu1  ;;  %v7272_v50 = vsel %vm12171_vm6, %v7244_v54, -inf  ;;  %v7258_v32 = vrot.slane %v7257_v30, 4  ;;  %v7268_v21 = vrot.slane %v7267_v45, 2  ;;  %v7254_v47 = vmax.f32 %v7252_v27, %v7253_v1  ;;  %v7118_v27 = vld [vmem:[#allocation3 + $0xf8] sm:$0xff] }
 0x432   : > { %v7148_v42 = vadd.f32 %v7112_v62, %v7061_v28  ;;  %v7063_v15 = vadd.f32 %v7062_v6, %v11730_v36  ;;  %v7240_v36 = vadd.f32 %v11778_v46, %v7223_v34  ;;  %v7273_v7 = vrot.slane %v7272_v50, 4  ;;  %v7201_v28 = vld [vmem:[#allocation3 + $0x28] sm:$0xff] }
 0x433   : > { %v7064_v22 = vpop.f32.mrf.mxu1  ;;  %v7213_v39 = vmax.f32 %v7201_v28, %v7207_v58  ;;  %v7259_v62 = vmax.f32 %v7257_v30, %v7258_v32  ;;  %v11834_v30 = vld [vmem:[#allocation3 + $0x88] sm:$0xff] }
 0x434   : > { %7184 = vst.msk [vmem:[#allocation3 + $0xc8] sm:$0xff] %vm231_vm0, %v7148_v42  ;;  %v11813_v48 = vadd.f32 %v7063_v15, %v11652_v53  ;;  %v7065_v2 = vadd.f32 %v7064_v22, %v11734_v24  ;;  %v7314_v53 = vrot.slane %v7313_v4, 4  ;;  %v11825_v13 = vmax.f32 %v7240_v36, 0.0  ;;  %v7120_v58 = vld [vmem:[#allocation3 + $0x108] sm:$0xff] }
 0x435   : > { %v7068_v11 = vpop.f32.mrf.mxu1  ;;  %v7269_v15 = vmax.f32 %v7267_v45, %v7268_v21  ;;  %v7274_v12 = vmax.f32 %v7272_v50, %v7273_v7  ;;  %v7289_v22 = vsel %vm12172_vm9, %v7244_v54, -inf  ;;  %v7327_v50 = vsel %vm7279_vm3, %v11780_v37, -inf }
 0x436   : > { %v7150_v8 = vadd.f32 %v7114_v31, %v7065_v2  ;;  %v7069_v17 = vadd.f32 %v7068_v11, %v11739_v26  ;;  %v7116_v26 = vld [vmem:[#allocation3 + $0xe8] sm:$0xff]  ;;  %v7315_v34 = vmax.f32 %v7313_v4, %v7314_v53  ;;  %v7301_v2 = vrot.slane %v7300_v43, 2 }
 0x437   : > { %v7070_v41 = vpop.f32.mrf.mxu1  ;;  %v7255_v31 = vrot.slane %v7254_v47, 1  ;;  %v7305_v45 = vsel %vm295_vm1, %v11825_v13, -inf  ;;  %v7275_v1 = vrot.slane %v7274_v12, 2  ;;  %v7320_v60 = vsel %vm12173_vm14, %v11825_v13, -inf }
 0x438   : > { %7186 = vst.msk [vmem:[#allocation3 + $0xd8] sm:$0xff] %vm231_vm0, %v7150_v8  ;;  %v11822_v24 = vadd.f32 %v7069_v17, %v11662_v3  ;;  %v7071_v29 = vadd.f32 %v7070_v41, %v11746_v44  ;;  %v7285_v3 = vrot.slane %v7284_v23, 2  ;;  %v7290_v44 = vsel %vm629_vm10, %v11825_v13, -inf }
 0x439   : > { %v7072_v52 = vpop.f32.mrf.mxu1  ;;  %v7291_v40 = vmax.f32 %v7289_v22, %v7290_v44  ;;  %v7316_v8 = vrot.slane %v7315_v34, 2  ;;  %v7247_v17 = vmax.f32 %v7241_v38, 0.0  ;;  %v7302_v53 = vmax.f32 %v7300_v43, %v7301_v2  ;;  %v7048_v44 = vpop.f32.mrf.mxu0 }
 0x43a   : > { %v7152_v55 = vadd.f32 %v7116_v26, %v7071_v29  ;;  %v7286_v11 = vmax.f32 %v7284_v23, %v7285_v3  ;;  %v7225_v32 = vmax.f32 %v7213_v39, %v11834_v30  ;;  %v7270_v26 = vrot.slane %v7269_v15, 1 }
 0x43b   : > { %v7074_v33 = vpop.f32.mrf.mxu1  ;;  %v7328_v41 = vsel %vm373_vm7, %v7247_v17, -inf  ;;  %v7292_v29 = vrot.slane %v7291_v40, 4  ;;  %v7306_v52 = vrot.slane %v7305_v45, 4  ;;  %v7321_v7 = vrot.slane %v7320_v60, 4 }
 0x43c   : > { %7188 = vst.msk [vmem:[#allocation3 + $0xe8] sm:$0xff] %vm231_vm0, %v7152_v55  ;;  %v7075_v6 = vadd.f32 %v7074_v33, %v11757_v63  ;;  %v7260_v63 = vrot.slane %v7259_v62, 2  ;;  %v7329_v23 = vmax.f32 %v7327_v50, %v7328_v41  ;;  %v7276_v33 = vmax.f32 %v7274_v12, %v7275_v1  ;;  %v7106_v41 = vld [vmem:[#allocation3 + $0x98] sm:$0xff] }
 0x43d   : > { %v7078_v42 = vpop.f32.mrf.mxu1  ;;  %v7287_v28 = vrot.slane %v7286_v11, 1  ;;  %v7345_v3 = vsel %vm7264_vm4, %v7247_v17, -inf  ;;  %v7045_v37 = vadd.f32 %v7044_v56, %v11696_v10  ;;  %v7303_v43 = vrot.slane %v7302_v53, 1 }
 0x43e   : > { %v7154_v36 = vadd.f32 %v7118_v27, %v7075_v6  ;;  %v7261_v21 = vmax.f32 %v7259_v62, %v7260_v63  ;;  %v11848_v6 = vmax.f32 %v7254_v47, %v7255_v31  ;;  %v7293_v42 = vmax.f32 %v7291_v40, %v7292_v29  ;;  %v7050_v31 = vpop.f32.mrf.mxu0 }
 0x43f   : > { %v7080_v4 = vpop.f32.mrf.mxu1  ;;  %v7242_v39 = vadd.f32 %v11778_v46, %v7225_v32  ;;  %v11852_v62 = vmax.f32 %v7269_v15, %v7270_v26  ;;  %v7359_v12 = vsel %vm7312_vm5, %v7247_v17, -inf  ;;  %v7379_v27 = vmax.f32 %v11750_v18, %v11789_v35 }
 0x440   : > { %7190 = vst.msk [vmem:[#allocation3 + $0xf8] sm:$0xff] %vm231_vm0, %v7154_v36  ;;  %v7081_v54 = vadd.f32 %v7080_v4, %v11767_v9  ;;  %v7317_v9 = vmax.f32 %v7315_v34, %v7316_v8  ;;  %v7307_v34 = vmax.f32 %v7305_v45, %v7306_v52  ;;  %v7262_v38 = vrot.slane %v7261_v21, 1  ;;  %v7052_v32 = vpop.f32.mrf.mxu0 }
 0x441   : > { %v7082_v22 = vpop.f32.mrf.mxu1  ;;  %v7322_v2 = vmax.f32 %v7320_v60, %v7321_v7  ;;  %v7346_v47 = vrot.slane %v7345_v3, 4  ;;  %v7277_v36 = vrot.slane %v7276_v33, 1  ;;  %v11857_v4 = vmax.f32 %v7286_v11, %v7287_v28 }
 0x442   : > { %v7156_v55 = vadd.f32 %v7120_v58, %v7081_v54  ;;  %v7318_v10 = vrot.slane %v7317_v9, 1  ;;  %v7391_v40 = vmax.f32 %v7379_v27, %v11802_v0  ;;  %v11860_v8 = vmax.f32 %v7302_v53, %v7303_v43  ;;  %v7122_v43 = vld [vmem:[#allocation3 + $0x118] sm:$0xff]  ;;  %v7054_v22 = vpop.f32.mrf.mxu0 }
 0x443   : > { %v7294_v15 = vrot.slane %v7293_v42, 2  ;;  %v7360_v63 = vrot.slane %v7359_v12, 4  ;;  %v7248_v45 = vmax.f32 %v7242_v39, 0.0  ;;  %v7308_v54 = vrot.slane %v7307_v34, 2  ;;  %v7084_v18 = vpop.f32.mrf.mxu1 }
 0x444   : > { %7192 = vst.msk [vmem:[#allocation3 + $0x108] sm:$0xff] %vm231_vm0, %v7156_v55  ;;  %v7330_v17 = vrot.slane %v7329_v23, 4  ;;  %v7397_v1 = vadd.f32 %v7391_v40, %v11753_v51  ;;  %v11863_v35 = vmax.f32 %v7261_v21, %v7262_v38  ;;  %v11865_v60 = vmax.f32 %v7317_v9, %v7318_v10  ;;  %v7108_v10 = vld [vmem:[#allocation3 + $0xa8] sm:$0xff] }
 0x445   : > { %v7323_v50 = vrot.slane %v7322_v2, 2  ;;  %v7347_v11 = vmax.f32 %v7345_v3, %v7346_v47  ;;  %v11867_v56 = vmax.f32 %v7276_v33, %v7277_v36  ;;  %v7336_v0 = vsel %vm12174_vm12, %v11825_v13, -inf }
 0x446   : > { %v11871_v53 = vmax.f32 %v7397_v1, 0.0  ;;  %v7142_v29 = vadd.f32 %v7106_v41, %v7045_v37  ;;  %v11873_v26 = vmax.f32 %v7293_v42, %v7294_v15  ;;  %v7361_v52 = vmax.f32 %v7359_v12, %v7360_v63 }
 0x447   : > { %v7337_v58 = vsel %vm629_vm10, %v7248_v45, -inf  ;;  %v7085_v21 = vadd.f32 %v7084_v18, %v11785_v16  ;;  %v11877_v9 = vmax.f32 %v7307_v34, %v7308_v54  ;;  %v7331_v7 = vmax.f32 %v7329_v23, %v7330_v17 }
 0x448   : > { %v7409_v55 = vsel %vm7249_vm2, %v11871_v53, -inf  ;;  %v7423_v13 = vsel %vm7264_vm4, %v11871_v53, -inf  ;;  %7178 = vst.msk [vmem:[#allocation3 + $0x98] sm:$0xff] %vm231_vm0, %v7142_v29  ;;  %v11884_v33 = vmax.f32 %v7322_v2, %v7323_v50  ;;  %v7348_v28 = vrot.slane %v7347_v11, 2 }
 0x449   : > { %v7410_v3 = vrot.slane %v7409_v55, 4  ;;  %v7424_v37 = vrot.slane %v7423_v13, 4  ;;  %v7338_v42 = vmax.f32 %v7336_v0, %v7337_v58  ;;  %v7158_v39 = vadd.f32 %v7122_v43, %v7085_v21 }
 0x44a   : > { %v7049_v16 = vadd.f32 %v7048_v44, %v11703_v61  ;;  %v7051_v23 = vadd.f32 %v7050_v31, %v11706_v14  ;;  %v7362_v34 = vrot.slane %v7361_v52, 2  ;;  %v7352_v12 = vsel %vm12175_vm11, %v7248_v45, -inf  ;;  %v7109_v31 = vld [vmem:[#allocation3 + $0xb0] sm:$0xff] }
 0x44b   : > { %v7411_v27 = vmax.f32 %v7409_v55, %v7410_v3  ;;  %v7425_v38 = vmax.f32 %v7423_v13, %v7424_v37  ;;  %v7332_v2 = vrot.slane %v7331_v7, 2  ;;  %7194 = vst.msk [vmem:[#allocation3 + $0x118] sm:$0xff] %vm231_vm0, %v7158_v39  ;;  %v7053_v40 = vadd.f32 %v7052_v32, %v11713_v20 }
 0x44c   : > { %v7143_v47 = vadd.f32 %v7049_v16, %v11624_v19  ;;  %v7144_v36 = vadd.f32 %v7108_v10, %v7051_v23  ;;  %v11893_v61 = vsel %vm12176_vm15, %v7248_v45, -inf  ;;  %v7055_v15 = vadd.f32 %v7054_v22, %v11716_v5  ;;  %v7110_v19 = vld [vmem:[#allocation3 + $0xb8] sm:$0xff] }
 0x44d   : > { %v7412_v14 = vrot.slane %v7411_v27, 2  ;;  %v7426_v44 = vrot.slane %v7425_v38, 2  ;;  %v11896_v63 = vmax.f32 %v7347_v11, %v7348_v28  ;;  %v7339_v54 = vrot.slane %v7338_v42, 4  ;;  %v7386_v11 = vld [vmem:[#allocation3 + $0xc8] sm:$0xff] }
 0x44e   : > { %v7381_v17 = vmax.f32 %v11761_v25, %v7143_v47  ;;  %7180 = vst.msk [vmem:[#allocation3 + $0xa8] sm:$0xff] %vm231_vm0, %v7144_v36  ;;  %v7145_v1 = vadd.f32 %v7109_v31, %v7053_v40  ;;  %v7353_v18 = vrot.slane %v7352_v12, 4  ;;  %v7146_v45 = vadd.f32 %v7110_v19, %v7055_v15 }
 0x44f   : > { %v7413_v50 = vmax.f32 %v7411_v27, %v7412_v14  ;;  %v7427_v20 = vmax.f32 %v7425_v38, %v7426_v44  ;;  %v7374_v41 = vld [vmem:[#allocation3 + $0x98] sm:$0xff]  ;;  %v7333_v0 = vmax.f32 %v7331_v7, %v7332_v2  ;;  %v7296_v25 = vrot.slane %v11873_v26, 1 }
 0x450   : > { %v7380_v29 = vmax.f32 %v11776_v59, %v7374_v41  ;;  %v7393_v32 = vmax.f32 %v7381_v17, %v11813_v48  ;;  %7181 = vst [vmem:[#allocation3 + $0xb0] sm:$0xff] %v7145_v1  ;;  %v7383_v5 = vmax.f32 %v11772_v49, %v7145_v1  ;;  %v7310_v58 = vrot.slane %v11877_v9, 1  ;;  %7182 = vst.msk [vmem:[#allocation3 + $0xb8] sm:$0xff] %vm231_vm0, %v7146_v45 }
 0x451   : > { %v7414_v21 = vrot.slane %v7413_v50, 1  ;;  %v7428_v55 = vrot.slane %v7427_v20, 1  ;;  %v11906_v13 = vmax.f32 %v7361_v52, %v7362_v34  ;;  %v7350_v48 = vrot.slane %v11896_v63, 1  ;;  %vm12177_vm0 = vmmov %vm12171_vm6 }
 0x452   : > { %v7392_v28 = vmax.f32 %v7380_v29, %v7386_v11  ;;  %v7399_v7 = vadd.f32 %v7393_v32, %v11753_v51  ;;  %v7395_v59 = vmax.f32 %v7383_v5, %v11822_v24  ;;  %v11911_v3 = vmax.f32 %v7338_v42, %v7339_v54 }
 0x453   : > { %v7367_v49 = vrot.slane %v11893_v61, 4  ;;  %v7415_v37 = vmax.f32 %v7413_v50, %v7414_v21  ;;  %v7334_v43 = vrot.slane %v7333_v0, 1  ;;  %v11914_v39 = vmax.f32 %v7352_v12, %v7353_v18  ;;  %v7388_v18 = vld [vmem:[#allocation3 + $0xd8] sm:$0xff] }
 0x454   : > { %v7398_v16 = vadd.f32 %v7392_v28, %v11778_v46  ;;  %v7405_v23 = vmax.f32 %v7399_v7, 0.0  ;;  %v7429_v52 = vmax.f32 %v7427_v20, %v7428_v55  ;;  %v7437_v22 = vsel %vm7279_vm3, %v11871_v53, -inf }
 0x455   : > { %v7529_v24 = vsel %vm373_vm7, %v11848_v6, %v7415_v37  ;;  %v7401_v34 = vadd.f32 %v7395_v59, %v11753_v51  ;;  %v7376_v36 = vld [vmem:[#allocation3 + $0xa8] sm:$0xff]  ;;  %v11930_v40 = vmax.f32 %v7333_v0, %v7334_v43  ;;  %vm7540_vm6 = vcmask 523268  }
 0x456   : > { %v7532_v42 = vsel %vm7531_vm13, %v7529_v24, %v11852_v62  ;;  %v7404_v27 = vmax.f32 %v7398_v16, 0.0  ;;  %v7438_v38 = vsel %vm373_vm7, %v7405_v23, -inf  ;;  %v7455_v12 = vsel %vm7249_vm2, %v7405_v23, -inf }
 0x457   : > { %v11927_v10 = vsel %vm7249_vm2, %v7532_v42, %v7429_v52  ;;  %v7439_v2 = vmax.f32 %v7437_v22, %v7438_v38  ;;  %v7456_v47 = vrot.slane %v7455_v12, 4  ;;  %v7469_v53 = vsel %vm7312_vm5, %v7405_v23, -inf }
 0x458   : > { %v7416_v51 = vsel %vm295_vm1, %v7404_v27, -inf  ;;  %v7430_v6 = vsel %vm12177_vm0, %v7404_v27, -inf  ;;  %v7470_v62 = vrot.slane %v7469_v53, 4  ;;  %v7382_v17 = vmax.f32 %v11798_v57, %v7376_v36 }
 0x459   : > { %v7417_v14 = vrot.slane %v7416_v51, 4  ;;  %v7431_v44 = vrot.slane %v7430_v6, 4  ;;  %v7440_v31 = vrot.slane %v7439_v2, 4  ;;  %v7457_v15 = vmax.f32 %v7455_v12, %v7456_v47 }
 0x45a   : > { %v7471_v54 = vmax.f32 %v7469_v53, %v7470_v62  ;;  %v11935_v1 = vmax.f32 %v7401_v34, 0.0  ;;  %v7483_v19 = vsel %vm7279_vm3, %v7405_v23, -inf  ;;  %v7394_v29 = vmax.f32 %v7382_v17, %v7388_v18  ;;  %vm12178_vm3 = vmmov %vm12172_vm9 }
 0x45b   : > { %v7418_v50 = vmax.f32 %v7416_v51, %v7417_v14  ;;  %v7432_v20 = vmax.f32 %v7430_v6, %v7431_v44  ;;  %v7441_v41 = vmax.f32 %v7439_v2, %v7440_v31  ;;  %v7458_v45 = vrot.slane %v7457_v15, 2 }
 0x45c   : > { %v7472_v0 = vrot.slane %v7471_v54, 2  ;;  %v7484_v32 = vsel %vm373_vm7, %v11935_v1, -inf  ;;  %v7501_v5 = vsel %vm7264_vm4, %v11935_v1, -inf  ;;  %v7400_v7 = vadd.f32 %v7394_v29, %v11778_v46  ;;  %vm12179_vm4 = vmmov %vm12173_vm14 }
 0x45d   : > { %v7419_v11 = vrot.slane %v7418_v50, 2  ;;  %v7433_v57 = vrot.slane %v7432_v20, 2  ;;  %v7442_v21 = vrot.slane %v7441_v41, 2  ;;  %v7459_v55 = vmax.f32 %v7457_v15, %v7458_v45  ;;  %vm12184_vm9 = vmmov %vm12179_vm4 }
 0x45e   : > { %v7473_v28 = vmax.f32 %v7471_v54, %v7472_v0  ;;  %v7485_v59 = vmax.f32 %v7483_v19, %v7484_v32  ;;  %v7502_v37 = vrot.slane %v7501_v5, 4  ;;  %v7446_v22 = vsel %vm12178_vm3, %v7404_v27, -inf }
 0x45f   : > { %v7420_v43 = vmax.f32 %v7418_v50, %v7419_v11  ;;  %v7434_v16 = vmax.f32 %v7432_v20, %v7433_v57  ;;  %v7443_v23 = vmax.f32 %v7441_v41, %v7442_v21  ;;  %v7460_v52 = vrot.slane %v7459_v55, 1  ;;  %v7378_v21 = vld [vmem:[#allocation3 + $0xb8] sm:$0xff] }
 0x460   : > { %v7474_v24 = vrot.slane %v7473_v28, 1  ;;  %v11944_v34 = vmax.f32 %v7400_v7, 0.0  ;;  %v7486_v42 = vrot.slane %v7485_v59, 4  ;;  %v7503_v47 = vmax.f32 %v7501_v5, %v7502_v37 }
 0x461   : > { %v7421_v38 = vrot.slane %v7420_v43, 1  ;;  %v7435_v12 = vrot.slane %v7434_v16, 1  ;;  %v7444_v2 = vrot.slane %v7443_v23, 1  ;;  %v7461_v53 = vmax.f32 %v7459_v55, %v7460_v52 }
 0x462   : > { %v7475_v36 = vmax.f32 %v7473_v28, %v7474_v24  ;;  %v7447_v51 = vsel %vm629_vm10, %v11944_v34, -inf  ;;  %v7462_v6 = vsel %vm295_vm1, %v11944_v34, -inf  ;;  %v7476_v44 = vsel %vm12179_vm4, %v11944_v34, -inf  ;;  %vm11971_vm1 = vmor %vm7540_vm6, %vm377_vm8 }
 0x463   : > { %v7422_v62 = vmax.f32 %v7420_v43, %v7421_v38  ;;  %v7445_v14 = vmax.f32 %v7443_v23, %v7444_v2  ;;  %v7448_v27 = vmax.f32 %v7446_v22, %v7447_v51  ;;  %v7436_v31 = vmax.f32 %v7434_v16, %v7435_v12  ;;  %vm12182_vm8 = vmmov %vm12178_vm3 }
 0x464   : > { %v7555_v15 = vsel %vm373_vm7, %v11865_v60, %v7475_v36  ;;  %v7463_v54 = vrot.slane %v7462_v6, 4  ;;  %v7487_v17 = vmax.f32 %v7485_v59, %v7486_v42  ;;  %v7504_v20 = vrot.slane %v7503_v47, 2  ;;  %v7390_v42 = vld [vmem:[#allocation3 + $0xe8] sm:$0xff] }
 0x465   : > { %v7530_v19 = vsel %vm373_vm7, %v11863_v35, %v7422_v62  ;;  %v7543_v18 = vsel %vm373_vm7, %v11857_v4, %v7445_v14  ;;  %v7449_v50 = vrot.slane %v7448_v27, 4  ;;  %v7477_v29 = vrot.slane %v7476_v44, 4 }
 0x466   : > { %v7533_v41 = vsel %vm7531_vm13, %v7530_v19, %v11867_v56  ;;  %v7545_v45 = vsel %vm7531_vm13, %v7543_v18, %v11860_v8  ;;  %v7464_v0 = vmax.f32 %v7462_v6, %v7463_v54  ;;  %v7488_v8 = vrot.slane %v7487_v17, 2 }
 0x467   : > { %v7535_v35 = vsel %vm7249_vm2, %v7533_v41, %v7436_v31  ;;  %v7547_v60 = vsel %vm7249_vm2, %v7545_v45, %v7461_v53  ;;  %v7450_v56 = vmax.f32 %v7448_v27, %v7449_v50  ;;  %v7364_v32 = vrot.slane %v11906_v13, 1 }
 0x468   : > { %v7538_v5 = vcombine.low %v11927_v10, %v7535_v35  ;;  %v7465_v11 = vrot.slane %v7464_v0, 2  ;;  %v7505_v57 = vmax.f32 %v7503_v47, %v7504_v20  ;;  %v7489_v28 = vmax.f32 %v7487_v17, %v7488_v8 }
 0x469   : > { %v7451_v55 = vrot.slane %v7450_v56, 2  ;;  %v7515_v7 = vsel %vm7312_vm5, %v11935_v1, -inf  ;;  %v7557_v59 = vsel %vm7531_vm13, %v7555_v15, %v11930_v40  ;;  %v7478_v43 = vmax.f32 %v7476_v44, %v7477_v29  ;;  %vm12183_vm5 = vmmov %vm12177_vm0 }
 0x46a   : > { %7542 = vst.msk [vmem:[%s11966_s8] sm:$0xff] %vm11971_vm1, %v7538_v5  ;;  %v7466_v37 = vmax.f32 %v7464_v0, %v7465_v11  ;;  %v7506_v16 = vrot.slane %v7505_v57, 1  ;;  %v7516_v23 = vrot.slane %v7515_v7, 4  ;;  %v7368_v10 = vmax.f32 %v11893_v61, %v7367_v49 }
 0x46b   : > { %v7452_v52 = vmax.f32 %v7450_v56, %v7451_v55  ;;  %v7490_v22 = vrot.slane %v7489_v28, 1  ;;  %v7384_v24 = vmax.f32 %v11834_v30, %v7378_v21  ;;  %v7351_v40 = vmax.f32 %v11896_v63, %v7350_v48 }
 0x46c   : > { %v7365_v1 = vmax.f32 %v11906_v13, %v7364_v32  ;;  %v7507_v38 = vmax.f32 %v7505_v57, %v7506_v16  ;;  %v7517_v12 = vmax.f32 %v7515_v7, %v7516_v23  ;;  %v7467_v47 = vrot.slane %v7466_v37, 1 }
 0x46d   : > { %v7453_v2 = vrot.slane %v7452_v52, 1  ;;  %v7491_v53 = vmax.f32 %v7489_v28, %v7490_v22  ;;  %v7396_v36 = vmax.f32 %v7384_v24, %v7390_v42  ;;  %v7297_v61 = vmax.f32 %v11873_v26, %v7296_v25 }
 0x46e   : > { %v7479_v49 = vrot.slane %v7478_v43, 2  ;;  %v7518_v51 = vrot.slane %v7517_v12, 2  ;;  %v7567_v30 = vsel %vm373_vm7, %v7351_v40, %v7507_v38  ;;  %v7311_v48 = vmax.f32 %v11877_v9, %v7310_v58 }
 0x46f   : > { %v7454_v6 = vmax.f32 %v7452_v52, %v7453_v2  ;;  %v11998_v62 = vsel %vm7249_vm2, %v7557_v59, %v7491_v53  ;;  %v7569_v63 = vsel %vm7531_vm13, %v7567_v30, %v7365_v1  ;;  %v7402_v13 = vadd.f32 %v7396_v36, %v11778_v46 }
 0x470   : > { %v7341_v14 = vrot.slane %v11911_v3, 2  ;;  %v7355_v26 = vrot.slane %v11914_v39, 2  ;;  %v7519_v25 = vmax.f32 %v7517_v12, %v7518_v51  ;;  %v7369_v27 = vrot.slane %v7368_v10, 2 }
 0x471   : > { %v7468_v44 = vmax.f32 %v7466_v37, %v7467_v47  ;;  %v7544_v31 = vsel %vm373_vm7, %v7297_v61, %v7454_v6  ;;  %v7408_v15 = vmax.f32 %v7402_v13, 0.0  ;;  %v7480_v54 = vmax.f32 %v7478_v43, %v7479_v49 }
 0x472   : > { %v7546_v17 = vsel %vm7531_vm13, %v7544_v31, %v7311_v48  ;;  %v7520_v19 = vrot.slane %v7519_v25, 1  ;;  %v7492_v46 = vsel %vm12182_vm8, %v11944_v34, -inf  ;;  %v7356_v29 = vmax.f32 %v11914_v39, %v7355_v26 }
 0x473   : > { %v7548_v9 = vsel %vm7249_vm2, %v7546_v17, %v7468_v44  ;;  %v7493_v58 = vsel %vm629_vm10, %v7408_v15, -inf  ;;  %v7508_v18 = vsel %vm12183_vm5, %v7408_v15, -inf  ;;  %v7522_v50 = vsel %vm12184_vm9, %v7408_v15, -inf }
 0x474   : > { %v7551_v20 = vcombine.low %v7547_v60, %v7548_v9  ;;  %v7521_v41 = vmax.f32 %v7519_v25, %v7520_v19  ;;  %v7494_v45 = vmax.f32 %v7492_v46, %v7493_v58  ;;  %v7509_v0 = vrot.slane %v7508_v18, 4 }
 0x475   : > { %v7523_v35 = vrot.slane %v7522_v50, 4  ;;  %v7481_v56 = vrot.slane %v7480_v54, 1  ;;  %v7342_v5 = vmax.f32 %v11911_v3, %v7341_v14  ;;  %v7370_v11 = vmax.f32 %v7368_v10, %v7369_v27 }
 0x476   : > { %8313 = vst.msk [vmem:[%s11966_s8 + $0x8] sm:$0xff] %vm11971_vm1, %v7551_v20  ;;  %v7571_v34 = vsel %vm7249_vm2, %v7569_v63, %v7521_v41  ;;  %v7495_v8 = vrot.slane %v7494_v45, 4  ;;  %v7510_v32 = vmax.f32 %v7508_v18, %v7509_v0  ;;  %v7325_v60 = vrot.slane %v11884_v33, 1 }
 0x477   : > { %v7524_v57 = vmax.f32 %v7522_v50, %v7523_v35  ;;  %v7357_v7 = vrot.slane %v7356_v29, 1  ;;  %v7482_v39 = vmax.f32 %v7480_v54, %v7481_v56  ;;  %v7343_v43 = vrot.slane %v7342_v5, 1 }
 0x478   : > { %v7496_v21 = vmax.f32 %v7494_v45, %v7495_v8  ;;  %v7511_v55 = vrot.slane %v7510_v32, 2  ;;  %v7371_v16 = vrot.slane %v7370_v11, 1  ;;  %v7326_v52 = vmax.f32 %v11884_v33, %v7325_v60 }
 0x479   : > { %v7525_v28 = vrot.slane %v7524_v57, 2  ;;  %v7358_v3 = vmax.f32 %v7356_v29, %v7357_v7  ;;  %v7344_v38 = vmax.f32 %v7342_v5, %v7343_v43 }
 0x47a   : > { %v7497_v59 = vrot.slane %v7496_v21, 2  ;;  %v7512_v37 = vmax.f32 %v7510_v32, %v7511_v55  ;;  %v7556_v10 = vsel %vm373_vm7, %v7326_v52, %v7482_v39  ;;  %v7372_v12 = vmax.f32 %v7370_v11, %v7371_v16 }
 0x47b   : > { %v7526_v23 = vmax.f32 %v7524_v57, %v7525_v28  ;;  %v7558_v36 = vsel %vm7531_vm13, %v7556_v10, %v7344_v38 }
 0x47c   : > { %v7498_v22 = vmax.f32 %v7496_v21, %v7497_v59  ;;  %v7513_v24 = vrot.slane %v7512_v37, 1 }
 0x47d   : > { %v7527_v42 = vrot.slane %v7526_v23, 1 }
 0x47e   : > { %v7499_v40 = vrot.slane %v7498_v22, 1  ;;  %v7514_v1 = vmax.f32 %v7512_v37, %v7513_v24 }
 0x47f   : > { %v7528_v47 = vmax.f32 %v7526_v23, %v7527_v42 }
 0x480   : > { %v7500_v2 = vmax.f32 %v7498_v22, %v7499_v40  ;;  %v7568_v53 = vsel %vm373_vm7, %v7358_v3, %v7514_v1 }
 0x481   : > { %v7570_v33 = vsel %vm7531_vm13, %v7568_v53, %v7372_v12 }
 0x482   : > { %v7560_v61 = vsel %vm7249_vm2, %v7558_v36, %v7500_v2  ;;  %v7572_v49 = vsel %vm7249_vm2, %v7570_v33, %v7528_v47 }
 0x483   : > { %v7563_v51 = vcombine.low %v11998_v62, %v7560_v61  ;;  %v7575_v30 = vcombine.low %v7571_v34, %v7572_v49 }
 0x485   : > { %8314 = vst.msk [vmem:[%s11966_s8 + $0x10] sm:$0xff] %vm11971_vm1, %v7563_v51  ;;  %8315 = vst.msk [vmem:[%s11966_s8 + $0x18] sm:$0xff] %vm11971_vm1, %v7575_v30 }
 0x486 PF: > { %s13_s12 = sadd.s32 1, %s8731_s12  }
 0x487   : > { %p10_p4 = scmp.ge.s32.totalorder %s13_s12, 4  }
 0x489   :  { %12 = sbr.rel (!%p10_p4) target bundleno = 1 (0x1), region = 72 }

</bundles_post_ra>
